<compile_context>
chip_gen: v7x
topology: tpu7x:2x2x1
jax: 0.10.0
libtpu: 0.0.40
codegen_flags: <defaults>
</compile_context>

<pallas_src>
import jax
import jax.numpy as jnp
from jax.experimental import pallas as pl
from jax.experimental.pallas import tpu as pltpu

BN_EPS = 1e-3
LANE = 128
MIN_TM = 16                       # bf16 packs 2 rows/sublane -> 16-row granularity
TM_MAX = 1024                     # big M tiles amortize per-step pipeline overhead
VMEM_LIMIT = 48 * 1024 * 1024     # explicit scoped-VMEM budget (fits v5e/v6e/v7x)


def _round_up(x, m):
    return (x + m - 1) // m * m


def _pick_tm(m):
    """Pick (tm, grid) so tiles are 16-row aligned, grid >= 2 when possible
    (v7x megacore), and padded waste stays well under one tile."""
    blocks = pl.cdiv(m, TM_MAX)
    if m >= 2 * MIN_TM:
        blocks = max(blocks, 2)
    tm = _round_up(pl.cdiv(m, blocks), MIN_TM)
    return tm, pl.cdiv(m, tm)


# ----------------------------- Pallas kernels ------------------------------ #

def _matmul_bn_relu_kernel(p_ref, w_ref, scale_ref, bias_ref, o_ref):
    # p_ref:     (TM, Kp)      im2col rows for this tile (bf16 or f32)
    # w_ref:     (Kp, Cout)    bf16 reshaped weights (K zero-padded to 128)
    # scale_ref: (1, Cout)     f32 folded BN scale  (gamma / sqrt(var+eps))
    # bias_ref:  (1, Cout)     f32 folded BN bias   (beta - mean*scale)
    # o_ref:     (TM, Cout)    output tile (bf16 intermediates, f32 finals)
    lhs = p_ref[...].astype(jnp.bfloat16)
    acc = jnp.dot(lhs, w_ref[...], preferred_element_type=jnp.float32)
    y = acc * scale_ref[...] + bias_ref[...]
    o_ref[...] = jnp.maximum(y, 0.0).astype(o_ref.dtype)


def _maxpool_kernel(y_ref, o_ref):
    # y_ref: (Hh, 2, Wh, 2C) one image, rows/cols regrouped in even/odd pairs.
    # o_ref: (OH, OW, C)     3x3 / stride-2 VALID max pool of that image.
    oh, ow, c = o_ref.shape
    y = y_ref[...]
    a = y[0:oh, 0]                       # input rows 2r
    b = y[0:oh, 1]                       # input rows 2r+1
    d = y[1:oh + 1, 0]                   # input rows 2r+2
    rmax = jnp.maximum(jnp.maximum(a, b), d)          # (OH, Wh, 2C)
    p0 = rmax[:, 0:ow, 0:c]              # input cols 2s
    p1 = rmax[:, 0:ow, c:2 * c]          # input cols 2s+1
    p2 = rmax[:, 1:ow + 1, 0:c]          # input cols 2s+2
    o_ref[...] = jnp.maximum(jnp.maximum(p0, p1), p2)


# ------------------------------ host-side glue ------------------------------ #

def _im2col(x, kh, kw, stride, ph, pw, cin_range=None):
    """Return (M, K = kh*kw*Cin) slab (K ordered tap_i, tap_j, cin) + geometry.

    For 1x1 stride-1 convs this is a pure (free) reshape.  `cin_range` selects
    a channel sub-range so the split of the fused 1x1 stem costs no extra pass.
    """
    if cin_range is not None:
        x = jax.lax.slice_in_dim(x, cin_range[0], cin_range[1], axis=3)
    if kh == 1 and kw == 1 and stride == 1 and ph == 0 and pw == 0:
        n, h, w, c = x.shape
        return x.reshape(n * h * w, c), (n, h, w)
    if ph or pw:
        x = jnp.pad(x, ((0, 0), (ph, ph), (pw, pw), (0, 0)))
    n, h, w, c = x.shape
    oh = (h - kh) // stride + 1
    ow = (w - kw) // stride + 1
    taps = []
    for i in range(kh):
        for j in range(kw):
            taps.append(jax.lax.slice(
                x, (0, i, j, 0),
                (n, i + stride * (oh - 1) + 1, j + stride * (ow - 1) + 1, c),
                (1, stride, stride, 1)))
    p = taps[0] if len(taps) == 1 else jnp.concatenate(taps, axis=-1)
    return p.reshape(n * oh * ow, kh * kw * c), (n, oh, ow)


def conv_bn_relu(x_nhwc, params, kh, kw, stride, pad, *,
                 cin_range=None, out_dtype=jnp.bfloat16):
    w = params["w"]                                   # (kh, kw, Cin, Cout)
    cin, cout = int(w.shape[2]), int(w.shape[3])
    k = kh * kw * cin

    # Multi-tap convs consume bf16 activations (halves slab HBM bytes); the
    # 1x1 path keeps the activation as-is (free reshape) and casts in-kernel.
    x_in = x_nhwc if (kh == 1 and kw == 1) else x_nhwc.astype(jnp.bfloat16)
    p, (n, oh, ow) = _im2col(x_in, kh, kw, stride, pad[0], pad[1], cin_range)
    m = p.shape[0]

    k_pad = _round_up(k, LANE)
    w2 = w.reshape(k, cout).astype(jnp.bfloat16)
    if k_pad != k:
        p = jnp.pad(p, ((0, 0), (0, k_pad - k)))
        w2 = jnp.pad(w2, ((0, k_pad - k), (0, 0)))
    scale = params["scale"].reshape(1, cout).astype(jnp.float32)
    bias = params["bias"].reshape(1, cout).astype(jnp.float32)

    tm, n_blocks = _pick_tm(m)

    out = pl.pallas_call(
        _matmul_bn_relu_kernel,
        out_shape=jax.ShapeDtypeStruct((m, cout), out_dtype),
        grid=(n_blocks,),
        in_specs=[
            pl.BlockSpec((tm, k_pad), lambda i: (i, 0)),
            pl.BlockSpec((k_pad, cout), lambda i: (0, 0)),   # resident weights
            pl.BlockSpec((1, cout), lambda i: (0, 0)),
            pl.BlockSpec((1, cout), lambda i: (0, 0)),
        ],
        out_specs=pl.BlockSpec((tm, cout), lambda i: (i, 0)),
        compiler_params=pltpu.CompilerParams(
            dimension_semantics=("parallel",),
            vmem_limit_bytes=VMEM_LIMIT),
    )(p, w2, scale, bias)

    return out.reshape(n, oh, ow, cout)


def maxpool_3x3_s2(x_nhwc):
    n, h, w, c = x_nhwc.shape
    oh = (h - 3) // 2 + 1
    ow = (w - 3) // 2 + 1
    he, we = h + (h % 2), w + (w % 2)
    x = x_nhwc
    if (he, we) != (h, w):
        # padded row/col is never touched by any valid pooling window
        x = jnp.pad(x, ((0, 0), (0, he - h), (0, we - w), (0, 0)))
    hh, wh = he // 2, we // 2
    y = x.reshape(n * hh, 2, wh, 2 * c)               # free regroup, no copy

    out = pl.pallas_call(
        _maxpool_kernel,
        out_shape=jax.ShapeDtypeStruct((n * oh, ow, c), x_nhwc.dtype),
        grid=(n,),
        in_specs=[pl.BlockSpec((hh, 2, wh, 2 * c), lambda i: (i, 0, 0, 0))],
        out_specs=pl.BlockSpec((oh, ow, c), lambda i: (i, 0, 0)),
        compiler_params=pltpu.CompilerParams(
            dimension_semantics=("parallel",),
            vmem_limit_bytes=VMEM_LIMIT),
    )(y)
    return out.reshape(n, oh, ow, c)


# ----------------------------- parameter setup ------------------------------ #

def _init_basic_conv(key, cin, cout, kh, kw):
    kconv, kg, kb, km, kv = jax.random.split(key, 5)
    w = jax.random.normal(kconv, (kh, kw, cin, cout), jnp.float32) * 0.05
    gamma = 1.0 + 0.1 * jax.random.normal(kg, (cout,), jnp.float32)
    beta = 0.1 * jax.random.normal(kb, (cout,), jnp.float32)
    mean = 0.1 * jax.random.normal(km, (cout,), jnp.float32)
    var = jnp.abs(jax.random.normal(kv, (cout,), jnp.float32)) + 0.5
    scale = gamma / jnp.sqrt(var + BN_EPS)
    bias = beta - mean * scale
    return {"w": w, "scale": scale, "bias": bias}


def init_inception_block_d(key, in_channels):
    keys = jax.random.split(key, 6)
    return {
        "b3_1": _init_basic_conv(keys[0], in_channels, 192, 1, 1),
        "b3_2": _init_basic_conv(keys[1], 192, 320, 3, 3),
        "b7_1": _init_basic_conv(keys[2], in_channels, 192, 1, 1),
        "b7_2": _init_basic_conv(keys[3], 192, 192, 1, 7),
        "b7_3": _init_basic_conv(keys[4], 192, 192, 7, 1),
        "b7_4": _init_basic_conv(keys[5], 192, 192, 3, 3),
    }


def _fuse_1x1(pa, pb):
    # Concatenate two 1x1 BasicConv2d's along Cout -> one fused matmul.
    return {"w": jnp.concatenate([pa["w"], pb["w"]], axis=3),
            "scale": jnp.concatenate([pa["scale"], pb["scale"]]),
            "bias": jnp.concatenate([pa["bias"], pb["bias"]])}


# ------------------------------- forward pass ------------------------------- #

def inception_block_d(x_nchw, params):
    x = jnp.transpose(x_nchw, (0, 2, 3, 1))          # NCHW -> NHWC

    c3 = int(params["b3_1"]["w"].shape[3])           # 192
    stem_p = _fuse_1x1(params["b3_1"], params["b7_1"])
    # Fused 1x1 stem: reads x once, 384 output channels = 3x128 lanes, bf16.
    stem = conv_bn_relu(x, stem_p, 1, 1, 1, (0, 0), out_dtype=jnp.bfloat16)

    # branch 3x3: channels [0:192) of the stem -> 3x3 stride-2 conv
    b1 = conv_bn_relu(stem, params["b3_2"], 3, 3, 2, (0, 0),
                      cin_range=(0, c3), out_dtype=jnp.float32)

    # branch 7x7x3: channels [192:384) -> 1x7 -> 7x1 -> 3x3 stride-2
    b2 = conv_bn_relu(stem, params["b7_2"], 1, 7, 1, (0, 3),
                      cin_range=(c3, 2 * c3), out_dtype=jnp.bfloat16)
    b2 = conv_bn_relu(b2, params["b7_3"], 7, 1, 1, (3, 0),
                      out_dtype=jnp.bfloat16)
    b2 = conv_bn_relu(b2, params["b7_4"], 3, 3, 2, (0, 0),
                      out_dtype=jnp.float32)

    # pool branch: MaxPool2d(kernel_size=3, stride=2)
    bp = maxpool_3x3_s2(x)

    out = jnp.concatenate([b1, b2, bp], axis=-1)     # channel concat
    return jnp.transpose(out, (0, 3, 1, 2))          # NHWC -> NCHW


# ------------------------------ pure-JAX reference --------------------------- #
# Reference uses the same bf16-operand / f32-accumulate convention as the
# kernels so the comparison isolates the Pallas implementation itself.

def _ref_conv_bn_relu(x_nhwc, p, stride, pad):
    y = jax.lax.conv_general_dilated(
        x_nhwc.astype(jnp.bfloat16), p["w"].astype(jnp.bfloat16),
        (stride, stride), [(pad[0], pad[0]), (pad[1], pad[1])],
        dimension_numbers=("NHWC", "HWIO", "NHWC"),
        preferred_element_type=jnp.float32)
    return jnp.maximum(y * p["scale"] + p["bias"], 0.0)


def _ref_block(x_nchw, params):
    x = jnp.transpose(x_nchw, (0, 2, 3, 1))
    b1 = _ref_conv_bn_relu(x, params["b3_1"], 1, (0, 0))
    b1 = _ref_conv_bn_relu(b1, params["b3_2"], 2, (0, 0))
    b2 = _ref_conv_bn_relu(x, params["b7_1"], 1, (0, 0))
    b2 = _ref_conv_bn_relu(b2, params["b7_2"], 1, (0, 3))
    b2 = _ref_conv_bn_relu(b2, params["b7_3"], 1, (3, 0))
    b2 = _ref_conv_bn_relu(b2, params["b7_4"], 2, (0, 0))
    bp = jax.lax.reduce_window(x, -jnp.inf, jax.lax.max,
                               (1, 3, 3, 1), (1, 2, 2, 1), "VALID")
    out = jnp.concatenate([b1, b2, bp], axis=-1)
    return jnp.transpose(out, (0, 3, 1, 2))


# ---------------------------------- main ------------------------------------ #

if __name__ == "__main__":
    key = jax.random.PRNGKey(0)
    kx, kp = jax.random.split(key)

    in_channels = 4
    x = jax.random.normal(kx, (2, in_channels, 16, 16), jnp.float32)  # NCHW
    params = init_inception_block_d(kp, in_channels)

    out = jax.jit(inception_block_d)(x, params)
    out = jax.block_until_ready(out)

    expected_shape = (2, 320 + 192 + in_channels, 7, 7)
    assert out.shape == expected_shape, (out.shape, expected_shape)

    ref = jax.block_until_ready(_ref_block(x, params))
    assert jnp.allclose(out, ref, atol=2e-2, rtol=2e-2), float(
        jnp.max(jnp.abs(out - ref)))

    print("KERNEL_OK")
</pallas_src>

<mosaic_0001>
module attributes {stable_mosaic.version = 11 : i64} {
  func.func @_maxpool_kernel(%arg0: i32, %arg1: memref<8x2x8x8xf32, #tpu.memory_space<vmem>>, %arg2: memref<7x7x4xf32, #tpu.memory_space<vmem>>) attributes {dimension_semantics = [#tpu.dimension_semantics<parallel>], iteration_bounds = array<i64: 2>, scalar_prefetch = 0 : i64, scratch_operands = 0 : i64, tpu.core_type = #tpu.core_type<tc>, window_params = [{transform_indices = @transform_0, window_bounds = array<i64: 8, 2, 8, 8>}, {transform_indices = @transform_1, window_bounds = array<i64: 7, 7, 4>}]} {
    %c0 = arith.constant 0 : index
    %c0_0 = arith.constant 0 : index
    %c0_1 = arith.constant 0 : index
    %c0_2 = arith.constant 0 : index
    %0 = vector.load %arg1[%c0, %c0_0, %c0_1, %c0_2] : memref<8x2x8x8xf32, #tpu.memory_space<vmem>>, vector<8x2x8x8xf32>
    %1 = vector.extract_strided_slice %0 {offsets = [0, 0, 0, 0], sizes = [7, 1, 8, 8], strides = [1, 1, 1, 1]} : vector<8x2x8x8xf32> to vector<7x1x8x8xf32>
    %2 = vector.shape_cast %1 : vector<7x1x8x8xf32> to vector<7x8x8xf32>
    %3 = vector.extract_strided_slice %0 {offsets = [0, 1, 0, 0], sizes = [7, 1, 8, 8], strides = [1, 1, 1, 1]} : vector<8x2x8x8xf32> to vector<7x1x8x8xf32>
    %4 = vector.shape_cast %3 : vector<7x1x8x8xf32> to vector<7x8x8xf32>
    %5 = vector.extract_strided_slice %0 {offsets = [1, 0, 0, 0], sizes = [7, 1, 8, 8], strides = [1, 1, 1, 1]} : vector<8x2x8x8xf32> to vector<7x1x8x8xf32>
    %6 = vector.shape_cast %5 : vector<7x1x8x8xf32> to vector<7x8x8xf32>
    %7 = arith.maximumf %2, %4 : vector<7x8x8xf32>
    %8 = arith.maximumf %7, %6 : vector<7x8x8xf32>
    %9 = vector.extract_strided_slice %8 {offsets = [0, 0, 0], sizes = [7, 7, 4], strides = [1, 1, 1]} : vector<7x8x8xf32> to vector<7x7x4xf32>
    %10 = vector.extract_strided_slice %8 {offsets = [0, 0, 4], sizes = [7, 7, 4], strides = [1, 1, 1]} : vector<7x8x8xf32> to vector<7x7x4xf32>
    %11 = vector.extract_strided_slice %8 {offsets = [0, 1, 0], sizes = [7, 7, 4], strides = [1, 1, 1]} : vector<7x8x8xf32> to vector<7x7x4xf32>
    %12 = arith.maximumf %9, %10 : vector<7x7x4xf32>
    %13 = arith.maximumf %12, %11 : vector<7x7x4xf32>
    %c0_3 = arith.constant 0 : index
    %c0_4 = arith.constant 0 : index
    %c0_5 = arith.constant 0 : index
    %14 = vector.load %arg2[%c0_3, %c0_4, %c0_5] : memref<7x7x4xf32, #tpu.memory_space<vmem>>, vector<7x7x4xf32>
    tpu.vector_store %arg2[%c0_3, %c0_4, %c0_5], %13 {strides = array<i32>} : memref<7x7x4xf32, #tpu.memory_space<vmem>>, vector<7x7x4xf32>,
    return
  }
  func.func @transform_0(%arg0: i32) -> (i32, i32, i32, i32) {
    %c0_i32 = arith.constant 0 : i32
    %c0_i32_0 = arith.constant 0 : i32
    %c0_i32_1 = arith.constant 0 : i32
    %c0_i32_2 = arith.constant 0 : i32
    return %arg0, %c0_i32, %c0_i32_0, %c0_i32_1 : i32, i32, i32, i32
  }
  func.func @transform_1(%arg0: i32) -> (i32, i32, i32) {
    %c0_i32 = arith.constant 0 : i32
    %c0_i32_0 = arith.constant 0 : i32
    %c0_i32_1 = arith.constant 0 : i32
    return %arg0, %c0_i32, %c0_i32_0 : i32, i32, i32
  }
}

module attributes {stable_mosaic.version = 11 : i64} {
  func.func @_matmul_bn_relu_kernel(%arg0: i32, %arg1: memref<256x128xf32, #tpu.memory_space<vmem>>, %arg2: memref<128x384xbf16, #tpu.memory_space<vmem>>, %arg3: memref<1x384xf32, #tpu.memory_space<vmem>>, %arg4: memref<1x384xf32, #tpu.memory_space<vmem>>, %arg5: memref<256x384xbf16, #tpu.memory_space<vmem>>) attributes {dimension_semantics = [#tpu.dimension_semantics<parallel>], iteration_bounds = array<i64: 2>, scalar_prefetch = 0 : i64, scratch_operands = 0 : i64, tpu.core_type = #tpu.core_type<tc>, window_params = [{transform_indices = @transform_0, window_bounds = array<i64: 256, 128>}, {pipeline_mode = #tpu.pipeline_mode<synchronous>, transform_indices = @transform_1, window_bounds = array<i64: 128, 384>}, {pipeline_mode = #tpu.pipeline_mode<synchronous>, transform_indices = @transform_2, window_bounds = array<i64: 1, 384>}, {pipeline_mode = #tpu.pipeline_mode<synchronous>, transform_indices = @transform_3, window_bounds = array<i64: 1, 384>}, {transform_indices = @transform_4, window_bounds = array<i64: 256, 384>}]} {
    %c0 = arith.constant 0 : index
    %c0_0 = arith.constant 0 : index
    %0 = vector.load %arg1[%c0, %c0_0] : memref<256x128xf32, #tpu.memory_space<vmem>>, vector<256x128xf32>
    %1 = arith.truncf %0 : vector<256x128xf32> to vector<256x128xbf16>
    %c0_1 = arith.constant 0 : index
    %c0_2 = arith.constant 0 : index
    %2 = vector.load %arg2[%c0_1, %c0_2] : memref<128x384xbf16, #tpu.memory_space<vmem>>, vector<128x384xbf16>
    %cst = arith.constant dense<0.000000e+00> : vector<256x384xf32>
    %3 = tpu.matmul %1, %2, %cst {dimension_numbers = #tpu.dot_dimension_numbers<[1], [0], [0], [1], [0, 0, 1, 1], [], []>} : vector<256x128xbf16>, vector<128x384xbf16>, vector<256x384xf32> -> vector<256x384xf32>
    %c0_3 = arith.constant 0 : index
    %c0_4 = arith.constant 0 : index
    %4 = vector.load %arg3[%c0_3, %c0_4] : memref<1x384xf32, #tpu.memory_space<vmem>>, vector<1x384xf32>
    %5 = vector.broadcast %4 : vector<1x384xf32> to vector<256x384xf32>
    %6 = arith.mulf %3, %5 : vector<256x384xf32>
    %c0_5 = arith.constant 0 : index
    %c0_6 = arith.constant 0 : index
    %7 = vector.load %arg4[%c0_5, %c0_6] : memref<1x384xf32, #tpu.memory_space<vmem>>, vector<1x384xf32>
    %8 = vector.broadcast %7 : vector<1x384xf32> to vector<256x384xf32>
    %9 = arith.addf %6, %8 : vector<256x384xf32>
    %cst_7 = arith.constant 0.000000e+00 : f32
    %10 = vector.broadcast %cst_7 : f32 to vector<256x384xf32>
    %11 = arith.maximumf %9, %10 : vector<256x384xf32>
    %12 = arith.truncf %11 : vector<256x384xf32> to vector<256x384xbf16>
    %c0_8 = arith.constant 0 : index
    %c0_9 = arith.constant 0 : index
    %13 = vector.load %arg5[%c0_8, %c0_9] : memref<256x384xbf16, #tpu.memory_space<vmem>>, vector<256x384xbf16>
    tpu.vector_store %arg5[%c0_8, %c0_9], %12 {strides = array<i32>} : memref<256x384xbf16, #tpu.memory_space<vmem>>, vector<256x384xbf16>,
    return
  }
  func.func @transform_0(%arg0: i32) -> (i32, i32) {
    %c0_i32 = arith.constant 0 : i32
    %c0_i32_0 = arith.constant 0 : i32
    return %arg0, %c0_i32 : i32, i32
  }
  func.func @transform_1(%arg0: i32) -> (i32, i32) {
    %c0_i32 = arith.constant 0 : i32
    %c0_i32_0 = arith.constant 0 : i32
    %c0_i32_1 = arith.constant 0 : i32
    return %c0_i32, %c0_i32_0 : i32, i32
  }
  func.func @transform_2(%arg0: i32) -> (i32, i32) {
    %c0_i32 = arith.constant 0 : i32
    %c0_i32_0 = arith.constant 0 : i32
    %c0_i32_1 = arith.constant 0 : i32
    return %c0_i32, %c0_i32_0 : i32, i32
  }
  func.func @transform_3(%arg0: i32) -> (i32, i32) {
    %c0_i32 = arith.constant 0 : i32
    %c0_i32_0 = arith.constant 0 : i32
    %c0_i32_1 = arith.constant 0 : i32
    return %c0_i32, %c0_i32_0 : i32, i32
  }
  func.func @transform_4(%arg0: i32) -> (i32, i32) {
    %c0_i32 = arith.constant 0 : i32
    %c0_i32_0 = arith.constant 0 : i32
    return %arg0, %c0_i32 : i32, i32
  }
}

module attributes {stable_mosaic.version = 11 : i64} {
  func.func @_matmul_bn_relu_kernel(%arg0: i32, %arg1: memref<256x1408xbf16, #tpu.memory_space<vmem>>, %arg2: memref<1408x192xbf16, #tpu.memory_space<vmem>>, %arg3: memref<1x192xf32, #tpu.memory_space<vmem>>, %arg4: memref<1x192xf32, #tpu.memory_space<vmem>>, %arg5: memref<256x192xbf16, #tpu.memory_space<vmem>>) attributes {dimension_semantics = [#tpu.dimension_semantics<parallel>], iteration_bounds = array<i64: 2>, scalar_prefetch = 0 : i64, scratch_operands = 0 : i64, tpu.core_type = #tpu.core_type<tc>, window_params = [{transform_indices = @transform_0, window_bounds = array<i64: 256, 1408>}, {pipeline_mode = #tpu.pipeline_mode<synchronous>, transform_indices = @transform_1, window_bounds = array<i64: 1408, 192>}, {pipeline_mode = #tpu.pipeline_mode<synchronous>, transform_indices = @transform_2, window_bounds = array<i64: 1, 192>}, {pipeline_mode = #tpu.pipeline_mode<synchronous>, transform_indices = @transform_3, window_bounds = array<i64: 1, 192>}, {transform_indices = @transform_4, window_bounds = array<i64: 256, 192>}]} {
    %c0 = arith.constant 0 : index
    %c0_0 = arith.constant 0 : index
    %0 = vector.load %arg1[%c0, %c0_0] : memref<256x1408xbf16, #tpu.memory_space<vmem>>, vector<256x1408xbf16>
    %c0_1 = arith.constant 0 : index
    %c0_2 = arith.constant 0 : index
    %1 = vector.load %arg2[%c0_1, %c0_2] : memref<1408x192xbf16, #tpu.memory_space<vmem>>, vector<1408x192xbf16>
    %cst = arith.constant dense<0.000000e+00> : vector<256x192xf32>
    %2 = tpu.matmul %0, %1, %cst {dimension_numbers = #tpu.dot_dimension_numbers<[1], [0], [0], [1], [0, 0, 1, 1], [], []>} : vector<256x1408xbf16>, vector<1408x192xbf16>, vector<256x192xf32> -> vector<256x192xf32>
    %c0_3 = arith.constant 0 : index
    %c0_4 = arith.constant 0 : index
    %3 = vector.load %arg3[%c0_3, %c0_4] : memref<1x192xf32, #tpu.memory_space<vmem>>, vector<1x192xf32>
    %4 = vector.broadcast %3 : vector<1x192xf32> to vector<256x192xf32>
    %5 = arith.mulf %2, %4 : vector<256x192xf32>
    %c0_5 = arith.constant 0 : index
    %c0_6 = arith.constant 0 : index
    %6 = vector.load %arg4[%c0_5, %c0_6] : memref<1x192xf32, #tpu.memory_space<vmem>>, vector<1x192xf32>
    %7 = vector.broadcast %6 : vector<1x192xf32> to vector<256x192xf32>
    %8 = arith.addf %5, %7 : vector<256x192xf32>
    %cst_7 = arith.constant 0.000000e+00 : f32
    %9 = vector.broadcast %cst_7 : f32 to vector<256x192xf32>
    %10 = arith.maximumf %8, %9 : vector<256x192xf32>
    %11 = arith.truncf %10 : vector<256x192xf32> to vector<256x192xbf16>
    %c0_8 = arith.constant 0 : index
    %c0_9 = arith.constant 0 : index
    %12 = vector.load %arg5[%c0_8, %c0_9] : memref<256x192xbf16, #tpu.memory_space<vmem>>, vector<256x192xbf16>
    tpu.vector_store %arg5[%c0_8, %c0_9], %11 {strides = array<i32>} : memref<256x192xbf16, #tpu.memory_space<vmem>>, vector<256x192xbf16>,
    return
  }
  func.func @transform_0(%arg0: i32) -> (i32, i32) {
    %c0_i32 = arith.constant 0 : i32
    %c0_i32_0 = arith.constant 0 : i32
    return %arg0, %c0_i32 : i32, i32
  }
  func.func @transform_1(%arg0: i32) -> (i32, i32) {
    %c0_i32 = arith.constant 0 : i32
    %c0_i32_0 = arith.constant 0 : i32
    %c0_i32_1 = arith.constant 0 : i32
    return %c0_i32, %c0_i32_0 : i32, i32
  }
  func.func @transform_2(%arg0: i32) -> (i32, i32) {
    %c0_i32 = arith.constant 0 : i32
    %c0_i32_0 = arith.constant 0 : i32
    %c0_i32_1 = arith.constant 0 : i32
    return %c0_i32, %c0_i32_0 : i32, i32
  }
  func.func @transform_3(%arg0: i32) -> (i32, i32) {
    %c0_i32 = arith.constant 0 : i32
    %c0_i32_0 = arith.constant 0 : i32
    %c0_i32_1 = arith.constant 0 : i32
    return %c0_i32, %c0_i32_0 : i32, i32
  }
  func.func @transform_4(%arg0: i32) -> (i32, i32) {
    %c0_i32 = arith.constant 0 : i32
    %c0_i32_0 = arith.constant 0 : i32
    return %arg0, %c0_i32 : i32, i32
  }
}

module attributes {stable_mosaic.version = 11 : i64} {
  func.func @_matmul_bn_relu_kernel(%arg0: i32, %arg1: memref<64x1792xbf16, #tpu.memory_space<vmem>>, %arg2: memref<1792x192xbf16, #tpu.memory_space<vmem>>, %arg3: memref<1x192xf32, #tpu.memory_space<vmem>>, %arg4: memref<1x192xf32, #tpu.memory_space<vmem>>, %arg5: memref<64x192xf32, #tpu.memory_space<vmem>>) attributes {dimension_semantics = [#tpu.dimension_semantics<parallel>], iteration_bounds = array<i64: 2>, scalar_prefetch = 0 : i64, scratch_operands = 0 : i64, tpu.core_type = #tpu.core_type<tc>, window_params = [{transform_indices = @transform_0, window_bounds = array<i64: 64, 1792>}, {pipeline_mode = #tpu.pipeline_mode<synchronous>, transform_indices = @transform_1, window_bounds = array<i64: 1792, 192>}, {pipeline_mode = #tpu.pipeline_mode<synchronous>, transform_indices = @transform_2, window_bounds = array<i64: 1, 192>}, {pipeline_mode = #tpu.pipeline_mode<synchronous>, transform_indices = @transform_3, window_bounds = array<i64: 1, 192>}, {transform_indices = @transform_4, window_bounds = array<i64: 64, 192>}]} {
    %c0 = arith.constant 0 : index
    %c0_0 = arith.constant 0 : index
    %0 = vector.load %arg1[%c0, %c0_0] : memref<64x1792xbf16, #tpu.memory_space<vmem>>, vector<64x1792xbf16>
    %c0_1 = arith.constant 0 : index
    %c0_2 = arith.constant 0 : index
    %1 = vector.load %arg2[%c0_1, %c0_2] : memref<1792x192xbf16, #tpu.memory_space<vmem>>, vector<1792x192xbf16>
    %cst = arith.constant dense<0.000000e+00> : vector<64x192xf32>
    %2 = tpu.matmul %0, %1, %cst {dimension_numbers = #tpu.dot_dimension_numbers<[1], [0], [0], [1], [0, 0, 1, 1], [], []>} : vector<64x1792xbf16>, vector<1792x192xbf16>, vector<64x192xf32> -> vector<64x192xf32>
    %c0_3 = arith.constant 0 : index
    %c0_4 = arith.constant 0 : index
    %3 = vector.load %arg3[%c0_3, %c0_4] : memref<1x192xf32, #tpu.memory_space<vmem>>, vector<1x192xf32>
    %4 = vector.broadcast %3 : vector<1x192xf32> to vector<64x192xf32>
    %5 = arith.mulf %2, %4 : vector<64x192xf32>
    %c0_5 = arith.constant 0 : index
    %c0_6 = arith.constant 0 : index
    %6 = vector.load %arg4[%c0_5, %c0_6] : memref<1x192xf32, #tpu.memory_space<vmem>>, vector<1x192xf32>
    %7 = vector.broadcast %6 : vector<1x192xf32> to vector<64x192xf32>
    %8 = arith.addf %5, %7 : vector<64x192xf32>
    %cst_7 = arith.constant 0.000000e+00 : f32
    %9 = vector.broadcast %cst_7 : f32 to vector<64x192xf32>
    %10 = arith.maximumf %8, %9 : vector<64x192xf32>
    %c0_8 = arith.constant 0 : index
    %c0_9 = arith.constant 0 : index
    %11 = vector.load %arg5[%c0_8, %c0_9] : memref<64x192xf32, #tpu.memory_space<vmem>>, vector<64x192xf32>
    tpu.vector_store %arg5[%c0_8, %c0_9], %10 {strides = array<i32>} : memref<64x192xf32, #tpu.memory_space<vmem>>, vector<64x192xf32>,
    return
  }
  func.func @transform_0(%arg0: i32) -> (i32, i32) {
    %c0_i32 = arith.constant 0 : i32
    %c0_i32_0 = arith.constant 0 : i32
    return %arg0, %c0_i32 : i32, i32
  }
  func.func @transform_1(%arg0: i32) -> (i32, i32) {
    %c0_i32 = arith.constant 0 : i32
    %c0_i32_0 = arith.constant 0 : i32
    %c0_i32_1 = arith.constant 0 : i32
    return %c0_i32, %c0_i32_0 : i32, i32
  }
  func.func @transform_2(%arg0: i32) -> (i32, i32) {
    %c0_i32 = arith.constant 0 : i32
    %c0_i32_0 = arith.constant 0 : i32
    %c0_i32_1 = arith.constant 0 : i32
    return %c0_i32, %c0_i32_0 : i32, i32
  }
  func.func @transform_3(%arg0: i32) -> (i32, i32) {
    %c0_i32 = arith.constant 0 : i32
    %c0_i32_0 = arith.constant 0 : i32
    %c0_i32_1 = arith.constant 0 : i32
    return %c0_i32, %c0_i32_0 : i32, i32
  }
  func.func @transform_4(%arg0: i32) -> (i32, i32) {
    %c0_i32 = arith.constant 0 : i32
    %c0_i32_0 = arith.constant 0 : i32
    return %arg0, %c0_i32 : i32, i32
  }
}

module attributes {stable_mosaic.version = 11 : i64} {
  func.func @_matmul_bn_relu_kernel(%arg0: i32, %arg1: memref<64x1792xbf16, #tpu.memory_space<vmem>>, %arg2: memref<1792x320xbf16, #tpu.memory_space<vmem>>, %arg3: memref<1x320xf32, #tpu.memory_space<vmem>>, %arg4: memref<1x320xf32, #tpu.memory_space<vmem>>, %arg5: memref<64x320xf32, #tpu.memory_space<vmem>>) attributes {dimension_semantics = [#tpu.dimension_semantics<parallel>], iteration_bounds = array<i64: 2>, scalar_prefetch = 0 : i64, scratch_operands = 0 : i64, tpu.core_type = #tpu.core_type<tc>, window_params = [{transform_indices = @transform_0, window_bounds = array<i64: 64, 1792>}, {pipeline_mode = #tpu.pipeline_mode<synchronous>, transform_indices = @transform_1, window_bounds = array<i64: 1792, 320>}, {pipeline_mode = #tpu.pipeline_mode<synchronous>, transform_indices = @transform_2, window_bounds = array<i64: 1, 320>}, {pipeline_mode = #tpu.pipeline_mode<synchronous>, transform_indices = @transform_3, window_bounds = array<i64: 1, 320>}, {transform_indices = @transform_4, window_bounds = array<i64: 64, 320>}]} {
    %c0 = arith.constant 0 : index
    %c0_0 = arith.constant 0 : index
    %0 = vector.load %arg1[%c0, %c0_0] : memref<64x1792xbf16, #tpu.memory_space<vmem>>, vector<64x1792xbf16>
    %c0_1 = arith.constant 0 : index
    %c0_2 = arith.constant 0 : index
    %1 = vector.load %arg2[%c0_1, %c0_2] : memref<1792x320xbf16, #tpu.memory_space<vmem>>, vector<1792x320xbf16>
    %cst = arith.constant dense<0.000000e+00> : vector<64x320xf32>
    %2 = tpu.matmul %0, %1, %cst {dimension_numbers = #tpu.dot_dimension_numbers<[1], [0], [0], [1], [0, 0, 1, 1], [], []>} : vector<64x1792xbf16>, vector<1792x320xbf16>, vector<64x320xf32> -> vector<64x320xf32>
    %c0_3 = arith.constant 0 : index
    %c0_4 = arith.constant 0 : index
    %3 = vector.load %arg3[%c0_3, %c0_4] : memref<1x320xf32, #tpu.memory_space<vmem>>, vector<1x320xf32>
    %4 = vector.broadcast %3 : vector<1x320xf32> to vector<64x320xf32>
    %5 = arith.mulf %2, %4 : vector<64x320xf32>
    %c0_5 = arith.constant 0 : index
    %c0_6 = arith.constant 0 : index
    %6 = vector.load %arg4[%c0_5, %c0_6] : memref<1x320xf32, #tpu.memory_space<vmem>>, vector<1x320xf32>
    %7 = vector.broadcast %6 : vector<1x320xf32> to vector<64x320xf32>
    %8 = arith.addf %5, %7 : vector<64x320xf32>
    %cst_7 = arith.constant 0.000000e+00 : f32
    %9 = vector.broadcast %cst_7 : f32 to vector<64x320xf32>
    %10 = arith.maximumf %8, %9 : vector<64x320xf32>
    %c0_8 = arith.constant 0 : index
    %c0_9 = arith.constant 0 : index
    %11 = vector.load %arg5[%c0_8, %c0_9] : memref<64x320xf32, #tpu.memory_space<vmem>>, vector<64x320xf32>
    tpu.vector_store %arg5[%c0_8, %c0_9], %10 {strides = array<i32>} : memref<64x320xf32, #tpu.memory_space<vmem>>, vector<64x320xf32>,
    return
  }
  func.func @transform_0(%arg0: i32) -> (i32, i32) {
    %c0_i32 = arith.constant 0 : i32
    %c0_i32_0 = arith.constant 0 : i32
    return %arg0, %c0_i32 : i32, i32
  }
  func.func @transform_1(%arg0: i32) -> (i32, i32) {
    %c0_i32 = arith.constant 0 : i32
    %c0_i32_0 = arith.constant 0 : i32
    %c0_i32_1 = arith.constant 0 : i32
    return %c0_i32, %c0_i32_0 : i32, i32
  }
  func.func @transform_2(%arg0: i32) -> (i32, i32) {
    %c0_i32 = arith.constant 0 : i32
    %c0_i32_0 = arith.constant 0 : i32
    %c0_i32_1 = arith.constant 0 : i32
    return %c0_i32, %c0_i32_0 : i32, i32
  }
  func.func @transform_3(%arg0: i32) -> (i32, i32) {
    %c0_i32 = arith.constant 0 : i32
    %c0_i32_0 = arith.constant 0 : i32
    %c0_i32_1 = arith.constant 0 : i32
    return %c0_i32, %c0_i32_0 : i32, i32
  }
  func.func @transform_4(%arg0: i32) -> (i32, i32) {
    %c0_i32 = arith.constant 0 : i32
    %c0_i32_0 = arith.constant 0 : i32
    return %arg0, %c0_i32 : i32, i32
  }
}

</mosaic_0001>

<bundles_post_ra>
// kernel: inception_block_d.11
= control target key start
LH: loop header
LB: loop body
LE: loop exit
PB: predicated region body
PF: predicated region fallthrough
CT: control target
= control target key end

     0   :  { %s312_s6 = smov 0   ;;  %s366_s0 = inlined_call_operand.vmem [shape: f32[16,2,8,8], index: 0, kind: input, shape index: {}]   ;;  %s367_s1 = inlined_call_operand.vmem [shape: f32[14,7,4], index: 1, kind: output, shape index: {}]  }
   0x1 LB: > { %s272_s7 = sadd.s32 4294967295, %s299_s6   ;;  %p276_p0 = scmp.ge.s32.totalorder %s299_s6, 1  ;;  %s299_s6 = sphi %s312_s6, %s11_s6  }
   0x2   : > { %p89_p1 = scmp.lt.s32.totalorder %s299_s6, 3 }
   0x4   : > { %p90_p2 = pnand %p276_p0, %p89_p1 }
   0x5   : > { %s277_s8 = sshll.u32 (!%p90_p2), %s272_s7, 3  ;;  %s301_s13 = smov (!%p90_p2), 124   ;;  %vm208_vm0 = vcmask (!%p90_p2), 30720  }
   0x6   : > { %93 = sbr.rel (%p90_p2) target bundleno = 153 (0x99), region = 24  ;;  %p111_p3 = scmp.lt.s32.totalorder (!%p90_p2), %s277_s8, 15 }
   0x7   : > { %s117_s14 = smul.u32 (!%p90_p2), 7, %s272_s7 }
   0x9   : > { %p118_p4 = scmp.lt.s32.totalorder (!%p90_p2), %s117_s14, 13 }
   0xd   : > { %s369_s8 = smov (!%p111_p3, %s277_s8), 15  ;;  %s371_s14 = smov (!%p118_p4, %s117_s14), 13 }
   0xe   : > { %s283_s9 = sshll.u32 %s369_s8, 4  ;;  %s280_s15 = sshll.u32 %s371_s14, 3 }
   0xf   : > { %s325_s12 = scalar_lea.vmem %s366_s0, %s283_s9  ;;  %s347_s18 = scalar_lea.vmem %s367_s1, %s280_s15 }
  0x10   : > { %v123_v0 = vld [vmem:[%s325_s12] sm:$0xff]  ;;  %v124_v1 = vld [vmem:[%s325_s12 + $0x8] sm:$0xff]  ;;  %v125_v2 = vld [vmem:[%s325_s12 + $0x10] sm:$0xff] }
  0x11   : > { %v138_v3 = vmax.f32 %v123_v0, %v124_v1  ;;  %v127_v4 = vld [vmem:[%s325_s12 + $0x20] sm:$0xff]  ;;  %v128_v5 = vld [vmem:[%s325_s12 + $0x28] sm:$0xff]  ;;  %v129_v6 = vld [vmem:[%s325_s12 + $0x30] sm:$0xff] }
  0x12   : > { %v140_v7 = vmax.f32 %v127_v4, %v128_v5  ;;  %v126_v8 = vld [vmem:[%s325_s12 + $0x18] sm:$0xff]  ;;  %v131_v10 = vld [vmem:[%s325_s12 + $0x40] sm:$0xff]  ;;  %v132_v14 = vld [vmem:[%s325_s12 + $0x48] sm:$0xff] }
  0x13   : > { %v130_v9 = vld [vmem:[%s325_s12 + $0x38] sm:$0xff]  ;;  %v145_v11 = vmax.f32 %v138_v3, %v125_v2  ;;  %v139_v12 = vmax.f32 %v125_v2, %v126_v8  ;;  %v133_v18 = vld [vmem:[%s325_s12 + $0x50] sm:$0xff]  ;;  %v142_v19 = vmax.f32 %v131_v10, %v132_v14  ;;  %v135_v21 = vld [vmem:[%s325_s12 + $0x60] sm:$0xff] }
  0x14   : > { %v141_v13 = vmax.f32 %v129_v6, %v130_v9  ;;  %v134_v15 = vld [vmem:[%s325_s12 + $0x58] sm:$0xff]  ;;  %v147_v16 = vmax.f32 %v140_v7, %v129_v6  ;;  %v136_v23 = vld [vmem:[%s325_s12 + $0x68] sm:$0xff]  ;;  %v137_v27 = vld [vmem:[%s325_s12 + $0x70] sm:$0xff] }
  0x15   : > { %159 = vrot.lane.b32.xlu0 %v145_v11, %s301_s13  ;;  %v146_v17 = vmax.f32 %v139_v12, %v127_v4  ;;  %v143_v22 = vmax.f32 %v133_v18, %v134_v15  ;;  %v149_v24 = vmax.f32 %v142_v19, %v133_v18  ;;  %v144_v25 = vmax.f32 %v135_v21, %v136_v23 }
  0x16   : > { %163 = vrot.lane.b32.xlu1 %v147_v16, %s301_s13  ;;  %v148_v20 = vmax.f32 %v141_v13, %v131_v10  ;;  %v187_v29 = vrot.slane %v145_v11, 1  ;;  %v189_v31 = vrot.slane %v147_v16, 1 }
  0x17   : > { %v150_v26 = vmax.f32 %v143_v22, %v135_v21  ;;  %v151_v28 = vmax.f32 %v144_v25, %v137_v27  ;;  %v188_v36 = vrot.slane %v146_v17, 1  ;;  %v191_v44 = vrot.slane %v149_v24, 1 }
  0x18   : > { %v190_v39 = vrot.slane %v148_v20, 1 }
  0x19   : > { %161 = vrot.lane.b32.xlu0 %v146_v17, %s301_s13  ;;  %v192_v47 = vrot.slane %v150_v26, 1  ;;  %v193_v52 = vrot.slane %v151_v28, 1 }
  0x1a   : > { %165 = vrot.lane.b32.xlu1 %v148_v20, %s301_s13 }
  0x1d   : > { %167 = vrot.lane.b32.xlu0 %v149_v24, %s301_s13 }
  0x1e   : > { %169 = vrot.lane.b32.xlu1 %v150_v26, %s301_s13 }
  0x21   : > { %171 = vrot.lane.b32.xlu0 %v151_v28, %s301_s13 }
  0x87   : > { %v160_v30 = vpop.permute.xlu0 %159 }
  0x88   : > { %v180_v32 = vmax.f32 %v145_v11, %v160_v30  ;;  %v164_v33 = vpop.permute.xlu1 %163 }
  0x89   : > { %v182_v34 = vmax.f32 %v147_v16, %v164_v33 }
  0x8a   : > { %v201_v35 = vmax.f32 %v180_v32, %v187_v29 }
  0x8b   : > { %v203_v37 = vmax.f32 %v182_v34, %v189_v31  ;;  %v162_v38 = vpop.permute.xlu0 %161 }
  0x8c   : > { %209 = vst.msk [vmem:[%s347_s18] sm:$0x7f] %vm208_vm0, %v201_v35  ;;  %v181_v40 = vmax.f32 %v146_v17, %v162_v38  ;;  %v166_v41 = vpop.permute.xlu1 %165 }
  0x8d   : > { %211 = vst.msk [vmem:[%s347_s18 + $0x10] sm:$0x7f] %vm208_vm0, %v203_v37  ;;  %v183_v42 = vmax.f32 %v148_v20, %v166_v41 }
  0x8e   : > { %v202_v43 = vmax.f32 %v181_v40, %v188_v36 }
  0x8f   : > { %v204_v45 = vmax.f32 %v183_v42, %v190_v39  ;;  %v168_v46 = vpop.permute.xlu0 %167 }
  0x90   : > { %210 = vst.msk [vmem:[%s347_s18 + $0x8] sm:$0x7f] %vm208_vm0, %v202_v43  ;;  %v184_v48 = vmax.f32 %v149_v24, %v168_v46  ;;  %v170_v49 = vpop.permute.xlu1 %169 }
  0x91   : > { %212 = vst.msk [vmem:[%s347_s18 + $0x18] sm:$0x7f] %vm208_vm0, %v204_v45  ;;  %v185_v50 = vmax.f32 %v150_v26, %v170_v49 }
  0x92   : > { %v205_v51 = vmax.f32 %v184_v48, %v191_v44 }
  0x93   : > { %v206_v53 = vmax.f32 %v185_v50, %v192_v47  ;;  %v172_v54 = vpop.permute.xlu0 %171 }
  0x94   : > { %213 = vst.msk [vmem:[%s347_s18 + $0x20] sm:$0x7f] %vm208_vm0, %v205_v51  ;;  %v186_v55 = vmax.f32 %v151_v28, %v172_v54 }
  0x95   : > { %214 = vst.msk [vmem:[%s347_s18 + $0x28] sm:$0x7f] %vm208_vm0, %v206_v53 }
  0x96   : > { %v207_v56 = vmax.f32 %v186_v55, %v193_v52 }
  0x98   : > { %215 = vst.msk [vmem:[%s347_s18 + $0x30] sm:$0x7f] %vm208_vm0, %v207_v56 }
  0x99 PF: > { %s11_s6 = sadd.s32 1, %s299_s6  }
  0x9a   : > { %p8_p5 = scmp.ge.s32.totalorder %s11_s6, 4  }
  0x9c   :  { %10 = sbr.rel (!%p8_p5) target bundleno = 1 (0x1), region = 54 }

// kernel: inception_block_d.6
= control target key start
LH: loop header
LB: loop body
LE: loop exit
PB: predicated region body
PF: predicated region fallthrough
CT: control target
= control target key end

     0   :  { %s1857_s15 = smov 0   ;;  %s2311_s0 = inlined_call_operand.vmem [shape: f32[512,128], index: 0, kind: input, shape index: {}]   ;;  %s2312_s1 = inlined_call_operand.vmem [shape: bf16[128,384], index: 1, kind: input, shape index: {}]   ;;  %s2313_s2 = inlined_call_operand.vmem [shape: f32[1,384], index: 2, kind: input, shape index: {}]   ;;  %s2314_s3 = inlined_call_operand.vmem [shape: f32[1,384], index: 3, kind: input, shape index: {}]   ;;  %s2315_s4 = inlined_call_operand.vmem [shape: bf16[512,384], index: 4, kind: output, shape index: {}]  }
   0x1 LB: > { %s1530_s16 = sadd.s32 4294967295, %s1829_s15   ;;  %p1534_p0 = scmp.ge.s32.totalorder %s1829_s15, 1  ;;  %s1829_s15 = sphi %s1857_s15, %s14_s15  }
   0x2   : > { %p163_p1 = scmp.lt.s32.totalorder %s1829_s15, 3 }
   0x4   : > { %p164_p2 = pnand %p1534_p0, %p163_p1 }
   0x5   : > { %v1791_v0 = vld [vmem:[%s2312_s1 + $0x4] ss:$12 sps:$4 sm:$0xff] (!%p164_p2)   ;;  %v1793_v1 = vld [vmem:[%s2312_s1] ss:$12 sps:$4 sm:$0xff] (!%p164_p2)   ;;  %v1831_v2 = vmov (!%p164_p2), 0   ;;  %s1535_s29 = sshll.u32 (!%p164_p2), %s1530_s16, 5 }
   0x6   : > { %167 = sbr.rel (%p164_p2) target bundleno = 352 (0x160), region = 36  ;;  %444 = vmatprep.mubr.bf16.mxu0 (!%p164_p2), %v1831_v2  ;;  %564 = vmatprep.mubr.bf16.mxu1 (!%p164_p2), %v1831_v2  ;;  %v1794_v3 = vld [vmem:[%s2312_s1 + $0x1c] ss:$12 sps:$4 sm:$0xff] (!%p164_p2)   ;;  %v1796_v4 = vld [vmem:[%s2312_s1 + $0x18] ss:$12 sps:$4 sm:$0xff] (!%p164_p2)   ;;  %p191_p3 = scmp.lt.s32.totalorder (!%p164_p2), %s1535_s29, 63 }
   0x7   : > { %412 = vmatprep.subr.bf16.mxu0 (!%p164_p2), %v1791_v0  ;;  %1765 = vmatprep.subr.bf16.mxu1 (!%p164_p2), %v1791_v0  ;;  %v1797_v5 = vld [vmem:[%s2312_s1 + $0x34] ss:$12 sps:$4 sm:$0xff] (!%p164_p2)   ;;  %v1799_v6 = vld [vmem:[%s2312_s1 + $0x30] ss:$12 sps:$4 sm:$0xff] (!%p164_p2)   ;;  %v1800_v7 = vld [vmem:[%s2312_s1 + $0x4c] ss:$12 sps:$4 sm:$0xff] (!%p164_p2)  }
   0x8   : > { %413 = vmatpush1.bf16.msra.mxu0 (!%p164_p2), %v1793_v1  ;;  %1773 = vmatpush1.bf16.msra.mxu1 (!%p164_p2), %v1793_v1  ;;  %v1802_v8 = vld [vmem:[%s2312_s1 + $0x48] ss:$12 sps:$4 sm:$0xff] (!%p164_p2)   ;;  %v1803_v9 = vld [vmem:[%s2312_s1 + $0x64] ss:$12 sps:$4 sm:$0xff] (!%p164_p2)   ;;  %v1805_v10 = vld [vmem:[%s2312_s1 + $0x60] ss:$12 sps:$4 sm:$0xff] (!%p164_p2)  }
   0x9   : > { %414 = vmatprep.subr.bf16.mxu0 (!%p164_p2), %v1794_v3  ;;  %1766 = vmatprep.subr.bf16.mxu1 (!%p164_p2), %v1794_v3  ;;  %v1806_v11 = vld [vmem:[%s2312_s1 + $0x7c] ss:$12 sps:$4 sm:$0xff] (!%p164_p2)   ;;  %v1808_v12 = vld [vmem:[%s2312_s1 + $0x78] ss:$12 sps:$4 sm:$0xff] (!%p164_p2)   ;;  %v1809_v13 = vld [vmem:[%s2312_s1 + $0x94] ss:$12 sps:$4 sm:$0xff] (!%p164_p2)  }
   0xa   : > { %v1811_v14 = vld [vmem:[%s2312_s1 + $0x90] ss:$12 sps:$4 sm:$0xff] (!%p164_p2)   ;;  %v1812_v15 = vld [vmem:[%s2312_s1 + $0xac] ss:$12 sps:$4 sm:$0xff] (!%p164_p2)   ;;  %v1814_v16 = vld [vmem:[%s2312_s1 + $0xa8] ss:$12 sps:$4 sm:$0xff] (!%p164_p2)  }
   0xb   : > { %v1815_v21 = vld [vmem:[%s2312_s1 + $0x8] ss:$12 sps:$4 sm:$0xff] (!%p164_p2)   ;;  %v1816_v24 = vld [vmem:[%s2312_s1 + $0x20] ss:$12 sps:$4 sm:$0xff] (!%p164_p2)   ;;  %v1817_v29 = vld [vmem:[%s2312_s1 + $0x38] ss:$12 sps:$4 sm:$0xff] (!%p164_p2)  }
   0xc   : > { %415 = vmatpush1.bf16.msra.mxu0 (!%p164_p2), %v1796_v4  ;;  %1774 = vmatpush1.bf16.msra.mxu1 (!%p164_p2), %v1796_v4  ;;  %v1818_v32 = vld [vmem:[%s2312_s1 + $0x50] ss:$12 sps:$4 sm:$0xff] (!%p164_p2)   ;;  %v1819_v37 = vld [vmem:[%s2312_s1 + $0x68] ss:$12 sps:$4 sm:$0xff] (!%p164_p2)   ;;  %v1820_v40 = vld [vmem:[%s2312_s1 + $0x80] ss:$12 sps:$4 sm:$0xff] (!%p164_p2)  }
   0xd   : > { %416 = vmatprep.subr.bf16.mxu0 %v1797_v5  ;;  %1767 = vmatprep.subr.bf16.mxu1 %v1797_v5  ;;  %s2317_s29 = smov (!%p191_p3, %s1535_s29), 63  ;;  %v1821_v45 = vld [vmem:[%s2312_s1 + $0x98] ss:$12 sps:$4 sm:$0xff]   ;;  %v1822_v48 = vld [vmem:[%s2312_s1 + $0xb0] ss:$12 sps:$4 sm:$0xff]  }
   0xe   : > { %s1536_s19 = sshll.u32 %s2317_s29, 3  ;;  %s1781_s25 = smul.u32 12, %s2317_s29 }
   0xf   : > { %s1915_s24 = scalar_lea.vmem %s2311_s0, %s1536_s19 }
  0x10   : > { %417 = vmatpush1.bf16.msra.mxu0 %v1799_v6  ;;  %1775 = vmatpush1.bf16.msra.mxu1 %v1799_v6  ;;  %v204_v17 = vld [vmem:[%s1915_s24] sm:$0xff]  ;;  %v205_v18 = vld [vmem:[%s1915_s24 + $0x8] sm:$0xff]  ;;  %v206_v25 = vld [vmem:[%s1915_s24 + $0x10] sm:$0xff]  ;;  %s2055_s27 = scalar_lea.vmem %s2315_s4, %s1781_s25 }
  0x11   : > { %418 = vmatprep.subr.bf16.mxu0 %v1800_v7  ;;  %1768 = vmatprep.subr.bf16.mxu1 %v1800_v7  ;;  %v228_v19 = vld [vmem:[%s1915_s24 + $0xc0] sm:$0xff]  ;;  %v229_v20 = vld [vmem:[%s1915_s24 + $0xc8] sm:$0xff]  ;;  %v236_v22 = vpack.c.bf16 %v205_v18, %v204_v17  ;;  %v207_v26 = vld [vmem:[%s1915_s24 + $0x18] sm:$0xff] }
  0x12   : > { %v1930_v23 = vpack.c.bf16 %v229_v20, %v228_v19  ;;  %v230_v27 = vld [vmem:[%s1915_s24 + $0xd0] sm:$0xff]  ;;  %v231_v28 = vld [vmem:[%s1915_s24 + $0xd8] sm:$0xff]  ;;  %v237_v30 = vpack.c.bf16 %v207_v26, %v206_v25  ;;  %v208_v33 = vld [vmem:[%s1915_s24 + $0x20] sm:$0xff] }
  0x13   : > { %v1945_v31 = vpack.c.bf16 %v231_v28, %v230_v27  ;;  %v209_v34 = vld [vmem:[%s1915_s24 + $0x28] sm:$0xff]  ;;  %v232_v35 = vld [vmem:[%s1915_s24 + $0xe0] sm:$0xff]  ;;  %v210_v41 = vld [vmem:[%s1915_s24 + $0x30] sm:$0xff] }
  0x14   : > { %419 = vmatpush1.bf16.msra.mxu0 %v1802_v8  ;;  %1776 = vmatpush1.bf16.msra.mxu1 %v1802_v8  ;;  %v233_v36 = vld [vmem:[%s1915_s24 + $0xe8] sm:$0xff]  ;;  %v238_v38 = vpack.c.bf16 %v209_v34, %v208_v33  ;;  %v211_v42 = vld [vmem:[%s1915_s24 + $0x38] sm:$0xff]  ;;  %v234_v43 = vld [vmem:[%s1915_s24 + $0xf0] sm:$0xff] }
  0x15   : > { %420 = vmatprep.subr.bf16.mxu0 %v1803_v9  ;;  %1769 = vmatprep.subr.bf16.mxu1 %v1803_v9  ;;  %v1960_v39 = vpack.c.bf16 %v233_v36, %v232_v35  ;;  %v235_v44 = vld [vmem:[%s1915_s24 + $0xf8] sm:$0xff]  ;;  %v239_v46 = vpack.c.bf16 %v211_v42, %v210_v41  ;;  %v212_v49 = vld [vmem:[%s1915_s24 + $0x40] sm:$0xff]  ;;  %v213_v50 = vld [vmem:[%s1915_s24 + $0x48] sm:$0xff] }
  0x16   : > { %v1975_v47 = vpack.c.bf16 %v235_v44, %v234_v43  ;;  %v240_v51 = vpack.c.bf16 %v213_v50, %v212_v49  ;;  %v214_v52 = vld [vmem:[%s1915_s24 + $0x50] sm:$0xff]  ;;  %v215_v53 = vld [vmem:[%s1915_s24 + $0x58] sm:$0xff]  ;;  %v216_v55 = vld [vmem:[%s1915_s24 + $0x60] sm:$0xff] }
  0x17   : > { %v241_v54 = vpack.c.bf16 %v215_v53, %v214_v52  ;;  %v217_v56 = vld [vmem:[%s1915_s24 + $0x68] sm:$0xff]  ;;  %v218_v58 = vld [vmem:[%s1915_s24 + $0x70] sm:$0xff]  ;;  %v219_v59 = vld [vmem:[%s1915_s24 + $0x78] sm:$0xff] }
  0x18   : > { %421 = vmatpush1.bf16.msra.mxu0 %v1805_v10  ;;  %1777 = vmatpush1.bf16.msra.mxu1 %v1805_v10  ;;  %v242_v57 = vpack.c.bf16 %v217_v56, %v216_v55  ;;  %v220_v60 = vld [vmem:[%s1915_s24 + $0x80] sm:$0xff]  ;;  %v221_v61 = vld [vmem:[%s1915_s24 + $0x88] sm:$0xff]  ;;  %v243_v62 = vpack.c.bf16 %v219_v59, %v218_v58  ;;  %v222_v0 = vld [vmem:[%s1915_s24 + $0x90] sm:$0xff]  ;;  %v768_v10 = vlaneseq }
  0x19   : > { %422 = vmatprep.subr.bf16.mxu0 %v1806_v11  ;;  %1770 = vmatprep.subr.bf16.mxu1 %v1806_v11  ;;  %v244_v63 = vpack.c.bf16 %v221_v61, %v220_v60  ;;  %v223_v1 = vld [vmem:[%s1915_s24 + $0x98] sm:$0xff]  ;;  %v224_v3 = vld [vmem:[%s1915_s24 + $0xa0] sm:$0xff]  ;;  %v225_v4 = vld [vmem:[%s1915_s24 + $0xa8] sm:$0xff] }
  0x1a   : > { %v245_v5 = vpack.c.bf16 %v223_v1, %v222_v0  ;;  %v246_v6 = vpack.c.bf16 %v225_v4, %v224_v3  ;;  %v226_v7 = vld [vmem:[%s1915_s24 + $0xb0] sm:$0xff]  ;;  %v227_v8 = vld [vmem:[%s1915_s24 + $0xb8] sm:$0xff]  ;;  %v2009_v11 = vshrl.u32 %v768_v10, 7 }
  0x1b   : > { %v247_v9 = vpack.c.bf16 %v227_v8, %v226_v7 }
  0x1c   : > { %423 = vmatpush1.bf16.msra.mxu0 %v1808_v12  ;;  %1778 = vmatpush1.bf16.msra.mxu1 %v1808_v12  ;;  %v770_v12 = vsub.s32 0, %v2009_v11 }
  0x1d   : > { %424 = vmatprep.subr.bf16.mxu0 %v1809_v13  ;;  %1771 = vmatprep.subr.bf16.mxu1 %v1809_v13  ;;  %v2015_v13 = vld [vmem:[%s2313_s2] sm:$0x7] }
  0x20   : > { %425 = vmatpush1.bf16.msra.mxu0 %v1811_v14  ;;  %1779 = vmatpush1.bf16.msra.mxu1 %v1811_v14  ;;  %v774_v14 = vsub.s32 1, %v2009_v11 }
  0x21   : > { %426 = vmatprep.subr.bf16.mxu0 %v1812_v15  ;;  %1772 = vmatprep.subr.bf16.mxu1 %v1812_v15  ;;  %v2024_v15 = vrot.slane %v2015_v13, %v770_v12 }
  0x24   : > { %427 = vmatpush1.bf16.msra.mxu0 %v1814_v16  ;;  %1780 = vmatpush1.bf16.msra.mxu1 %v1814_v16  ;;  %v2027_v16 = vrot.slane %v2015_v13, %v774_v14 }
  0x25   : > { %1717 = vmatprep.subr.bf16.mxu1 %v1815_v21 }
  0x27   : > { %445 = vmatmul.mubr.bf16.vlgmr.msra.gmra.mrb[0].mxu0 %v236_v22  ;;  %565 = vmatmul.mubr.bf16.vlgmr.msra.gmra.mrb[0].mxu1 %v1930_v23 }
  0x28   : > { %1718 = vmatpush3.bf16.msra.mxu1 %v1815_v21  ;;  %454 = vmatprep.mubr.bf16.mxu0 %v1831_v2 }
  0x29   : > { %1719 = vmatprep.subr.bf16.mxu1 %v1816_v24  ;;  %574 = vmatprep.mubr.bf16.mxu1 %v1831_v2 }
  0x2c   : > { %1720 = vmatpush3.bf16.msra.mxu1 %v1816_v24 }
  0x2d   : > { %1721 = vmatprep.subr.bf16.mxu1 %v1817_v29 }
  0x2f   : > { %455 = vmatmul.mubr.bf16.gmra.mrb[4].mxu0 %v237_v30  ;;  %575 = vmatmul.mubr.bf16.gmra.mrb[4].mxu1 %v1945_v31 }
  0x30   : > { %1722 = vmatpush3.bf16.msra.mxu1 %v1817_v29  ;;  %464 = vmatprep.mubr.bf16.mxu0 %v1831_v2 }
  0x31   : > { %1723 = vmatprep.subr.bf16.mxu1 %v1818_v32  ;;  %584 = vmatprep.mubr.bf16.mxu1 %v1831_v2 }
  0x34   : > { %1724 = vmatpush3.bf16.msra.mxu1 %v1818_v32 }
  0x35   : > { %1725 = vmatprep.subr.bf16.mxu1 %v1819_v37 }
  0x37   : > { %465 = vmatmul.mubr.bf16.gmra.mrb[8].mxu0 %v238_v38  ;;  %585 = vmatmul.mubr.bf16.gmra.mrb[8].mxu1 %v1960_v39 }
  0x38   : > { %1726 = vmatpush3.bf16.msra.mxu1 %v1819_v37  ;;  %474 = vmatprep.mubr.bf16.mxu0 %v1831_v2 }
  0x39   : > { %1727 = vmatprep.subr.bf16.mxu1 %v1820_v40  ;;  %594 = vmatprep.mubr.bf16.mxu1 %v1831_v2 }
  0x3c   : > { %1728 = vmatpush3.bf16.msra.mxu1 %v1820_v40 }
  0x3d   : > { %1729 = vmatprep.subr.bf16.mxu1 %v1821_v45 }
  0x3f   : > { %475 = vmatmul.mubr.bf16.gmra.mrb[12].mxu0 %v239_v46  ;;  %595 = vmatmul.mubr.bf16.gmra.mrb[12].mxu1 %v1975_v47 }
  0x40   : > { %1730 = vmatpush3.bf16.msra.mxu1 %v1821_v45  ;;  %484 = vmatprep.mubr.bf16.mxu0 %v1831_v2 }
  0x41   : > { %1731 = vmatprep.subr.bf16.mxu1 %v1822_v48  ;;  %1733 = vmatprep.mubr.bf16.mxu1 %v236_v22 }
  0x44   : > { %1732 = vmatpush3.bf16.msra.mxu1 %v1822_v48 }
  0x47   : > { %485 = vmatmul.mubr.bf16.gmra.mrb[16].mxu0 %v240_v51  ;;  %1734 = vmatmul.mubr.bf16.vlgmr.msra.gmra.mrb[16].mxu1 %v237_v30 }
  0x48   : > { %494 = vmatprep.mubr.bf16.mxu0 %v1831_v2  ;;  %1737 = vmatprep.mubr.bf16.mxu1 %v238_v38 }
  0x4f   : > { %495 = vmatmul.mubr.bf16.gmra.mrb[20].mxu0 %v241_v54  ;;  %1738 = vmatmul.mubr.bf16.gmra.mrb[20].mxu1 %v239_v46 }
  0x50   : > { %504 = vmatprep.mubr.bf16.mxu0 %v1831_v2  ;;  %1741 = vmatprep.mubr.bf16.mxu1 %v240_v51 }
  0x57   : > { %505 = vmatmul.mubr.bf16.gmra.mrb[24].mxu0 %v242_v57  ;;  %1742 = vmatmul.mubr.bf16.gmra.mrb[24].mxu1 %v241_v54 }
  0x58   : > { %514 = vmatprep.mubr.bf16.mxu0 %v1831_v2  ;;  %1745 = vmatprep.mubr.bf16.mxu1 %v242_v57 }
  0x5f   : > { %515 = vmatmul.mubr.bf16.gmra.mrb[28].mxu0 %v243_v62  ;;  %1746 = vmatmul.mubr.bf16.gmra.mrb[28].mxu1 %v243_v62 }
  0x60   : > { %524 = vmatprep.mubr.bf16.mxu0 %v1831_v2  ;;  %1749 = vmatprep.mubr.bf16.mxu1 %v244_v63 }
  0x67   : > { %525 = vmatmul.mubr.bf16.gmra.mrb[32].mxu0 %v244_v63  ;;  %1750 = vmatmul.mubr.bf16.gmra.mrb[32].mxu1 %v245_v5 }
  0x68   : > { %534 = vmatprep.mubr.bf16.mxu0 %v1831_v2  ;;  %1753 = vmatprep.mubr.bf16.mxu1 %v246_v6 }
  0x6f   : > { %535 = vmatmul.mubr.bf16.gmra.mrb[36].mxu0 %v245_v5  ;;  %1754 = vmatmul.mubr.bf16.gmra.mrb[36].mxu1 %v247_v9 }
  0x70   : > { %544 = vmatprep.mubr.bf16.mxu0 %v1831_v2  ;;  %1757 = vmatprep.mubr.bf16.mxu1 %v1930_v23 }
  0x77   : > { %545 = vmatmul.mubr.bf16.gmra.mrb[40].mxu0 %v246_v6  ;;  %1758 = vmatmul.mubr.bf16.gmra.mrb[40].mxu1 %v1945_v31 }
  0x78   : > { %554 = vmatprep.mubr.bf16.mxu0 %v1831_v2  ;;  %1761 = vmatprep.mubr.bf16.mxu1 %v1960_v39  ;;  %v2021_v2 = vld [vmem:[%s2314_s3] sm:$0x7] }
  0x79   : > { %v2030_v17 = vrot.slane %v2021_v2, %v770_v12  ;;  %v2033_v20 = vrot.slane %v2021_v2, %v774_v14 }
  0x7f   : > { %555 = vmatmul.mubr.bf16.gmra.mrb[44].mxu0 %v247_v9  ;;  %1762 = vmatmul.mubr.bf16.gmra.mrb[44].mxu1 %v1975_v47 }
  0xfa   : > { %v446_v18 = vpop.f32.mrb[0].mxu0  ;;  %v566_v19 = vpop.f32.mrb[0].mxu1 }
  0xfb   : > { %v783_v21 = vmul.f32 %v2024_v15, %v446_v18  ;;  %v855_v22 = vmul.f32 %v2024_v15, %v566_v19  ;;  %v448_v23 = vpop.f32.mrb[1].mxu0  ;;  %v568_v24 = vpop.f32.mrb[1].mxu1 }
  0xfc   : > { %v784_v25 = vmul.f32 %v2027_v16, %v448_v23  ;;  %v856_v26 = vmul.f32 %v2027_v16, %v568_v24  ;;  %v450_v27 = vpop.f32.mrb[2].mxu0  ;;  %v570_v28 = vpop.f32.mrb[2].mxu1 }
  0xfd   : > { %v896_v29 = vadd.f32 %v2030_v17, %v783_v21  ;;  %v968_v30 = vadd.f32 %v2030_v17, %v855_v22  ;;  %v786_v31 = vmul.f32 %v2024_v15, %v450_v27  ;;  %v858_v32 = vmul.f32 %v2024_v15, %v570_v28  ;;  %v452_v33 = vpop.f32.mrb[3].mxu0  ;;  %v572_v34 = vpop.f32.mrb[3].mxu1 }
  0xfe   : > { %v897_v35 = vadd.f32 %v2033_v20, %v784_v25  ;;  %v969_v36 = vadd.f32 %v2033_v20, %v856_v26  ;;  %v787_v37 = vmul.f32 %v2027_v16, %v452_v33  ;;  %v859_v38 = vmul.f32 %v2027_v16, %v572_v34 }
  0xff   : > { %v992_v39 = vmax.f32 %v896_v29, 0.0  ;;  %v1064_v40 = vmax.f32 %v968_v30, 0.0  ;;  %v899_v41 = vadd.f32 %v2030_v17, %v786_v31  ;;  %v971_v42 = vadd.f32 %v2030_v17, %v858_v32 }
 0x100   : > { %v993_v43 = vmax.f32 %v897_v35, 0.0  ;;  %v1065_v44 = vmax.f32 %v969_v36, 0.0  ;;  %v900_v45 = vadd.f32 %v2033_v20, %v787_v37  ;;  %v972_v46 = vadd.f32 %v2033_v20, %v859_v38 }
 0x101   : > { %v995_v47 = vmax.f32 %v899_v41, 0.0  ;;  %v1067_v48 = vmax.f32 %v971_v42, 0.0  ;;  %v778_v38 = vsub.s32 2, %v2009_v11 }
 0x102   : > { %v1629_v49 = vpack.c.bf16 %v993_v43, %v992_v39  ;;  %v1677_v50 = vpack.c.bf16 %v1065_v44, %v1064_v40  ;;  %v996_v51 = vmax.f32 %v900_v45, 0.0  ;;  %v1068_v52 = vmax.f32 %v972_v46, 0.0  ;;  %v456_v53 = vpop.f32.mrb[4].mxu0  ;;  %v576_v54 = vpop.f32.mrb[4].mxu1 }
 0x103   : > { %v789_v55 = vmul.f32 %v2024_v15, %v456_v53  ;;  %v861_v56 = vmul.f32 %v2024_v15, %v576_v54  ;;  %v458_v57 = vpop.f32.mrb[5].mxu0  ;;  %v578_v58 = vpop.f32.mrb[5].mxu1 }
 0x104   : > { %1408 = vst [vmem:[%s2055_s27] sm:$0xff] %v1629_v49  ;;  %1456 = vst [vmem:[%s2055_s27 + $0x120] sm:$0xff] %v1677_v50  ;;  %v1631_v59 = vpack.c.bf16 %v996_v51, %v995_v47  ;;  %v1679_v60 = vpack.c.bf16 %v1068_v52, %v1067_v48  ;;  %v790_v61 = vmul.f32 %v2027_v16, %v458_v57  ;;  %v460_v63 = vpop.f32.mrb[6].mxu0  ;;  %v580_v0 = vpop.f32.mrb[6].mxu1 }
 0x105   : > { %v862_v62 = vmul.f32 %v2027_v16, %v578_v58  ;;  %v902_v1 = vadd.f32 %v2030_v17, %v789_v55  ;;  %v974_v3 = vadd.f32 %v2030_v17, %v861_v56  ;;  %v792_v4 = vmul.f32 %v2024_v15, %v460_v63  ;;  %v462_v6 = vpop.f32.mrb[7].mxu0  ;;  %v582_v7 = vpop.f32.mrb[7].mxu1 }
 0x106   : > { %v864_v5 = vmul.f32 %v2024_v15, %v580_v0  ;;  %1410 = vst [vmem:[%s2055_s27 + $0xc] sm:$0xff] %v1631_v59  ;;  %1458 = vst [vmem:[%s2055_s27 + $0x12c] sm:$0xff] %v1679_v60  ;;  %v903_v8 = vadd.f32 %v2033_v20, %v790_v61  ;;  %v793_v10 = vmul.f32 %v2027_v16, %v462_v6 }
 0x107   : > { %v975_v9 = vadd.f32 %v2033_v20, %v862_v62  ;;  %v865_v12 = vmul.f32 %v2027_v16, %v582_v7  ;;  %v998_v14 = vmax.f32 %v902_v1, 0.0  ;;  %v1070_v18 = vmax.f32 %v974_v3, 0.0 }
 0x108   : > { %v905_v19 = vadd.f32 %v2030_v17, %v792_v4  ;;  %v977_v21 = vadd.f32 %v2030_v17, %v864_v5  ;;  %v999_v22 = vmax.f32 %v903_v8, 0.0  ;;  %v906_v24 = vadd.f32 %v2033_v20, %v793_v10 }
 0x109   : > { %v1071_v23 = vmax.f32 %v975_v9, 0.0  ;;  %v978_v25 = vadd.f32 %v2033_v20, %v865_v12 }
 0x10a   : > { %v1001_v26 = vmax.f32 %v905_v19, 0.0  ;;  %v1073_v27 = vmax.f32 %v977_v21, 0.0  ;;  %v1633_v28 = vpack.c.bf16 %v999_v22, %v998_v14  ;;  %v1002_v30 = vmax.f32 %v906_v24, 0.0  ;;  %v466_v32 = vpop.f32.mrb[8].mxu0  ;;  %v586_v33 = vpop.f32.mrb[8].mxu1 }
 0x10b   : > { %v1681_v29 = vpack.c.bf16 %v1071_v23, %v1070_v18  ;;  %v1074_v31 = vmax.f32 %v978_v25, 0.0  ;;  %v795_v34 = vmul.f32 %v2024_v15, %v466_v32  ;;  %v867_v35 = vmul.f32 %v2024_v15, %v586_v33  ;;  %v468_v36 = vpop.f32.mrb[9].mxu0  ;;  %v588_v37 = vpop.f32.mrb[9].mxu1 }
 0x10c   : > { %1412 = vst [vmem:[%s2055_s27 + $0x18] sm:$0xff] %v1633_v28  ;;  %v1635_v39 = vpack.c.bf16 %v1002_v30, %v1001_v26  ;;  %v796_v41 = vmul.f32 %v2027_v16, %v468_v36  ;;  %v868_v42 = vmul.f32 %v2027_v16, %v588_v37  ;;  %v470_v43 = vpop.f32.mrb[10].mxu0  ;;  %v590_v44 = vpop.f32.mrb[10].mxu1  ;;  %v2103_v14 = vrot.slane %v2015_v13, %v778_v38 }
 0x10d   : > { %1460 = vst [vmem:[%s2055_s27 + $0x138] sm:$0xff] %v1681_v29  ;;  %v1683_v40 = vpack.c.bf16 %v1074_v31, %v1073_v27  ;;  %v908_v45 = vadd.f32 %v2030_v17, %v795_v34  ;;  %v980_v46 = vadd.f32 %v2030_v17, %v867_v35  ;;  %v798_v47 = vmul.f32 %v2024_v15, %v470_v43  ;;  %v472_v49 = vpop.f32.mrb[11].mxu0  ;;  %v592_v50 = vpop.f32.mrb[11].mxu1 }
 0x10e   : > { %v870_v48 = vmul.f32 %v2024_v15, %v590_v44  ;;  %1414 = vst [vmem:[%s2055_s27 + $0x24] sm:$0xff] %v1635_v39  ;;  %v909_v51 = vadd.f32 %v2033_v20, %v796_v41  ;;  %v981_v52 = vadd.f32 %v2033_v20, %v868_v42  ;;  %v799_v53 = vmul.f32 %v2027_v16, %v472_v49 }
 0x10f   : > { %1462 = vst [vmem:[%s2055_s27 + $0x144] sm:$0xff] %v1683_v40  ;;  %v871_v54 = vmul.f32 %v2027_v16, %v592_v50  ;;  %v1004_v55 = vmax.f32 %v908_v45, 0.0  ;;  %v1076_v56 = vmax.f32 %v980_v46, 0.0  ;;  %v911_v57 = vadd.f32 %v2030_v17, %v798_v47 }
 0x110   : > { %v983_v58 = vadd.f32 %v2030_v17, %v870_v48  ;;  %v1005_v59 = vmax.f32 %v909_v51, 0.0  ;;  %v1077_v60 = vmax.f32 %v981_v52, 0.0  ;;  %v912_v61 = vadd.f32 %v2033_v20, %v799_v53 }
 0x111   : > { %v984_v62 = vadd.f32 %v2033_v20, %v871_v54  ;;  %v1007_v63 = vmax.f32 %v911_v57, 0.0  ;;  %v2126_v45 = vrot.slane %v2021_v2, %v778_v38 }
 0x112   : > { %v1079_v0 = vmax.f32 %v983_v58, 0.0  ;;  %v1637_v1 = vpack.c.bf16 %v1005_v59, %v1004_v55  ;;  %v1685_v3 = vpack.c.bf16 %v1077_v60, %v1076_v56  ;;  %v1008_v4 = vmax.f32 %v912_v61, 0.0  ;;  %v476_v6 = vpop.f32.mrb[12].mxu0  ;;  %v596_v7 = vpop.f32.mrb[12].mxu1 }
 0x113   : > { %v1080_v5 = vmax.f32 %v984_v62, 0.0  ;;  %v801_v8 = vmul.f32 %v2024_v15, %v476_v6  ;;  %v873_v9 = vmul.f32 %v2024_v15, %v596_v7  ;;  %v478_v10 = vpop.f32.mrb[13].mxu0  ;;  %v598_v12 = vpop.f32.mrb[13].mxu1 }
 0x114   : > { %1416 = vst [vmem:[%s2055_s27 + $0x30] sm:$0xff] %v1637_v1  ;;  %1464 = vst [vmem:[%s2055_s27 + $0x150] sm:$0xff] %v1685_v3  ;;  %v1639_v18 = vpack.c.bf16 %v1008_v4, %v1007_v63  ;;  %v802_v21 = vmul.f32 %v2027_v16, %v478_v10  ;;  %v874_v22 = vmul.f32 %v2027_v16, %v598_v12  ;;  %v480_v23 = vpop.f32.mrb[14].mxu0  ;;  %v600_v24 = vpop.f32.mrb[14].mxu1 }
 0x115   : > { %v1687_v19 = vpack.c.bf16 %v1080_v5, %v1079_v0  ;;  %v914_v25 = vadd.f32 %v2030_v17, %v801_v8  ;;  %v986_v26 = vadd.f32 %v2030_v17, %v873_v9  ;;  %v804_v27 = vmul.f32 %v2024_v15, %v480_v23  ;;  %v482_v28 = vpop.f32.mrb[15].mxu0  ;;  %v602_v29 = vpop.f32.mrb[15].mxu1 }
 0x116   : > { %v876_v13 = vmul.f32 %v2024_v15, %v600_v24  ;;  %1418 = vst [vmem:[%s2055_s27 + $0x3c] sm:$0xff] %v1639_v18  ;;  %v915_v30 = vadd.f32 %v2033_v20, %v802_v21  ;;  %v987_v31 = vadd.f32 %v2033_v20, %v874_v22  ;;  %v805_v32 = vmul.f32 %v2027_v16, %v482_v28 }
 0x117   : > { %1466 = vst [vmem:[%s2055_s27 + $0x15c] sm:$0xff] %v1687_v19  ;;  %v877_v33 = vmul.f32 %v2027_v16, %v602_v29  ;;  %v1010_v34 = vmax.f32 %v914_v25, 0.0  ;;  %v1082_v35 = vmax.f32 %v986_v26, 0.0  ;;  %v917_v36 = vadd.f32 %v2030_v17, %v804_v27 }
 0x118   : > { %v989_v37 = vadd.f32 %v2030_v17, %v876_v13  ;;  %v1011_v39 = vmax.f32 %v915_v30, 0.0  ;;  %v1083_v40 = vmax.f32 %v987_v31, 0.0  ;;  %v918_v41 = vadd.f32 %v2033_v20, %v805_v32 }
 0x119   : > { %v990_v42 = vadd.f32 %v2033_v20, %v877_v33  ;;  %v1013_v43 = vmax.f32 %v917_v36, 0.0 }
 0x11a   : > { %v1085_v44 = vmax.f32 %v989_v37, 0.0  ;;  %v1641_v46 = vpack.c.bf16 %v1011_v39, %v1010_v34  ;;  %v1689_v47 = vpack.c.bf16 %v1083_v40, %v1082_v35  ;;  %v1014_v48 = vmax.f32 %v918_v41, 0.0  ;;  %v486_v50 = vpop.f32.mrb[16].mxu0  ;;  %v1735_v51 = vpop.f32.mrb[16].mxu1 }
 0x11b   : > { %v1086_v49 = vmax.f32 %v990_v42, 0.0  ;;  %v807_v52 = vmul.f32 %v2024_v15, %v486_v50  ;;  %v791_v53 = vmul.f32 %v1735_v51, %v2103_v14  ;;  %v488_v54 = vpop.f32.mrb[17].mxu0  ;;  %v639_v55 = vpop.f32.mrb[17].mxu1 }
 0x11c   : > { %1420 = vst [vmem:[%s2055_s27 + $0x48] sm:$0xff] %v1641_v46  ;;  %1468 = vst [vmem:[%s2055_s27 + $0x168] sm:$0xff] %v1689_v47  ;;  %v1643_v11 = vpack.c.bf16 %v1014_v48, %v1013_v43  ;;  %v808_v2 = vmul.f32 %v2027_v16, %v488_v54  ;;  %v785_v38 = vmul.f32 %v2103_v14, %v639_v55  ;;  %v490_v57 = vpop.f32.mrb[18].mxu0  ;;  %v1736_v58 = vpop.f32.mrb[18].mxu1 }
 0x11d   : > { %v1691_v56 = vpack.c.bf16 %v1086_v49, %v1085_v44  ;;  %v920_v59 = vadd.f32 %v2030_v17, %v807_v52  ;;  %v904_v60 = vadd.f32 %v2126_v45, %v791_v53  ;;  %v810_v61 = vmul.f32 %v2024_v15, %v490_v57  ;;  %v492_v63 = vpop.f32.mrb[19].mxu0  ;;  %v642_v0 = vpop.f32.mrb[19].mxu1 }
 0x11e   : > { %v794_v62 = vmul.f32 %v1736_v58, %v2103_v14  ;;  %1422 = vst [vmem:[%s2055_s27 + $0x54] sm:$0xff] %v1643_v11  ;;  %v921_v1 = vadd.f32 %v2033_v20, %v808_v2  ;;  %v898_v3 = vadd.f32 %v2126_v45, %v785_v38  ;;  %v811_v4 = vmul.f32 %v2027_v16, %v492_v63 }
 0x11f   : > { %1470 = vst [vmem:[%s2055_s27 + $0x174] sm:$0xff] %v1691_v56  ;;  %v788_v5 = vmul.f32 %v2103_v14, %v642_v0  ;;  %v1016_v6 = vmax.f32 %v920_v59, 0.0  ;;  %v1000_v7 = vmax.f32 %v904_v60, 0.0  ;;  %v923_v8 = vadd.f32 %v2030_v17, %v810_v61 }
 0x120   : > { %v907_v9 = vadd.f32 %v2126_v45, %v794_v62  ;;  %v1017_v10 = vmax.f32 %v921_v1, 0.0  ;;  %v994_v12 = vmax.f32 %v898_v3, 0.0  ;;  %v924_v18 = vadd.f32 %v2033_v20, %v811_v4 }
 0x121   : > { %v901_v19 = vadd.f32 %v2126_v45, %v788_v5  ;;  %v1634_v21 = vpack.c.bf16 %v1000_v7, %v1000_v7  ;;  %v1019_v22 = vmax.f32 %v923_v8, 0.0 }
 0x122   : > { %v1003_v23 = vmax.f32 %v907_v9, 0.0  ;;  %v1645_v24 = vpack.c.bf16 %v1017_v10, %v1016_v6  ;;  %v1630_v25 = vpack.c.bf16 %v994_v12, %v994_v12  ;;  %v1020_v26 = vmax.f32 %v924_v18, 0.0  ;;  %v496_v13 = vpop.f32.mrb[20].mxu0  ;;  %v1739_v28 = vpop.f32.mrb[20].mxu1 }
 0x123   : > { %v997_v27 = vmax.f32 %v901_v19, 0.0  ;;  %1413 = vst [vmem:[%s2055_s27 + $0x20] sm:$0xf] %v1634_v21  ;;  %v813_v30 = vmul.f32 %v2024_v15, %v496_v13  ;;  %v803_v31 = vmul.f32 %v1739_v28, %v2103_v14  ;;  %v498_v32 = vpop.f32.mrb[21].mxu0  ;;  %v655_v33 = vpop.f32.mrb[21].mxu1 }
 0x124   : > { %v1636_v29 = vpack.c.bf16 %v1003_v23, %v1003_v23  ;;  %1424 = vst [vmem:[%s2055_s27 + $0x60] sm:$0xff] %v1645_v24  ;;  %1409 = vst [vmem:[%s2055_s27 + $0x8] sm:$0xf] %v1630_v25  ;;  %v1647_v34 = vpack.c.bf16 %v1020_v26, %v1019_v22  ;;  %v814_v36 = vmul.f32 %v2027_v16, %v498_v32  ;;  %v500_v39 = vpop.f32.mrb[22].mxu0  ;;  %v1740_v40 = vpop.f32.mrb[22].mxu1 }
 0x125   : > { %v1632_v35 = vpack.c.bf16 %v997_v27, %v997_v27  ;;  %v797_v37 = vmul.f32 %v2103_v14, %v655_v33  ;;  %v926_v41 = vadd.f32 %v2030_v17, %v813_v30  ;;  %v916_v42 = vadd.f32 %v2126_v45, %v803_v31  ;;  %v502_v46 = vpop.f32.mrb[23].mxu0  ;;  %v658_v47 = vpop.f32.mrb[23].mxu1 }
 0x126   : > { %1415 = vst [vmem:[%s2055_s27 + $0x2c] sm:$0xf] %v1636_v29  ;;  %v816_v43 = vmul.f32 %v2024_v15, %v500_v39  ;;  %v806_v44 = vmul.f32 %v1740_v40, %v2103_v14  ;;  %1426 = vst [vmem:[%s2055_s27 + $0x6c] sm:$0xff] %v1647_v34  ;;  %v927_v48 = vadd.f32 %v2033_v20, %v814_v36 }
 0x127   : > { %1411 = vst [vmem:[%s2055_s27 + $0x14] sm:$0xf] %v1632_v35  ;;  %v910_v49 = vadd.f32 %v2126_v45, %v797_v37  ;;  %v817_v50 = vmul.f32 %v2027_v16, %v502_v46  ;;  %v800_v51 = vmul.f32 %v2103_v14, %v658_v47  ;;  %v1022_v52 = vmax.f32 %v926_v41, 0.0 }
 0x128   : > { %v1012_v53 = vmax.f32 %v916_v42, 0.0  ;;  %v929_v54 = vadd.f32 %v2030_v17, %v816_v43  ;;  %v919_v55 = vadd.f32 %v2126_v45, %v806_v44  ;;  %v1023_v11 = vmax.f32 %v927_v48, 0.0 }
 0x129   : > { %v1006_v56 = vmax.f32 %v910_v49, 0.0  ;;  %v930_v2 = vadd.f32 %v2033_v20, %v817_v50  ;;  %v913_v38 = vadd.f32 %v2126_v45, %v800_v51 }
 0x12a   : > { %v1642_v57 = vpack.c.bf16 %v1012_v53, %v1012_v53  ;;  %v1025_v58 = vmax.f32 %v929_v54, 0.0  ;;  %v1015_v59 = vmax.f32 %v919_v55, 0.0  ;;  %v1649_v60 = vpack.c.bf16 %v1023_v11, %v1022_v52  ;;  %v506_v0 = vpop.f32.mrb[24].mxu0  ;;  %v1743_v1 = vpop.f32.mrb[24].mxu1 }
 0x12b   : > { %v1638_v61 = vpack.c.bf16 %v1006_v56, %v1006_v56  ;;  %v1026_v62 = vmax.f32 %v930_v2, 0.0  ;;  %v1009_v63 = vmax.f32 %v913_v38, 0.0  ;;  %v819_v4 = vmul.f32 %v2024_v15, %v506_v0  ;;  %v508_v6 = vpop.f32.mrb[25].mxu0  ;;  %v671_v7 = vpop.f32.mrb[25].mxu1 }
 0x12c   : > { %1421 = vst [vmem:[%s2055_s27 + $0x50] sm:$0xf] %v1642_v57  ;;  %v1644_v3 = vpack.c.bf16 %v1015_v59, %v1015_v59  ;;  %v815_v5 = vmul.f32 %v1743_v1, %v2103_v14  ;;  %1428 = vst [vmem:[%s2055_s27 + $0x78] sm:$0xff] %v1649_v60  ;;  %v820_v10 = vmul.f32 %v2027_v16, %v508_v6  ;;  %v510_v18 = vpop.f32.mrb[26].mxu0  ;;  %v1744_v19 = vpop.f32.mrb[26].mxu1 }
 0x12d   : > { %1417 = vst [vmem:[%s2055_s27 + $0x38] sm:$0xf] %v1638_v61  ;;  %v1651_v8 = vpack.c.bf16 %v1026_v62, %v1025_v58  ;;  %v1640_v9 = vpack.c.bf16 %v1009_v63, %v1009_v63  ;;  %v809_v12 = vmul.f32 %v2103_v14, %v671_v7  ;;  %v932_v21 = vadd.f32 %v2030_v17, %v819_v4  ;;  %v512_v25 = vpop.f32.mrb[27].mxu0  ;;  %v674_v26 = vpop.f32.mrb[27].mxu1 }
 0x12e   : > { %1423 = vst [vmem:[%s2055_s27 + $0x5c] sm:$0xf] %v1644_v3  ;;  %v928_v22 = vadd.f32 %v2126_v45, %v815_v5  ;;  %v822_v23 = vmul.f32 %v2024_v15, %v510_v18  ;;  %v818_v24 = vmul.f32 %v1744_v19, %v2103_v14  ;;  %v933_v27 = vadd.f32 %v2033_v20, %v820_v10 }
 0x12f   : > { %1430 = vst [vmem:[%s2055_s27 + $0x84] sm:$0xff] %v1651_v8  ;;  %1419 = vst [vmem:[%s2055_s27 + $0x44] sm:$0xf] %v1640_v9  ;;  %v922_v13 = vadd.f32 %v2126_v45, %v809_v12  ;;  %v823_v28 = vmul.f32 %v2027_v16, %v512_v25  ;;  %v812_v29 = vmul.f32 %v2103_v14, %v674_v26  ;;  %v1028_v30 = vmax.f32 %v932_v21, 0.0 }
 0x130   : > { %v1024_v31 = vmax.f32 %v928_v22, 0.0  ;;  %v935_v32 = vadd.f32 %v2030_v17, %v822_v23  ;;  %v931_v33 = vadd.f32 %v2126_v45, %v818_v24  ;;  %v1029_v34 = vmax.f32 %v933_v27, 0.0 }
 0x131   : > { %v1018_v35 = vmax.f32 %v922_v13, 0.0  ;;  %v936_v36 = vadd.f32 %v2033_v20, %v823_v28  ;;  %v925_v37 = vadd.f32 %v2126_v45, %v812_v29 }
 0x132   : > { %v1650_v39 = vpack.c.bf16 %v1024_v31, %v1024_v31  ;;  %v1031_v40 = vmax.f32 %v935_v32, 0.0  ;;  %v1027_v41 = vmax.f32 %v931_v33, 0.0  ;;  %v1653_v42 = vpack.c.bf16 %v1029_v34, %v1028_v30  ;;  %v516_v47 = vpop.f32.mrb[28].mxu0  ;;  %v1747_v48 = vpop.f32.mrb[28].mxu1 }
 0x133   : > { %v1646_v43 = vpack.c.bf16 %v1018_v35, %v1018_v35  ;;  %v1032_v44 = vmax.f32 %v936_v36, 0.0  ;;  %v1021_v46 = vmax.f32 %v925_v37, 0.0  ;;  %v825_v50 = vmul.f32 %v2024_v15, %v516_v47  ;;  %v518_v52 = vpop.f32.mrb[29].mxu0  ;;  %v687_v53 = vpop.f32.mrb[29].mxu1 }
 0x134   : > { %1429 = vst [vmem:[%s2055_s27 + $0x80] sm:$0xf] %v1650_v39  ;;  %v1652_v49 = vpack.c.bf16 %v1027_v41, %v1027_v41  ;;  %v827_v51 = vmul.f32 %v1747_v48, %v2103_v14  ;;  %1432 = vst [vmem:[%s2055_s27 + $0x90] sm:$0xff] %v1653_v42  ;;  %v826_v11 = vmul.f32 %v2027_v16, %v518_v52  ;;  %v520_v2 = vpop.f32.mrb[30].mxu0  ;;  %v1748_v38 = vpop.f32.mrb[30].mxu1 }
 0x135   : > { %1425 = vst [vmem:[%s2055_s27 + $0x68] sm:$0xf] %v1646_v43  ;;  %v1655_v54 = vpack.c.bf16 %v1032_v44, %v1031_v40  ;;  %v1648_v55 = vpack.c.bf16 %v1021_v46, %v1021_v46  ;;  %v821_v56 = vmul.f32 %v2103_v14, %v687_v53  ;;  %v938_v57 = vadd.f32 %v2030_v17, %v825_v50  ;;  %v522_v61 = vpop.f32.mrb[31].mxu0  ;;  %v690_v62 = vpop.f32.mrb[31].mxu1 }
 0x136   : > { %1431 = vst [vmem:[%s2055_s27 + $0x8c] sm:$0xf] %v1652_v49  ;;  %v940_v58 = vadd.f32 %v2126_v45, %v827_v51  ;;  %v828_v59 = vmul.f32 %v2024_v15, %v520_v2  ;;  %v830_v60 = vmul.f32 %v1748_v38, %v2103_v14  ;;  %v939_v63 = vadd.f32 %v2033_v20, %v826_v11 }
 0x137   : > { %1434 = vst [vmem:[%s2055_s27 + $0x9c] sm:$0xff] %v1655_v54  ;;  %1427 = vst [vmem:[%s2055_s27 + $0x74] sm:$0xf] %v1648_v55  ;;  %v934_v0 = vadd.f32 %v2126_v45, %v821_v56  ;;  %v829_v1 = vmul.f32 %v2027_v16, %v522_v61  ;;  %v824_v3 = vmul.f32 %v2103_v14, %v690_v62  ;;  %v1034_v4 = vmax.f32 %v938_v57, 0.0 }
 0x138   : > { %v1036_v5 = vmax.f32 %v940_v58, 0.0  ;;  %v941_v6 = vadd.f32 %v2030_v17, %v828_v59  ;;  %v943_v7 = vadd.f32 %v2126_v45, %v830_v60  ;;  %v1035_v8 = vmax.f32 %v939_v63, 0.0 }
 0x139   : > { %v1030_v9 = vmax.f32 %v934_v0, 0.0  ;;  %v942_v10 = vadd.f32 %v2033_v20, %v829_v1  ;;  %v937_v12 = vadd.f32 %v2126_v45, %v824_v3 }
 0x13a   : > { %v1658_v18 = vpack.c.bf16 %v1036_v5, %v1036_v5  ;;  %v1037_v19 = vmax.f32 %v941_v6, 0.0  ;;  %v1039_v21 = vmax.f32 %v943_v7, 0.0  ;;  %v1657_v22 = vpack.c.bf16 %v1035_v8, %v1034_v4  ;;  %v526_v26 = vpop.f32.mrb[32].mxu0  ;;  %v1751_v27 = vpop.f32.mrb[32].mxu1 }
 0x13b   : > { %v1654_v23 = vpack.c.bf16 %v1030_v9, %v1030_v9  ;;  %v1038_v24 = vmax.f32 %v942_v10, 0.0  ;;  %v1033_v25 = vmax.f32 %v937_v12, 0.0  ;;  %v831_v28 = vmul.f32 %v2024_v15, %v526_v26  ;;  %v528_v30 = vpop.f32.mrb[33].mxu0  ;;  %v703_v31 = vpop.f32.mrb[33].mxu1 }
 0x13c   : > { %1437 = vst [vmem:[%s2055_s27 + $0xb0] sm:$0xf] %v1658_v18  ;;  %v1660_v13 = vpack.c.bf16 %v1039_v21, %v1039_v21  ;;  %v839_v29 = vmul.f32 %v1751_v27, %v2103_v14  ;;  %1436 = vst [vmem:[%s2055_s27 + $0xa8] sm:$0xff] %v1657_v22  ;;  %v832_v34 = vmul.f32 %v2027_v16, %v528_v30  ;;  %v530_v36 = vpop.f32.mrb[34].mxu0  ;;  %v1752_v37 = vpop.f32.mrb[34].mxu1 }
 0x13d   : > { %1433 = vst [vmem:[%s2055_s27 + $0x98] sm:$0xf] %v1654_v23  ;;  %v1659_v32 = vpack.c.bf16 %v1038_v24, %v1037_v19  ;;  %v1656_v33 = vpack.c.bf16 %v1033_v25, %v1033_v25  ;;  %v833_v35 = vmul.f32 %v2103_v14, %v703_v31  ;;  %v944_v39 = vadd.f32 %v2030_v17, %v831_v28  ;;  %v532_v43 = vpop.f32.mrb[35].mxu0  ;;  %v706_v44 = vpop.f32.mrb[35].mxu1 }
 0x13e   : > { %1439 = vst [vmem:[%s2055_s27 + $0xbc] sm:$0xf] %v1660_v13  ;;  %v952_v40 = vadd.f32 %v2126_v45, %v839_v29  ;;  %v834_v41 = vmul.f32 %v2024_v15, %v530_v36  ;;  %v842_v42 = vmul.f32 %v1752_v37, %v2103_v14  ;;  %v945_v46 = vadd.f32 %v2033_v20, %v832_v34 }
 0x13f   : > { %1438 = vst [vmem:[%s2055_s27 + $0xb4] sm:$0xff] %v1659_v32  ;;  %1435 = vst [vmem:[%s2055_s27 + $0xa4] sm:$0xf] %v1656_v33  ;;  %v946_v47 = vadd.f32 %v2126_v45, %v833_v35  ;;  %v835_v48 = vmul.f32 %v2027_v16, %v532_v43  ;;  %v836_v49 = vmul.f32 %v2103_v14, %v706_v44  ;;  %v1040_v50 = vmax.f32 %v944_v39, 0.0 }
 0x140   : > { %v1048_v51 = vmax.f32 %v952_v40, 0.0  ;;  %v947_v52 = vadd.f32 %v2030_v17, %v834_v41  ;;  %v955_v53 = vadd.f32 %v2126_v45, %v842_v42  ;;  %v1041_v54 = vmax.f32 %v945_v46, 0.0 }
 0x141   : > { %v1042_v55 = vmax.f32 %v946_v47, 0.0  ;;  %v948_v11 = vadd.f32 %v2033_v20, %v835_v48  ;;  %v949_v56 = vadd.f32 %v2126_v45, %v836_v49 }
 0x142   : > { %v1666_v2 = vpack.c.bf16 %v1048_v51, %v1048_v51  ;;  %v1043_v38 = vmax.f32 %v947_v52, 0.0  ;;  %v1051_v57 = vmax.f32 %v955_v53, 0.0  ;;  %v1661_v58 = vpack.c.bf16 %v1041_v54, %v1040_v50  ;;  %v536_v62 = vpop.f32.mrb[36].mxu0  ;;  %v1755_v63 = vpop.f32.mrb[36].mxu1 }
 0x143   : > { %v1662_v59 = vpack.c.bf16 %v1042_v55, %v1042_v55  ;;  %v1044_v60 = vmax.f32 %v948_v11, 0.0  ;;  %v1045_v61 = vmax.f32 %v949_v56, 0.0  ;;  %v837_v1 = vmul.f32 %v2024_v15, %v536_v62  ;;  %v538_v4 = vpop.f32.mrb[37].mxu0  ;;  %v719_v5 = vpop.f32.mrb[37].mxu1 }
 0x144   : > { %1445 = vst [vmem:[%s2055_s27 + $0xe0] sm:$0xf] %v1666_v2  ;;  %v1668_v0 = vpack.c.bf16 %v1051_v57, %v1051_v57  ;;  %v851_v3 = vmul.f32 %v1755_v63, %v2103_v14  ;;  %1440 = vst [vmem:[%s2055_s27 + $0xc0] sm:$0xff] %v1661_v58  ;;  %v838_v8 = vmul.f32 %v2027_v16, %v538_v4  ;;  %v540_v10 = vpop.f32.mrb[38].mxu0  ;;  %v1756_v12 = vpop.f32.mrb[38].mxu1 }
 0x145   : > { %1441 = vst [vmem:[%s2055_s27 + $0xc8] sm:$0xf] %v1662_v59  ;;  %v1663_v6 = vpack.c.bf16 %v1044_v60, %v1043_v38  ;;  %v1664_v7 = vpack.c.bf16 %v1045_v61, %v1045_v61  ;;  %v845_v9 = vmul.f32 %v2103_v14, %v719_v5  ;;  %v950_v18 = vadd.f32 %v2030_v17, %v837_v1  ;;  %v542_v23 = vpop.f32.mrb[39].mxu0  ;;  %v722_v24 = vpop.f32.mrb[39].mxu1 }
 0x146   : > { %1447 = vst [vmem:[%s2055_s27 + $0xec] sm:$0xf] %v1668_v0  ;;  %v964_v19 = vadd.f32 %v2126_v45, %v851_v3  ;;  %v840_v21 = vmul.f32 %v2024_v15, %v540_v10  ;;  %v854_v22 = vmul.f32 %v1756_v12, %v2103_v14  ;;  %v951_v25 = vadd.f32 %v2033_v20, %v838_v8 }
 0x147   : > { %1442 = vst [vmem:[%s2055_s27 + $0xcc] sm:$0xff] %v1663_v6  ;;  %1443 = vst [vmem:[%s2055_s27 + $0xd4] sm:$0xf] %v1664_v7  ;;  %v958_v26 = vadd.f32 %v2126_v45, %v845_v9  ;;  %v841_v27 = vmul.f32 %v2027_v16, %v542_v23  ;;  %v848_v13 = vmul.f32 %v2103_v14, %v722_v24  ;;  %v1046_v28 = vmax.f32 %v950_v18, 0.0 }
 0x148   : > { %v1060_v29 = vmax.f32 %v964_v19, 0.0  ;;  %v953_v30 = vadd.f32 %v2030_v17, %v840_v21  ;;  %v967_v31 = vadd.f32 %v2126_v45, %v854_v22  ;;  %v1047_v32 = vmax.f32 %v951_v25, 0.0 }
 0x149   : > { %v1054_v33 = vmax.f32 %v958_v26, 0.0  ;;  %v954_v34 = vadd.f32 %v2033_v20, %v841_v27  ;;  %v961_v35 = vadd.f32 %v2126_v45, %v848_v13 }
 0x14a   : > { %v1674_v36 = vpack.c.bf16 %v1060_v29, %v1060_v29  ;;  %v1049_v37 = vmax.f32 %v953_v30, 0.0  ;;  %v1063_v39 = vmax.f32 %v967_v31, 0.0  ;;  %v1665_v40 = vpack.c.bf16 %v1047_v32, %v1046_v28  ;;  %v546_v44 = vpop.f32.mrb[40].mxu0  ;;  %v1759_v46 = vpop.f32.mrb[40].mxu1 }
 0x14b   : > { %v1670_v41 = vpack.c.bf16 %v1054_v33, %v1054_v33  ;;  %v1050_v42 = vmax.f32 %v954_v34, 0.0  ;;  %v1057_v43 = vmax.f32 %v961_v35, 0.0  ;;  %v843_v48 = vmul.f32 %v2024_v15, %v546_v44  ;;  %v548_v50 = vpop.f32.mrb[41].mxu0  ;;  %v735_v51 = vpop.f32.mrb[41].mxu1 }
 0x14c   : > { %1453 = vst [vmem:[%s2055_s27 + $0x110] sm:$0xf] %v1674_v36  ;;  %v1676_v47 = vpack.c.bf16 %v1063_v39, %v1063_v39  ;;  %v863_v49 = vmul.f32 %v1759_v46, %v2103_v14  ;;  %1444 = vst [vmem:[%s2055_s27 + $0xd8] sm:$0xff] %v1665_v40  ;;  %v844_v54 = vmul.f32 %v2027_v16, %v548_v50  ;;  %v550_v11 = vpop.f32.mrb[42].mxu0  ;;  %v1760_v56 = vpop.f32.mrb[42].mxu1 }
 0x14d   : > { %1449 = vst [vmem:[%s2055_s27 + $0xf8] sm:$0xf] %v1670_v41  ;;  %v1667_v52 = vpack.c.bf16 %v1050_v42, %v1049_v37  ;;  %v1672_v53 = vpack.c.bf16 %v1057_v43, %v1057_v43  ;;  %v857_v55 = vmul.f32 %v2103_v14, %v735_v51  ;;  %v956_v2 = vadd.f32 %v2030_v17, %v843_v48  ;;  %v552_v59 = vpop.f32.mrb[43].mxu0  ;;  %v738_v60 = vpop.f32.mrb[43].mxu1 }
 0x14e   : > { %1455 = vst [vmem:[%s2055_s27 + $0x11c] sm:$0xf] %v1676_v47  ;;  %v976_v38 = vadd.f32 %v2126_v45, %v863_v49  ;;  %v846_v57 = vmul.f32 %v2024_v15, %v550_v11  ;;  %v866_v58 = vmul.f32 %v1760_v56, %v2103_v14  ;;  %v957_v61 = vadd.f32 %v2033_v20, %v844_v54 }
 0x14f   : > { %1446 = vst [vmem:[%s2055_s27 + $0xe4] sm:$0xff] %v1667_v52  ;;  %1451 = vst [vmem:[%s2055_s27 + $0x104] sm:$0xf] %v1672_v53  ;;  %v970_v62 = vadd.f32 %v2126_v45, %v857_v55  ;;  %v847_v63 = vmul.f32 %v2027_v16, %v552_v59  ;;  %v860_v0 = vmul.f32 %v2103_v14, %v738_v60  ;;  %v1052_v1 = vmax.f32 %v956_v2, 0.0 }
 0x150   : > { %v1072_v3 = vmax.f32 %v976_v38, 0.0  ;;  %v959_v4 = vadd.f32 %v2030_v17, %v846_v57  ;;  %v979_v5 = vadd.f32 %v2126_v45, %v866_v58  ;;  %v1053_v6 = vmax.f32 %v957_v61, 0.0 }
 0x151   : > { %v1066_v7 = vmax.f32 %v970_v62, 0.0  ;;  %v960_v8 = vadd.f32 %v2033_v20, %v847_v63  ;;  %v973_v9 = vadd.f32 %v2126_v45, %v860_v0 }
 0x152   : > { %v1682_v10 = vpack.c.bf16 %v1072_v3, %v1072_v3  ;;  %v1055_v12 = vmax.f32 %v959_v4, 0.0  ;;  %v1075_v18 = vmax.f32 %v979_v5, 0.0  ;;  %v1669_v19 = vpack.c.bf16 %v1053_v6, %v1052_v1  ;;  %v556_v24 = vpop.f32.mrb[44].mxu0  ;;  %v1763_v25 = vpop.f32.mrb[44].mxu1 }
 0x153   : > { %v1678_v21 = vpack.c.bf16 %v1066_v7, %v1066_v7  ;;  %v1056_v22 = vmax.f32 %v960_v8, 0.0  ;;  %v1069_v23 = vmax.f32 %v973_v9, 0.0  ;;  %v849_v27 = vmul.f32 %v2024_v15, %v556_v24  ;;  %v558_v28 = vpop.f32.mrb[45].mxu0  ;;  %v751_v29 = vpop.f32.mrb[45].mxu1 }
 0x154   : > { %1461 = vst [vmem:[%s2055_s27 + $0x140] sm:$0xf] %v1682_v10  ;;  %v1684_v26 = vpack.c.bf16 %v1075_v18, %v1075_v18  ;;  %v875_v13 = vmul.f32 %v1763_v25, %v2103_v14  ;;  %1448 = vst [vmem:[%s2055_s27 + $0xf0] sm:$0xff] %v1669_v19  ;;  %v850_v32 = vmul.f32 %v2027_v16, %v558_v28  ;;  %v560_v34 = vpop.f32.mrb[46].mxu0  ;;  %v1764_v35 = vpop.f32.mrb[46].mxu1 }
 0x155   : > { %1457 = vst [vmem:[%s2055_s27 + $0x128] sm:$0xf] %v1678_v21  ;;  %v1671_v30 = vpack.c.bf16 %v1056_v22, %v1055_v12  ;;  %v1680_v31 = vpack.c.bf16 %v1069_v23, %v1069_v23  ;;  %v869_v33 = vmul.f32 %v2103_v14, %v751_v29  ;;  %v962_v36 = vadd.f32 %v2030_v17, %v849_v27  ;;  %v562_v41 = vpop.f32.mrb[47].mxu0  ;;  %v754_v42 = vpop.f32.mrb[47].mxu1 }
 0x156   : > { %1463 = vst [vmem:[%s2055_s27 + $0x14c] sm:$0xf] %v1684_v26  ;;  %v988_v37 = vadd.f32 %v2126_v45, %v875_v13  ;;  %v852_v39 = vmul.f32 %v2024_v15, %v560_v34  ;;  %v878_v40 = vmul.f32 %v1764_v35, %v2103_v14  ;;  %v963_v43 = vadd.f32 %v2033_v20, %v850_v32 }
 0x157   : > { %1450 = vst [vmem:[%s2055_s27 + $0xfc] sm:$0xff] %v1671_v30  ;;  %1459 = vst [vmem:[%s2055_s27 + $0x134] sm:$0xf] %v1680_v31  ;;  %v982_v44 = vadd.f32 %v2126_v45, %v869_v33  ;;  %v853_v46 = vmul.f32 %v2027_v16, %v562_v41  ;;  %v872_v47 = vmul.f32 %v2103_v14, %v754_v42  ;;  %v1058_v48 = vmax.f32 %v962_v36, 0.0 }
 0x158   : > { %v1084_v49 = vmax.f32 %v988_v37, 0.0  ;;  %v965_v15 = vadd.f32 %v2030_v17, %v852_v39  ;;  %v991_v50 = vadd.f32 %v2126_v45, %v878_v40  ;;  %v1059_v51 = vmax.f32 %v963_v43, 0.0 }
 0x159   : > { %v1078_v52 = vmax.f32 %v982_v44, 0.0  ;;  %v966_v53 = vadd.f32 %v2033_v20, %v853_v46  ;;  %v985_v54 = vadd.f32 %v2126_v45, %v872_v47 }
 0x15a   : > { %v1690_v16 = vpack.c.bf16 %v1084_v49, %v1084_v49  ;;  %v1061_v14 = vmax.f32 %v965_v15, 0.0  ;;  %v1087_v55 = vmax.f32 %v991_v50, 0.0  ;;  %v1673_v11 = vpack.c.bf16 %v1059_v51, %v1058_v48 }
 0x15b   : > { %v1686_v56 = vpack.c.bf16 %v1078_v52, %v1078_v52  ;;  %v1062_v2 = vmax.f32 %v966_v53, 0.0  ;;  %v1081_v38 = vmax.f32 %v985_v54, 0.0 }
 0x15c   : > { %1469 = vst [vmem:[%s2055_s27 + $0x170] sm:$0xf] %v1690_v16  ;;  %v1692_v17 = vpack.c.bf16 %v1087_v55, %v1087_v55  ;;  %1452 = vst [vmem:[%s2055_s27 + $0x108] sm:$0xff] %v1673_v11 }
 0x15d   : > { %1465 = vst [vmem:[%s2055_s27 + $0x158] sm:$0xf] %v1686_v56  ;;  %v1675_v57 = vpack.c.bf16 %v1062_v2, %v1061_v14  ;;  %v1688_v58 = vpack.c.bf16 %v1081_v38, %v1081_v38 }
 0x15e   : > { %1471 = vst [vmem:[%s2055_s27 + $0x17c] sm:$0xf] %v1692_v17 }
 0x15f   : > { %1454 = vst [vmem:[%s2055_s27 + $0x114] sm:$0xff] %v1675_v57  ;;  %1467 = vst [vmem:[%s2055_s27 + $0x164] sm:$0xf] %v1688_v58 }
 0x160 PF: > { %s14_s15 = sadd.s32 1, %s1829_s15  }
 0x161   : > { %p11_p4 = scmp.ge.s32.totalorder %s14_s15, 4  }
 0x163   :  { %13 = sbr.rel (!%p11_p4) target bundleno = 1 (0x1), region = 66 }

// kernel: inception_block_d.8
= control target key start
LH: loop header
LB: loop body
LE: loop exit
PB: predicated region body
PF: predicated region fallthrough
CT: control target
= control target key end

     0   :  { %s5323_s15 = smov 0   ;;  %s6312_s0 = inlined_call_operand.vmem [shape: bf16[512,1408], index: 0, kind: input, shape index: {}]   ;;  %s6313_s1 = inlined_call_operand.vmem [shape: bf16[1408,192], index: 1, kind: input, shape index: {}]   ;;  %s6314_s2 = inlined_call_operand.vmem [shape: f32[1,192], index: 2, kind: input, shape index: {}]   ;;  %s6315_s3 = inlined_call_operand.vmem [shape: f32[1,192], index: 3, kind: input, shape index: {}]   ;;  %s6316_s4 = inlined_call_operand.vmem [shape: bf16[512,192], index: 4, kind: output, shape index: {}]  }
   0x1 LB: > { %s4010_s16 = sadd.s32 4294967295, %s5295_s15   ;;  %p4014_p0 = scmp.ge.s32.totalorder %s5295_s15, 1  ;;  %s5295_s15 = sphi %s5323_s15, %s14_s15  }
   0x2   : > { %p164_p1 = scmp.lt.s32.totalorder %s5295_s15, 3 }
   0x4   : > { %p165_p2 = pnand %p4014_p0, %p164_p1 }
   0x5   : > { %v4769_v0 = vld [vmem:[%s6313_s1 + $0x4] ss:$8 sps:$4 sm:$0xff] (!%p165_p2)   ;;  %v4773_v2 = vld [vmem:[%s6313_s1] ss:$8 sps:$4 sm:$0xff] (!%p165_p2)   ;;  %v4775_v4 = vld [vmem:[%s6313_s1 + $0x14] ss:$8 sps:$4 sm:$0xff] (!%p165_p2)  }
   0x6   : > { %168 = sbr.rel (%p165_p2) target bundleno = 673 (0x2a1), region = 36  ;;  %v4771_v1 = vld [vmem:[%s6313_s1 + $0x304] ss:$8 sps:$4 sm:$0xff] (!%p165_p2)   ;;  %2351 = vmatprep.subr.bf16.mxu1 (!%p165_p2), %v4769_v0  ;;  %v4774_v3 = vld [vmem:[%s6313_s1 + $0x300] ss:$8 sps:$4 sm:$0xff] (!%p165_p2)   ;;  %s4015_s29 = sshll.u32 (!%p165_p2), %s4010_s16, 5 }
   0x7   : > { %2930 = vmatprep.subr.bf16.mxu0 (!%p165_p2), %v4771_v1  ;;  %2352 = vmatpush1.bf16.msra.mxu1 (!%p165_p2), %v4773_v2  ;;  %v4777_v5 = vld [vmem:[%s6313_s1 + $0x314] ss:$8 sps:$4 sm:$0xff] (!%p165_p2)   ;;  %v4779_v6 = vld [vmem:[%s6313_s1 + $0x10] ss:$8 sps:$4 sm:$0xff] (!%p165_p2)   ;;  %v4781_v8 = vld [vmem:[%s6313_s1 + $0x24] ss:$8 sps:$4 sm:$0xff] (!%p165_p2)  }
   0x8   : > { %2931 = vmatpush1.bf16.msra.mxu0 (!%p165_p2), %v4774_v3  ;;  %2353 = vmatprep.subr.bf16.mxu1 (!%p165_p2), %v4775_v4  ;;  %v4780_v7 = vld [vmem:[%s6313_s1 + $0x310] ss:$8 sps:$4 sm:$0xff] (!%p165_p2)   ;;  %v4783_v9 = vld [vmem:[%s6313_s1 + $0x324] ss:$8 sps:$4 sm:$0xff] (!%p165_p2)   ;;  %v4785_v10 = vld [vmem:[%s6313_s1 + $0x20] ss:$8 sps:$4 sm:$0xff] (!%p165_p2)  }
   0x9   : > { %2932 = vmatprep.subr.bf16.mxu0 (!%p165_p2), %v4777_v5  ;;  %v4786_v11 = vld [vmem:[%s6313_s1 + $0x320] ss:$8 sps:$4 sm:$0xff] (!%p165_p2)   ;;  %v4787_v12 = vld [vmem:[%s6313_s1 + $0x34] ss:$8 sps:$4 sm:$0xff] (!%p165_p2)   ;;  %v4791_v14 = vld [vmem:[%s6313_s1 + $0x30] ss:$8 sps:$4 sm:$0xff] (!%p165_p2)  }
   0xa   : > { %v4789_v13 = vld [vmem:[%s6313_s1 + $0x334] ss:$8 sps:$4 sm:$0xff] (!%p165_p2)   ;;  %v4792_v15 = vld [vmem:[%s6313_s1 + $0x330] ss:$8 sps:$4 sm:$0xff] (!%p165_p2)   ;;  %v4793_v16 = vld [vmem:[%s6313_s1 + $0x44] ss:$8 sps:$4 sm:$0xff] (!%p165_p2)  }
   0xb   : > { %2354 = vmatpush1.bf16.msra.mxu1 (!%p165_p2), %v4779_v6  ;;  %v4795_v17 = vld [vmem:[%s6313_s1 + $0x344] ss:$8 sps:$4 sm:$0xff] (!%p165_p2)   ;;  %v4797_v18 = vld [vmem:[%s6313_s1 + $0x40] ss:$8 sps:$4 sm:$0xff] (!%p165_p2)   ;;  %v4799_v20 = vld [vmem:[%s6313_s1 + $0x54] ss:$8 sps:$4 sm:$0xff] (!%p165_p2)  }
   0xc   : > { %2933 = vmatpush1.bf16.msra.mxu0 (!%p165_p2), %v4780_v7  ;;  %2355 = vmatprep.subr.bf16.mxu1 (!%p165_p2), %v4781_v8  ;;  %v4798_v19 = vld [vmem:[%s6313_s1 + $0x340] ss:$8 sps:$4 sm:$0xff] (!%p165_p2)   ;;  %v4801_v21 = vld [vmem:[%s6313_s1 + $0x354] ss:$8 sps:$4 sm:$0xff] (!%p165_p2)   ;;  %v4803_v22 = vld [vmem:[%s6313_s1 + $0x50] ss:$8 sps:$4 sm:$0xff] (!%p165_p2)  }
   0xd   : > { %2934 = vmatprep.subr.bf16.mxu0 %v4783_v9  ;;  %v4804_v23 = vld [vmem:[%s6313_s1 + $0x350] ss:$8 sps:$4 sm:$0xff]   ;;  %v4805_v24 = vld [vmem:[%s6313_s1 + $0x64] ss:$8 sps:$4 sm:$0xff]   ;;  %v4809_v26 = vld [vmem:[%s6313_s1 + $0x60] ss:$8 sps:$4 sm:$0xff]  }
   0xe   : > { %v4807_v25 = vld [vmem:[%s6313_s1 + $0x364] ss:$8 sps:$4 sm:$0xff]   ;;  %v4810_v27 = vld [vmem:[%s6313_s1 + $0x360] ss:$8 sps:$4 sm:$0xff]   ;;  %v4811_v28 = vld [vmem:[%s6313_s1 + $0x74] ss:$8 sps:$4 sm:$0xff]  }
   0xf   : > { %2356 = vmatpush1.bf16.msra.mxu1 %v4785_v10  ;;  %v4813_v29 = vld [vmem:[%s6313_s1 + $0x374] ss:$8 sps:$4 sm:$0xff]   ;;  %v4815_v30 = vld [vmem:[%s6313_s1 + $0x70] ss:$8 sps:$4 sm:$0xff]   ;;  %v4817_v32 = vld [vmem:[%s6313_s1 + $0x84] ss:$8 sps:$4 sm:$0xff]  }
  0x10   : > { %2935 = vmatpush1.bf16.msra.mxu0 %v4786_v11  ;;  %2357 = vmatprep.subr.bf16.mxu1 %v4787_v12  ;;  %v4816_v31 = vld [vmem:[%s6313_s1 + $0x370] ss:$8 sps:$4 sm:$0xff]   ;;  %p193_p3 = scmp.lt.s32.totalorder %s4015_s29, 63  ;;  %v4819_v33 = vld [vmem:[%s6313_s1 + $0x384] ss:$8 sps:$4 sm:$0xff]   ;;  %vm3917_vm0 = vcmask 1043456  }
  0x11   : > { %2936 = vmatprep.subr.bf16.mxu0 %v4789_v13  ;;  %v4821_v34 = vld [vmem:[%s6313_s1 + $0x80] ss:$8 sps:$4 sm:$0xff]   ;;  %v4823_v36 = vld [vmem:[%s6313_s1 + $0x94] ss:$8 sps:$4 sm:$0xff]   ;;  %v4827_v38 = vld [vmem:[%s6313_s1 + $0x90] ss:$8 sps:$4 sm:$0xff]  }
  0x12   : > { %v4822_v35 = vld [vmem:[%s6313_s1 + $0x380] ss:$8 sps:$4 sm:$0xff]   ;;  %s6320_s29 = smov (!%p193_p3, %s4015_s29), 63  ;;  %v4825_v37 = vld [vmem:[%s6313_s1 + $0x394] ss:$8 sps:$4 sm:$0xff]   ;;  %vm3918_vm1 = vcmask 523268  }
  0x13   : > { %2358 = vmatpush1.bf16.msra.mxu1 %v4791_v14  ;;  %v4828_v39 = vld [vmem:[%s6313_s1 + $0x390] ss:$8 sps:$4 sm:$0xff]   ;;  %v4829_v40 = vld [vmem:[%s6313_s1 + $0xa4] ss:$8 sps:$4 sm:$0xff]   ;;  %s4759_s27 = smul.u32 44, %s6320_s29  ;;  %vm6089_vm2 = vmor %vm3918_vm1, %vm3917_vm0 }
  0x14   : > { %2937 = vmatpush1.bf16.msra.mxu0 %v4792_v15  ;;  %2359 = vmatprep.subr.bf16.mxu1 %v4793_v16  ;;  %v4831_v41 = vld [vmem:[%s6313_s1 + $0x3a4] ss:$8 sps:$4 sm:$0xff]   ;;  %v4833_v42 = vld [vmem:[%s6313_s1 + $0xa0] ss:$8 sps:$4 sm:$0xff]   ;;  %v4835_v44 = vld [vmem:[%s6313_s1 + $0xb4] ss:$8 sps:$4 sm:$0xff]  }
  0x15   : > { %2938 = vmatprep.subr.bf16.mxu0 %v4795_v17  ;;  %v4834_v43 = vld [vmem:[%s6313_s1 + $0x3a0] ss:$8 sps:$4 sm:$0xff]   ;;  %s5474_s12 = scalar_lea.vmem %s6312_s0, %s4759_s27  ;;  %v4837_v45 = vld [vmem:[%s6313_s1 + $0x3b4] ss:$8 sps:$4 sm:$0xff]   ;;  %v4839_v46 = vld [vmem:[%s6313_s1 + $0xb0] ss:$8 sps:$4 sm:$0xff]  }
  0x16   : > { %v4840_v47 = vld [vmem:[%s6313_s1 + $0x3b0] ss:$8 sps:$4 sm:$0xff]   ;;  %v4841_v48 = vld [vmem:[%s6313_s1 + $0xc4] ss:$8 sps:$4 sm:$0xff]   ;;  %v4870_v51 = vld [vmem:[%s5474_s12 + $0x1c] ss:$44 sps:$4 sm:$0xff]  }
  0x17   : > { %2360 = vmatpush1.bf16.msra.mxu1 %v4797_v18  ;;  %v4867_v49 = vld [vmem:[%s5474_s12 + $0x4] ss:$44 sps:$4 sm:$0xff]   ;;  %v4845_v52 = vld [vmem:[%s6313_s1 + $0xc0] ss:$8 sps:$4 sm:$0xff]   ;;  %2962 = vmatprep.mubr.bf16.mxu0 %v4870_v51  ;;  %v4847_v54 = vld [vmem:[%s6313_s1 + $0xd4] ss:$8 sps:$4 sm:$0xff]  }
  0x18   : > { %2939 = vmatpush1.bf16.msra.mxu0 %v4798_v19  ;;  %2361 = vmatprep.subr.bf16.mxu1 %v4799_v20  ;;  %v4843_v50 = vld [vmem:[%s6313_s1 + $0x3c4] ss:$8 sps:$4 sm:$0xff]   ;;  %v4846_v53 = vld [vmem:[%s6313_s1 + $0x3c0] ss:$8 sps:$4 sm:$0xff]   ;;  %v4849_v55 = vld [vmem:[%s6313_s1 + $0x3d4] ss:$8 sps:$4 sm:$0xff]  }
  0x19   : > { %2940 = vmatprep.subr.bf16.mxu0 %v4801_v21  ;;  %2383 = vmatprep.mubr.bf16.mxu1 %v4867_v49  ;;  %v4851_v56 = vld [vmem:[%s6313_s1 + $0xd0] ss:$8 sps:$4 sm:$0xff]   ;;  %v4853_v58 = vld [vmem:[%s6313_s1 + $0xe4] ss:$8 sps:$4 sm:$0xff]   ;;  %v4857_v60 = vld [vmem:[%s6313_s1 + $0xe0] ss:$8 sps:$4 sm:$0xff]  }
  0x1a   : > { %v4852_v57 = vld [vmem:[%s6313_s1 + $0x3d0] ss:$8 sps:$4 sm:$0xff]   ;;  %v4855_v59 = vld [vmem:[%s6313_s1 + $0x3e4] ss:$8 sps:$4 sm:$0xff]   ;;  %v4858_v61 = vld [vmem:[%s6313_s1 + $0x3e0] ss:$8 sps:$4 sm:$0xff]  }
  0x1b   : > { %2362 = vmatpush1.bf16.msra.mxu1 %v4803_v22  ;;  %v4859_v62 = vld [vmem:[%s6313_s1 + $0xf4] ss:$8 sps:$4 sm:$0xff]   ;;  %v4863_v0 = vld [vmem:[%s6313_s1 + $0xf0] ss:$8 sps:$4 sm:$0xff]   ;;  %v4873_v2 = vld [vmem:[%s6313_s1 + $0x104] ss:$8 sps:$4 sm:$0xff]  }
  0x1c   : > { %2941 = vmatpush1.bf16.msra.mxu0 %v4804_v23  ;;  %2363 = vmatprep.subr.bf16.mxu1 %v4805_v24  ;;  %v4861_v63 = vld [vmem:[%s6313_s1 + $0x3f4] ss:$8 sps:$4 sm:$0xff]   ;;  %v4864_v1 = vld [vmem:[%s6313_s1 + $0x3f0] ss:$8 sps:$4 sm:$0xff]   ;;  %v4865_v3 = vld [vmem:[%s5474_s12] ss:$44 sps:$4 sm:$0xff]  }
  0x1d   : > { %2942 = vmatprep.subr.bf16.mxu0 %v4807_v25  ;;  %v4876_v4 = vld [vmem:[%s6313_s1 + $0x404] ss:$8 sps:$4 sm:$0xff]   ;;  %v4871_v6 = vld [vmem:[%s6313_s1 + $0x100] ss:$8 sps:$4 sm:$0xff]   ;;  %v4884_v10 = vld [vmem:[%s6313_s1 + $0x114] ss:$8 sps:$4 sm:$0xff]  }
  0x1e   : > { %v4868_v5 = vld [vmem:[%s5474_s12 + $0x18] ss:$44 sps:$4 sm:$0xff]   ;;  %v4874_v7 = vld [vmem:[%s6313_s1 + $0x400] ss:$8 sps:$4 sm:$0xff]   ;;  %v4888_v11 = vld [vmem:[%s6313_s1 + $0x414] ss:$8 sps:$4 sm:$0xff]  }
  0x1f   : > { %2364 = vmatpush1.bf16.msra.mxu1 %v4809_v26  ;;  %v4877_v8 = vld [vmem:[%s5474_s12 + $0x5c] ss:$44 sps:$4 sm:$0xff]   ;;  %v4879_v9 = vld [vmem:[%s5474_s12 + $0x74] ss:$44 sps:$4 sm:$0xff]   ;;  %v4882_v12 = vld [vmem:[%s6313_s1 + $0x110] ss:$8 sps:$4 sm:$0xff]  }
  0x20   : > { %2943 = vmatpush1.bf16.msra.mxu0 %v4810_v27  ;;  %2365 = vmatprep.subr.bf16.mxu1 %v4811_v28  ;;  %v4886_v13 = vld [vmem:[%s6313_s1 + $0x410] ss:$8 sps:$4 sm:$0xff]   ;;  %v4896_v14 = vld [vmem:[%s6313_s1 + $0x124] ss:$8 sps:$4 sm:$0xff]   ;;  %v4889_v18 = vld [vmem:[%s5474_s12 + $0xb4] ss:$44 sps:$4 sm:$0xff]  }
  0x21   : > { %2944 = vmatprep.subr.bf16.mxu0 %v4813_v29  ;;  %v4900_v15 = vld [vmem:[%s6313_s1 + $0x424] ss:$8 sps:$4 sm:$0xff]   ;;  %v4885_v17 = vld [vmem:[%s5474_s12 + $0x70] ss:$44 sps:$4 sm:$0xff]   ;;  %v4894_v20 = vld [vmem:[%s6313_s1 + $0x120] ss:$8 sps:$4 sm:$0xff]  }
  0x22   : > { %v4881_v16 = vld [vmem:[%s5474_s12 + $0x58] ss:$44 sps:$4 sm:$0xff]   ;;  %v4898_v21 = vld [vmem:[%s6313_s1 + $0x420] ss:$8 sps:$4 sm:$0xff]   ;;  %v4908_v22 = vld [vmem:[%s6313_s1 + $0x134] ss:$8 sps:$4 sm:$0xff]  }
  0x23   : > { %2366 = vmatpush1.bf16.msra.mxu1 %v4815_v30  ;;  %v4891_v19 = vld [vmem:[%s5474_s12 + $0xcc] ss:$44 sps:$4 sm:$0xff]   ;;  %v4912_v23 = vld [vmem:[%s6313_s1 + $0x434] ss:$8 sps:$4 sm:$0xff]  }
  0x24   : > { %2945 = vmatpush1.bf16.msra.mxu0 %v4816_v31  ;;  %2367 = vmatprep.subr.bf16.mxu1 %v4817_v32  ;;  %v4906_v24 = vld [vmem:[%s6313_s1 + $0x130] ss:$8 sps:$4 sm:$0xff]   ;;  %v4897_v26 = vld [vmem:[%s5474_s12 + $0xc8] ss:$44 sps:$4 sm:$0xff]   ;;  %v4920_v29 = vld [vmem:[%s6313_s1 + $0x144] ss:$8 sps:$4 sm:$0xff]  }
  0x25   : > { %2946 = vmatprep.subr.bf16.mxu0 %v4819_v33  ;;  %v4893_v25 = vld [vmem:[%s5474_s12 + $0xb0] ss:$44 sps:$4 sm:$0xff]   ;;  %v4901_v28 = vld [vmem:[%s5474_s12 + $0x10c] ss:$44 sps:$4 sm:$0xff]   ;;  %v4918_v32 = vld [vmem:[%s6313_s1 + $0x140] ss:$8 sps:$4 sm:$0xff]  }
  0x26   : > { %v4910_v27 = vld [vmem:[%s6313_s1 + $0x430] ss:$8 sps:$4 sm:$0xff]   ;;  %v4924_v30 = vld [vmem:[%s6313_s1 + $0x444] ss:$8 sps:$4 sm:$0xff]   ;;  %v4922_v33 = vld [vmem:[%s6313_s1 + $0x440] ss:$8 sps:$4 sm:$0xff]  }
  0x27   : > { %2368 = vmatpush1.bf16.msra.mxu1 %v4821_v34  ;;  %v4903_v31 = vld [vmem:[%s5474_s12 + $0x124] ss:$44 sps:$4 sm:$0xff]   ;;  %v4932_v34 = vld [vmem:[%s6313_s1 + $0x154] ss:$8 sps:$4 sm:$0xff]   ;;  %v4917_v49 = vld [vmem:[%s5474_s12 + $0x160] ss:$44 sps:$4 sm:$0xff]  }
  0x28   : > { %2947 = vmatpush1.bf16.msra.mxu0 %v4822_v35  ;;  %2369 = vmatprep.subr.bf16.mxu1 %v4823_v36  ;;  %v4936_v35 = vld [vmem:[%s6313_s1 + $0x454] ss:$8 sps:$4 sm:$0xff]   ;;  %v4930_v36 = vld [vmem:[%s6313_s1 + $0x150] ss:$8 sps:$4 sm:$0xff]  }
  0x29   : > { %2948 = vmatprep.subr.bf16.mxu0 %v4825_v37  ;;  %v4934_v37 = vld [vmem:[%s6313_s1 + $0x450] ss:$8 sps:$4 sm:$0xff]  }
  0x2a   : > { %v4958_v51 = vld [vmem:[%s6313_s1 + $0x470] ss:$8 sps:$4 sm:$0xff]  }
  0x2b   : > { %2370 = vmatpush1.bf16.msra.mxu1 %v4827_v38  ;;  %v4905_v38 = vld [vmem:[%s5474_s12 + $0x108] ss:$44 sps:$4 sm:$0xff]  }
  0x2c   : > { %2949 = vmatpush1.bf16.msra.mxu0 %v4828_v39  ;;  %2371 = vmatprep.subr.bf16.mxu1 %v4829_v40  ;;  %v4944_v39 = vld [vmem:[%s6313_s1 + $0x164] ss:$8 sps:$4 sm:$0xff]  }
  0x2d   : > { %2950 = vmatprep.subr.bf16.mxu0 %v4831_v41  ;;  %v4948_v40 = vld [vmem:[%s6313_s1 + $0x464] ss:$8 sps:$4 sm:$0xff]  }
  0x2e   : > { %v4909_v41 = vld [vmem:[%s5474_s12 + $0x120] ss:$44 sps:$4 sm:$0xff]  }
  0x2f   : > { %2372 = vmatpush1.bf16.msra.mxu1 %v4833_v42  ;;  %v4913_v42 = vld [vmem:[%s5474_s12 + $0x164] ss:$44 sps:$4 sm:$0xff]  }
  0x30   : > { %2951 = vmatpush1.bf16.msra.mxu0 %v4834_v43  ;;  %2373 = vmatprep.subr.bf16.mxu1 %v4835_v44  ;;  %v4915_v43 = vld [vmem:[%s5474_s12 + $0x17c] ss:$44 sps:$4 sm:$0xff]  }
  0x31   : > { %2952 = vmatprep.subr.bf16.mxu0 %v4837_v45  ;;  %v4942_v44 = vld [vmem:[%s6313_s1 + $0x160] ss:$8 sps:$4 sm:$0xff]  }
  0x32   : > { %v4946_v45 = vld [vmem:[%s6313_s1 + $0x460] ss:$8 sps:$4 sm:$0xff]  }
  0x33   : > { %2374 = vmatpush1.bf16.msra.mxu1 %v4839_v46  ;;  %v4956_v46 = vld [vmem:[%s6313_s1 + $0x174] ss:$8 sps:$4 sm:$0xff]  }
  0x34   : > { %2953 = vmatpush1.bf16.msra.mxu0 %v4840_v47  ;;  %2375 = vmatprep.subr.bf16.mxu1 %v4841_v48  ;;  %v4960_v47 = vld [vmem:[%s6313_s1 + $0x474] ss:$8 sps:$4 sm:$0xff]   ;;  %v4954_v48 = vld [vmem:[%s6313_s1 + $0x170] ss:$8 sps:$4 sm:$0xff]  }
  0x35   : > { %2954 = vmatprep.subr.bf16.mxu0 %v4843_v50  ;;  %v4921_v50 = vld [vmem:[%s5474_s12 + $0x178] ss:$44 sps:$4 sm:$0xff]  }
  0x37   : > { %2376 = vmatpush1.bf16.msra.mxu1 %v4845_v52  ;;  %v4925_v52 = vld [vmem:[%s5474_s12 + $0x1bc] ss:$44 sps:$4 sm:$0xff]  }
  0x38   : > { %2955 = vmatpush1.bf16.msra.mxu0 %v4846_v53  ;;  %2377 = vmatprep.subr.bf16.mxu1 %v4847_v54  ;;  %v4968_v53 = vld [vmem:[%s6313_s1 + $0x184] ss:$8 sps:$4 sm:$0xff]  }
  0x39   : > { %2956 = vmatprep.subr.bf16.mxu0 %v4849_v55  ;;  %v4972_v54 = vld [vmem:[%s6313_s1 + $0x484] ss:$8 sps:$4 sm:$0xff]   ;;  %v4927_v55 = vld [vmem:[%s5474_s12 + $0x1d4] ss:$44 sps:$4 sm:$0xff]  }
  0x3b   : > { %2378 = vmatpush1.bf16.msra.mxu1 %v4851_v56  ;;  %v4966_v56 = vld [vmem:[%s6313_s1 + $0x180] ss:$8 sps:$4 sm:$0xff]  }
  0x3c   : > { %2957 = vmatpush1.bf16.msra.mxu0 %v4852_v57  ;;  %2379 = vmatprep.subr.bf16.mxu1 %v4853_v58  ;;  %v4970_v57 = vld [vmem:[%s6313_s1 + $0x480] ss:$8 sps:$4 sm:$0xff]   ;;  %v4980_v58 = vld [vmem:[%s6313_s1 + $0x194] ss:$8 sps:$4 sm:$0xff]  }
  0x3d   : > { %2958 = vmatprep.subr.bf16.mxu0 %v4855_v59  ;;  %v4984_v59 = vld [vmem:[%s6313_s1 + $0x494] ss:$8 sps:$4 sm:$0xff]  }
  0x3f   : > { %2380 = vmatpush1.bf16.msra.mxu1 %v4857_v60  ;;  %v4978_v60 = vld [vmem:[%s6313_s1 + $0x190] ss:$8 sps:$4 sm:$0xff]  }
  0x40   : > { %2959 = vmatpush1.bf16.msra.mxu0 %v4858_v61  ;;  %2381 = vmatprep.subr.bf16.mxu1 %v4859_v62  ;;  %v4982_v61 = vld [vmem:[%s6313_s1 + $0x490] ss:$8 sps:$4 sm:$0xff]  }
  0x41   : > { %2960 = vmatprep.subr.bf16.mxu0 %v4861_v63  ;;  %v4929_v62 = vld [vmem:[%s5474_s12 + $0x1b8] ss:$44 sps:$4 sm:$0xff]  }
  0x42   : > { %v4992_v63 = vld [vmem:[%s6313_s1 + $0x1a4] ss:$8 sps:$4 sm:$0xff]  }
  0x43   : > { %2382 = vmatpush1.bf16.msra.mxu1 %v4863_v0  ;;  %v4996_v0 = vld [vmem:[%s6313_s1 + $0x4a4] ss:$8 sps:$4 sm:$0xff]  }
  0x44   : > { %2961 = vmatpush1.bf16.msra.mxu0 %v4864_v1  ;;  %2544 = vmatprep.subr.bf16.mxu1 %v4873_v2  ;;  %v4933_v1 = vld [vmem:[%s5474_s12 + $0x1d0] ss:$44 sps:$4 sm:$0xff]   ;;  %v4937_v2 = vld [vmem:[%s5474_s12 + $0x214] ss:$44 sps:$4 sm:$0xff]  }
  0x45   : > { %3123 = vmatprep.subr.bf16.mxu0 %v4876_v4  ;;  %v4990_v4 = vld [vmem:[%s6313_s1 + $0x1a0] ss:$8 sps:$4 sm:$0xff]  }
  0x46   : > { %2384 = vmatmul.mubr.bf16.vlgmr.msra.gmra.mrb[0].mxu1 %v4865_v3  ;;  %v4939_v3 = vld [vmem:[%s5474_s12 + $0x22c] ss:$44 sps:$4 sm:$0xff]  }
  0x47   : > { %2963 = vmatmul.mubr.bf16.vlgmr.msra.gmra.mrb[0].mxu0 %v4868_v5  ;;  %2545 = vmatpush1.bf16.msra.mxu1 %v4871_v6  ;;  %v4994_v5 = vld [vmem:[%s6313_s1 + $0x4a0] ss:$8 sps:$4 sm:$0xff]   ;;  %v5004_v6 = vld [vmem:[%s6313_s1 + $0x1b4] ss:$8 sps:$4 sm:$0xff]  }
  0x48   : > { %3124 = vmatpush1.bf16.msra.mxu0 %v4874_v7  ;;  %2393 = vmatprep.mubr.bf16.mxu1 %v4877_v8  ;;  %v5008_v7 = vld [vmem:[%s6313_s1 + $0x4b4] ss:$8 sps:$4 sm:$0xff]   ;;  %v5002_v8 = vld [vmem:[%s6313_s1 + $0x1b0] ss:$8 sps:$4 sm:$0xff]  }
  0x49   : > { %2972 = vmatprep.mubr.bf16.mxu0 %v4879_v9  ;;  %2546 = vmatprep.subr.bf16.mxu1 %v4884_v10  ;;  %v4941_v9 = vld [vmem:[%s5474_s12 + $0x210] ss:$44 sps:$4 sm:$0xff]   ;;  %v4945_v10 = vld [vmem:[%s5474_s12 + $0x228] ss:$44 sps:$4 sm:$0xff]  }
  0x4a   : > { %3125 = vmatprep.subr.bf16.mxu0 %v4888_v11  ;;  %v5006_v11 = vld [vmem:[%s6313_s1 + $0x4b0] ss:$8 sps:$4 sm:$0xff]  }
  0x4b   : > { %2547 = vmatpush1.bf16.msra.mxu1 %v4882_v12  ;;  %v4949_v12 = vld [vmem:[%s5474_s12 + $0x26c] ss:$44 sps:$4 sm:$0xff]  }
  0x4c   : > { %3126 = vmatpush1.bf16.msra.mxu0 %v4886_v13  ;;  %2548 = vmatprep.subr.bf16.mxu1 %v4896_v14  ;;  %v5016_v13 = vld [vmem:[%s6313_s1 + $0x1c4] ss:$8 sps:$4 sm:$0xff]  }
  0x4d   : > { %3127 = vmatprep.subr.bf16.mxu0 %v4900_v15  ;;  %v4951_v14 = vld [vmem:[%s5474_s12 + $0x284] ss:$44 sps:$4 sm:$0xff]  }
  0x4e   : > { %2394 = vmatmul.mubr.bf16.gmra.mrb[4].mxu1 %v4881_v16  ;;  %v5020_v15 = vld [vmem:[%s6313_s1 + $0x4c4] ss:$8 sps:$4 sm:$0xff]   ;;  %v5014_v16 = vld [vmem:[%s6313_s1 + $0x1c0] ss:$8 sps:$4 sm:$0xff]  }
  0x4f   : > { %2973 = vmatmul.mubr.bf16.gmra.mrb[4].mxu0 %v4885_v17  ;;  %2403 = vmatprep.mubr.bf16.mxu1 %v4889_v18  ;;  %v5018_v17 = vld [vmem:[%s6313_s1 + $0x4c0] ss:$8 sps:$4 sm:$0xff]   ;;  %v5026_v18 = vld [vmem:[%s6313_s1 + $0x1d0] ss:$8 sps:$4 sm:$0xff]  }
  0x50   : > { %2982 = vmatprep.mubr.bf16.mxu0 %v4891_v19  ;;  %2549 = vmatpush1.bf16.msra.mxu1 %v4894_v20  ;;  %v5028_v19 = vld [vmem:[%s6313_s1 + $0x1d4] ss:$8 sps:$4 sm:$0xff]   ;;  %v5030_v20 = vld [vmem:[%s6313_s1 + $0x4d0] ss:$8 sps:$4 sm:$0xff]  }
  0x51   : > { %3128 = vmatpush1.bf16.msra.mxu0 %v4898_v21  ;;  %2550 = vmatprep.subr.bf16.mxu1 %v4908_v22  ;;  %v5032_v21 = vld [vmem:[%s6313_s1 + $0x4d4] ss:$8 sps:$4 sm:$0xff]  }
  0x52   : > { %3129 = vmatprep.subr.bf16.mxu0 %v4912_v23  ;;  %v4953_v22 = vld [vmem:[%s5474_s12 + $0x268] ss:$44 sps:$4 sm:$0xff]   ;;  %v4957_v23 = vld [vmem:[%s5474_s12 + $0x280] ss:$44 sps:$4 sm:$0xff]  }
  0x54   : > { %2551 = vmatpush1.bf16.msra.mxu1 %v4906_v24  ;;  %v4961_v24 = vld [vmem:[%s5474_s12 + $0x2c4] ss:$44 sps:$4 sm:$0xff]  }
  0x55   : > { %3130 = vmatpush1.bf16.msra.mxu0 %v4910_v27  ;;  %2552 = vmatprep.subr.bf16.mxu1 %v4920_v29  ;;  %v5038_v27 = vld [vmem:[%s6313_s1 + $0x1e0] ss:$8 sps:$4 sm:$0xff]   ;;  %v5044_v29 = vld [vmem:[%s6313_s1 + $0x4e4] ss:$8 sps:$4 sm:$0xff]  }
  0x56   : > { %3131 = vmatprep.subr.bf16.mxu0 %v4924_v30  ;;  %2404 = vmatmul.mubr.bf16.gmra.mrb[8].mxu1 %v4893_v25  ;;  %v4963_v25 = vld [vmem:[%s5474_s12 + $0x2dc] ss:$44 sps:$4 sm:$0xff]   ;;  %v4965_v30 = vld [vmem:[%s5474_s12 + $0x2c0] ss:$44 sps:$4 sm:$0xff]  }
  0x57   : > { %2983 = vmatmul.mubr.bf16.gmra.mrb[8].mxu0 %v4897_v26  ;;  %2413 = vmatprep.mubr.bf16.mxu1 %v4901_v28  ;;  %v5040_v26 = vld [vmem:[%s6313_s1 + $0x1e4] ss:$8 sps:$4 sm:$0xff]   ;;  %v5042_v28 = vld [vmem:[%s6313_s1 + $0x4e0] ss:$8 sps:$4 sm:$0xff]  }
  0x58   : > { %2992 = vmatprep.mubr.bf16.mxu0 %v4903_v31  ;;  %2553 = vmatpush1.bf16.msra.mxu1 %v4918_v32  ;;  %v4969_v31 = vld [vmem:[%s5474_s12 + $0x2d8] ss:$44 sps:$4 sm:$0xff]  }
  0x59   : > { %3132 = vmatpush1.bf16.msra.mxu0 %v4922_v33  ;;  %2554 = vmatprep.subr.bf16.mxu1 %v4932_v34  ;;  %v5050_v32 = vld [vmem:[%s6313_s1 + $0x1f0] ss:$8 sps:$4 sm:$0xff]   ;;  %v4973_v33 = vld [vmem:[%s5474_s12 + $0x31c] ss:$44 sps:$4 sm:$0xff]  }
  0x5a   : > { %3133 = vmatprep.subr.bf16.mxu0 %v4936_v35  ;;  %v5052_v34 = vld [vmem:[%s6313_s1 + $0x1f4] ss:$8 sps:$4 sm:$0xff]   ;;  %v5054_v35 = vld [vmem:[%s6313_s1 + $0x4f0] ss:$8 sps:$4 sm:$0xff]  }
  0x5c   : > { %2555 = vmatpush1.bf16.msra.mxu1 %v4930_v36  ;;  %v5056_v36 = vld [vmem:[%s6313_s1 + $0x4f4] ss:$8 sps:$4 sm:$0xff]  }
  0x5d   : > { %3134 = vmatpush1.bf16.msra.mxu0 %v4934_v37  ;;  %2556 = vmatprep.subr.bf16.mxu1 %v4944_v39  ;;  %v4975_v37 = vld [vmem:[%s5474_s12 + $0x334] ss:$44 sps:$4 sm:$0xff]   ;;  %v5068_v39 = vld [vmem:[%s6313_s1 + $0x504] ss:$8 sps:$4 sm:$0xff]  }
  0x5e   : > { %3135 = vmatprep.subr.bf16.mxu0 %v4948_v40  ;;  %2414 = vmatmul.mubr.bf16.gmra.mrb[12].mxu1 %v4905_v38  ;;  %v5065_v38 = vld [vmem:[%s6313_s1 + $0x204] ss:$8 sps:$4 sm:$0xff]  }
  0x5f   : > { %2993 = vmatmul.mubr.bf16.gmra.mrb[12].mxu0 %v4909_v41  ;;  %2423 = vmatprep.mubr.bf16.mxu1 %v4913_v42  ;;  %v4977_v40 = vld [vmem:[%s5474_s12 + $0x318] ss:$44 sps:$4 sm:$0xff]   ;;  %v4981_v41 = vld [vmem:[%s5474_s12 + $0x330] ss:$44 sps:$4 sm:$0xff]   ;;  %v4985_v42 = vld [vmem:[%s5474_s12 + $0x374] ss:$44 sps:$4 sm:$0xff]  }
  0x60   : > { %3002 = vmatprep.mubr.bf16.mxu0 %v4915_v43  ;;  %2557 = vmatpush1.bf16.msra.mxu1 %v4942_v44  ;;  %v4987_v43 = vld [vmem:[%s5474_s12 + $0x38c] ss:$44 sps:$4 sm:$0xff]   ;;  %v4989_v44 = vld [vmem:[%s5474_s12 + $0x370] ss:$44 sps:$4 sm:$0xff]  }
  0x61   : > { %3136 = vmatpush1.bf16.msra.mxu0 %v4946_v45  ;;  %2558 = vmatprep.subr.bf16.mxu1 %v4956_v46  ;;  %v4993_v45 = vld [vmem:[%s5474_s12 + $0x388] ss:$44 sps:$4 sm:$0xff]   ;;  %v4997_v46 = vld [vmem:[%s5474_s12 + $0x3cc] ss:$44 sps:$4 sm:$0xff]  }
  0x62   : > { %3137 = vmatprep.subr.bf16.mxu0 %v4960_v47  ;;  %v4999_v47 = vld [vmem:[%s5474_s12 + $0x3e4] ss:$44 sps:$4 sm:$0xff]  }
  0x64   : > { %2559 = vmatpush1.bf16.msra.mxu1 %v4954_v48  ;;  %v5001_v48 = vld [vmem:[%s5474_s12 + $0x3c8] ss:$44 sps:$4 sm:$0xff]  }
  0x65   : > { %3138 = vmatpush1.bf16.msra.mxu0 %v4958_v51  ;;  %2560 = vmatprep.subr.bf16.mxu1 %v4968_v53  ;;  %v5011_v51 = vld [vmem:[%s5474_s12 + $0x43c] ss:$44 sps:$4 sm:$0xff]   ;;  %v5017_v53 = vld [vmem:[%s5474_s12 + $0x438] ss:$44 sps:$4 sm:$0xff]  }
  0x66   : > { %3139 = vmatprep.subr.bf16.mxu0 %v4972_v54  ;;  %2424 = vmatmul.mubr.bf16.gmra.mrb[16].mxu1 %v4917_v49  ;;  %v5005_v49 = vld [vmem:[%s5474_s12 + $0x3e0] ss:$44 sps:$4 sm:$0xff]   ;;  %v5021_v54 = vld [vmem:[%s5474_s12 + $0x47c] ss:$44 sps:$4 sm:$0xff]  }
  0x67   : > { %3003 = vmatmul.mubr.bf16.gmra.mrb[16].mxu0 %v4921_v50  ;;  %2433 = vmatprep.mubr.bf16.mxu1 %v4925_v52  ;;  %v5009_v50 = vld [vmem:[%s5474_s12 + $0x424] ss:$44 sps:$4 sm:$0xff]   ;;  %v5013_v52 = vld [vmem:[%s5474_s12 + $0x420] ss:$44 sps:$4 sm:$0xff]  }
  0x68   : > { %3012 = vmatprep.mubr.bf16.mxu0 %v4927_v55  ;;  %2561 = vmatpush1.bf16.msra.mxu1 %v4966_v56  ;;  %v5023_v55 = vld [vmem:[%s5474_s12 + $0x494] ss:$44 sps:$4 sm:$0xff]   ;;  %v5025_v56 = vld [vmem:[%s5474_s12 + $0x478] ss:$44 sps:$4 sm:$0xff]  }
  0x69   : > { %3140 = vmatpush1.bf16.msra.mxu0 %v4970_v57  ;;  %2562 = vmatprep.subr.bf16.mxu1 %v4980_v58  ;;  %v5029_v57 = vld [vmem:[%s5474_s12 + $0x490] ss:$44 sps:$4 sm:$0xff]   ;;  %v5033_v58 = vld [vmem:[%s5474_s12 + $0x4d4] ss:$44 sps:$4 sm:$0xff]  }
  0x6a   : > { %3141 = vmatprep.subr.bf16.mxu0 %v4984_v59  ;;  %v5035_v59 = vld [vmem:[%s5474_s12 + $0x4ec] ss:$44 sps:$4 sm:$0xff]  }
  0x6c   : > { %2563 = vmatpush1.bf16.msra.mxu1 %v4978_v60  ;;  %v5037_v60 = vld [vmem:[%s5474_s12 + $0x4d0] ss:$44 sps:$4 sm:$0xff]  }
  0x6d   : > { %3142 = vmatpush1.bf16.msra.mxu0 %v4982_v61  ;;  %2564 = vmatprep.subr.bf16.mxu1 %v4992_v63  ;;  %v5041_v61 = vld [vmem:[%s5474_s12 + $0x4e8] ss:$44 sps:$4 sm:$0xff]   ;;  %v5047_v63 = vld [vmem:[%s5474_s12 + $0x544] ss:$44 sps:$4 sm:$0xff]  }
  0x6e   : > { %3143 = vmatprep.subr.bf16.mxu0 %v4996_v0  ;;  %2434 = vmatmul.mubr.bf16.gmra.mrb[20].mxu1 %v4929_v62  ;;  %v5045_v62 = vld [vmem:[%s5474_s12 + $0x52c] ss:$44 sps:$4 sm:$0xff]   ;;  %v5049_v0 = vld [vmem:[%s5474_s12 + $0x528] ss:$44 sps:$4 sm:$0xff]  }
  0x6f   : > { %3013 = vmatmul.mubr.bf16.gmra.mrb[20].mxu0 %v4933_v1  ;;  %2443 = vmatprep.mubr.bf16.mxu1 %v4937_v2  ;;  %v5053_v1 = vld [vmem:[%s5474_s12 + $0x540] ss:$44 sps:$4 sm:$0xff]  }
  0x70   : > { %3022 = vmatprep.mubr.bf16.mxu0 %v4939_v3  ;;  %2565 = vmatpush1.bf16.msra.mxu1 %v4990_v4  ;;  %v5059_v2 = vld [vmem:[%s5474_s12 + $0xc] ss:$44 sps:$4 sm:$0xff]   ;;  %v5062_v3 = vld [vmem:[%s5474_s12 + $0x24] ss:$44 sps:$4 sm:$0xff]   ;;  %v5057_v4 = vld [vmem:[%s5474_s12 + $0x8] ss:$44 sps:$4 sm:$0xff]  }
  0x71   : > { %3144 = vmatpush1.bf16.msra.mxu0 %v4994_v5  ;;  %2566 = vmatprep.subr.bf16.mxu1 %v5004_v6  ;;  %v5060_v5 = vld [vmem:[%s5474_s12 + $0x20] ss:$44 sps:$4 sm:$0xff]  }
  0x72   : > { %3145 = vmatprep.subr.bf16.mxu0 %v5008_v7  ;;  %v5063_v6 = vld [vmem:[%s6313_s1 + $0x200] ss:$8 sps:$4 sm:$0xff]  }
  0x73   : > { %v5066_v7 = vld [vmem:[%s6313_s1 + $0x500] ss:$8 sps:$4 sm:$0xff]  }
  0x74   : > { %2567 = vmatpush1.bf16.msra.mxu1 %v5002_v8  ;;  %v5069_v8 = vld [vmem:[%s5474_s12 + $0x64] ss:$44 sps:$4 sm:$0xff]  }
  0x75   : > { %3146 = vmatpush1.bf16.msra.mxu0 %v5006_v11  ;;  %2568 = vmatprep.subr.bf16.mxu1 %v5016_v13  ;;  %v5089_v11 = vld [vmem:[%s6313_s1 + $0x514] ss:$8 sps:$4 sm:$0xff]   ;;  %v5085_v13 = vld [vmem:[%s6313_s1 + $0x224] ss:$8 sps:$4 sm:$0xff]  }
  0x76   : > { %3147 = vmatprep.subr.bf16.mxu0 %v5020_v15  ;;  %2444 = vmatmul.mubr.bf16.gmra.mrb[24].mxu1 %v4941_v9  ;;  %v5071_v9 = vld [vmem:[%s5474_s12 + $0x7c] ss:$44 sps:$4 sm:$0xff]   ;;  %v5110_v15 = vld [vmem:[%s6313_s1 + $0x524] ss:$8 sps:$4 sm:$0xff]  }
  0x77   : > { %3023 = vmatmul.mubr.bf16.gmra.mrb[24].mxu0 %v4945_v10  ;;  %2453 = vmatprep.mubr.bf16.mxu1 %v4949_v12  ;;  %v5076_v10 = vld [vmem:[%s6313_s1 + $0x214] ss:$8 sps:$4 sm:$0xff]   ;;  %v5074_v12 = vld [vmem:[%s6313_s1 + $0x210] ss:$8 sps:$4 sm:$0xff]  }
  0x78   : > { %3032 = vmatprep.mubr.bf16.mxu0 %v4951_v14  ;;  %2569 = vmatpush1.bf16.msra.mxu1 %v5014_v16  ;;  %v5087_v14 = vld [vmem:[%s6313_s1 + $0x510] ss:$8 sps:$4 sm:$0xff]   ;;  %v5073_v16 = vld [vmem:[%s5474_s12 + $0x60] ss:$44 sps:$4 sm:$0xff]  }
  0x79   : > { %3148 = vmatpush1.bf16.msra.mxu0 %v5018_v17  ;;  %2570 = vmatprep.subr.bf16.mxu1 %v5028_v19  ;;  %v5077_v17 = vld [vmem:[%s5474_s12 + $0x78] ss:$44 sps:$4 sm:$0xff]   ;;  %v5080_v19 = vld [vmem:[%s5474_s12 + $0xd4] ss:$44 sps:$4 sm:$0xff]  }
  0x7a   : > { %3149 = vmatprep.subr.bf16.mxu0 %v5032_v21  ;;  %v5108_v21 = vld [vmem:[%s6313_s1 + $0x520] ss:$8 sps:$4 sm:$0xff]  }
  0x7c   : > { %2571 = vmatpush1.bf16.msra.mxu1 %v5026_v18  ;;  %v5078_v18 = vld [vmem:[%s5474_s12 + $0xbc] ss:$44 sps:$4 sm:$0xff]  }
  0x7d   : > { %3150 = vmatpush1.bf16.msra.mxu0 %v5030_v20  ;;  %2572 = vmatprep.subr.bf16.mxu1 %v5040_v26  ;;  %v5083_v20 = vld [vmem:[%s6313_s1 + $0x220] ss:$8 sps:$4 sm:$0xff]   ;;  %v5082_v26 = vld [vmem:[%s5474_s12 + $0xb8] ss:$44 sps:$4 sm:$0xff]  }
  0x7e   : > { %2454 = vmatmul.mubr.bf16.gmra.mrb[28].mxu1 %v4953_v22  ;;  %3151 = vmatprep.subr.bf16.mxu0 %v5044_v29  ;;  %v5097_v22 = vld [vmem:[%s6313_s1 + $0x234] ss:$8 sps:$4 sm:$0xff]  }
  0x7f   : > { %3033 = vmatmul.mubr.bf16.gmra.mrb[28].mxu0 %v4957_v23  ;;  %2463 = vmatprep.mubr.bf16.mxu1 %v4961_v24  ;;  %v5131_v23 = vld [vmem:[%s6313_s1 + $0x534] ss:$8 sps:$4 sm:$0xff]   ;;  %v5095_v24 = vld [vmem:[%s6313_s1 + $0x230] ss:$8 sps:$4 sm:$0xff]  }
  0x80   : > { %3042 = vmatprep.mubr.bf16.mxu0 %v4963_v25  ;;  %2573 = vmatpush1.bf16.msra.mxu1 %v5038_v27  ;;  %v5106_v25 = vld [vmem:[%s6313_s1 + $0x244] ss:$8 sps:$4 sm:$0xff]   ;;  %v5086_v27 = vld [vmem:[%s5474_s12 + $0xd0] ss:$44 sps:$4 sm:$0xff]   ;;  %v5090_v29 = vld [vmem:[%s5474_s12 + $0x114] ss:$44 sps:$4 sm:$0xff]  }
  0x81   : > { %3152 = vmatpush1.bf16.msra.mxu0 %v5042_v28  ;;  %2574 = vmatprep.subr.bf16.mxu1 %v5052_v34  ;;  %v5129_v28 = vld [vmem:[%s6313_s1 + $0x530] ss:$8 sps:$4 sm:$0xff]   ;;  %v5150_v34 = vld [vmem:[%s6313_s1 + $0x540] ss:$8 sps:$4 sm:$0xff]  }
  0x82   : > { %3153 = vmatprep.subr.bf16.mxu0 %v5056_v36  ;;  %v5116_v36 = vld [vmem:[%s6313_s1 + $0x250] ss:$8 sps:$4 sm:$0xff]  }
  0x84   : > { %2575 = vmatpush1.bf16.msra.mxu1 %v5050_v32  ;;  %v5104_v32 = vld [vmem:[%s6313_s1 + $0x240] ss:$8 sps:$4 sm:$0xff]  }
  0x85   : > { %3154 = vmatpush1.bf16.msra.mxu0 %v5054_v35  ;;  %2737 = vmatprep.subr.bf16.mxu1 %v5065_v38  ;;  %v5173_v35 = vld [vmem:[%s6313_s1 + $0x554] ss:$8 sps:$4 sm:$0xff]   ;;  %v5127_v38 = vld [vmem:[%s6313_s1 + $0x264] ss:$8 sps:$4 sm:$0xff]  }
  0x86   : > { %2464 = vmatmul.mubr.bf16.gmra.mrb[32].mxu1 %v4965_v30  ;;  %3316 = vmatprep.subr.bf16.mxu0 %v5068_v39  ;;  %v5092_v30 = vld [vmem:[%s5474_s12 + $0x12c] ss:$44 sps:$4 sm:$0xff]  }
  0x87   : > { %3043 = vmatmul.mubr.bf16.gmra.mrb[32].mxu0 %v4969_v31  ;;  %2473 = vmatprep.mubr.bf16.mxu1 %v4973_v33  ;;  %v5152_v31 = vld [vmem:[%s6313_s1 + $0x544] ss:$8 sps:$4 sm:$0xff]   ;;  %v5118_v33 = vld [vmem:[%s6313_s1 + $0x254] ss:$8 sps:$4 sm:$0xff]  }
  0x88   : > { %3052 = vmatprep.mubr.bf16.mxu0 %v4975_v37  ;;  %v5171_v37 = vld [vmem:[%s6313_s1 + $0x550] ss:$8 sps:$4 sm:$0xff]   ;;  %v5194_v39 = vld [vmem:[%s6313_s1 + $0x564] ss:$8 sps:$4 sm:$0xff]  }
  0x8e   : > { %2474 = vmatmul.mubr.bf16.gmra.mrb[36].mxu1 %v4977_v40  ;;  %v5094_v40 = vld [vmem:[%s5474_s12 + $0x110] ss:$44 sps:$4 sm:$0xff]  }
  0x8f   : > { %3053 = vmatmul.mubr.bf16.gmra.mrb[36].mxu0 %v4981_v41  ;;  %2483 = vmatprep.mubr.bf16.mxu1 %v4985_v42  ;;  %v5098_v41 = vld [vmem:[%s5474_s12 + $0x128] ss:$44 sps:$4 sm:$0xff]   ;;  %v5099_v42 = vld [vmem:[%s5474_s12 + $0x16c] ss:$44 sps:$4 sm:$0xff]  }
  0x90   : > { %3062 = vmatprep.mubr.bf16.mxu0 %v4987_v43  ;;  %v5101_v43 = vld [vmem:[%s5474_s12 + $0x184] ss:$44 sps:$4 sm:$0xff]  }
  0x96   : > { %2484 = vmatmul.mubr.bf16.gmra.mrb[40].mxu1 %v4989_v44  ;;  %v5125_v44 = vld [vmem:[%s6313_s1 + $0x260] ss:$8 sps:$4 sm:$0xff]  }
  0x97   : > { %3063 = vmatmul.mubr.bf16.gmra.mrb[40].mxu0 %v4993_v45  ;;  %2493 = vmatprep.mubr.bf16.mxu1 %v4997_v46  ;;  %v5192_v45 = vld [vmem:[%s6313_s1 + $0x560] ss:$8 sps:$4 sm:$0xff]   ;;  %v5139_v46 = vld [vmem:[%s6313_s1 + $0x274] ss:$8 sps:$4 sm:$0xff]  }
  0x98   : > { %3072 = vmatprep.mubr.bf16.mxu0 %v4999_v47  ;;  %v5215_v47 = vld [vmem:[%s6313_s1 + $0x574] ss:$8 sps:$4 sm:$0xff]  }
  0x9e   : > { %2494 = vmatmul.mubr.bf16.gmra.mrb[44].mxu1 %v5001_v48  ;;  %v5137_v48 = vld [vmem:[%s6313_s1 + $0x270] ss:$8 sps:$4 sm:$0xff]  }
  0x9f   : > { %3073 = vmatmul.mubr.bf16.gmra.mrb[44].mxu0 %v5005_v49  ;;  %2503 = vmatprep.mubr.bf16.mxu1 %v5009_v50  ;;  %v5148_v49 = vld [vmem:[%s6313_s1 + $0x284] ss:$8 sps:$4 sm:$0xff]   ;;  %v5213_v50 = vld [vmem:[%s6313_s1 + $0x570] ss:$8 sps:$4 sm:$0xff]  }
  0xa0   : > { %3082 = vmatprep.mubr.bf16.mxu0 %v5011_v51  ;;  %v5103_v51 = vld [vmem:[%s5474_s12 + $0x168] ss:$44 sps:$4 sm:$0xff]  }
  0xa6   : > { %2504 = vmatmul.mubr.bf16.gmra.mrb[48].mxu1 %v5013_v52  ;;  %v5107_v52 = vld [vmem:[%s5474_s12 + $0x180] ss:$44 sps:$4 sm:$0xff]  }
  0xa7   : > { %3083 = vmatmul.mubr.bf16.gmra.mrb[48].mxu0 %v5017_v53  ;;  %2513 = vmatprep.mubr.bf16.mxu1 %v5021_v54  ;;  %v5111_v53 = vld [vmem:[%s5474_s12 + $0x1c4] ss:$44 sps:$4 sm:$0xff]   ;;  %v5113_v54 = vld [vmem:[%s5474_s12 + $0x1dc] ss:$44 sps:$4 sm:$0xff]  }
  0xa8   : > { %3092 = vmatprep.mubr.bf16.mxu0 %v5023_v55  ;;  %v5146_v55 = vld [vmem:[%s6313_s1 + $0x280] ss:$8 sps:$4 sm:$0xff]  }
  0xae   : > { %2514 = vmatmul.mubr.bf16.gmra.mrb[52].mxu1 %v5025_v56  ;;  %v5160_v56 = vld [vmem:[%s6313_s1 + $0x294] ss:$8 sps:$4 sm:$0xff]  }
  0xaf   : > { %3093 = vmatmul.mubr.bf16.gmra.mrb[52].mxu0 %v5029_v57  ;;  %2523 = vmatprep.mubr.bf16.mxu1 %v5033_v58  ;;  %v5158_v57 = vld [vmem:[%s6313_s1 + $0x290] ss:$8 sps:$4 sm:$0xff]   ;;  %v5169_v58 = vld [vmem:[%s6313_s1 + $0x2a4] ss:$8 sps:$4 sm:$0xff]  }
  0xb0   : > { %3102 = vmatprep.mubr.bf16.mxu0 %v5035_v59  ;;  %v5115_v59 = vld [vmem:[%s5474_s12 + $0x1c0] ss:$44 sps:$4 sm:$0xff]  }
  0xb6   : > { %2524 = vmatmul.mubr.bf16.gmra.mrb[56].mxu1 %v5037_v60  ;;  %v5119_v60 = vld [vmem:[%s5474_s12 + $0x1d8] ss:$44 sps:$4 sm:$0xff]  }
  0xb7   : > { %3103 = vmatmul.mubr.bf16.gmra.mrb[56].mxu0 %v5041_v61  ;;  %2533 = vmatprep.mubr.bf16.mxu1 %v5045_v62  ;;  %v5120_v61 = vld [vmem:[%s5474_s12 + $0x21c] ss:$44 sps:$4 sm:$0xff]   ;;  %v5122_v62 = vld [vmem:[%s5474_s12 + $0x234] ss:$44 sps:$4 sm:$0xff]  }
  0xb8   : > { %3112 = vmatprep.mubr.bf16.mxu0 %v5047_v63  ;;  %v5167_v63 = vld [vmem:[%s6313_s1 + $0x2a0] ss:$8 sps:$4 sm:$0xff]  }
  0xbe   : > { %2534 = vmatmul.mubr.bf16.gmra.mrb[60].mxu1 %v5049_v0  ;;  %v5181_v0 = vld [vmem:[%s6313_s1 + $0x2b4] ss:$8 sps:$4 sm:$0xff]  }
  0xbf   : > { %3113 = vmatmul.mubr.bf16.gmra.mrb[60].mxu0 %v5053_v1  ;;  %2576 = vmatprep.mubr.bf16.mxu1 %v5059_v2  ;;  %v5179_v1 = vld [vmem:[%s6313_s1 + $0x2b0] ss:$8 sps:$4 sm:$0xff]   ;;  %v5190_v2 = vld [vmem:[%s6313_s1 + $0x2c4] ss:$8 sps:$4 sm:$0xff]  }
  0xc0   : > { %3155 = vmatprep.mubr.bf16.mxu0 %v5062_v3  ;;  %v5124_v3 = vld [vmem:[%s5474_s12 + $0x218] ss:$44 sps:$4 sm:$0xff]  }
  0xc6   : > { %2577 = vmatmul.mubr.bf16.vlgmr.msra.gmra.mrb[0].mxu1 %v5057_v4  ;;  %v5128_v4 = vld [vmem:[%s5474_s12 + $0x230] ss:$44 sps:$4 sm:$0xff]  }
  0xc7   : > { %3156 = vmatmul.mubr.bf16.vlgmr.msra.gmra.mrb[0].mxu0 %v5060_v5  ;;  %2738 = vmatpush1.bf16.msra.mxu1 %v5063_v6  ;;  %v5132_v5 = vld [vmem:[%s5474_s12 + $0x274] ss:$44 sps:$4 sm:$0xff]   ;;  %v5134_v6 = vld [vmem:[%s5474_s12 + $0x28c] ss:$44 sps:$4 sm:$0xff]  }
  0xc8   : > { %3317 = vmatpush1.bf16.msra.mxu0 %v5066_v7  ;;  %2586 = vmatprep.mubr.bf16.mxu1 %v5069_v8  ;;  %v5188_v7 = vld [vmem:[%s6313_s1 + $0x2c0] ss:$8 sps:$4 sm:$0xff]   ;;  %v5202_v8 = vld [vmem:[%s6313_s1 + $0x2d4] ss:$8 sps:$4 sm:$0xff]  }
  0xc9   : > { %3165 = vmatprep.mubr.bf16.mxu0 %v5071_v9  ;;  %2739 = vmatprep.subr.bf16.mxu1 %v5076_v10  ;;  %v5200_v9 = vld [vmem:[%s6313_s1 + $0x2d0] ss:$8 sps:$4 sm:$0xff]   ;;  %v5211_v10 = vld [vmem:[%s6313_s1 + $0x2e4] ss:$8 sps:$4 sm:$0xff]  }
  0xca   : > { %3318 = vmatprep.subr.bf16.mxu0 %v5089_v11  ;;  %v5136_v11 = vld [vmem:[%s5474_s12 + $0x270] ss:$44 sps:$4 sm:$0xff]  }
  0xcb   : > { %2740 = vmatpush1.bf16.msra.mxu1 %v5074_v12  ;;  %v5140_v12 = vld [vmem:[%s5474_s12 + $0x288] ss:$44 sps:$4 sm:$0xff]  }
  0xcc   : > { %3319 = vmatpush1.bf16.msra.mxu0 %v5087_v14  ;;  %2741 = vmatprep.subr.bf16.mxu1 %v5085_v13  ;;  %v5141_v13 = vld [vmem:[%s5474_s12 + $0x2cc] ss:$44 sps:$4 sm:$0xff]   ;;  %v5143_v14 = vld [vmem:[%s5474_s12 + $0x2e4] ss:$44 sps:$4 sm:$0xff]  }
  0xcd   : > { %3320 = vmatprep.subr.bf16.mxu0 %v5110_v15  ;;  %v5209_v15 = vld [vmem:[%s6313_s1 + $0x2e0] ss:$8 sps:$4 sm:$0xff]  }
  0xce   : > { %2587 = vmatmul.mubr.bf16.gmra.mrb[4].mxu1 %v5073_v16  ;;  %v5223_v16 = vld [vmem:[%s6313_s1 + $0x2f4] ss:$8 sps:$4 sm:$0xff]  }
  0xcf   : > { %3166 = vmatmul.mubr.bf16.gmra.mrb[4].mxu0 %v5077_v17  ;;  %2596 = vmatprep.mubr.bf16.mxu1 %v5078_v18  ;;  %v5221_v17 = vld [vmem:[%s6313_s1 + $0x2f0] ss:$8 sps:$4 sm:$0xff]   ;;  %v5145_v18 = vld [vmem:[%s5474_s12 + $0x2c8] ss:$44 sps:$4 sm:$0xff]  }
  0xd0   : > { %3175 = vmatprep.mubr.bf16.mxu0 %v5080_v19  ;;  %2742 = vmatpush1.bf16.msra.mxu1 %v5083_v20  ;;  %v5149_v19 = vld [vmem:[%s5474_s12 + $0x2e0] ss:$44 sps:$4 sm:$0xff]   ;;  %v5153_v20 = vld [vmem:[%s5474_s12 + $0x324] ss:$44 sps:$4 sm:$0xff]  }
  0xd1   : > { %3321 = vmatpush1.bf16.msra.mxu0 %v5108_v21  ;;  %2743 = vmatprep.subr.bf16.mxu1 %v5097_v22  ;;  %v5155_v21 = vld [vmem:[%s5474_s12 + $0x33c] ss:$44 sps:$4 sm:$0xff]   ;;  %v5157_v22 = vld [vmem:[%s5474_s12 + $0x320] ss:$44 sps:$4 sm:$0xff]  }
  0xd2   : > { %3322 = vmatprep.subr.bf16.mxu0 %v5131_v23  ;;  %v5161_v23 = vld [vmem:[%s5474_s12 + $0x338] ss:$44 sps:$4 sm:$0xff]  }
  0xd4   : > { %2744 = vmatpush1.bf16.msra.mxu1 %v5095_v24  ;;  %v5162_v24 = vld [vmem:[%s5474_s12 + $0x37c] ss:$44 sps:$4 sm:$0xff]  }
  0xd5   : > { %3323 = vmatpush1.bf16.msra.mxu0 %v5129_v28  ;;  %2745 = vmatprep.subr.bf16.mxu1 %v5106_v25  ;;  %v5164_v25 = vld [vmem:[%s5474_s12 + $0x394] ss:$44 sps:$4 sm:$0xff]  }
  0xd6   : > { %3324 = vmatprep.subr.bf16.mxu0 %v5152_v31  ;;  %2597 = vmatmul.mubr.bf16.gmra.mrb[8].mxu1 %v5082_v26  ;;  %v5166_v26 = vld [vmem:[%s5474_s12 + $0x378] ss:$44 sps:$4 sm:$0xff]   ;;  %v5174_v28 = vld [vmem:[%s5474_s12 + $0x3d4] ss:$44 sps:$4 sm:$0xff]  }
  0xd7   : > { %3176 = vmatmul.mubr.bf16.gmra.mrb[8].mxu0 %v5086_v27  ;;  %2606 = vmatprep.mubr.bf16.mxu1 %v5090_v29  ;;  %v5170_v27 = vld [vmem:[%s5474_s12 + $0x390] ss:$44 sps:$4 sm:$0xff]   ;;  %v5176_v29 = vld [vmem:[%s5474_s12 + $0x3ec] ss:$44 sps:$4 sm:$0xff]   ;;  %v5182_v31 = vld [vmem:[%s5474_s12 + $0x3e8] ss:$44 sps:$4 sm:$0xff]  }
  0xd8   : > { %3185 = vmatprep.mubr.bf16.mxu0 %v5092_v30  ;;  %2746 = vmatpush1.bf16.msra.mxu1 %v5104_v32  ;;  %v5178_v30 = vld [vmem:[%s5474_s12 + $0x3d0] ss:$44 sps:$4 sm:$0xff]   ;;  %v5183_v32 = vld [vmem:[%s5474_s12 + $0x42c] ss:$44 sps:$4 sm:$0xff]  }
  0xd9   : > { %3325 = vmatpush1.bf16.msra.mxu0 %v5150_v34  ;;  %2747 = vmatprep.subr.bf16.mxu1 %v5118_v33  ;;  %v5185_v33 = vld [vmem:[%s5474_s12 + $0x444] ss:$44 sps:$4 sm:$0xff]   ;;  %v5187_v34 = vld [vmem:[%s5474_s12 + $0x428] ss:$44 sps:$4 sm:$0xff]  }
  0xda   : > { %3326 = vmatprep.subr.bf16.mxu0 %v5173_v35  ;;  %v5191_v35 = vld [vmem:[%s5474_s12 + $0x440] ss:$44 sps:$4 sm:$0xff]  }
  0xdc   : > { %2748 = vmatpush1.bf16.msra.mxu1 %v5116_v36  ;;  %v5195_v36 = vld [vmem:[%s5474_s12 + $0x484] ss:$44 sps:$4 sm:$0xff]  }
  0xdd   : > { %3327 = vmatpush1.bf16.msra.mxu0 %v5171_v37  ;;  %2749 = vmatprep.subr.bf16.mxu1 %v5127_v38  ;;  %v5197_v37 = vld [vmem:[%s5474_s12 + $0x49c] ss:$44 sps:$4 sm:$0xff]   ;;  %v5199_v38 = vld [vmem:[%s5474_s12 + $0x480] ss:$44 sps:$4 sm:$0xff]  }
  0xde   : > { %3328 = vmatprep.subr.bf16.mxu0 %v5194_v39  ;;  %2607 = vmatmul.mubr.bf16.gmra.mrb[12].mxu1 %v5094_v40  ;;  %v5203_v39 = vld [vmem:[%s5474_s12 + $0x498] ss:$44 sps:$4 sm:$0xff]   ;;  %v5204_v40 = vld [vmem:[%s5474_s12 + $0x4dc] ss:$44 sps:$4 sm:$0xff]  }
  0xdf   : > { %3186 = vmatmul.mubr.bf16.gmra.mrb[12].mxu0 %v5098_v41  ;;  %2616 = vmatprep.mubr.bf16.mxu1 %v5099_v42  ;;  %v5206_v41 = vld [vmem:[%s5474_s12 + $0x4f4] ss:$44 sps:$4 sm:$0xff]   ;;  %v5208_v42 = vld [vmem:[%s5474_s12 + $0x4d8] ss:$44 sps:$4 sm:$0xff]  }
  0xe0   : > { %3195 = vmatprep.mubr.bf16.mxu0 %v5101_v43  ;;  %2750 = vmatpush1.bf16.msra.mxu1 %v5125_v44  ;;  %v5212_v43 = vld [vmem:[%s5474_s12 + $0x4f0] ss:$44 sps:$4 sm:$0xff]   ;;  %v5216_v44 = vld [vmem:[%s5474_s12 + $0x534] ss:$44 sps:$4 sm:$0xff]  }
  0xe1   : > { %3329 = vmatpush1.bf16.msra.mxu0 %v5192_v45  ;;  %2751 = vmatprep.subr.bf16.mxu1 %v5139_v46  ;;  %v5218_v45 = vld [vmem:[%s5474_s12 + $0x54c] ss:$44 sps:$4 sm:$0xff]   ;;  %v5220_v46 = vld [vmem:[%s5474_s12 + $0x530] ss:$44 sps:$4 sm:$0xff]  }
  0xe2   : > { %3330 = vmatprep.subr.bf16.mxu0 %v5215_v47  ;;  %v5224_v47 = vld [vmem:[%s5474_s12 + $0x548] ss:$44 sps:$4 sm:$0xff]  }
  0xe4   : > { %2752 = vmatpush1.bf16.msra.mxu1 %v5137_v48  ;;  %v5227_v48 = vld [vmem:[%s5474_s12 + $0x14] ss:$44 sps:$4 sm:$0xff]  }
  0xe5   : > { %3331 = vmatpush1.bf16.msra.mxu0 %v5213_v50  ;;  %2753 = vmatprep.subr.bf16.mxu1 %v5148_v49  ;;  %v5297_v49 = vmov 0   ;;  %v5225_v50 = vld [vmem:[%s5474_s12 + $0x10] ss:$44 sps:$4 sm:$0xff]  }
  0xe6   : > { %2617 = vmatmul.mubr.bf16.gmra.mrb[16].mxu1 %v5103_v51  ;;  %v5228_v51 = vld [vmem:[%s5474_s12 + $0x28] ss:$44 sps:$4 sm:$0xff]  }
  0xe7   : > { %3196 = vmatmul.mubr.bf16.gmra.mrb[16].mxu0 %v5107_v52  ;;  %2626 = vmatprep.mubr.bf16.mxu1 %v5111_v53  ;;  %v5229_v52 = vld [vmem:[%s5474_s12 + $0x6c] ss:$44 sps:$4 sm:$0xff]   ;;  %v5231_v53 = vld [vmem:[%s5474_s12 + $0x68] ss:$44 sps:$4 sm:$0xff]  }
  0xe8   : > { %3205 = vmatprep.mubr.bf16.mxu0 %v5113_v54  ;;  %2754 = vmatpush1.bf16.msra.mxu1 %v5146_v55  ;;  %v5232_v54 = vld [vmem:[%s5474_s12 + $0x80] ss:$44 sps:$4 sm:$0xff]   ;;  %v5233_v55 = vld [vmem:[%s5474_s12 + $0xc4] ss:$44 sps:$4 sm:$0xff]  }
  0xe9   : > { %2755 = vmatprep.subr.bf16.mxu1 %v5160_v56  ;;  %v5235_v56 = vld [vmem:[%s5474_s12 + $0xc0] ss:$44 sps:$4 sm:$0xff]  }
  0xec   : > { %2756 = vmatpush1.bf16.msra.mxu1 %v5158_v57  ;;  %v5236_v57 = vld [vmem:[%s5474_s12 + $0xd8] ss:$44 sps:$4 sm:$0xff]  }
  0xed   : > { %2757 = vmatprep.subr.bf16.mxu1 %v5169_v58  ;;  %v5237_v58 = vld [vmem:[%s5474_s12 + $0x11c] ss:$44 sps:$4 sm:$0xff]  }
  0xee   : > { %2627 = vmatmul.mubr.bf16.gmra.mrb[20].mxu1 %v5115_v59  ;;  %v5239_v59 = vld [vmem:[%s5474_s12 + $0x118] ss:$44 sps:$4 sm:$0xff]  }
  0xef   : > { %3206 = vmatmul.mubr.bf16.gmra.mrb[20].mxu0 %v5119_v60  ;;  %2636 = vmatprep.mubr.bf16.mxu1 %v5120_v61  ;;  %v5240_v60 = vld [vmem:[%s5474_s12 + $0x130] ss:$44 sps:$4 sm:$0xff]   ;;  %v5241_v61 = vld [vmem:[%s5474_s12 + $0x174] ss:$44 sps:$4 sm:$0xff]  }
  0xf0   : > { %3215 = vmatprep.mubr.bf16.mxu0 %v5122_v62  ;;  %2758 = vmatpush1.bf16.msra.mxu1 %v5167_v63  ;;  %v5243_v62 = vld [vmem:[%s5474_s12 + $0x170] ss:$44 sps:$4 sm:$0xff]   ;;  %v5244_v63 = vld [vmem:[%s5474_s12 + $0x188] ss:$44 sps:$4 sm:$0xff]  }
  0xf1   : > { %2759 = vmatprep.subr.bf16.mxu1 %v5181_v0  ;;  %v5245_v0 = vld [vmem:[%s5474_s12 + $0x1cc] ss:$44 sps:$4 sm:$0xff]  }
  0xf4   : > { %2760 = vmatpush1.bf16.msra.mxu1 %v5179_v1  ;;  %v5247_v1 = vld [vmem:[%s5474_s12 + $0x1c8] ss:$44 sps:$4 sm:$0xff]  }
  0xf5   : > { %2761 = vmatprep.subr.bf16.mxu1 %v5190_v2  ;;  %v5248_v2 = vld [vmem:[%s5474_s12 + $0x1e0] ss:$44 sps:$4 sm:$0xff]  }
  0xf6   : > { %2637 = vmatmul.mubr.bf16.gmra.mrb[24].mxu1 %v5124_v3  ;;  %v5249_v3 = vld [vmem:[%s5474_s12 + $0x224] ss:$44 sps:$4 sm:$0xff]  }
  0xf7   : > { %3216 = vmatmul.mubr.bf16.gmra.mrb[24].mxu0 %v5128_v4  ;;  %2646 = vmatprep.mubr.bf16.mxu1 %v5132_v5  ;;  %v5251_v4 = vld [vmem:[%s5474_s12 + $0x220] ss:$44 sps:$4 sm:$0xff]   ;;  %v5252_v5 = vld [vmem:[%s5474_s12 + $0x238] ss:$44 sps:$4 sm:$0xff]  }
  0xf8   : > { %3225 = vmatprep.mubr.bf16.mxu0 %v5134_v6  ;;  %2762 = vmatpush1.bf16.msra.mxu1 %v5188_v7  ;;  %v5253_v6 = vld [vmem:[%s5474_s12 + $0x27c] ss:$44 sps:$4 sm:$0xff]   ;;  %v5255_v7 = vld [vmem:[%s5474_s12 + $0x278] ss:$44 sps:$4 sm:$0xff]  }
  0xf9   : > { %2763 = vmatprep.subr.bf16.mxu1 %v5202_v8  ;;  %v5256_v8 = vld [vmem:[%s5474_s12 + $0x290] ss:$44 sps:$4 sm:$0xff]  }
  0xfc   : > { %2764 = vmatpush1.bf16.msra.mxu1 %v5200_v9  ;;  %v5257_v9 = vld [vmem:[%s5474_s12 + $0x2d4] ss:$44 sps:$4 sm:$0xff]  }
  0xfd   : > { %2765 = vmatprep.subr.bf16.mxu1 %v5211_v10  ;;  %v5259_v10 = vld [vmem:[%s5474_s12 + $0x2d0] ss:$44 sps:$4 sm:$0xff]  }
  0xfe   : > { %2647 = vmatmul.mubr.bf16.gmra.mrb[28].mxu1 %v5136_v11  ;;  %v5260_v11 = vld [vmem:[%s5474_s12 + $0x2e8] ss:$44 sps:$4 sm:$0xff]  }
  0xff   : > { %3226 = vmatmul.mubr.bf16.gmra.mrb[28].mxu0 %v5140_v12  ;;  %2656 = vmatprep.mubr.bf16.mxu1 %v5141_v13  ;;  %v5261_v12 = vld [vmem:[%s5474_s12 + $0x32c] ss:$44 sps:$4 sm:$0xff]   ;;  %v5263_v13 = vld [vmem:[%s5474_s12 + $0x328] ss:$44 sps:$4 sm:$0xff]  }
 0x100   : > { %3235 = vmatprep.mubr.bf16.mxu0 %v5143_v14  ;;  %2766 = vmatpush1.bf16.msra.mxu1 %v5209_v15  ;;  %v5264_v14 = vld [vmem:[%s5474_s12 + $0x340] ss:$44 sps:$4 sm:$0xff]   ;;  %v5265_v15 = vld [vmem:[%s5474_s12 + $0x384] ss:$44 sps:$4 sm:$0xff]  }
 0x101   : > { %2767 = vmatprep.subr.bf16.mxu1 %v5223_v16  ;;  %v5267_v16 = vld [vmem:[%s5474_s12 + $0x380] ss:$44 sps:$4 sm:$0xff]  }
 0x104   : > { %2768 = vmatpush1.bf16.msra.mxu1 %v5221_v17  ;;  %v5268_v17 = vld [vmem:[%s5474_s12 + $0x398] ss:$44 sps:$4 sm:$0xff]  }
 0x106   : > { %2657 = vmatmul.mubr.bf16.gmra.mrb[32].mxu1 %v5145_v18  ;;  %v5269_v18 = vld [vmem:[%s5474_s12 + $0x3dc] ss:$44 sps:$4 sm:$0xff]  }
 0x107   : > { %3236 = vmatmul.mubr.bf16.gmra.mrb[32].mxu0 %v5149_v19  ;;  %2666 = vmatprep.mubr.bf16.mxu1 %v5153_v20  ;;  %v5271_v19 = vld [vmem:[%s5474_s12 + $0x3d8] ss:$44 sps:$4 sm:$0xff]   ;;  %v5272_v20 = vld [vmem:[%s5474_s12 + $0x3f0] ss:$44 sps:$4 sm:$0xff]  }
 0x108   : > { %3245 = vmatprep.mubr.bf16.mxu0 %v5155_v21  ;;  %v5273_v21 = vld [vmem:[%s5474_s12 + $0x434] ss:$44 sps:$4 sm:$0xff]  }
 0x10e   : > { %2667 = vmatmul.mubr.bf16.gmra.mrb[36].mxu1 %v5157_v22  ;;  %v5275_v22 = vld [vmem:[%s5474_s12 + $0x430] ss:$44 sps:$4 sm:$0xff]  }
 0x10f   : > { %3246 = vmatmul.mubr.bf16.gmra.mrb[36].mxu0 %v5161_v23  ;;  %2676 = vmatprep.mubr.bf16.mxu1 %v5162_v24  ;;  %v5276_v23 = vld [vmem:[%s5474_s12 + $0x448] ss:$44 sps:$4 sm:$0xff]   ;;  %v5277_v24 = vld [vmem:[%s5474_s12 + $0x48c] ss:$44 sps:$4 sm:$0xff]  }
 0x110   : > { %3255 = vmatprep.mubr.bf16.mxu0 %v5164_v25  ;;  %v5279_v25 = vld [vmem:[%s5474_s12 + $0x488] ss:$44 sps:$4 sm:$0xff]  }
 0x116   : > { %2677 = vmatmul.mubr.bf16.gmra.mrb[40].mxu1 %v5166_v26  ;;  %v5280_v26 = vld [vmem:[%s5474_s12 + $0x4a0] ss:$44 sps:$4 sm:$0xff]  }
 0x117   : > { %3256 = vmatmul.mubr.bf16.gmra.mrb[40].mxu0 %v5170_v27  ;;  %2686 = vmatprep.mubr.bf16.mxu1 %v5174_v28  ;;  %v5281_v27 = vld [vmem:[%s5474_s12 + $0x4e4] ss:$44 sps:$4 sm:$0xff]   ;;  %v5283_v28 = vld [vmem:[%s5474_s12 + $0x4e0] ss:$44 sps:$4 sm:$0xff]  }
 0x118   : > { %3265 = vmatprep.mubr.bf16.mxu0 %v5176_v29  ;;  %v5284_v29 = vld [vmem:[%s5474_s12 + $0x4f8] ss:$44 sps:$4 sm:$0xff]  }
 0x11e   : > { %2687 = vmatmul.mubr.bf16.gmra.mrb[44].mxu1 %v5178_v30  ;;  %v5285_v30 = vld [vmem:[%s5474_s12 + $0x53c] ss:$44 sps:$4 sm:$0xff]  }
 0x11f   : > { %3266 = vmatmul.mubr.bf16.gmra.mrb[44].mxu0 %v5182_v31  ;;  %2696 = vmatprep.mubr.bf16.mxu1 %v5183_v32  ;;  %v5287_v31 = vld [vmem:[%s5474_s12 + $0x538] ss:$44 sps:$4 sm:$0xff]   ;;  %v5288_v32 = vld [vmem:[%s5474_s12 + $0x550] ss:$44 sps:$4 sm:$0xff]   ;;  %s4406_s12 = sshll.u32 %s6320_s29, 3 }
 0x120   : > { %3275 = vmatprep.mubr.bf16.mxu0 %v5185_v33  ;;  %v3511_v33 = vlaneseq  ;;  %s6087_s5 = scalar_lea.vmem %s6316_s4, %s4406_s12 }
 0x126   : > { %2697 = vmatmul.mubr.bf16.gmra.mrb[48].mxu1 %v5187_v34  ;;  %v3512_v34 = vshrl.u32 %v3511_v33, 7 }
 0x127   : > { %3276 = vmatmul.mubr.bf16.gmra.mrb[48].mxu0 %v5191_v35  ;;  %2706 = vmatprep.mubr.bf16.mxu1 %v5195_v36  ;;  %v3509_v36 = vld [vmem:[%s6314_s2] sm:$0x3] }
 0x128   : > { %3285 = vmatprep.mubr.bf16.mxu0 %v5197_v37  ;;  %v3513_v35 = vsub.s32 0, %v3512_v34  ;;  %v3517_v37 = vsub.s32 1, %v3512_v34 }
 0x12e   : > { %2707 = vmatmul.mubr.bf16.gmra.mrb[52].mxu1 %v5199_v38  ;;  %v3585_v38 = vld [vmem:[%s6315_s3] sm:$0x3] }
 0x12f   : > { %3286 = vmatmul.mubr.bf16.gmra.mrb[52].mxu0 %v5203_v39  ;;  %2716 = vmatprep.mubr.bf16.mxu1 %v5204_v40  ;;  %v6067_v39 = vrot.slane %v3509_v36, %v3513_v35 }
 0x130   : > { %3295 = vmatprep.mubr.bf16.mxu0 %v5206_v41 }
 0x136   : > { %2717 = vmatmul.mubr.bf16.gmra.mrb[56].mxu1 %v5208_v42  ;;  %v6069_v42 = vrot.slane %v3509_v36, %v3517_v37 }
 0x137   : > { %3296 = vmatmul.mubr.bf16.gmra.mrb[56].mxu0 %v5212_v43  ;;  %2726 = vmatprep.mubr.bf16.mxu1 %v5216_v44  ;;  %v6071_v44 = vrot.slane %v3585_v38, %v3513_v35 }
 0x138   : > { %3305 = vmatprep.mubr.bf16.mxu0 %v5218_v45 }
 0x13e   : > { %2727 = vmatmul.mubr.bf16.gmra.mrb[60].mxu1 %v5220_v46 }
 0x13f   : > { %3306 = vmatmul.mubr.bf16.gmra.mrb[60].mxu0 %v5224_v47  ;;  %2769 = vmatprep.mubr.bf16.mxu1 %v5227_v48  ;;  %v6073_v48 = vrot.slane %v3585_v38, %v3517_v37 }
 0x140   : > { %3348 = vmatprep.mubr.bf16.mxu0 %v5297_v49 }
 0x146   : > { %2770 = vmatmul.mubr.bf16.vlgmr.msra.gmra.mrb[0].mxu1 %v5225_v50 }
 0x147   : > { %3349 = vmatmul.mubr.bf16.vlgmr.msra.gmra.mrb[0].mxu0 %v5228_v51  ;;  %2779 = vmatprep.mubr.bf16.mxu1 %v5229_v52 }
 0x148   : > { %3358 = vmatprep.mubr.bf16.mxu0 %v5297_v49 }
 0x14e   : > { %2780 = vmatmul.mubr.bf16.gmra.mrb[4].mxu1 %v5231_v53 }
 0x14f   : > { %3359 = vmatmul.mubr.bf16.gmra.mrb[4].mxu0 %v5232_v54  ;;  %2789 = vmatprep.mubr.bf16.mxu1 %v5233_v55 }
 0x150   : > { %3368 = vmatprep.mubr.bf16.mxu0 %v5297_v49 }
 0x156   : > { %2790 = vmatmul.mubr.bf16.gmra.mrb[8].mxu1 %v5235_v56 }
 0x157   : > { %3369 = vmatmul.mubr.bf16.gmra.mrb[8].mxu0 %v5236_v57  ;;  %2799 = vmatprep.mubr.bf16.mxu1 %v5237_v58 }
 0x158   : > { %3378 = vmatprep.mubr.bf16.mxu0 %v5297_v49 }
 0x15e   : > { %2800 = vmatmul.mubr.bf16.gmra.mrb[12].mxu1 %v5239_v59 }
 0x15f   : > { %3379 = vmatmul.mubr.bf16.gmra.mrb[12].mxu0 %v5240_v60  ;;  %2809 = vmatprep.mubr.bf16.mxu1 %v5241_v61 }
 0x160   : > { %3388 = vmatprep.mubr.bf16.mxu0 %v5297_v49 }
 0x166   : > { %2810 = vmatmul.mubr.bf16.gmra.mrb[16].mxu1 %v5243_v62 }
 0x167   : > { %3389 = vmatmul.mubr.bf16.gmra.mrb[16].mxu0 %v5244_v63  ;;  %2819 = vmatprep.mubr.bf16.mxu1 %v5245_v0 }
 0x168   : > { %3398 = vmatprep.mubr.bf16.mxu0 %v5297_v49 }
 0x16e   : > { %2820 = vmatmul.mubr.bf16.gmra.mrb[20].mxu1 %v5247_v1 }
 0x16f   : > { %3399 = vmatmul.mubr.bf16.gmra.mrb[20].mxu0 %v5248_v2  ;;  %2829 = vmatprep.mubr.bf16.mxu1 %v5249_v3 }
 0x170   : > { %3408 = vmatprep.mubr.bf16.mxu0 %v5297_v49 }
 0x176   : > { %2830 = vmatmul.mubr.bf16.gmra.mrb[24].mxu1 %v5251_v4 }
 0x177   : > { %3409 = vmatmul.mubr.bf16.gmra.mrb[24].mxu0 %v5252_v5  ;;  %2839 = vmatprep.mubr.bf16.mxu1 %v5253_v6 }
 0x178   : > { %3418 = vmatprep.mubr.bf16.mxu0 %v5297_v49 }
 0x17e   : > { %2840 = vmatmul.mubr.bf16.gmra.mrb[28].mxu1 %v5255_v7 }
 0x17f   : > { %3419 = vmatmul.mubr.bf16.gmra.mrb[28].mxu0 %v5256_v8  ;;  %2849 = vmatprep.mubr.bf16.mxu1 %v5257_v9 }
 0x180   : > { %3428 = vmatprep.mubr.bf16.mxu0 %v5297_v49 }
 0x186   : > { %2850 = vmatmul.mubr.bf16.gmra.mrb[32].mxu1 %v5259_v10 }
 0x187   : > { %3429 = vmatmul.mubr.bf16.gmra.mrb[32].mxu0 %v5260_v11  ;;  %2859 = vmatprep.mubr.bf16.mxu1 %v5261_v12 }
 0x188   : > { %3438 = vmatprep.mubr.bf16.mxu0 %v5297_v49 }
 0x18e   : > { %2860 = vmatmul.mubr.bf16.gmra.mrb[36].mxu1 %v5263_v13 }
 0x18f   : > { %3439 = vmatmul.mubr.bf16.gmra.mrb[36].mxu0 %v5264_v14  ;;  %2869 = vmatprep.mubr.bf16.mxu1 %v5265_v15 }
 0x190   : > { %3448 = vmatprep.mubr.bf16.mxu0 %v5297_v49 }
 0x196   : > { %2870 = vmatmul.mubr.bf16.gmra.mrb[40].mxu1 %v5267_v16 }
 0x197   : > { %3449 = vmatmul.mubr.bf16.gmra.mrb[40].mxu0 %v5268_v17  ;;  %2879 = vmatprep.mubr.bf16.mxu1 %v5269_v18 }
 0x198   : > { %3458 = vmatprep.mubr.bf16.mxu0 %v5297_v49 }
 0x19e   : > { %2880 = vmatmul.mubr.bf16.gmra.mrb[44].mxu1 %v5271_v19 }
 0x19f   : > { %3459 = vmatmul.mubr.bf16.gmra.mrb[44].mxu0 %v5272_v20  ;;  %2889 = vmatprep.mubr.bf16.mxu1 %v5273_v21 }
 0x1a0   : > { %3468 = vmatprep.mubr.bf16.mxu0 %v5297_v49 }
 0x1a6   : > { %2890 = vmatmul.mubr.bf16.gmra.mrb[48].mxu1 %v5275_v22 }
 0x1a7   : > { %3469 = vmatmul.mubr.bf16.gmra.mrb[48].mxu0 %v5276_v23  ;;  %2899 = vmatprep.mubr.bf16.mxu1 %v5277_v24 }
 0x1a8   : > { %3478 = vmatprep.mubr.bf16.mxu0 %v5297_v49 }
 0x1ae   : > { %2900 = vmatmul.mubr.bf16.gmra.mrb[52].mxu1 %v5279_v25 }
 0x1af   : > { %3479 = vmatmul.mubr.bf16.gmra.mrb[52].mxu0 %v5280_v26  ;;  %2909 = vmatprep.mubr.bf16.mxu1 %v5281_v27 }
 0x1b0   : > { %3488 = vmatprep.mubr.bf16.mxu0 %v5297_v49 }
 0x1b6   : > { %2910 = vmatmul.mubr.bf16.gmra.mrb[56].mxu1 %v5283_v28 }
 0x1b7   : > { %3489 = vmatmul.mubr.bf16.gmra.mrb[56].mxu0 %v5284_v29  ;;  %2919 = vmatprep.mubr.bf16.mxu1 %v5285_v30 }
 0x1b8   : > { %3498 = vmatprep.mubr.bf16.mxu0 %v5297_v49 }
 0x1be   : > { %2920 = vmatmul.mubr.bf16.gmra.mrb[60].mxu1 %v5287_v31 }
 0x1bf   : > { %3499 = vmatmul.mubr.bf16.gmra.mrb[60].mxu0 %v5288_v32 }
 0x219   : > { %v2771_v40 = vpop.f32.mrb[0].mxu1 }
 0x21a   : > { %v3350_v41 = vpop.f32.mrb[0].mxu0  ;;  %v2773_v45 = vpop.f32.mrb[1].mxu1 }
 0x21b   : > { %v4439_v43 = vadd.f32 %v3350_v41, %v2771_v40  ;;  %v3352_v46 = vpop.f32.mrb[1].mxu0  ;;  %v2775_v49 = vpop.f32.mrb[2].mxu1 }
 0x21c   : > { %v4440_v47 = vadd.f32 %v3352_v46, %v2773_v45  ;;  %v3354_v50 = vpop.f32.mrb[2].mxu0  ;;  %v2777_v53 = vpop.f32.mrb[3].mxu1 }
 0x21d   : > { %v3521_v51 = vmul.f32 %v4439_v43, %v6067_v39  ;;  %v4441_v52 = vadd.f32 %v3354_v50, %v2775_v49  ;;  %v3356_v54 = vpop.f32.mrb[3].mxu0 }
 0x21e   : > { %v3522_v55 = vmul.f32 %v4440_v47, %v6069_v42  ;;  %v4442_v56 = vadd.f32 %v3356_v54, %v2777_v53 }
 0x21f   : > { %v3597_v57 = vadd.f32 %v6071_v44, %v3521_v51  ;;  %v3523_v58 = vmul.f32 %v4441_v52, %v6067_v39 }
 0x220   : > { %v3598_v59 = vadd.f32 %v6073_v48, %v3522_v55  ;;  %v3524_v60 = vmul.f32 %v4442_v56, %v6069_v42 }
 0x221   : > { %v3661_v61 = vmax.f32 %v3597_v57, 0.0  ;;  %v3599_v62 = vadd.f32 %v6071_v44, %v3523_v58  ;;  %v2781_v1 = vpop.f32.mrb[4].mxu1 }
 0x222   : > { %v3662_v63 = vmax.f32 %v3598_v59, 0.0  ;;  %v3600_v0 = vadd.f32 %v6073_v48, %v3524_v60  ;;  %v3360_v2 = vpop.f32.mrb[4].mxu0  ;;  %v2783_v6 = vpop.f32.mrb[5].mxu1 }
 0x223   : > { %v3663_v4 = vmax.f32 %v3599_v62, 0.0  ;;  %v4443_v5 = vadd.f32 %v3360_v2, %v2781_v1  ;;  %v3362_v7 = vpop.f32.mrb[5].mxu0  ;;  %v2785_v11 = vpop.f32.mrb[6].mxu1 }
 0x224   : > { %v4407_v8 = vpack.c.bf16 %v3662_v63, %v3661_v61  ;;  %v3664_v9 = vmax.f32 %v3600_v0, 0.0  ;;  %v4444_v10 = vadd.f32 %v3362_v7, %v2783_v6  ;;  %v3364_v12 = vpop.f32.mrb[6].mxu0  ;;  %v2787_v15 = vpop.f32.mrb[7].mxu1 }
 0x225   : > { %v3525_v13 = vmul.f32 %v4443_v5, %v6067_v39  ;;  %v4445_v14 = vadd.f32 %v3364_v12, %v2785_v11  ;;  %v3366_v16 = vpop.f32.mrb[7].mxu0 }
 0x226   : > { %3920 = vst.msk [vmem:[%s6087_s5] sm:$0xff] %vm6089_vm2, %v4407_v8  ;;  %v4408_v17 = vpack.c.bf16 %v3664_v9, %v3663_v4  ;;  %v3526_v18 = vmul.f32 %v4444_v10, %v6069_v42  ;;  %v4446_v19 = vadd.f32 %v3366_v16, %v2787_v15 }
 0x227   : > { %v3601_v20 = vadd.f32 %v6071_v44, %v3525_v13  ;;  %v3527_v21 = vmul.f32 %v4445_v14, %v6067_v39 }
 0x228   : > { %3921 = vst.msk [vmem:[%s6087_s5 + $0x8] sm:$0xff] %vm6089_vm2, %v4408_v17  ;;  %v3602_v22 = vadd.f32 %v6073_v48, %v3526_v18  ;;  %v3528_v23 = vmul.f32 %v4446_v19, %v6069_v42 }
 0x229   : > { %v3665_v24 = vmax.f32 %v3601_v20, 0.0  ;;  %v3603_v25 = vadd.f32 %v6071_v44, %v3527_v21  ;;  %v2791_v28 = vpop.f32.mrb[8].mxu1 }
 0x22a   : > { %v3666_v26 = vmax.f32 %v3602_v22, 0.0  ;;  %v3604_v27 = vadd.f32 %v6073_v48, %v3528_v23  ;;  %v3370_v29 = vpop.f32.mrb[8].mxu0  ;;  %v2793_v32 = vpop.f32.mrb[9].mxu1 }
 0x22b   : > { %v3667_v30 = vmax.f32 %v3603_v25, 0.0  ;;  %v4447_v31 = vadd.f32 %v3370_v29, %v2791_v28  ;;  %v3372_v33 = vpop.f32.mrb[9].mxu0  ;;  %v2795_v37 = vpop.f32.mrb[10].mxu1 }
 0x22c   : > { %v4409_v34 = vpack.c.bf16 %v3666_v26, %v3665_v24  ;;  %v3668_v35 = vmax.f32 %v3604_v27, 0.0  ;;  %v4448_v36 = vadd.f32 %v3372_v33, %v2793_v32  ;;  %v3374_v38 = vpop.f32.mrb[10].mxu0  ;;  %v2797_v43 = vpop.f32.mrb[11].mxu1 }
 0x22d   : > { %v3529_v40 = vmul.f32 %v4447_v31, %v6067_v39  ;;  %v4449_v41 = vadd.f32 %v3374_v38, %v2795_v37  ;;  %v3376_v45 = vpop.f32.mrb[11].mxu0 }
 0x22e   : > { %3922 = vst.msk [vmem:[%s6087_s5 + $0x10] sm:$0xff] %vm6089_vm2, %v4409_v34  ;;  %v4410_v46 = vpack.c.bf16 %v3668_v35, %v3667_v30  ;;  %v3530_v47 = vmul.f32 %v4448_v36, %v6069_v42  ;;  %v4450_v49 = vadd.f32 %v3376_v45, %v2797_v43 }
 0x22f   : > { %v3605_v50 = vadd.f32 %v6071_v44, %v3529_v40  ;;  %v3531_v51 = vmul.f32 %v4449_v41, %v6067_v39 }
 0x230   : > { %3923 = vst.msk [vmem:[%s6087_s5 + $0x18] sm:$0xff] %vm6089_vm2, %v4410_v46  ;;  %v3606_v52 = vadd.f32 %v6073_v48, %v3530_v47  ;;  %v3532_v53 = vmul.f32 %v4450_v49, %v6069_v42 }
 0x231   : > { %v3669_v54 = vmax.f32 %v3605_v50, 0.0  ;;  %v3607_v55 = vadd.f32 %v6071_v44, %v3531_v51  ;;  %v2801_v58 = vpop.f32.mrb[12].mxu1 }
 0x232   : > { %v3670_v56 = vmax.f32 %v3606_v52, 0.0  ;;  %v3608_v57 = vadd.f32 %v6073_v48, %v3532_v53  ;;  %v3380_v59 = vpop.f32.mrb[12].mxu0  ;;  %v2803_v62 = vpop.f32.mrb[13].mxu1 }
 0x233   : > { %v3671_v60 = vmax.f32 %v3607_v55, 0.0  ;;  %v4451_v61 = vadd.f32 %v3380_v59, %v2801_v58  ;;  %v3382_v63 = vpop.f32.mrb[13].mxu0  ;;  %v2805_v4 = vpop.f32.mrb[14].mxu1 }
 0x234   : > { %v4411_v0 = vpack.c.bf16 %v3670_v56, %v3669_v54  ;;  %v3672_v1 = vmax.f32 %v3608_v57, 0.0  ;;  %v4452_v2 = vadd.f32 %v3382_v63, %v2803_v62  ;;  %v3384_v5 = vpop.f32.mrb[14].mxu0  ;;  %v2807_v8 = vpop.f32.mrb[15].mxu1 }
 0x235   : > { %v3533_v6 = vmul.f32 %v4451_v61, %v6067_v39  ;;  %v4453_v7 = vadd.f32 %v3384_v5, %v2805_v4  ;;  %v3386_v9 = vpop.f32.mrb[15].mxu0 }
 0x236   : > { %3924 = vst.msk [vmem:[%s6087_s5 + $0x20] sm:$0xff] %vm6089_vm2, %v4411_v0  ;;  %v4412_v10 = vpack.c.bf16 %v3672_v1, %v3671_v60  ;;  %v3534_v11 = vmul.f32 %v4452_v2, %v6069_v42  ;;  %v4454_v12 = vadd.f32 %v3386_v9, %v2807_v8 }
 0x237   : > { %v3609_v13 = vadd.f32 %v6071_v44, %v3533_v6  ;;  %v3535_v14 = vmul.f32 %v4453_v7, %v6067_v39 }
 0x238   : > { %3925 = vst.msk [vmem:[%s6087_s5 + $0x28] sm:$0xff] %vm6089_vm2, %v4412_v10  ;;  %v3610_v15 = vadd.f32 %v6073_v48, %v3534_v11  ;;  %v3536_v16 = vmul.f32 %v4454_v12, %v6069_v42 }
 0x239   : > { %v3673_v17 = vmax.f32 %v3609_v13, 0.0  ;;  %v3611_v18 = vadd.f32 %v6071_v44, %v3535_v14  ;;  %v2811_v21 = vpop.f32.mrb[16].mxu1 }
 0x23a   : > { %v3674_v19 = vmax.f32 %v3610_v15, 0.0  ;;  %v3612_v20 = vadd.f32 %v6073_v48, %v3536_v16  ;;  %v3390_v22 = vpop.f32.mrb[16].mxu0  ;;  %v2813_v25 = vpop.f32.mrb[17].mxu1 }
 0x23b   : > { %v3675_v23 = vmax.f32 %v3611_v18, 0.0  ;;  %v4455_v24 = vadd.f32 %v3390_v22, %v2811_v21  ;;  %v3392_v26 = vpop.f32.mrb[17].mxu0  ;;  %v2815_v30 = vpop.f32.mrb[18].mxu1 }
 0x23c   : > { %v4413_v27 = vpack.c.bf16 %v3674_v19, %v3673_v17  ;;  %v3676_v28 = vmax.f32 %v3612_v20, 0.0  ;;  %v4456_v29 = vadd.f32 %v3392_v26, %v2813_v25  ;;  %v3394_v31 = vpop.f32.mrb[18].mxu0  ;;  %v2817_v34 = vpop.f32.mrb[19].mxu1 }
 0x23d   : > { %v3537_v32 = vmul.f32 %v4455_v24, %v6067_v39  ;;  %v4457_v33 = vadd.f32 %v3394_v31, %v2815_v30  ;;  %v3396_v35 = vpop.f32.mrb[19].mxu0 }
 0x23e   : > { %3926 = vst.msk [vmem:[%s6087_s5 + $0x30] sm:$0xff] %vm6089_vm2, %v4413_v27  ;;  %v4414_v36 = vpack.c.bf16 %v3676_v28, %v3675_v23  ;;  %v3538_v37 = vmul.f32 %v4456_v29, %v6069_v42  ;;  %v4458_v38 = vadd.f32 %v3396_v35, %v2817_v34 }
 0x23f   : > { %v3613_v40 = vadd.f32 %v6071_v44, %v3537_v32  ;;  %v3539_v41 = vmul.f32 %v4457_v33, %v6067_v39 }
 0x240   : > { %3927 = vst.msk [vmem:[%s6087_s5 + $0x38] sm:$0xff] %vm6089_vm2, %v4414_v36  ;;  %v3614_v43 = vadd.f32 %v6073_v48, %v3538_v37  ;;  %v3540_v45 = vmul.f32 %v4458_v38, %v6069_v42 }
 0x241   : > { %v3677_v46 = vmax.f32 %v3613_v40, 0.0  ;;  %v3615_v47 = vadd.f32 %v6071_v44, %v3539_v41  ;;  %v2821_v51 = vpop.f32.mrb[20].mxu1 }
 0x242   : > { %v3678_v49 = vmax.f32 %v3614_v43, 0.0  ;;  %v3616_v50 = vadd.f32 %v6073_v48, %v3540_v45  ;;  %v3400_v52 = vpop.f32.mrb[20].mxu0  ;;  %v2823_v55 = vpop.f32.mrb[21].mxu1 }
 0x243   : > { %v3679_v53 = vmax.f32 %v3615_v47, 0.0  ;;  %v4459_v54 = vadd.f32 %v3400_v52, %v2821_v51  ;;  %v3402_v56 = vpop.f32.mrb[21].mxu0  ;;  %v2825_v60 = vpop.f32.mrb[22].mxu1 }
 0x244   : > { %v4415_v57 = vpack.c.bf16 %v3678_v49, %v3677_v46  ;;  %v3680_v58 = vmax.f32 %v3616_v50, 0.0  ;;  %v4460_v59 = vadd.f32 %v3402_v56, %v2823_v55  ;;  %v3404_v61 = vpop.f32.mrb[22].mxu0  ;;  %v2827_v0 = vpop.f32.mrb[23].mxu1 }
 0x245   : > { %v3541_v62 = vmul.f32 %v4459_v54, %v6067_v39  ;;  %v4461_v63 = vadd.f32 %v3404_v61, %v2825_v60  ;;  %v3406_v1 = vpop.f32.mrb[23].mxu0 }
 0x246   : > { %3928 = vst.msk [vmem:[%s6087_s5 + $0x40] sm:$0xff] %vm6089_vm2, %v4415_v57  ;;  %v4416_v2 = vpack.c.bf16 %v3680_v58, %v3679_v53  ;;  %v3542_v4 = vmul.f32 %v4460_v59, %v6069_v42  ;;  %v4462_v5 = vadd.f32 %v3406_v1, %v2827_v0 }
 0x247   : > { %v3617_v6 = vadd.f32 %v6071_v44, %v3541_v62  ;;  %v3543_v7 = vmul.f32 %v4461_v63, %v6067_v39 }
 0x248   : > { %3929 = vst.msk [vmem:[%s6087_s5 + $0x48] sm:$0xff] %vm6089_vm2, %v4416_v2  ;;  %v3618_v8 = vadd.f32 %v6073_v48, %v3542_v4  ;;  %v3544_v9 = vmul.f32 %v4462_v5, %v6069_v42 }
 0x249   : > { %v3681_v10 = vmax.f32 %v3617_v6, 0.0  ;;  %v3619_v11 = vadd.f32 %v6071_v44, %v3543_v7  ;;  %v2831_v14 = vpop.f32.mrb[24].mxu1 }
 0x24a   : > { %v3682_v12 = vmax.f32 %v3618_v8, 0.0  ;;  %v3620_v13 = vadd.f32 %v6073_v48, %v3544_v9  ;;  %v3410_v15 = vpop.f32.mrb[24].mxu0  ;;  %v2833_v18 = vpop.f32.mrb[25].mxu1 }
 0x24b   : > { %v3683_v16 = vmax.f32 %v3619_v11, 0.0  ;;  %v4463_v17 = vadd.f32 %v3410_v15, %v2831_v14  ;;  %v3412_v19 = vpop.f32.mrb[25].mxu0  ;;  %v2835_v23 = vpop.f32.mrb[26].mxu1 }
 0x24c   : > { %v4417_v20 = vpack.c.bf16 %v3682_v12, %v3681_v10  ;;  %v3684_v21 = vmax.f32 %v3620_v13, 0.0  ;;  %v4464_v22 = vadd.f32 %v3412_v19, %v2833_v18  ;;  %v3414_v24 = vpop.f32.mrb[26].mxu0  ;;  %v2837_v27 = vpop.f32.mrb[27].mxu1 }
 0x24d   : > { %v3545_v25 = vmul.f32 %v4463_v17, %v6067_v39  ;;  %v4465_v26 = vadd.f32 %v3414_v24, %v2835_v23  ;;  %v3416_v28 = vpop.f32.mrb[27].mxu0 }
 0x24e   : > { %3930 = vst.msk [vmem:[%s6087_s5 + $0x50] sm:$0xff] %vm6089_vm2, %v4417_v20  ;;  %v4418_v29 = vpack.c.bf16 %v3684_v21, %v3683_v16  ;;  %v3546_v30 = vmul.f32 %v4464_v22, %v6069_v42  ;;  %v4466_v31 = vadd.f32 %v3416_v28, %v2837_v27 }
 0x24f   : > { %v3621_v32 = vadd.f32 %v6071_v44, %v3545_v25  ;;  %v3547_v33 = vmul.f32 %v4465_v26, %v6067_v39 }
 0x250   : > { %3931 = vst.msk [vmem:[%s6087_s5 + $0x58] sm:$0xff] %vm6089_vm2, %v4418_v29  ;;  %v3622_v34 = vadd.f32 %v6073_v48, %v3546_v30  ;;  %v3548_v35 = vmul.f32 %v4466_v31, %v6069_v42 }
 0x251   : > { %v3685_v36 = vmax.f32 %v3621_v32, 0.0  ;;  %v3623_v37 = vadd.f32 %v6071_v44, %v3547_v33  ;;  %v2841_v41 = vpop.f32.mrb[28].mxu1 }
 0x252   : > { %v3686_v38 = vmax.f32 %v3622_v34, 0.0  ;;  %v3624_v40 = vadd.f32 %v6073_v48, %v3548_v35  ;;  %v3420_v43 = vpop.f32.mrb[28].mxu0  ;;  %v2843_v47 = vpop.f32.mrb[29].mxu1 }
 0x253   : > { %v3687_v45 = vmax.f32 %v3623_v37, 0.0  ;;  %v4467_v46 = vadd.f32 %v3420_v43, %v2841_v41  ;;  %v3422_v49 = vpop.f32.mrb[29].mxu0  ;;  %v2845_v53 = vpop.f32.mrb[30].mxu1 }
 0x254   : > { %v4419_v50 = vpack.c.bf16 %v3686_v38, %v3685_v36  ;;  %v3688_v51 = vmax.f32 %v3624_v40, 0.0  ;;  %v4468_v52 = vadd.f32 %v3422_v49, %v2843_v47  ;;  %v3424_v54 = vpop.f32.mrb[30].mxu0  ;;  %v2847_v57 = vpop.f32.mrb[31].mxu1 }
 0x255   : > { %v3549_v55 = vmul.f32 %v4467_v46, %v6067_v39  ;;  %v4469_v56 = vadd.f32 %v3424_v54, %v2845_v53  ;;  %v3426_v58 = vpop.f32.mrb[31].mxu0 }
 0x256   : > { %3932 = vst.msk [vmem:[%s6087_s5 + $0x60] sm:$0xff] %vm6089_vm2, %v4419_v50  ;;  %v4420_v59 = vpack.c.bf16 %v3688_v51, %v3687_v45  ;;  %v3550_v60 = vmul.f32 %v4468_v52, %v6069_v42  ;;  %v4470_v61 = vadd.f32 %v3426_v58, %v2847_v57 }
 0x257   : > { %v3625_v62 = vadd.f32 %v6071_v44, %v3549_v55  ;;  %v3551_v63 = vmul.f32 %v4469_v56, %v6067_v39 }
 0x258   : > { %3933 = vst.msk [vmem:[%s6087_s5 + $0x68] sm:$0xff] %vm6089_vm2, %v4420_v59  ;;  %v3626_v0 = vadd.f32 %v6073_v48, %v3550_v60  ;;  %v3552_v1 = vmul.f32 %v4470_v61, %v6069_v42 }
 0x259   : > { %v3689_v2 = vmax.f32 %v3625_v62, 0.0  ;;  %v3627_v4 = vadd.f32 %v6071_v44, %v3551_v63  ;;  %v2851_v7 = vpop.f32.mrb[32].mxu1 }
 0x25a   : > { %v3690_v5 = vmax.f32 %v3626_v0, 0.0  ;;  %v3628_v6 = vadd.f32 %v6073_v48, %v3552_v1  ;;  %v3430_v8 = vpop.f32.mrb[32].mxu0  ;;  %v2853_v11 = vpop.f32.mrb[33].mxu1 }
 0x25b   : > { %v3691_v9 = vmax.f32 %v3627_v4, 0.0  ;;  %v4471_v10 = vadd.f32 %v3430_v8, %v2851_v7  ;;  %v3432_v12 = vpop.f32.mrb[33].mxu0  ;;  %v2855_v16 = vpop.f32.mrb[34].mxu1 }
 0x25c   : > { %v4421_v13 = vpack.c.bf16 %v3690_v5, %v3689_v2  ;;  %v3692_v14 = vmax.f32 %v3628_v6, 0.0  ;;  %v4472_v15 = vadd.f32 %v3432_v12, %v2853_v11  ;;  %v3434_v17 = vpop.f32.mrb[34].mxu0  ;;  %v2857_v20 = vpop.f32.mrb[35].mxu1 }
 0x25d   : > { %v3553_v18 = vmul.f32 %v4471_v10, %v6067_v39  ;;  %v4473_v19 = vadd.f32 %v3434_v17, %v2855_v16  ;;  %v3436_v21 = vpop.f32.mrb[35].mxu0 }
 0x25e   : > { %3934 = vst.msk [vmem:[%s6087_s5 + $0x70] sm:$0xff] %vm6089_vm2, %v4421_v13  ;;  %v4422_v22 = vpack.c.bf16 %v3692_v14, %v3691_v9  ;;  %v3554_v23 = vmul.f32 %v4472_v15, %v6069_v42  ;;  %v4474_v24 = vadd.f32 %v3436_v21, %v2857_v20 }
 0x25f   : > { %v3629_v25 = vadd.f32 %v6071_v44, %v3553_v18  ;;  %v3555_v26 = vmul.f32 %v4473_v19, %v6067_v39 }
 0x260   : > { %3935 = vst.msk [vmem:[%s6087_s5 + $0x78] sm:$0xff] %vm6089_vm2, %v4422_v22  ;;  %v3630_v27 = vadd.f32 %v6073_v48, %v3554_v23  ;;  %v3556_v28 = vmul.f32 %v4474_v24, %v6069_v42 }
 0x261   : > { %v3693_v29 = vmax.f32 %v3629_v25, 0.0  ;;  %v3631_v30 = vadd.f32 %v6071_v44, %v3555_v26  ;;  %v2861_v33 = vpop.f32.mrb[36].mxu1 }
 0x262   : > { %v3694_v31 = vmax.f32 %v3630_v27, 0.0  ;;  %v3632_v32 = vadd.f32 %v6073_v48, %v3556_v28  ;;  %v3440_v34 = vpop.f32.mrb[36].mxu0  ;;  %v2863_v37 = vpop.f32.mrb[37].mxu1 }
 0x263   : > { %v3695_v35 = vmax.f32 %v3631_v30, 0.0  ;;  %v4475_v36 = vadd.f32 %v3440_v34, %v2861_v33  ;;  %v3442_v38 = vpop.f32.mrb[37].mxu0  ;;  %v2865_v45 = vpop.f32.mrb[38].mxu1 }
 0x264   : > { %v4423_v40 = vpack.c.bf16 %v3694_v31, %v3693_v29  ;;  %v3696_v41 = vmax.f32 %v3632_v32, 0.0  ;;  %v4476_v43 = vadd.f32 %v3442_v38, %v2863_v37  ;;  %v3444_v46 = vpop.f32.mrb[38].mxu0  ;;  %v2867_v50 = vpop.f32.mrb[39].mxu1 }
 0x265   : > { %v3557_v47 = vmul.f32 %v4475_v36, %v6067_v39  ;;  %v4477_v49 = vadd.f32 %v3444_v46, %v2865_v45  ;;  %v3446_v51 = vpop.f32.mrb[39].mxu0 }
 0x266   : > { %3936 = vst.msk [vmem:[%s6087_s5 + $0x80] sm:$0xff] %vm6089_vm2, %v4423_v40  ;;  %v4424_v52 = vpack.c.bf16 %v3696_v41, %v3695_v35  ;;  %v3558_v53 = vmul.f32 %v4476_v43, %v6069_v42  ;;  %v4478_v54 = vadd.f32 %v3446_v51, %v2867_v50 }
 0x267   : > { %v3633_v55 = vadd.f32 %v6071_v44, %v3557_v47  ;;  %v3559_v56 = vmul.f32 %v4477_v49, %v6067_v39 }
 0x268   : > { %3937 = vst.msk [vmem:[%s6087_s5 + $0x88] sm:$0xff] %vm6089_vm2, %v4424_v52  ;;  %v3634_v57 = vadd.f32 %v6073_v48, %v3558_v53  ;;  %v3560_v58 = vmul.f32 %v4478_v54, %v6069_v42 }
 0x269   : > { %v3697_v59 = vmax.f32 %v3633_v55, 0.0  ;;  %v3635_v60 = vadd.f32 %v6071_v44, %v3559_v56  ;;  %v2871_v63 = vpop.f32.mrb[40].mxu1 }
 0x26a   : > { %v3698_v61 = vmax.f32 %v3634_v57, 0.0  ;;  %v3636_v62 = vadd.f32 %v6073_v48, %v3560_v58  ;;  %v3450_v0 = vpop.f32.mrb[40].mxu0  ;;  %v2873_v4 = vpop.f32.mrb[41].mxu1 }
 0x26b   : > { %v3699_v1 = vmax.f32 %v3635_v60, 0.0  ;;  %v4479_v2 = vadd.f32 %v3450_v0, %v2871_v63  ;;  %v3452_v5 = vpop.f32.mrb[41].mxu0  ;;  %v2875_v9 = vpop.f32.mrb[42].mxu1 }
 0x26c   : > { %v4425_v6 = vpack.c.bf16 %v3698_v61, %v3697_v59  ;;  %v3700_v7 = vmax.f32 %v3636_v62, 0.0  ;;  %v4480_v8 = vadd.f32 %v3452_v5, %v2873_v4  ;;  %v3454_v10 = vpop.f32.mrb[42].mxu0  ;;  %v2877_v13 = vpop.f32.mrb[43].mxu1 }
 0x26d   : > { %v3561_v11 = vmul.f32 %v4479_v2, %v6067_v39  ;;  %v4481_v12 = vadd.f32 %v3454_v10, %v2875_v9  ;;  %v3456_v14 = vpop.f32.mrb[43].mxu0 }
 0x26e   : > { %3938 = vst.msk [vmem:[%s6087_s5 + $0x90] sm:$0xff] %vm6089_vm2, %v4425_v6  ;;  %v4426_v15 = vpack.c.bf16 %v3700_v7, %v3699_v1  ;;  %v3562_v16 = vmul.f32 %v4480_v8, %v6069_v42  ;;  %v4482_v17 = vadd.f32 %v3456_v14, %v2877_v13 }
 0x26f   : > { %v3637_v18 = vadd.f32 %v6071_v44, %v3561_v11  ;;  %v3563_v19 = vmul.f32 %v4481_v12, %v6067_v39 }
 0x270   : > { %3939 = vst.msk [vmem:[%s6087_s5 + $0x98] sm:$0xff] %vm6089_vm2, %v4426_v15  ;;  %v3638_v20 = vadd.f32 %v6073_v48, %v3562_v16  ;;  %v3564_v21 = vmul.f32 %v4482_v17, %v6069_v42 }
 0x271   : > { %v3701_v22 = vmax.f32 %v3637_v18, 0.0  ;;  %v3639_v23 = vadd.f32 %v6071_v44, %v3563_v19  ;;  %v2881_v26 = vpop.f32.mrb[44].mxu1 }
 0x272   : > { %v3702_v24 = vmax.f32 %v3638_v20, 0.0  ;;  %v3640_v25 = vadd.f32 %v6073_v48, %v3564_v21  ;;  %v3460_v27 = vpop.f32.mrb[44].mxu0  ;;  %v2883_v30 = vpop.f32.mrb[45].mxu1 }
 0x273   : > { %v3703_v28 = vmax.f32 %v3639_v23, 0.0  ;;  %v4483_v29 = vadd.f32 %v3460_v27, %v2881_v26  ;;  %v3462_v31 = vpop.f32.mrb[45].mxu0  ;;  %v2885_v35 = vpop.f32.mrb[46].mxu1 }
 0x274   : > { %v4427_v32 = vpack.c.bf16 %v3702_v24, %v3701_v22  ;;  %v3704_v33 = vmax.f32 %v3640_v25, 0.0  ;;  %v4484_v34 = vadd.f32 %v3462_v31, %v2883_v30  ;;  %v3464_v36 = vpop.f32.mrb[46].mxu0  ;;  %v2887_v40 = vpop.f32.mrb[47].mxu1 }
 0x275   : > { %v3565_v37 = vmul.f32 %v4483_v29, %v6067_v39  ;;  %v4485_v38 = vadd.f32 %v3464_v36, %v2885_v35  ;;  %v3466_v41 = vpop.f32.mrb[47].mxu0 }
 0x276   : > { %3940 = vst.msk [vmem:[%s6087_s5 + $0xa0] sm:$0xff] %vm6089_vm2, %v4427_v32  ;;  %v4428_v43 = vpack.c.bf16 %v3704_v33, %v3703_v28  ;;  %v3566_v45 = vmul.f32 %v4484_v34, %v6069_v42  ;;  %v4486_v46 = vadd.f32 %v3466_v41, %v2887_v40 }
 0x277   : > { %v3641_v47 = vadd.f32 %v6071_v44, %v3565_v37  ;;  %v3567_v49 = vmul.f32 %v4485_v38, %v6067_v39 }
 0x278   : > { %3941 = vst.msk [vmem:[%s6087_s5 + $0xa8] sm:$0xff] %vm6089_vm2, %v4428_v43  ;;  %v3642_v50 = vadd.f32 %v6073_v48, %v3566_v45  ;;  %v3568_v51 = vmul.f32 %v4486_v46, %v6069_v42 }
 0x279   : > { %v3705_v52 = vmax.f32 %v3641_v47, 0.0  ;;  %v3643_v53 = vadd.f32 %v6071_v44, %v3567_v49  ;;  %v2891_v56 = vpop.f32.mrb[48].mxu1 }
 0x27a   : > { %v3706_v54 = vmax.f32 %v3642_v50, 0.0  ;;  %v3644_v55 = vadd.f32 %v6073_v48, %v3568_v51  ;;  %v3470_v57 = vpop.f32.mrb[48].mxu0  ;;  %v2893_v60 = vpop.f32.mrb[49].mxu1 }
 0x27b   : > { %v3707_v58 = vmax.f32 %v3643_v53, 0.0  ;;  %v4487_v59 = vadd.f32 %v3470_v57, %v2891_v56  ;;  %v3472_v61 = vpop.f32.mrb[49].mxu0  ;;  %v2895_v1 = vpop.f32.mrb[50].mxu1 }
 0x27c   : > { %v4429_v62 = vpack.c.bf16 %v3706_v54, %v3705_v52  ;;  %v3708_v63 = vmax.f32 %v3644_v55, 0.0  ;;  %v4488_v0 = vadd.f32 %v3472_v61, %v2893_v60  ;;  %v3474_v2 = vpop.f32.mrb[50].mxu0  ;;  %v2897_v6 = vpop.f32.mrb[51].mxu1 }
 0x27d   : > { %v3569_v4 = vmul.f32 %v4487_v59, %v6067_v39  ;;  %v4489_v5 = vadd.f32 %v3474_v2, %v2895_v1  ;;  %v3476_v7 = vpop.f32.mrb[51].mxu0 }
 0x27e   : > { %3942 = vst.msk [vmem:[%s6087_s5 + $0xb0] sm:$0xff] %vm6089_vm2, %v4429_v62  ;;  %v4430_v8 = vpack.c.bf16 %v3708_v63, %v3707_v58  ;;  %v3570_v9 = vmul.f32 %v4488_v0, %v6069_v42  ;;  %v4490_v10 = vadd.f32 %v3476_v7, %v2897_v6 }
 0x27f   : > { %v3645_v11 = vadd.f32 %v6071_v44, %v3569_v4  ;;  %v3571_v12 = vmul.f32 %v4489_v5, %v6067_v39 }
 0x280   : > { %3943 = vst.msk [vmem:[%s6087_s5 + $0xb8] sm:$0xff] %vm6089_vm2, %v4430_v8  ;;  %v3646_v13 = vadd.f32 %v6073_v48, %v3570_v9  ;;  %v3572_v14 = vmul.f32 %v4490_v10, %v6069_v42 }
 0x281   : > { %v3709_v15 = vmax.f32 %v3645_v11, 0.0  ;;  %v3647_v16 = vadd.f32 %v6071_v44, %v3571_v12  ;;  %v2901_v19 = vpop.f32.mrb[52].mxu1 }
 0x282   : > { %v3710_v17 = vmax.f32 %v3646_v13, 0.0  ;;  %v3648_v18 = vadd.f32 %v6073_v48, %v3572_v14  ;;  %v3480_v20 = vpop.f32.mrb[52].mxu0  ;;  %v2903_v23 = vpop.f32.mrb[53].mxu1 }
 0x283   : > { %v3711_v21 = vmax.f32 %v3647_v16, 0.0  ;;  %v4491_v22 = vadd.f32 %v3480_v20, %v2901_v19  ;;  %v3482_v24 = vpop.f32.mrb[53].mxu0  ;;  %v2905_v28 = vpop.f32.mrb[54].mxu1 }
 0x284   : > { %v4431_v25 = vpack.c.bf16 %v3710_v17, %v3709_v15  ;;  %v3712_v26 = vmax.f32 %v3648_v18, 0.0  ;;  %v4492_v27 = vadd.f32 %v3482_v24, %v2903_v23  ;;  %v3484_v29 = vpop.f32.mrb[54].mxu0  ;;  %v2907_v32 = vpop.f32.mrb[55].mxu1 }
 0x285   : > { %v3573_v30 = vmul.f32 %v4491_v22, %v6067_v39  ;;  %v4493_v31 = vadd.f32 %v3484_v29, %v2905_v28  ;;  %v3486_v33 = vpop.f32.mrb[55].mxu0 }
 0x286   : > { %3944 = vst.msk [vmem:[%s6087_s5 + $0xc0] sm:$0xff] %vm6089_vm2, %v4431_v25  ;;  %v4432_v34 = vpack.c.bf16 %v3712_v26, %v3711_v21  ;;  %v3574_v35 = vmul.f32 %v4492_v27, %v6069_v42  ;;  %v4494_v36 = vadd.f32 %v3486_v33, %v2907_v32 }
 0x287   : > { %v3649_v37 = vadd.f32 %v6071_v44, %v3573_v30  ;;  %v3575_v38 = vmul.f32 %v4493_v31, %v6067_v39 }
 0x288   : > { %3945 = vst.msk [vmem:[%s6087_s5 + $0xc8] sm:$0xff] %vm6089_vm2, %v4432_v34  ;;  %v3650_v40 = vadd.f32 %v6073_v48, %v3574_v35  ;;  %v3576_v41 = vmul.f32 %v4494_v36, %v6069_v42 }
 0x289   : > { %v3713_v43 = vmax.f32 %v3649_v37, 0.0  ;;  %v3651_v45 = vadd.f32 %v6071_v44, %v3575_v38  ;;  %v2911_v49 = vpop.f32.mrb[56].mxu1 }
 0x28a   : > { %v3714_v46 = vmax.f32 %v3650_v40, 0.0  ;;  %v3652_v47 = vadd.f32 %v6073_v48, %v3576_v41  ;;  %v3490_v50 = vpop.f32.mrb[56].mxu0  ;;  %v2913_v53 = vpop.f32.mrb[57].mxu1 }
 0x28b   : > { %v3715_v51 = vmax.f32 %v3651_v45, 0.0  ;;  %v4495_v52 = vadd.f32 %v3490_v50, %v2911_v49  ;;  %v3492_v54 = vpop.f32.mrb[57].mxu0  ;;  %v2915_v58 = vpop.f32.mrb[58].mxu1 }
 0x28c   : > { %v4433_v55 = vpack.c.bf16 %v3714_v46, %v3713_v43  ;;  %v3716_v56 = vmax.f32 %v3652_v47, 0.0  ;;  %v4496_v57 = vadd.f32 %v3492_v54, %v2913_v53  ;;  %v3494_v59 = vpop.f32.mrb[58].mxu0  ;;  %v2917_v62 = vpop.f32.mrb[59].mxu1 }
 0x28d   : > { %v3577_v60 = vmul.f32 %v4495_v52, %v6067_v39  ;;  %v4497_v61 = vadd.f32 %v3494_v59, %v2915_v58  ;;  %v3496_v63 = vpop.f32.mrb[59].mxu0 }
 0x28e   : > { %3946 = vst.msk [vmem:[%s6087_s5 + $0xd0] sm:$0xff] %vm6089_vm2, %v4433_v55  ;;  %v4434_v0 = vpack.c.bf16 %v3716_v56, %v3715_v51  ;;  %v3578_v1 = vmul.f32 %v4496_v57, %v6069_v42  ;;  %v4498_v2 = vadd.f32 %v3496_v63, %v2917_v62 }
 0x28f   : > { %v3653_v4 = vadd.f32 %v6071_v44, %v3577_v60  ;;  %v3579_v5 = vmul.f32 %v4497_v61, %v6067_v39 }
 0x290   : > { %3947 = vst.msk [vmem:[%s6087_s5 + $0xd8] sm:$0xff] %vm6089_vm2, %v4434_v0  ;;  %v3654_v6 = vadd.f32 %v6073_v48, %v3578_v1  ;;  %v3580_v7 = vmul.f32 %v4498_v2, %v6069_v42 }
 0x291   : > { %v3717_v8 = vmax.f32 %v3653_v4, 0.0  ;;  %v3655_v9 = vadd.f32 %v6071_v44, %v3579_v5  ;;  %v2921_v12 = vpop.f32.mrb[60].mxu1 }
 0x292   : > { %v3718_v10 = vmax.f32 %v3654_v6, 0.0  ;;  %v3656_v11 = vadd.f32 %v6073_v48, %v3580_v7  ;;  %v3500_v13 = vpop.f32.mrb[60].mxu0  ;;  %v2923_v16 = vpop.f32.mrb[61].mxu1 }
 0x293   : > { %v3719_v14 = vmax.f32 %v3655_v9, 0.0  ;;  %v4499_v15 = vadd.f32 %v3500_v13, %v2921_v12  ;;  %v3502_v17 = vpop.f32.mrb[61].mxu0  ;;  %v2925_v21 = vpop.f32.mrb[62].mxu1 }
 0x294   : > { %v4435_v18 = vpack.c.bf16 %v3718_v10, %v3717_v8  ;;  %v3720_v19 = vmax.f32 %v3656_v11, 0.0  ;;  %v4500_v20 = vadd.f32 %v3502_v17, %v2923_v16  ;;  %v3504_v22 = vpop.f32.mrb[62].mxu0  ;;  %v2927_v25 = vpop.f32.mrb[63].mxu1 }
 0x295   : > { %v3581_v23 = vmul.f32 %v4499_v15, %v6067_v39  ;;  %v4501_v24 = vadd.f32 %v3504_v22, %v2925_v21  ;;  %v3506_v26 = vpop.f32.mrb[63].mxu0 }
 0x296   : > { %3948 = vst.msk [vmem:[%s6087_s5 + $0xe0] sm:$0xff] %vm6089_vm2, %v4435_v18  ;;  %v4436_v27 = vpack.c.bf16 %v3720_v19, %v3719_v14  ;;  %v3582_v28 = vmul.f32 %v4500_v20, %v6069_v42  ;;  %v4502_v29 = vadd.f32 %v3506_v26, %v2927_v25 }
 0x297   : > { %v3657_v30 = vadd.f32 %v6071_v44, %v3581_v23  ;;  %v3583_v31 = vmul.f32 %v4501_v24, %v6067_v39 }
 0x298   : > { %3949 = vst.msk [vmem:[%s6087_s5 + $0xe8] sm:$0xff] %vm6089_vm2, %v4436_v27  ;;  %v3658_v32 = vadd.f32 %v6073_v48, %v3582_v28  ;;  %v3584_v33 = vmul.f32 %v4502_v29, %v6069_v42 }
 0x299   : > { %v3721_v34 = vmax.f32 %v3657_v30, 0.0  ;;  %v3659_v35 = vadd.f32 %v6071_v44, %v3583_v31 }
 0x29a   : > { %v3722_v36 = vmax.f32 %v3658_v32, 0.0  ;;  %v3660_v37 = vadd.f32 %v6073_v48, %v3584_v33 }
 0x29b   : > { %v3723_v38 = vmax.f32 %v3659_v35, 0.0 }
 0x29c   : > { %v4437_v40 = vpack.c.bf16 %v3722_v36, %v3721_v34  ;;  %v3724_v41 = vmax.f32 %v3660_v37, 0.0 }
 0x29e   : > { %3950 = vst.msk [vmem:[%s6087_s5 + $0xf0] sm:$0xff] %vm6089_vm2, %v4437_v40  ;;  %v4438_v39 = vpack.c.bf16 %v3724_v41, %v3723_v38 }
 0x2a0   : > { %3951 = vst.msk [vmem:[%s6087_s5 + $0xf8] sm:$0xff] %vm6089_vm2, %v4438_v39 }
 0x2a1 PF: > { %s14_s15 = sadd.s32 1, %s5295_s15  }
 0x2a2   : > { %p11_p4 = scmp.ge.s32.totalorder %s14_s15, 4  }
 0x2a4   :  { %13 = sbr.rel (!%p11_p4) target bundleno = 1 (0x1), region = 66 }

// kernel: inception_block_d.10
= control target key start
LH: loop header
LB: loop body
LE: loop exit
PB: predicated region body
PF: predicated region fallthrough
CT: control target
= control target key end

     0   :  { %s3757_s15 = smov 0   ;;  %s3759_s16 = smov 0   ;;  %s4725_s0 = inlined_call_operand.vmem [shape: bf16[98,1792], index: 0, kind: input, shape index: {}]   ;;  %s4726_s1 = inlined_call_operand.vmem [shape: bf16[1792,192], index: 1, kind: input, shape index: {}]   ;;  %s4727_s2 = inlined_call_operand.vmem [shape: f32[1,192], index: 2, kind: input, shape index: {}]   ;;  %s4728_s3 = inlined_call_operand.vmem [shape: f32[1,192], index: 3, kind: input, shape index: {}]   ;;  %s4729_s4 = inlined_call_operand.vmem [shape: f32[98,192], index: 4, kind: output, shape index: {}]  }
   0x1   :  { %s3761_s17 = smov 0  }
   0x2 LB: > { %s3770_s18 = sadd.s32 4294967295, %s3698_s17   ;;  %s3772_s19 = sadd.s32 1, %s3698_s17   ;;  %s3698_s17 = sphi %s3761_s17, %s4736_s17   ;;  %s3694_s16 = sphi %s3759_s16, %s4735_s16   ;;  %s3690_s15 = sphi %s3757_s15, %s4734_s15  }
   0x3   : > { %s107_s20 = ssub.s32 %s3698_s17, %s3772_s19  ;;  %s110_s21 = sadd.s32 1, %s3694_s16 }
   0x4   : > { %p108_p0 = scmp.eq.s32.totalorder %s107_s20, 0  ;;  %p120_p1 = scmp.ne.s32.totalorder %s3694_s16, %s3690_s15 }
   0x5   : > { %p121_p2 = scmp.eq.s32.totalorder %s3770_s18, 1  ;;  %p2699_p3 = scmp.ge.s32.totalorder %s3698_s17, 1 }
   0x6   : > { %s3780_s22 = scalar_select %p108_p0, %s3694_s16, %s110_s21  }
   0x7   : > { %p3782_p4 = por %p121_p2, %p120_p1  ;;  %p174_p5 = scmp.lt.s32.totalorder %s3698_s17, 3 }
   0x9   : > { %p175_p6 = pnand %p2699_p3, %p174_p5 }
   0xa   : > { %v3224_v0 = vld [vmem:[%s4726_s1 + $0x4] ss:$8 sps:$4 sm:$0xff] (!%p175_p6)   ;;  %v3228_v2 = vld [vmem:[%s4726_s1] ss:$8 sps:$4 sm:$0xff] (!%p175_p6)   ;;  %v3230_v4 = vld [vmem:[%s4726_s1 + $0x14] ss:$8 sps:$4 sm:$0xff] (!%p175_p6)  }
   0xb   : > { %178 = sbr.rel (%p175_p6) target bundleno = 549 (0x225), region = 36  ;;  %v3226_v1 = vld [vmem:[%s4726_s1 + $0x304] ss:$8 sps:$4 sm:$0xff] (!%p175_p6)   ;;  %1908 = vmatprep.subr.bf16.mxu1 (!%p175_p6), %v3224_v0  ;;  %v3229_v3 = vld [vmem:[%s4726_s1 + $0x300] ss:$8 sps:$4 sm:$0xff] (!%p175_p6)   ;;  %s3877_s24 = sshll.u32 (!%p175_p6), %s3770_s18, 3 }
   0xc   : > { %2127 = vmatprep.subr.bf16.mxu0 (!%p175_p6), %v3226_v1  ;;  %1909 = vmatpush1.bf16.msra.mxu1 (!%p175_p6), %v3228_v2  ;;  %v3232_v5 = vld [vmem:[%s4726_s1 + $0x314] ss:$8 sps:$4 sm:$0xff] (!%p175_p6)   ;;  %v3234_v6 = vld [vmem:[%s4726_s1 + $0x10] ss:$8 sps:$4 sm:$0xff] (!%p175_p6)   ;;  %v3236_v8 = vld [vmem:[%s4726_s1 + $0x24] ss:$8 sps:$4 sm:$0xff] (!%p175_p6)  }
   0xd   : > { %2128 = vmatpush1.bf16.msra.mxu0 (!%p175_p6), %v3229_v3  ;;  %1910 = vmatprep.subr.bf16.mxu1 (!%p175_p6), %v3230_v4  ;;  %v3235_v7 = vld [vmem:[%s4726_s1 + $0x310] ss:$8 sps:$4 sm:$0xff] (!%p175_p6)   ;;  %v3238_v9 = vld [vmem:[%s4726_s1 + $0x324] ss:$8 sps:$4 sm:$0xff] (!%p175_p6)   ;;  %v3240_v10 = vld [vmem:[%s4726_s1 + $0x20] ss:$8 sps:$4 sm:$0xff] (!%p175_p6)  }
   0xe   : > { %2129 = vmatprep.subr.bf16.mxu0 (!%p175_p6), %v3232_v5  ;;  %v3241_v11 = vld [vmem:[%s4726_s1 + $0x320] ss:$8 sps:$4 sm:$0xff] (!%p175_p6)   ;;  %v3242_v12 = vld [vmem:[%s4726_s1 + $0x34] ss:$8 sps:$4 sm:$0xff] (!%p175_p6)   ;;  %v3246_v14 = vld [vmem:[%s4726_s1 + $0x30] ss:$8 sps:$4 sm:$0xff] (!%p175_p6)  }
   0xf   : > { %v3244_v13 = vld [vmem:[%s4726_s1 + $0x334] ss:$8 sps:$4 sm:$0xff] (!%p175_p6)   ;;  %v3247_v15 = vld [vmem:[%s4726_s1 + $0x330] ss:$8 sps:$4 sm:$0xff] (!%p175_p6)   ;;  %v3248_v16 = vld [vmem:[%s4726_s1 + $0x44] ss:$8 sps:$4 sm:$0xff] (!%p175_p6)  }
  0x10   : > { %1911 = vmatpush1.bf16.msra.mxu1 (!%p175_p6), %v3234_v6  ;;  %v3250_v17 = vld [vmem:[%s4726_s1 + $0x344] ss:$8 sps:$4 sm:$0xff] (!%p175_p6)   ;;  %v3252_v18 = vld [vmem:[%s4726_s1 + $0x40] ss:$8 sps:$4 sm:$0xff] (!%p175_p6)   ;;  %v3254_v20 = vld [vmem:[%s4726_s1 + $0x54] ss:$8 sps:$4 sm:$0xff] (!%p175_p6)  }
  0x11   : > { %2130 = vmatpush1.bf16.msra.mxu0 (!%p175_p6), %v3235_v7  ;;  %1912 = vmatprep.subr.bf16.mxu1 (!%p175_p6), %v3236_v8  ;;  %v3253_v19 = vld [vmem:[%s4726_s1 + $0x340] ss:$8 sps:$4 sm:$0xff] (!%p175_p6)   ;;  %v3256_v21 = vld [vmem:[%s4726_s1 + $0x354] ss:$8 sps:$4 sm:$0xff] (!%p175_p6)   ;;  %v3258_v22 = vld [vmem:[%s4726_s1 + $0x50] ss:$8 sps:$4 sm:$0xff] (!%p175_p6)  }
  0x12   : > { %2131 = vmatprep.subr.bf16.mxu0 %v3238_v9  ;;  %v3259_v23 = vld [vmem:[%s4726_s1 + $0x350] ss:$8 sps:$4 sm:$0xff]   ;;  %v3260_v24 = vld [vmem:[%s4726_s1 + $0x64] ss:$8 sps:$4 sm:$0xff]   ;;  %v3264_v26 = vld [vmem:[%s4726_s1 + $0x60] ss:$8 sps:$4 sm:$0xff]  }
  0x13   : > { %v3262_v25 = vld [vmem:[%s4726_s1 + $0x364] ss:$8 sps:$4 sm:$0xff]   ;;  %v3265_v27 = vld [vmem:[%s4726_s1 + $0x360] ss:$8 sps:$4 sm:$0xff]   ;;  %v3266_v28 = vld [vmem:[%s4726_s1 + $0x74] ss:$8 sps:$4 sm:$0xff]  }
  0x14   : > { %1913 = vmatpush1.bf16.msra.mxu1 %v3240_v10  ;;  %v3268_v29 = vld [vmem:[%s4726_s1 + $0x374] ss:$8 sps:$4 sm:$0xff]   ;;  %v3270_v30 = vld [vmem:[%s4726_s1 + $0x70] ss:$8 sps:$4 sm:$0xff]   ;;  %v3272_v32 = vld [vmem:[%s4726_s1 + $0x84] ss:$8 sps:$4 sm:$0xff]  }
  0x15   : > { %2132 = vmatpush1.bf16.msra.mxu0 %v3241_v11  ;;  %1914 = vmatprep.subr.bf16.mxu1 %v3242_v12  ;;  %v3271_v31 = vld [vmem:[%s4726_s1 + $0x370] ss:$8 sps:$4 sm:$0xff]   ;;  %p211_p7 = scmp.lt.s32.totalorder %s3877_s24, 12  ;;  %v3274_v33 = vld [vmem:[%s4726_s1 + $0x384] ss:$8 sps:$4 sm:$0xff]   ;;  %s202_s20 = sand.u32 1, %s3690_s15  }
  0x16   : > { %2133 = vmatprep.subr.bf16.mxu0 %v3244_v13  ;;  %v3276_v34 = vld [vmem:[%s4726_s1 + $0x80] ss:$8 sps:$4 sm:$0xff]   ;;  %v3278_v36 = vld [vmem:[%s4726_s1 + $0x94] ss:$8 sps:$4 sm:$0xff]   ;;  %v3282_v38 = vld [vmem:[%s4726_s1 + $0x90] ss:$8 sps:$4 sm:$0xff]  }
  0x17   : > { %v3277_v35 = vld [vmem:[%s4726_s1 + $0x380] ss:$8 sps:$4 sm:$0xff]   ;;  %s212_s13 = scalar_select %p211_p7, %s3877_s24, 12  ;;  %v3280_v37 = vld [vmem:[%s4726_s1 + $0x394] ss:$8 sps:$4 sm:$0xff]   ;;  %vm2492_vm0 = vcmask 523264  }
  0x18   : > { %1915 = vmatpush1.bf16.msra.mxu1 %v3246_v14  ;;  %v3283_v39 = vld [vmem:[%s4726_s1 + $0x390] ss:$8 sps:$4 sm:$0xff]   ;;  %v3284_v40 = vld [vmem:[%s4726_s1 + $0xa4] ss:$8 sps:$4 sm:$0xff]   ;;  %v3288_v42 = vld [vmem:[%s4726_s1 + $0xa0] ss:$8 sps:$4 sm:$0xff]  }
  0x19   : > { %2134 = vmatpush1.bf16.msra.mxu0 %v3247_v15  ;;  %1916 = vmatprep.subr.bf16.mxu1 %v3248_v16  ;;  %s3135_s29 = smul.u32 56, %s212_s13  ;;  %v3286_v41 = vld [vmem:[%s4726_s1 + $0x3a4] ss:$8 sps:$4 sm:$0xff]   ;;  %v3289_v43 = vld [vmem:[%s4726_s1 + $0x3a0] ss:$8 sps:$4 sm:$0xff]   ;;  %s2700_s21 = sshll.u32 %s202_s20, 7 }
  0x1a   : > { %2135 = vmatprep.subr.bf16.mxu0 %v3250_v17  ;;  %v3290_v44 = vld [vmem:[%s4726_s1 + $0xb4] ss:$8 sps:$4 sm:$0xff]   ;;  %v3294_v46 = vld [vmem:[%s4726_s1 + $0xb0] ss:$8 sps:$4 sm:$0xff]   ;;  %v3296_v49 = vld [vmem:[%s4726_s1 + $0xc4] ss:$8 sps:$4 sm:$0xff]  }
  0x1b   : > { %s3929_s14 = scalar_lea.vmem %s4725_s0, %s3135_s29  ;;  %v3292_v45 = vld [vmem:[%s4726_s1 + $0x3b4] ss:$8 sps:$4 sm:$0xff]   ;;  %v3295_v47 = vld [vmem:[%s4726_s1 + $0x3b0] ss:$8 sps:$4 sm:$0xff]   ;;  %v3298_v50 = vld [vmem:[%s4726_s1 + $0x3c4] ss:$8 sps:$4 sm:$0xff]  }
  0x1c   : > { %1917 = vmatpush1.bf16.msra.mxu1 %v3252_v18  ;;  %v3322_v48 = vld [vmem:[%s3929_s14 + $0x4] ss:$56 sps:$4 sm:$0xff]   ;;  %v3300_v52 = vld [vmem:[%s4726_s1 + $0xc0] ss:$8 sps:$4 sm:$0xff]   ;;  %v3306_v56 = vld [vmem:[%s4726_s1 + $0xd0] ss:$8 sps:$4 sm:$0xff]  }
  0x1d   : > { %2136 = vmatpush1.bf16.msra.mxu0 %v3253_v19  ;;  %1918 = vmatprep.subr.bf16.mxu1 %v3254_v20  ;;  %v3328_v51 = vld [vmem:[%s3929_s14 + $0x1c] ss:$56 sps:$4 sm:$0xff]   ;;  %v3301_v53 = vld [vmem:[%s4726_s1 + $0x3c0] ss:$8 sps:$4 sm:$0xff]   ;;  %v3307_v57 = vld [vmem:[%s4726_s1 + $0x3d0] ss:$8 sps:$4 sm:$0xff]  }
  0x1e   : > { %2137 = vmatprep.subr.bf16.mxu0 %v3256_v21  ;;  %1940 = vmatprep.mubr.bf16.mxu1 %v3322_v48  ;;  %v3302_v54 = vld [vmem:[%s4726_s1 + $0xd4] ss:$8 sps:$4 sm:$0xff]   ;;  %v3308_v58 = vld [vmem:[%s4726_s1 + $0xe4] ss:$8 sps:$4 sm:$0xff]   ;;  %v3312_v60 = vld [vmem:[%s4726_s1 + $0xe0] ss:$8 sps:$4 sm:$0xff]  }
  0x1f   : > { %v3304_v55 = vld [vmem:[%s4726_s1 + $0x3d4] ss:$8 sps:$4 sm:$0xff]   ;;  %2159 = vmatprep.mubr.bf16.mxu0 %v3328_v51  ;;  %v3310_v59 = vld [vmem:[%s4726_s1 + $0x3e4] ss:$8 sps:$4 sm:$0xff]   ;;  %v3313_v61 = vld [vmem:[%s4726_s1 + $0x3e0] ss:$8 sps:$4 sm:$0xff]  }
  0x20   : > { %1919 = vmatpush1.bf16.msra.mxu1 %v3258_v22  ;;  %v3314_v62 = vld [vmem:[%s4726_s1 + $0xf4] ss:$8 sps:$4 sm:$0xff]   ;;  %v3318_v0 = vld [vmem:[%s4726_s1 + $0xf0] ss:$8 sps:$4 sm:$0xff]   ;;  %v3325_v2 = vld [vmem:[%s4726_s1 + $0x104] ss:$8 sps:$4 sm:$0xff]  }
  0x21   : > { %2138 = vmatpush1.bf16.msra.mxu0 %v3259_v23  ;;  %1920 = vmatprep.subr.bf16.mxu1 %v3260_v24  ;;  %v3316_v63 = vld [vmem:[%s4726_s1 + $0x3f4] ss:$8 sps:$4 sm:$0xff]   ;;  %v3319_v1 = vld [vmem:[%s4726_s1 + $0x3f0] ss:$8 sps:$4 sm:$0xff]   ;;  %v3331_v3 = vld [vmem:[%s4726_s1 + $0x404] ss:$8 sps:$4 sm:$0xff]  }
  0x22   : > { %2139 = vmatprep.subr.bf16.mxu0 %v3262_v25  ;;  %v3320_v4 = vld [vmem:[%s3929_s14] ss:$56 sps:$4 sm:$0xff]   ;;  %v3334_v8 = vld [vmem:[%s4726_s1 + $0x114] ss:$8 sps:$4 sm:$0xff]   ;;  %v3340_v12 = vld [vmem:[%s4726_s1 + $0x124] ss:$8 sps:$4 sm:$0xff]  }
  0x23   : > { %v3323_v5 = vld [vmem:[%s4726_s1 + $0x100] ss:$8 sps:$4 sm:$0xff]   ;;  %v3326_v6 = vld [vmem:[%s3929_s14 + $0x18] ss:$56 sps:$4 sm:$0xff]   ;;  %v3337_v9 = vld [vmem:[%s4726_s1 + $0x414] ss:$8 sps:$4 sm:$0xff]  }
  0x24   : > { %1921 = vmatpush1.bf16.msra.mxu1 %v3264_v26  ;;  %v3329_v7 = vld [vmem:[%s4726_s1 + $0x400] ss:$8 sps:$4 sm:$0xff]   ;;  %v3332_v10 = vld [vmem:[%s4726_s1 + $0x110] ss:$8 sps:$4 sm:$0xff]   ;;  %v3343_v13 = vld [vmem:[%s4726_s1 + $0x424] ss:$8 sps:$4 sm:$0xff]  }
  0x25   : > { %2140 = vmatpush1.bf16.msra.mxu0 %v3265_v27  ;;  %1922 = vmatprep.subr.bf16.mxu1 %v3266_v28  ;;  %v3335_v11 = vld [vmem:[%s4726_s1 + $0x410] ss:$8 sps:$4 sm:$0xff]   ;;  %v3338_v14 = vld [vmem:[%s4726_s1 + $0x120] ss:$8 sps:$4 sm:$0xff]   ;;  %v3346_v16 = vld [vmem:[%s4726_s1 + $0x134] ss:$8 sps:$4 sm:$0xff]  }
  0x26   : > { %2141 = vmatprep.subr.bf16.mxu0 %v3268_v29  ;;  %v3341_v15 = vld [vmem:[%s4726_s1 + $0x420] ss:$8 sps:$4 sm:$0xff]   ;;  %v3386_v17 = vld [vmem:[%s3929_s14 + $0x74] ss:$56 sps:$4 sm:$0xff]   ;;  %v3344_v19 = vld [vmem:[%s4726_s1 + $0x130] ss:$8 sps:$4 sm:$0xff]  }
  0x27   : > { %v3349_v18 = vld [vmem:[%s4726_s1 + $0x434] ss:$8 sps:$4 sm:$0xff]   ;;  %v3347_v20 = vld [vmem:[%s4726_s1 + $0x430] ss:$8 sps:$4 sm:$0xff]   ;;  %v3391_v21 = vld [vmem:[%s3929_s14 + $0x8c] ss:$56 sps:$4 sm:$0xff]  }
  0x28   : > { %1923 = vmatpush1.bf16.msra.mxu1 %v3270_v30  ;;  %v3352_v22 = vld [vmem:[%s4726_s1 + $0x144] ss:$8 sps:$4 sm:$0xff]   ;;  %v3396_v24 = vld [vmem:[%s3929_s14 + $0x70] ss:$56 sps:$4 sm:$0xff]   ;;  %v3358_v28 = vld [vmem:[%s4726_s1 + $0x154] ss:$8 sps:$4 sm:$0xff]  }
  0x29   : > { %2142 = vmatpush1.bf16.msra.mxu0 %v3271_v31  ;;  %1924 = vmatprep.subr.bf16.mxu1 %v3272_v32  ;;  %v3355_v23 = vld [vmem:[%s4726_s1 + $0x444] ss:$8 sps:$4 sm:$0xff]   ;;  %v3397_v25 = vld [vmem:[%s3929_s14 + $0x88] ss:$56 sps:$4 sm:$0xff]   ;;  %v3361_v30 = vld [vmem:[%s4726_s1 + $0x454] ss:$8 sps:$4 sm:$0xff]  }
  0x2a   : > { %2143 = vmatprep.subr.bf16.mxu0 %v3274_v33  ;;  %v3350_v26 = vld [vmem:[%s4726_s1 + $0x140] ss:$8 sps:$4 sm:$0xff]   ;;  %v3404_v29 = vld [vmem:[%s3929_s14 + $0xe4] ss:$56 sps:$4 sm:$0xff]   ;;  %v3356_v31 = vld [vmem:[%s4726_s1 + $0x150] ss:$8 sps:$4 sm:$0xff]  }
  0x2b   : > { %v3353_v27 = vld [vmem:[%s4726_s1 + $0x440] ss:$8 sps:$4 sm:$0xff]   ;;  %v3359_v32 = vld [vmem:[%s4726_s1 + $0x450] ss:$8 sps:$4 sm:$0xff]   ;;  %v3409_v33 = vld [vmem:[%s3929_s14 + $0xfc] ss:$56 sps:$4 sm:$0xff]  }
  0x2c   : > { %1925 = vmatpush1.bf16.msra.mxu1 %v3276_v34  ;;  %v3364_v34 = vld [vmem:[%s4726_s1 + $0x164] ss:$8 sps:$4 sm:$0xff]   ;;  %v3432_v48 = vld [vmem:[%s3929_s14 + $0x150] ss:$56 sps:$4 sm:$0xff]   ;;  %s4571_s15 = scalar_lea.vmem [#allocation2], %s2700_s21   ;;  %s2516_s25 = ssub.s32 (%p3782_p4), 13, %s3877_s24 }
  0x2d   : > { %2144 = vmatpush1.bf16.msra.mxu0 %v3277_v35  ;;  %1926 = vmatprep.subr.bf16.mxu1 %v3278_v36  ;;  %v3367_v35 = vld [vmem:[%s4726_s1 + $0x464] ss:$8 sps:$4 sm:$0xff]   ;;  %v3414_v36 = vld [vmem:[%s3929_s14 + $0xe0] ss:$56 sps:$4 sm:$0xff]   ;;  %s3004_s26 = sshll.u32 (%p3782_p4), %s3770_s18, 7  ;;  %p2517_p8 = scmp.lt.s32.totalorder (%p3782_p4), %s2516_s25, 8 }
  0x2e   : > { %2145 = vmatprep.subr.bf16.mxu0 %v3280_v37  ;;  %v3415_v37 = vld [vmem:[%s3929_s14 + $0xf8] ss:$56 sps:$4 sm:$0xff]   ;;  %v3377_v51 = vld [vmem:[%s4726_s1 + $0x480] ss:$8 sps:$4 sm:$0xff]   ;;  %s4628_s29 = scalar_lea.vmem (%p3782_p4), %s4729_s4, %s3004_s26  }
  0x30   : > { %1927 = vmatpush1.bf16.msra.mxu1 %v3282_v38  ;;  %v3362_v38 = vld [vmem:[%s4726_s1 + $0x160] ss:$8 sps:$4 sm:$0xff]  }
  0x31   : > { %2146 = vmatpush1.bf16.msra.mxu0 %v3283_v39  ;;  %1928 = vmatprep.subr.bf16.mxu1 %v3284_v40  ;;  %v3365_v39 = vld [vmem:[%s4726_s1 + $0x460] ss:$8 sps:$4 sm:$0xff]   ;;  %v3370_v40 = vld [vmem:[%s4726_s1 + $0x174] ss:$8 sps:$4 sm:$0xff]  }
  0x32   : > { %2147 = vmatprep.subr.bf16.mxu0 %v3286_v41  ;;  %v3422_v41 = vld [vmem:[%s3929_s14 + $0x154] ss:$56 sps:$4 sm:$0xff]  }
  0x34   : > { %1929 = vmatpush1.bf16.msra.mxu1 %v3288_v42  ;;  %v3373_v42 = vld [vmem:[%s4726_s1 + $0x474] ss:$8 sps:$4 sm:$0xff]  }
  0x35   : > { %2148 = vmatpush1.bf16.msra.mxu0 %v3289_v43  ;;  %1930 = vmatprep.subr.bf16.mxu1 %v3290_v44  ;;  %v3368_v43 = vld [vmem:[%s4726_s1 + $0x170] ss:$8 sps:$4 sm:$0xff]  }
  0x36   : > { %2149 = vmatprep.subr.bf16.mxu0 %v3292_v45  ;;  %v3371_v44 = vld [vmem:[%s4726_s1 + $0x470] ss:$8 sps:$4 sm:$0xff]   ;;  %v3427_v45 = vld [vmem:[%s3929_s14 + $0x16c] ss:$56 sps:$4 sm:$0xff]  }
  0x38   : > { %1931 = vmatpush1.bf16.msra.mxu1 %v3294_v46  ;;  %v3376_v46 = vld [vmem:[%s4726_s1 + $0x184] ss:$8 sps:$4 sm:$0xff]  }
  0x39   : > { %2150 = vmatpush1.bf16.msra.mxu0 %v3295_v47  ;;  %1932 = vmatprep.subr.bf16.mxu1 %v3296_v49  ;;  %v3379_v47 = vld [vmem:[%s4726_s1 + $0x484] ss:$8 sps:$4 sm:$0xff]   ;;  %v3433_v49 = vld [vmem:[%s3929_s14 + $0x168] ss:$56 sps:$4 sm:$0xff]  }
  0x3a   : > { %2151 = vmatprep.subr.bf16.mxu0 %v3298_v50  ;;  %v3374_v50 = vld [vmem:[%s4726_s1 + $0x180] ss:$8 sps:$4 sm:$0xff]  }
  0x3c   : > { %1933 = vmatpush1.bf16.msra.mxu1 %v3300_v52  ;;  %v3382_v52 = vld [vmem:[%s4726_s1 + $0x194] ss:$8 sps:$4 sm:$0xff]  }
  0x3d   : > { %2152 = vmatpush1.bf16.msra.mxu0 %v3301_v53  ;;  %1934 = vmatprep.subr.bf16.mxu1 %v3302_v54  ;;  %v3385_v53 = vld [vmem:[%s4726_s1 + $0x494] ss:$8 sps:$4 sm:$0xff]   ;;  %v3442_v54 = vld [vmem:[%s3929_s14 + $0xc] ss:$56 sps:$4 sm:$0xff]  }
  0x3e   : > { %2153 = vmatprep.subr.bf16.mxu0 %v3304_v55  ;;  %v3380_v55 = vld [vmem:[%s4726_s1 + $0x190] ss:$8 sps:$4 sm:$0xff]  }
  0x40   : > { %1935 = vmatpush1.bf16.msra.mxu1 %v3306_v56  ;;  %v3383_v56 = vld [vmem:[%s4726_s1 + $0x490] ss:$8 sps:$4 sm:$0xff]  }
  0x41   : > { %2154 = vmatpush1.bf16.msra.mxu0 %v3307_v57  ;;  %1936 = vmatprep.subr.bf16.mxu1 %v3308_v58  ;;  %v3448_v57 = vld [vmem:[%s3929_s14 + $0x24] ss:$56 sps:$4 sm:$0xff]  }
  0x42   : > { %2155 = vmatprep.subr.bf16.mxu0 %v3310_v59  ;;  %v3390_v58 = vld [vmem:[%s4726_s1 + $0x1a4] ss:$8 sps:$4 sm:$0xff]  }
  0x43   : > { %v3395_v59 = vld [vmem:[%s4726_s1 + $0x4a4] ss:$8 sps:$4 sm:$0xff]  }
  0x44   : > { %1937 = vmatpush1.bf16.msra.mxu1 %v3312_v60  ;;  %v3388_v60 = vld [vmem:[%s4726_s1 + $0x1a0] ss:$8 sps:$4 sm:$0xff]  }
  0x45   : > { %2156 = vmatpush1.bf16.msra.mxu0 %v3313_v61  ;;  %1938 = vmatprep.subr.bf16.mxu1 %v3314_v62  ;;  %v3393_v61 = vld [vmem:[%s4726_s1 + $0x4a0] ss:$8 sps:$4 sm:$0xff]   ;;  %v3400_v62 = vld [vmem:[%s4726_s1 + $0x1b4] ss:$8 sps:$4 sm:$0xff]  }
  0x46   : > { %2157 = vmatprep.subr.bf16.mxu0 %v3316_v63  ;;  %v3403_v63 = vld [vmem:[%s4726_s1 + $0x4b4] ss:$8 sps:$4 sm:$0xff]  }
  0x48   : > { %1939 = vmatpush1.bf16.msra.mxu1 %v3318_v0  ;;  %v3398_v0 = vld [vmem:[%s4726_s1 + $0x1b0] ss:$8 sps:$4 sm:$0xff]  }
  0x49   : > { %2158 = vmatpush1.bf16.msra.mxu0 %v3319_v1  ;;  %1981 = vmatprep.subr.bf16.mxu1 %v3325_v2  ;;  %v3401_v1 = vld [vmem:[%s4726_s1 + $0x4b0] ss:$8 sps:$4 sm:$0xff]   ;;  %v3408_v2 = vld [vmem:[%s4726_s1 + $0x1c4] ss:$8 sps:$4 sm:$0xff]  }
  0x4a   : > { %2200 = vmatprep.subr.bf16.mxu0 %v3331_v3  ;;  %v3413_v3 = vld [vmem:[%s4726_s1 + $0x4c4] ss:$8 sps:$4 sm:$0xff]  }
  0x4b   : > { %1941 = vmatmul.mubr.bf16.vlgmr.msra.gmra.mrb[0].mxu1 %v3320_v4  ;;  %v3406_v4 = vld [vmem:[%s4726_s1 + $0x1c0] ss:$8 sps:$4 sm:$0xff]  }
  0x4c   : > { %2160 = vmatmul.mubr.bf16.vlgmr.msra.gmra.mrb[0].mxu0 %v3326_v6  ;;  %1982 = vmatpush1.bf16.msra.mxu1 %v3323_v5  ;;  %v3411_v5 = vld [vmem:[%s4726_s1 + $0x4c0] ss:$8 sps:$4 sm:$0xff]   ;;  %v3418_v6 = vld [vmem:[%s4726_s1 + $0x1d4] ss:$8 sps:$4 sm:$0xff]  }
  0x4d   : > { %2201 = vmatpush1.bf16.msra.mxu0 %v3329_v7  ;;  %1983 = vmatprep.subr.bf16.mxu1 %v3334_v8  ;;  %v3421_v7 = vld [vmem:[%s4726_s1 + $0x4d4] ss:$8 sps:$4 sm:$0xff]   ;;  %v3416_v8 = vld [vmem:[%s4726_s1 + $0x1d0] ss:$8 sps:$4 sm:$0xff]  }
  0x4e   : > { %2202 = vmatprep.subr.bf16.mxu0 %v3337_v9  ;;  %1950 = vmatprep.mubr.bf16.mxu1 %v3386_v17  ;;  %v3419_v9 = vld [vmem:[%s4726_s1 + $0x4d0] ss:$8 sps:$4 sm:$0xff]  }
  0x4f   : > { %2169 = vmatprep.mubr.bf16.mxu0 %v3391_v21  ;;  %v3437_v17 = vld [vmem:[%s4726_s1 + $0x4f0] ss:$8 sps:$4 sm:$0xff]   ;;  %v3443_v21 = vld [vmem:[%s4726_s1 + $0x200] ss:$8 sps:$4 sm:$0xff]  }
  0x50   : > { %1984 = vmatpush1.bf16.msra.mxu1 %v3332_v10  ;;  %v3426_v10 = vld [vmem:[%s4726_s1 + $0x1e4] ss:$8 sps:$4 sm:$0xff]  }
  0x51   : > { %2203 = vmatpush1.bf16.msra.mxu0 %v3335_v11  ;;  %1985 = vmatprep.subr.bf16.mxu1 %v3340_v12  ;;  %v3431_v11 = vld [vmem:[%s4726_s1 + $0x4e4] ss:$8 sps:$4 sm:$0xff]   ;;  %v3424_v12 = vld [vmem:[%s4726_s1 + $0x1e0] ss:$8 sps:$4 sm:$0xff]  }
  0x52   : > { %2204 = vmatprep.subr.bf16.mxu0 %v3343_v13  ;;  %v3429_v13 = vld [vmem:[%s4726_s1 + $0x4e0] ss:$8 sps:$4 sm:$0xff]  }
  0x53   : > { %1951 = vmatmul.mubr.bf16.gmra.mrb[4].mxu1 %v3396_v24  ;;  %v3454_v24 = vld [vmem:[%s4726_s1 + $0x214] ss:$8 sps:$4 sm:$0xff]  }
  0x54   : > { %1986 = vmatpush1.bf16.msra.mxu1 %v3338_v14  ;;  %2170 = vmatmul.mubr.bf16.gmra.mrb[4].mxu0 %v3397_v25  ;;  %v3436_v14 = vld [vmem:[%s4726_s1 + $0x1f4] ss:$8 sps:$4 sm:$0xff]  }
  0x55   : > { %2205 = vmatpush1.bf16.msra.mxu0 %v3341_v15  ;;  %1987 = vmatprep.subr.bf16.mxu1 %v3346_v16  ;;  %v3439_v15 = vld [vmem:[%s4726_s1 + $0x4f4] ss:$8 sps:$4 sm:$0xff]   ;;  %v3434_v16 = vld [vmem:[%s4726_s1 + $0x1f0] ss:$8 sps:$4 sm:$0xff]  }
  0x56   : > { %2206 = vmatprep.subr.bf16.mxu0 %v3349_v18  ;;  %1960 = vmatprep.mubr.bf16.mxu1 %v3404_v29  ;;  %v3445_v18 = vld [vmem:[%s4726_s1 + $0x204] ss:$8 sps:$4 sm:$0xff]   ;;  %v3457_v25 = vld [vmem:[%s4726_s1 + $0x514] ss:$8 sps:$4 sm:$0xff]   ;;  %v3455_v29 = vld [vmem:[%s4726_s1 + $0x510] ss:$8 sps:$4 sm:$0xff]  }
  0x57   : > { %2179 = vmatprep.mubr.bf16.mxu0 %v3409_v33  ;;  %v3510_v33 = vld [vmem:[%s3929_s14 + $0x78] ss:$56 sps:$4 sm:$0xff]  }
  0x58   : > { %1988 = vmatpush1.bf16.msra.mxu1 %v3344_v19  ;;  %v3451_v19 = vld [vmem:[%s4726_s1 + $0x504] ss:$8 sps:$4 sm:$0xff]  }
  0x59   : > { %2207 = vmatpush1.bf16.msra.mxu0 %v3347_v20  ;;  %1989 = vmatprep.subr.bf16.mxu1 %v3352_v22  ;;  %v3440_v20 = vld [vmem:[%s3929_s14 + $0x8] ss:$56 sps:$4 sm:$0xff]  }
  0x5a   : > { %2208 = vmatprep.subr.bf16.mxu0 %v3355_v23  ;;  %v3446_v22 = vld [vmem:[%s3929_s14 + $0x20] ss:$56 sps:$4 sm:$0xff]  }
  0x5b   : > { %1961 = vmatmul.mubr.bf16.gmra.mrb[8].mxu1 %v3414_v36  ;;  %v3449_v23 = vld [vmem:[%s4726_s1 + $0x500] ss:$8 sps:$4 sm:$0xff]   ;;  %v3466_v36 = vld [vmem:[%s4726_s1 + $0x234] ss:$8 sps:$4 sm:$0xff]  }
  0x5c   : > { %1990 = vmatpush1.bf16.msra.mxu1 %v3350_v26  ;;  %2180 = vmatmul.mubr.bf16.gmra.mrb[8].mxu0 %v3415_v37  ;;  %v3506_v26 = vld [vmem:[%s3929_s14 + $0x7c] ss:$56 sps:$4 sm:$0xff]  }
  0x5d   : > { %2209 = vmatpush1.bf16.msra.mxu0 %v3353_v27  ;;  %1991 = vmatprep.subr.bf16.mxu1 %v3358_v28  ;;  %v3508_v27 = vld [vmem:[%s3929_s14 + $0x94] ss:$56 sps:$4 sm:$0xff]   ;;  %v3452_v28 = vld [vmem:[%s4726_s1 + $0x210] ss:$8 sps:$4 sm:$0xff]  }
  0x5e   : > { %2210 = vmatprep.subr.bf16.mxu0 %v3361_v30  ;;  %1970 = vmatprep.mubr.bf16.mxu1 %v3422_v41  ;;  %v3460_v30 = vld [vmem:[%s4726_s1 + $0x224] ss:$8 sps:$4 sm:$0xff]   ;;  %v3469_v37 = vld [vmem:[%s4726_s1 + $0x534] ss:$8 sps:$4 sm:$0xff]   ;;  %v3467_v41 = vld [vmem:[%s4726_s1 + $0x530] ss:$8 sps:$4 sm:$0xff]  }
  0x5f   : > { %2189 = vmatprep.mubr.bf16.mxu0 %v3427_v45  ;;  %v3528_v45 = vld [vmem:[%s3929_s14 + $0xe8] ss:$56 sps:$4 sm:$0xff]  }
  0x60   : > { %1992 = vmatpush1.bf16.msra.mxu1 %v3356_v31  ;;  %v3463_v31 = vld [vmem:[%s4726_s1 + $0x524] ss:$8 sps:$4 sm:$0xff]  }
  0x61   : > { %2211 = vmatpush1.bf16.msra.mxu0 %v3359_v32  ;;  %1993 = vmatprep.subr.bf16.mxu1 %v3364_v34  ;;  %v3458_v32 = vld [vmem:[%s4726_s1 + $0x220] ss:$8 sps:$4 sm:$0xff]  }
  0x62   : > { %2212 = vmatprep.subr.bf16.mxu0 %v3367_v35  ;;  %v3514_v34 = vld [vmem:[%s3929_s14 + $0x90] ss:$56 sps:$4 sm:$0xff]  }
  0x63   : > { %1971 = vmatmul.mubr.bf16.gmra.mrb[12].mxu1 %v3432_v48  ;;  %v3461_v35 = vld [vmem:[%s4726_s1 + $0x520] ss:$8 sps:$4 sm:$0xff]   ;;  %v3478_v48 = vld [vmem:[%s4726_s1 + $0x254] ss:$8 sps:$4 sm:$0xff]  }
  0x64   : > { %1994 = vmatpush1.bf16.msra.mxu1 %v3362_v38  ;;  %2190 = vmatmul.mubr.bf16.gmra.mrb[12].mxu0 %v3433_v49  ;;  %v3524_v38 = vld [vmem:[%s3929_s14 + $0xec] ss:$56 sps:$4 sm:$0xff]   ;;  %v3481_v49 = vld [vmem:[%s4726_s1 + $0x554] ss:$8 sps:$4 sm:$0xff]  }
  0x65   : > { %2213 = vmatpush1.bf16.msra.mxu0 %v3365_v39  ;;  %1995 = vmatprep.subr.bf16.mxu1 %v3370_v40  ;;  %v3526_v39 = vld [vmem:[%s3929_s14 + $0x104] ss:$56 sps:$4 sm:$0xff]   ;;  %v3464_v40 = vld [vmem:[%s4726_s1 + $0x230] ss:$8 sps:$4 sm:$0xff]  }
  0x66   : > { %2214 = vmatprep.subr.bf16.mxu0 %v3373_v42  ;;  %2013 = vmatprep.mubr.bf16.mxu1 %v3442_v54  ;;  %v3472_v42 = vld [vmem:[%s4726_s1 + $0x244] ss:$8 sps:$4 sm:$0xff]  }
  0x67   : > { %2232 = vmatprep.mubr.bf16.mxu0 %v3448_v57  ;;  %v3484_v54 = vld [vmem:[%s4726_s1 + $0x264] ss:$8 sps:$4 sm:$0xff]   ;;  %v3485_v57 = vld [vmem:[%s4726_s1 + $0x560] ss:$8 sps:$4 sm:$0xff]  }
  0x68   : > { %1996 = vmatpush1.bf16.msra.mxu1 %v3368_v43  ;;  %v3475_v43 = vld [vmem:[%s4726_s1 + $0x544] ss:$8 sps:$4 sm:$0xff]  }
  0x69   : > { %2215 = vmatpush1.bf16.msra.mxu0 %v3371_v44  ;;  %1997 = vmatprep.subr.bf16.mxu1 %v3376_v46  ;;  %v3470_v44 = vld [vmem:[%s4726_s1 + $0x240] ss:$8 sps:$4 sm:$0xff]  }
  0x6a   : > { %2216 = vmatprep.subr.bf16.mxu0 %v3379_v47  ;;  %v3532_v46 = vld [vmem:[%s3929_s14 + $0x100] ss:$56 sps:$4 sm:$0xff]  }
  0x6b   : > { %v3473_v47 = vld [vmem:[%s4726_s1 + $0x540] ss:$8 sps:$4 sm:$0xff]  }
  0x6c   : > { %1998 = vmatpush1.bf16.msra.mxu1 %v3374_v50  ;;  %v3542_v50 = vld [vmem:[%s3929_s14 + $0x15c] ss:$56 sps:$4 sm:$0xff]  }
  0x6d   : > { %2217 = vmatpush1.bf16.msra.mxu0 %v3377_v51  ;;  %1999 = vmatprep.subr.bf16.mxu1 %v3382_v52  ;;  %v3544_v51 = vld [vmem:[%s3929_s14 + $0x174] ss:$56 sps:$4 sm:$0xff]   ;;  %v3476_v52 = vld [vmem:[%s4726_s1 + $0x250] ss:$8 sps:$4 sm:$0xff]  }
  0x6e   : > { %2218 = vmatprep.subr.bf16.mxu0 %v3385_v53  ;;  %v3479_v53 = vld [vmem:[%s4726_s1 + $0x550] ss:$8 sps:$4 sm:$0xff]  }
  0x70   : > { %2000 = vmatpush1.bf16.msra.mxu1 %v3380_v55  ;;  %v3487_v55 = vld [vmem:[%s4726_s1 + $0x564] ss:$8 sps:$4 sm:$0xff]  }
  0x71   : > { %2219 = vmatpush1.bf16.msra.mxu0 %v3383_v56  ;;  %2001 = vmatprep.subr.bf16.mxu1 %v3390_v58  ;;  %v3482_v56 = vld [vmem:[%s4726_s1 + $0x260] ss:$8 sps:$4 sm:$0xff]   ;;  %v3546_v58 = vld [vmem:[%s3929_s14 + $0x158] ss:$56 sps:$4 sm:$0xff]  }
  0x72   : > { %2220 = vmatprep.subr.bf16.mxu0 %v3395_v59  ;;  %v3550_v59 = vld [vmem:[%s3929_s14 + $0x170] ss:$56 sps:$4 sm:$0xff]  }
  0x74   : > { %2002 = vmatpush1.bf16.msra.mxu1 %v3388_v60  ;;  %v3490_v60 = vld [vmem:[%s4726_s1 + $0x274] ss:$8 sps:$4 sm:$0xff]  }
  0x75   : > { %2221 = vmatpush1.bf16.msra.mxu0 %v3393_v61  ;;  %2003 = vmatprep.subr.bf16.mxu1 %v3400_v62  ;;  %v3493_v61 = vld [vmem:[%s4726_s1 + $0x574] ss:$8 sps:$4 sm:$0xff]  }
  0x76   : > { %2222 = vmatprep.subr.bf16.mxu0 %v3403_v63  ;;  %v3562_v62 = vld [vmem:[%s3929_s14 + $0x14] ss:$56 sps:$4 sm:$0xff]  }
  0x77   : > { %v3565_v63 = vld [vmem:[%s3929_s14 + $0x2c] ss:$56 sps:$4 sm:$0xff]  }
  0x78   : > { %2004 = vmatpush1.bf16.msra.mxu1 %v3398_v0  ;;  %v3488_v0 = vld [vmem:[%s4726_s1 + $0x270] ss:$8 sps:$4 sm:$0xff]  }
  0x79   : > { %2223 = vmatpush1.bf16.msra.mxu0 %v3401_v1  ;;  %2005 = vmatprep.subr.bf16.mxu1 %v3408_v2  ;;  %v3491_v1 = vld [vmem:[%s4726_s1 + $0x570] ss:$8 sps:$4 sm:$0xff]   ;;  %v3496_v2 = vld [vmem:[%s4726_s1 + $0x284] ss:$8 sps:$4 sm:$0xff]  }
  0x7a   : > { %2224 = vmatprep.subr.bf16.mxu0 %v3413_v3  ;;  %v3499_v3 = vld [vmem:[%s4726_s1 + $0x584] ss:$8 sps:$4 sm:$0xff]  }
  0x7c   : > { %2006 = vmatpush1.bf16.msra.mxu1 %v3406_v4  ;;  %v3494_v4 = vld [vmem:[%s4726_s1 + $0x280] ss:$8 sps:$4 sm:$0xff]  }
  0x7d   : > { %2225 = vmatpush1.bf16.msra.mxu0 %v3411_v5  ;;  %2007 = vmatprep.subr.bf16.mxu1 %v3418_v6  ;;  %v3497_v5 = vld [vmem:[%s4726_s1 + $0x580] ss:$8 sps:$4 sm:$0xff]   ;;  %v3502_v6 = vld [vmem:[%s4726_s1 + $0x294] ss:$8 sps:$4 sm:$0xff]  }
  0x7e   : > { %2226 = vmatprep.subr.bf16.mxu0 %v3421_v7  ;;  %v3505_v7 = vld [vmem:[%s4726_s1 + $0x594] ss:$8 sps:$4 sm:$0xff]  }
  0x80   : > { %2008 = vmatpush1.bf16.msra.mxu1 %v3416_v8  ;;  %v3500_v8 = vld [vmem:[%s4726_s1 + $0x290] ss:$8 sps:$4 sm:$0xff]  }
  0x81   : > { %2227 = vmatpush1.bf16.msra.mxu0 %v3419_v9  ;;  %2009 = vmatprep.subr.bf16.mxu1 %v3426_v10  ;;  %v3503_v9 = vld [vmem:[%s4726_s1 + $0x590] ss:$8 sps:$4 sm:$0xff]   ;;  %v3513_v10 = vld [vmem:[%s4726_s1 + $0x2a4] ss:$8 sps:$4 sm:$0xff]  }
  0x82   : > { %2228 = vmatprep.subr.bf16.mxu0 %v3431_v11  ;;  %v3517_v11 = vld [vmem:[%s4726_s1 + $0x5a4] ss:$8 sps:$4 sm:$0xff]  }
  0x84   : > { %2010 = vmatpush1.bf16.msra.mxu1 %v3424_v12  ;;  %v3511_v12 = vld [vmem:[%s4726_s1 + $0x2a0] ss:$8 sps:$4 sm:$0xff]  }
  0x85   : > { %2229 = vmatpush1.bf16.msra.mxu0 %v3429_v13  ;;  %2011 = vmatprep.subr.bf16.mxu1 %v3436_v14  ;;  %v3515_v13 = vld [vmem:[%s4726_s1 + $0x5a0] ss:$8 sps:$4 sm:$0xff]   ;;  %v3520_v14 = vld [vmem:[%s4726_s1 + $0x2b4] ss:$8 sps:$4 sm:$0xff]  }
  0x86   : > { %2230 = vmatprep.subr.bf16.mxu0 %v3439_v15  ;;  %v3523_v15 = vld [vmem:[%s4726_s1 + $0x5b4] ss:$8 sps:$4 sm:$0xff]  }
  0x88   : > { %2012 = vmatpush1.bf16.msra.mxu1 %v3434_v16  ;;  %v3518_v16 = vld [vmem:[%s4726_s1 + $0x2b0] ss:$8 sps:$4 sm:$0xff]  }
  0x89   : > { %2231 = vmatpush1.bf16.msra.mxu0 %v3437_v17  ;;  %2054 = vmatprep.subr.bf16.mxu1 %v3445_v18  ;;  %v3521_v17 = vld [vmem:[%s4726_s1 + $0x5b0] ss:$8 sps:$4 sm:$0xff]   ;;  %v3531_v18 = vld [vmem:[%s4726_s1 + $0x2c4] ss:$8 sps:$4 sm:$0xff]  }
  0x8a   : > { %2273 = vmatprep.subr.bf16.mxu0 %v3451_v19  ;;  %v3535_v19 = vld [vmem:[%s4726_s1 + $0x5c4] ss:$8 sps:$4 sm:$0xff]  }
  0x8b   : > { %2014 = vmatmul.mubr.bf16.vlgmr.msra.gmra.mrb[0].mxu1 %v3440_v20  ;;  %v3529_v20 = vld [vmem:[%s4726_s1 + $0x2c0] ss:$8 sps:$4 sm:$0xff]  }
  0x8c   : > { %2233 = vmatmul.mubr.bf16.vlgmr.msra.gmra.mrb[0].mxu0 %v3446_v22  ;;  %2055 = vmatpush1.bf16.msra.mxu1 %v3443_v21  ;;  %v3533_v21 = vld [vmem:[%s4726_s1 + $0x5c0] ss:$8 sps:$4 sm:$0xff]   ;;  %v3538_v22 = vld [vmem:[%s4726_s1 + $0x2d4] ss:$8 sps:$4 sm:$0xff]  }
  0x8d   : > { %2274 = vmatpush1.bf16.msra.mxu0 %v3449_v23  ;;  %2056 = vmatprep.subr.bf16.mxu1 %v3454_v24  ;;  %v3541_v23 = vld [vmem:[%s4726_s1 + $0x5d4] ss:$8 sps:$4 sm:$0xff]   ;;  %v3536_v24 = vld [vmem:[%s4726_s1 + $0x2d0] ss:$8 sps:$4 sm:$0xff]  }
  0x8e   : > { %2275 = vmatprep.subr.bf16.mxu0 %v3457_v25  ;;  %2023 = vmatprep.mubr.bf16.mxu1 %v3506_v26  ;;  %v3539_v25 = vld [vmem:[%s4726_s1 + $0x5d0] ss:$8 sps:$4 sm:$0xff]   ;;  %v3549_v26 = vld [vmem:[%s4726_s1 + $0x2e4] ss:$8 sps:$4 sm:$0xff]  }
  0x8f   : > { %2242 = vmatprep.mubr.bf16.mxu0 %v3508_v27  ;;  %v3553_v27 = vld [vmem:[%s4726_s1 + $0x5e4] ss:$8 sps:$4 sm:$0xff]  }
  0x90   : > { %2057 = vmatpush1.bf16.msra.mxu1 %v3452_v28  ;;  %v3547_v28 = vld [vmem:[%s4726_s1 + $0x2e0] ss:$8 sps:$4 sm:$0xff]  }
  0x91   : > { %2276 = vmatpush1.bf16.msra.mxu0 %v3455_v29  ;;  %2058 = vmatprep.subr.bf16.mxu1 %v3460_v30  ;;  %v3551_v29 = vld [vmem:[%s4726_s1 + $0x5e0] ss:$8 sps:$4 sm:$0xff]   ;;  %v3556_v30 = vld [vmem:[%s4726_s1 + $0x2f4] ss:$8 sps:$4 sm:$0xff]  }
  0x92   : > { %2277 = vmatprep.subr.bf16.mxu0 %v3463_v31  ;;  %v3559_v31 = vld [vmem:[%s4726_s1 + $0x5f4] ss:$8 sps:$4 sm:$0xff]  }
  0x93   : > { %2024 = vmatmul.mubr.bf16.gmra.mrb[4].mxu1 %v3510_v33  ;;  %v3557_v33 = vld [vmem:[%s4726_s1 + $0x5f0] ss:$8 sps:$4 sm:$0xff]  }
  0x94   : > { %2243 = vmatmul.mubr.bf16.gmra.mrb[4].mxu0 %v3514_v34  ;;  %2059 = vmatpush1.bf16.msra.mxu1 %v3458_v32  ;;  %v3554_v32 = vld [vmem:[%s4726_s1 + $0x2f0] ss:$8 sps:$4 sm:$0xff]   ;;  %v3568_v34 = vld [vmem:[%s4726_s1 + $0x604] ss:$8 sps:$4 sm:$0xff]  }
  0x95   : > { %2278 = vmatpush1.bf16.msra.mxu0 %v3461_v35  ;;  %2060 = vmatprep.subr.bf16.mxu1 %v3466_v36  ;;  %v3560_v35 = vld [vmem:[%s3929_s14 + $0x10] ss:$56 sps:$4 sm:$0xff]  }
  0x96   : > { %2279 = vmatprep.subr.bf16.mxu0 %v3469_v37  ;;  %2033 = vmatprep.mubr.bf16.mxu1 %v3524_v38  ;;  %v3563_v36 = vld [vmem:[%s3929_s14 + $0x28] ss:$56 sps:$4 sm:$0xff]   ;;  %v3571_v38 = vld [vmem:[%s4726_s1 + $0x614] ss:$8 sps:$4 sm:$0xff]  }
  0x97   : > { %2252 = vmatprep.mubr.bf16.mxu0 %v3526_v39  ;;  %v3566_v37 = vld [vmem:[%s4726_s1 + $0x600] ss:$8 sps:$4 sm:$0xff]   ;;  %v3572_v39 = vld [vmem:[%s3929_s14 + $0x84] ss:$56 sps:$4 sm:$0xff]  }
  0x98   : > { %2061 = vmatpush1.bf16.msra.mxu1 %v3464_v40  ;;  %v3574_v40 = vld [vmem:[%s3929_s14 + $0x9c] ss:$56 sps:$4 sm:$0xff]  }
  0x99   : > { %2280 = vmatpush1.bf16.msra.mxu0 %v3467_v41  ;;  %2062 = vmatprep.subr.bf16.mxu1 %v3472_v42  ;;  %v3569_v41 = vld [vmem:[%s4726_s1 + $0x610] ss:$8 sps:$4 sm:$0xff]   ;;  %v3580_v42 = vld [vmem:[%s4726_s1 + $0x624] ss:$8 sps:$4 sm:$0xff]  }
  0x9a   : > { %2281 = vmatprep.subr.bf16.mxu0 %v3475_v43  ;;  %v3576_v43 = vld [vmem:[%s3929_s14 + $0x80] ss:$56 sps:$4 sm:$0xff]  }
  0x9b   : > { %2034 = vmatmul.mubr.bf16.gmra.mrb[8].mxu1 %v3528_v45  ;;  %v3578_v45 = vld [vmem:[%s4726_s1 + $0x620] ss:$8 sps:$4 sm:$0xff]  }
  0x9c   : > { %2253 = vmatmul.mubr.bf16.gmra.mrb[8].mxu0 %v3532_v46  ;;  %2063 = vmatpush1.bf16.msra.mxu1 %v3470_v44  ;;  %v3577_v44 = vld [vmem:[%s3929_s14 + $0x98] ss:$56 sps:$4 sm:$0xff]   ;;  %v3583_v46 = vld [vmem:[%s4726_s1 + $0x634] ss:$8 sps:$4 sm:$0xff]  }
  0x9d   : > { %2282 = vmatpush1.bf16.msra.mxu0 %v3473_v47  ;;  %2064 = vmatprep.subr.bf16.mxu1 %v3478_v48  ;;  %v3584_v47 = vld [vmem:[%s3929_s14 + $0xf4] ss:$56 sps:$4 sm:$0xff]  }
  0x9e   : > { %2283 = vmatprep.subr.bf16.mxu0 %v3481_v49  ;;  %2043 = vmatprep.mubr.bf16.mxu1 %v3542_v50  ;;  %v3586_v48 = vld [vmem:[%s3929_s14 + $0x10c] ss:$56 sps:$4 sm:$0xff]   ;;  %v3581_v49 = vld [vmem:[%s4726_s1 + $0x630] ss:$8 sps:$4 sm:$0xff]  }
  0x9f   : > { %2262 = vmatprep.mubr.bf16.mxu0 %v3544_v51  ;;  %v3592_v50 = vld [vmem:[%s4726_s1 + $0x644] ss:$8 sps:$4 sm:$0xff]   ;;  %v3588_v51 = vld [vmem:[%s3929_s14 + $0xf0] ss:$56 sps:$4 sm:$0xff]  }
  0xa0   : > { %2065 = vmatpush1.bf16.msra.mxu1 %v3476_v52  ;;  %v3589_v52 = vld [vmem:[%s3929_s14 + $0x108] ss:$56 sps:$4 sm:$0xff]  }
  0xa1   : > { %2284 = vmatpush1.bf16.msra.mxu0 %v3479_v53  ;;  %2066 = vmatprep.subr.bf16.mxu1 %v3484_v54  ;;  %v3590_v53 = vld [vmem:[%s4726_s1 + $0x640] ss:$8 sps:$4 sm:$0xff]   ;;  %v3595_v54 = vld [vmem:[%s4726_s1 + $0x654] ss:$8 sps:$4 sm:$0xff]  }
  0xa2   : > { %2285 = vmatprep.subr.bf16.mxu0 %v3487_v55  ;;  %v3596_v55 = vld [vmem:[%s3929_s14 + $0x164] ss:$56 sps:$4 sm:$0xff]  }
  0xa3   : > { %2044 = vmatmul.mubr.bf16.gmra.mrb[12].mxu1 %v3546_v58  ;;  %v3604_v58 = vld [vmem:[%s4726_s1 + $0x664] ss:$8 sps:$4 sm:$0xff]  }
  0xa4   : > { %2263 = vmatmul.mubr.bf16.gmra.mrb[12].mxu0 %v3550_v59  ;;  %2067 = vmatpush1.bf16.msra.mxu1 %v3482_v56  ;;  %v3598_v56 = vld [vmem:[%s3929_s14 + $0x17c] ss:$56 sps:$4 sm:$0xff]   ;;  %v3600_v59 = vld [vmem:[%s3929_s14 + $0x160] ss:$56 sps:$4 sm:$0xff]  }
  0xa5   : > { %2286 = vmatpush1.bf16.msra.mxu0 %v3485_v57  ;;  %2068 = vmatprep.subr.bf16.mxu1 %v3490_v60  ;;  %v3593_v57 = vld [vmem:[%s4726_s1 + $0x650] ss:$8 sps:$4 sm:$0xff]  }
  0xa6   : > { %2287 = vmatprep.subr.bf16.mxu0 %v3493_v61  ;;  %2086 = vmatprep.mubr.bf16.mxu1 %v3562_v62  ;;  %v3601_v60 = vld [vmem:[%s3929_s14 + $0x178] ss:$56 sps:$4 sm:$0xff]   ;;  %v3602_v61 = vld [vmem:[%s4726_s1 + $0x660] ss:$8 sps:$4 sm:$0xff]   ;;  %v3607_v62 = vld [vmem:[%s4726_s1 + $0x674] ss:$8 sps:$4 sm:$0xff]  }
  0xa7   : > { %2305 = vmatprep.mubr.bf16.mxu0 %v3565_v63  ;;  %v3634_v63 = vld [vmem:[%s3929_s14 + $0x34] ss:$56 sps:$4 sm:$0xff]  }
  0xa8   : > { %2069 = vmatpush1.bf16.msra.mxu1 %v3488_v0  ;;  %v3637_v0 = vld [vmem:[%s3929_s14 + $0x114] ss:$56 sps:$4 sm:$0xff]  }
  0xa9   : > { %2288 = vmatpush1.bf16.msra.mxu0 %v3491_v1  ;;  %2070 = vmatprep.subr.bf16.mxu1 %v3496_v2  ;;  %v3605_v1 = vld [vmem:[%s4726_s1 + $0x670] ss:$8 sps:$4 sm:$0xff]   ;;  %v3610_v2 = vld [vmem:[%s4726_s1 + $0x684] ss:$8 sps:$4 sm:$0xff]  }
  0xaa   : > { %2289 = vmatprep.subr.bf16.mxu0 %v3499_v3  ;;  %v3608_v3 = vld [vmem:[%s4726_s1 + $0x680] ss:$8 sps:$4 sm:$0xff]  }
  0xac   : > { %2071 = vmatpush1.bf16.msra.mxu1 %v3494_v4  ;;  %v3613_v4 = vld [vmem:[%s4726_s1 + $0x694] ss:$8 sps:$4 sm:$0xff]  }
  0xad   : > { %2290 = vmatpush1.bf16.msra.mxu0 %v3497_v5  ;;  %2072 = vmatprep.subr.bf16.mxu1 %v3502_v6  ;;  %v3611_v5 = vld [vmem:[%s4726_s1 + $0x690] ss:$8 sps:$4 sm:$0xff]   ;;  %v3616_v6 = vld [vmem:[%s4726_s1 + $0x6a4] ss:$8 sps:$4 sm:$0xff]  }
  0xae   : > { %2291 = vmatprep.subr.bf16.mxu0 %v3505_v7  ;;  %v3614_v7 = vld [vmem:[%s4726_s1 + $0x6a0] ss:$8 sps:$4 sm:$0xff]  }
  0xb0   : > { %2073 = vmatpush1.bf16.msra.mxu1 %v3500_v8  ;;  %v3619_v8 = vld [vmem:[%s4726_s1 + $0x6b4] ss:$8 sps:$4 sm:$0xff]  }
  0xb1   : > { %2292 = vmatpush1.bf16.msra.mxu0 %v3503_v9  ;;  %2074 = vmatprep.subr.bf16.mxu1 %v3513_v10  ;;  %v3617_v9 = vld [vmem:[%s4726_s1 + $0x6b0] ss:$8 sps:$4 sm:$0xff]   ;;  %v3622_v10 = vld [vmem:[%s4726_s1 + $0x6c4] ss:$8 sps:$4 sm:$0xff]  }
  0xb2   : > { %2293 = vmatprep.subr.bf16.mxu0 %v3517_v11  ;;  %v3620_v11 = vld [vmem:[%s4726_s1 + $0x6c0] ss:$8 sps:$4 sm:$0xff]  }
  0xb4   : > { %2075 = vmatpush1.bf16.msra.mxu1 %v3511_v12  ;;  %v3625_v12 = vld [vmem:[%s4726_s1 + $0x6d4] ss:$8 sps:$4 sm:$0xff]  }
  0xb5   : > { %2294 = vmatpush1.bf16.msra.mxu0 %v3515_v13  ;;  %2076 = vmatprep.subr.bf16.mxu1 %v3520_v14  ;;  %v3623_v13 = vld [vmem:[%s4726_s1 + $0x6d0] ss:$8 sps:$4 sm:$0xff]   ;;  %v3628_v14 = vld [vmem:[%s4726_s1 + $0x6e4] ss:$8 sps:$4 sm:$0xff]  }
  0xb6   : > { %2295 = vmatprep.subr.bf16.mxu0 %v3523_v15  ;;  %v3626_v15 = vld [vmem:[%s4726_s1 + $0x6e0] ss:$8 sps:$4 sm:$0xff]  }
  0xb8   : > { %2077 = vmatpush1.bf16.msra.mxu1 %v3518_v16  ;;  %v3631_v16 = vld [vmem:[%s4726_s1 + $0x6f4] ss:$8 sps:$4 sm:$0xff]  }
  0xb9   : > { %2296 = vmatpush1.bf16.msra.mxu0 %v3521_v17  ;;  %2078 = vmatprep.subr.bf16.mxu1 %v3531_v18  ;;  %v3629_v17 = vld [vmem:[%s4726_s1 + $0x6f0] ss:$8 sps:$4 sm:$0xff]  }
  0xba   : > { %2297 = vmatprep.subr.bf16.mxu0 %v3535_v19  ;;  %v3632_v18 = vld [vmem:[%s3929_s14 + $0x30] ss:$56 sps:$4 sm:$0xff]  }
  0xbb   : > { %v3635_v19 = vld [vmem:[%s3929_s14 + $0x110] ss:$56 sps:$4 sm:$0xff]  }
  0xbc   : > { %2079 = vmatpush1.bf16.msra.mxu1 %v3529_v20  ;;  %v3638_v20 = vld [vmem:[%s3929_s14 + $0xa4] ss:$56 sps:$4 sm:$0xff]  }
  0xbd   : > { %2298 = vmatpush1.bf16.msra.mxu0 %v3533_v21  ;;  %2080 = vmatprep.subr.bf16.mxu1 %v3538_v22  ;;  %v3640_v21 = vld [vmem:[%s3929_s14 + $0x184] ss:$56 sps:$4 sm:$0xff]   ;;  %v3642_v22 = vld [vmem:[%s3929_s14 + $0xa0] ss:$56 sps:$4 sm:$0xff]  }
  0xbe   : > { %2299 = vmatprep.subr.bf16.mxu0 %v3541_v23  ;;  %v3643_v23 = vld [vmem:[%s3929_s14 + $0x180] ss:$56 sps:$4 sm:$0xff]  }
  0xc0   : > { %2081 = vmatpush1.bf16.msra.mxu1 %v3536_v24 }
  0xc1   : > { %2300 = vmatpush1.bf16.msra.mxu0 %v3539_v25  ;;  %2082 = vmatprep.subr.bf16.mxu1 %v3549_v26 }
  0xc2   : > { %2301 = vmatprep.subr.bf16.mxu0 %v3553_v27 }
  0xc4   : > { %2083 = vmatpush1.bf16.msra.mxu1 %v3547_v28 }
  0xc5   : > { %2302 = vmatpush1.bf16.msra.mxu0 %v3551_v29  ;;  %2084 = vmatprep.subr.bf16.mxu1 %v3556_v30 }
  0xc6   : > { %2303 = vmatprep.subr.bf16.mxu0 %v3559_v31 }
  0xc8   : > { %2085 = vmatpush1.bf16.msra.mxu1 %v3554_v32 }
  0xc9   : > { %2304 = vmatpush1.bf16.msra.mxu0 %v3557_v33  ;;  %3007 = vmatprep.subr.bf16.mxu1 %v3568_v34 }
  0xca   : > { %2346 = vmatprep.subr.bf16.mxu0 %v3568_v34 }
  0xcb   : > { %2087 = vmatmul.mubr.bf16.vlgmr.msra.gmra.mrb[0].mxu1 %v3560_v35 }
  0xcc   : > { %2306 = vmatmul.mubr.bf16.vlgmr.msra.gmra.mrb[0].mxu0 %v3563_v36  ;;  %3023 = vmatpush1.bf16.msra.mxu1 %v3566_v37 }
  0xcd   : > { %2347 = vmatpush1.bf16.msra.mxu0 %v3566_v37  ;;  %3008 = vmatprep.subr.bf16.mxu1 %v3571_v38 }
  0xce   : > { %2348 = vmatprep.subr.bf16.mxu0 %v3571_v38  ;;  %2096 = vmatprep.mubr.bf16.mxu1 %v3572_v39 }
  0xcf   : > { %2315 = vmatprep.mubr.bf16.mxu0 %v3574_v40 }
  0xd0   : > { %3024 = vmatpush1.bf16.msra.mxu1 %v3569_v41 }
  0xd1   : > { %2349 = vmatpush1.bf16.msra.mxu0 %v3569_v41  ;;  %3009 = vmatprep.subr.bf16.mxu1 %v3580_v42 }
  0xd2   : > { %2350 = vmatprep.subr.bf16.mxu0 %v3580_v42 }
  0xd3   : > { %2097 = vmatmul.mubr.bf16.gmra.mrb[4].mxu1 %v3576_v43 }
  0xd4   : > { %2316 = vmatmul.mubr.bf16.gmra.mrb[4].mxu0 %v3577_v44  ;;  %3025 = vmatpush1.bf16.msra.mxu1 %v3578_v45 }
  0xd5   : > { %2351 = vmatpush1.bf16.msra.mxu0 %v3578_v45  ;;  %3010 = vmatprep.subr.bf16.mxu1 %v3583_v46 }
  0xd6   : > { %2352 = vmatprep.subr.bf16.mxu0 %v3583_v46  ;;  %2106 = vmatprep.mubr.bf16.mxu1 %v3584_v47 }
  0xd7   : > { %2325 = vmatprep.mubr.bf16.mxu0 %v3586_v48 }
  0xd8   : > { %3026 = vmatpush1.bf16.msra.mxu1 %v3581_v49 }
  0xd9   : > { %2353 = vmatpush1.bf16.msra.mxu0 %v3581_v49  ;;  %3011 = vmatprep.subr.bf16.mxu1 %v3592_v50 }
  0xda   : > { %2354 = vmatprep.subr.bf16.mxu0 %v3592_v50 }
  0xdb   : > { %2107 = vmatmul.mubr.bf16.gmra.mrb[8].mxu1 %v3588_v51 }
  0xdc   : > { %2326 = vmatmul.mubr.bf16.gmra.mrb[8].mxu0 %v3589_v52  ;;  %3027 = vmatpush1.bf16.msra.mxu1 %v3590_v53 }
  0xdd   : > { %2355 = vmatpush1.bf16.msra.mxu0 %v3590_v53  ;;  %3012 = vmatprep.subr.bf16.mxu1 %v3595_v54 }
  0xde   : > { %2356 = vmatprep.subr.bf16.mxu0 %v3595_v54  ;;  %2116 = vmatprep.mubr.bf16.mxu1 %v3596_v55 }
  0xdf   : > { %2335 = vmatprep.mubr.bf16.mxu0 %v3598_v56  ;;  %v2421_v56 = vlaneseq }
  0xe0   : > { %3028 = vmatpush1.bf16.msra.mxu1 %v3593_v57 }
  0xe1   : > { %2357 = vmatpush1.bf16.msra.mxu0 %v3593_v57  ;;  %3013 = vmatprep.subr.bf16.mxu1 %v3604_v58  ;;  %v2422_v57 = vshrl.u32 %v2421_v56, 7 }
  0xe2   : > { %2358 = vmatprep.subr.bf16.mxu0 %v3604_v58 }
  0xe3   : > { %2117 = vmatmul.mubr.bf16.gmra.mrb[12].mxu1 %v3600_v59  ;;  %v2423_v58 = vsub.s32 0, %v2422_v57  ;;  %v2419_v59 = vld [vmem:[%s4727_s2] sm:$0x3] }
  0xe4   : > { %2336 = vmatmul.mubr.bf16.gmra.mrb[12].mxu0 %v3601_v60  ;;  %3029 = vmatpush1.bf16.msra.mxu1 %v3602_v61  ;;  %v2427_v60 = vsub.s32 1, %v2422_v57 }
  0xe5   : > { %2359 = vmatpush1.bf16.msra.mxu0 %v3602_v61  ;;  %3014 = vmatprep.subr.bf16.mxu1 %v3607_v62  ;;  %v2447_v61 = vld [vmem:[%s4728_s3] sm:$0x3] }
  0xe6   : > { %2360 = vmatprep.subr.bf16.mxu0 %v3607_v62  ;;  %2378 = vmatprep.mubr.bf16.mxu0 %v3634_v63  ;;  %v4546_v62 = vrot.slane %v2419_v59, %v2423_v58 }
  0xe7   : > { %2398 = vmatprep.mubr.bf16.mxu1 %v3637_v0 }
  0xe8   : > { %3030 = vmatpush1.bf16.msra.mxu1 %v3605_v1 }
  0xe9   : > { %2361 = vmatpush1.bf16.msra.mxu0 %v3605_v1  ;;  %3015 = vmatprep.subr.bf16.mxu1 %v3610_v2  ;;  %v4549_v1 = vrot.slane %v2419_v59, %v2427_v60 }
  0xea   : > { %2362 = vmatprep.subr.bf16.mxu0 %v3610_v2 }
  0xec   : > { %3031 = vmatpush1.bf16.msra.mxu1 %v3608_v3 }
  0xed   : > { %2363 = vmatpush1.bf16.msra.mxu0 %v3608_v3  ;;  %3016 = vmatprep.subr.bf16.mxu1 %v3613_v4  ;;  %v4551_v3 = vrot.slane %v2447_v61, %v2423_v58 }
  0xee   : > { %2364 = vmatprep.subr.bf16.mxu0 %v3613_v4 }
  0xf0   : > { %3032 = vmatpush1.bf16.msra.mxu1 %v3611_v5 }
  0xf1   : > { %2365 = vmatpush1.bf16.msra.mxu0 %v3611_v5  ;;  %3017 = vmatprep.subr.bf16.mxu1 %v3616_v6 }
  0xf2   : > { %2366 = vmatprep.subr.bf16.mxu0 %v3616_v6 }
  0xf4   : > { %3033 = vmatpush1.bf16.msra.mxu1 %v3614_v7 }
  0xf5   : > { %2367 = vmatpush1.bf16.msra.mxu0 %v3614_v7  ;;  %3018 = vmatprep.subr.bf16.mxu1 %v3619_v8 }
  0xf6   : > { %2368 = vmatprep.subr.bf16.mxu0 %v3619_v8  ;;  %v4553_v8 = vrot.slane %v2447_v61, %v2427_v60 }
  0xf8   : > { %3034 = vmatpush1.bf16.msra.mxu1 %v3617_v9 }
  0xf9   : > { %2369 = vmatpush1.bf16.msra.mxu0 %v3617_v9  ;;  %3019 = vmatprep.subr.bf16.mxu1 %v3622_v10 }
  0xfa   : > { %2370 = vmatprep.subr.bf16.mxu0 %v3622_v10 }
  0xfc   : > { %3035 = vmatpush1.bf16.msra.mxu1 %v3620_v11 }
  0xfd   : > { %2371 = vmatpush1.bf16.msra.mxu0 %v3620_v11  ;;  %3020 = vmatprep.subr.bf16.mxu1 %v3625_v12 }
  0xfe   : > { %2372 = vmatprep.subr.bf16.mxu0 %v3625_v12 }
 0x100   : > { %3036 = vmatpush1.bf16.msra.mxu1 %v3623_v13 }
 0x101   : > { %2373 = vmatpush1.bf16.msra.mxu0 %v3623_v13  ;;  %3021 = vmatprep.subr.bf16.mxu1 %v3628_v14 }
 0x102   : > { %2374 = vmatprep.subr.bf16.mxu0 %v3628_v14 }
 0x104   : > { %3037 = vmatpush1.bf16.msra.mxu1 %v3626_v15 }
 0x105   : > { %2375 = vmatpush1.bf16.msra.mxu0 %v3626_v15  ;;  %3022 = vmatprep.subr.bf16.mxu1 %v3631_v16 }
 0x106   : > { %2376 = vmatprep.subr.bf16.mxu0 %v3631_v16 }
 0x108   : > { %3038 = vmatpush1.bf16.msra.mxu1 %v3629_v17 }
 0x109   : > { %2377 = vmatpush1.bf16.msra.mxu0 %v3629_v17 }
 0x10b   : > { %2399 = vmatmul.mubr.bf16.vlgmr.msra.gmra.mrb[16].mxu1 %v3635_v19 }
 0x10c   : > { %2379 = vmatmul.mubr.bf16.vlgmr.msra.gmra.mrb[0].mxu0 %v3632_v18  ;;  %2408 = vmatprep.mubr.bf16.mxu1 %v3640_v21 }
 0x10d   : > { %2388 = vmatprep.mubr.bf16.mxu0 %v3638_v20 }
 0x113   : > { %2409 = vmatmul.mubr.bf16.gmra.mrb[20].mxu1 %v3643_v23 }
 0x114   : > { %2389 = vmatmul.mubr.bf16.gmra.mrb[4].mxu0 %v3642_v22 }
 0x19e   : > { %v2088_v24 = vpop.f32.mrb[0].mxu1 }
 0x19f   : > { %v2090_v25 = vpop.f32.mrb[1].mxu1 }
 0x1a0   : > { %v2092_v26 = vpop.f32.mrb[2].mxu1 }
 0x1a1   : > { %v2094_v27 = vpop.f32.mrb[3].mxu1 }
 0x1a6   : > { %v4524_v28 = vpop.f32.mrb[4].mxu1 }
 0x1a7   : > { %v4526_v29 = vpop.f32.mrb[5].mxu1 }
 0x1a8   : > { %v4528_v30 = vpop.f32.mrb[6].mxu1 }
 0x1a9   : > { %v4530_v31 = vpop.f32.mrb[7].mxu1 }
 0x1ae   : > { %v2108_v32 = vpop.f32.mrb[8].mxu1 }
 0x1af   : > { %v2327_v33 = vpop.f32.mrb[8].mxu0  ;;  %v2110_v35 = vpop.f32.mrb[9].mxu1 }
 0x1b0   : > { %v3047_v34 = vadd.f32 %v2327_v33, %v2108_v32  ;;  %v2329_v36 = vpop.f32.mrb[9].mxu0  ;;  %v2112_v38 = vpop.f32.mrb[10].mxu1 }
 0x1b1   : > { %v3049_v37 = vadd.f32 %v2329_v36, %v2110_v35  ;;  %v2331_v39 = vpop.f32.mrb[10].mxu0  ;;  %v2114_v41 = vpop.f32.mrb[11].mxu1 }
 0x1b2   : > { %v3051_v40 = vadd.f32 %v2331_v39, %v2112_v38  ;;  %v2333_v42 = vpop.f32.mrb[11].mxu0 }
 0x1b3   : > { %v3053_v43 = vadd.f32 %v2333_v42, %v2114_v41 }
 0x1b6   : > { %v2118_v44 = vpop.f32.mrb[12].mxu1 }
 0x1b7   : > { %v2337_v45 = vpop.f32.mrb[12].mxu0  ;;  %v2120_v47 = vpop.f32.mrb[13].mxu1 }
 0x1b8   : > { %v4532_v46 = vadd.f32 %v2337_v45, %v2118_v44  ;;  %v2339_v48 = vpop.f32.mrb[13].mxu0  ;;  %v2122_v50 = vpop.f32.mrb[14].mxu1 }
 0x1b9   : > { %v4534_v49 = vadd.f32 %v2339_v48, %v2120_v47  ;;  %v2341_v51 = vpop.f32.mrb[14].mxu0  ;;  %v2124_v53 = vpop.f32.mrb[15].mxu1 }
 0x1ba   : > { %v4536_v52 = vadd.f32 %v2341_v51, %v2122_v50  ;;  %v2343_v54 = vpop.f32.mrb[15].mxu0 }
 0x1bb   : > { %v4538_v55 = vadd.f32 %v2343_v54, %v2124_v53 }
 0x1de   : > { %v2400_v0 = vpop.f32.mrb[16].mxu1 }
 0x1df   : > { %v2380_v63 = vpop.f32.mrb[0].mxu0  ;;  %v3048_v4 = vadd.f32 %v3047_v34, %v2400_v0  ;;  %v2402_v6 = vpop.f32.mrb[17].mxu1 }
 0x1e0   : > { %v3039_v2 = vadd.f32 %v2380_v63, %v2088_v24  ;;  %v2382_v5 = vpop.f32.mrb[1].mxu0  ;;  %v3050_v9 = vadd.f32 %v3049_v37, %v2402_v6  ;;  %v2404_v11 = vpop.f32.mrb[18].mxu1 }
 0x1e1   : > { %v3040_v7 = vadd.f32 %v2382_v5, %v2090_v25  ;;  %v2384_v10 = vpop.f32.mrb[2].mxu0  ;;  %v2439_v13 = vmul.f32 %v3048_v4, %v4546_v62  ;;  %v3052_v15 = vadd.f32 %v3051_v40, %v2404_v11  ;;  %v2406_v17 = vpop.f32.mrb[19].mxu1 }
 0x1e2   : > { %v2431_v12 = vmul.f32 %v3039_v2, %v4546_v62  ;;  %v3041_v14 = vadd.f32 %v2384_v10, %v2092_v26  ;;  %v2386_v16 = vpop.f32.mrb[3].mxu0  ;;  %v2440_v19 = vmul.f32 %v3050_v9, %v4549_v1  ;;  %v3054_v21 = vadd.f32 %v3053_v43, %v2406_v17 }
 0x1e3   : > { %v2432_v18 = vmul.f32 %v3040_v7, %v4549_v1  ;;  %v3042_v20 = vadd.f32 %v2386_v16, %v2094_v27  ;;  %v2467_v23 = vadd.f32 %v4551_v3, %v2439_v13  ;;  %v2441_v25 = vmul.f32 %v3052_v15, %v4546_v62 }
 0x1e4   : > { %v2459_v22 = vadd.f32 %v4551_v3, %v2431_v12  ;;  %v2433_v24 = vmul.f32 %v3041_v14, %v4546_v62  ;;  %v2468_v26 = vadd.f32 %v4553_v8, %v2440_v19  ;;  %v2442_v34 = vmul.f32 %v3054_v21, %v4549_v1 }
 0x1e5   : > { %v2460_v32 = vadd.f32 %v4553_v8, %v2432_v18  ;;  %v2434_v33 = vmul.f32 %v3042_v20, %v4549_v1  ;;  %v2483_v36 = vmax.f32 %v2467_v23, 0.0  ;;  %v2469_v37 = vadd.f32 %v4551_v3, %v2441_v25 }
 0x1e6   : > { %v2475_v35 = vmax.f32 %v2459_v22, 0.0  ;;  %v2461_v27 = vadd.f32 %v4551_v3, %v2433_v24  ;;  %v2484_v39 = vmax.f32 %v2468_v26, 0.0  ;;  %v2470_v41 = vadd.f32 %v4553_v8, %v2442_v34  ;;  %v2410_v43 = vpop.f32.mrb[20].mxu1 }
 0x1e7   : > { %v2476_v38 = vmax.f32 %v2460_v32, 0.0  ;;  %v2462_v40 = vadd.f32 %v4553_v8, %v2434_v33  ;;  %v2390_v42 = vpop.f32.mrb[4].mxu0  ;;  %2500 = vst [vmem:[%s4571_s15 + $0x40] sm:$0xff] %v2483_v36  ;;  %v2485_v45 = vmax.f32 %v2469_v37, 0.0  ;;  %v3056_v48 = vadd.f32 %v4532_v46, %v2410_v43  ;;  %v2412_v51 = vpop.f32.mrb[21].mxu1 }
 0x1e8   : > { %2491 = vst [vmem:[%s4571_s15] sm:$0xff] %v2475_v35  ;;  %v2477_v44 = vmax.f32 %v2461_v27, 0.0  ;;  %v3043_v47 = vadd.f32 %v2390_v42, %v4524_v28  ;;  %v2392_v50 = vpop.f32.mrb[5].mxu0  ;;  %2501 = vst.msk [vmem:[%s4571_s15 + $0x48] sm:$0xff] %vm2492_vm0, %v2484_v39  ;;  %v2486_v54 = vmax.f32 %v2470_v41, 0.0  ;;  %v3058_v57 = vadd.f32 %v4534_v49, %v2412_v51  ;;  %v2414_v59 = vpop.f32.mrb[22].mxu1 }
 0x1e9   : > { %2493 = vst.msk [vmem:[%s4571_s15 + $0x8] sm:$0xff] %vm2492_vm0, %v2476_v38  ;;  %v2478_v53 = vmax.f32 %v2462_v40, 0.0  ;;  %v3044_v56 = vadd.f32 %v2392_v50, %v4526_v29  ;;  %v2394_v58 = vpop.f32.mrb[6].mxu0  ;;  %2502 = vst [vmem:[%s4571_s15 + $0x50] sm:$0xff] %v2485_v45  ;;  %v2443_v46 = vmul.f32 %v3056_v48, %v4546_v62  ;;  %v3060_v61 = vadd.f32 %v4536_v52, %v2414_v59  ;;  %v2416_v0 = vpop.f32.mrb[23].mxu1 }
 0x1ea   : > { %2494 = vst [vmem:[%s4571_s15 + $0x10] sm:$0xff] %v2477_v44  ;;  %v2435_v28 = vmul.f32 %v3043_v47, %v4546_v62  ;;  %v3045_v60 = vadd.f32 %v2394_v58, %v4528_v30  ;;  %v2396_v63 = vpop.f32.mrb[7].mxu0  ;;  %2503 = vst.msk [vmem:[%s4571_s15 + $0x58] sm:$0xff] %vm2492_vm0, %v2486_v54  ;;  %v2444_v49 = vmul.f32 %v3058_v57, %v4549_v1 }
 0x1eb   : > { %2495 = vst.msk [vmem:[%s4571_s15 + $0x18] sm:$0xff] %vm2492_vm0, %v2478_v53  ;;  %v2436_v29 = vmul.f32 %v3044_v56, %v4549_v1  ;;  %v3046_v2 = vadd.f32 %v2396_v63, %v4530_v31  ;;  %v3062_v4 = vadd.f32 %v4538_v55, %v2416_v0  ;;  %v2471_v30 = vadd.f32 %v4551_v3, %v2443_v46 }
 0x1ec   : > { %v2463_v5 = vadd.f32 %v4551_v3, %v2435_v28  ;;  %v2437_v52 = vmul.f32 %v3045_v60, %v4546_v62  ;;  %v2445_v6 = vmul.f32 %v3060_v61, %v4546_v62  ;;  %v2472_v9 = vadd.f32 %v4553_v8, %v2444_v49 }
 0x1ed   : > { %v2464_v7 = vadd.f32 %v4553_v8, %v2436_v29  ;;  %v2438_v31 = vmul.f32 %v3046_v2, %v4549_v1  ;;  %v2446_v55 = vmul.f32 %v3062_v4, %v4549_v1  ;;  %v2487_v11 = vmax.f32 %v2471_v30, 0.0  ;;  %2514 = sbr.rel (!%p3782_p4) target bundleno = 549 (0x225), region = 40 }
 0x1ee   : > { %v2479_v10 = vmax.f32 %v2463_v5, 0.0  ;;  %v2465_v12 = vadd.f32 %v4551_v3, %v2437_v52  ;;  %v2473_v13 = vadd.f32 %v4551_v3, %v2445_v6  ;;  %v2488_v14 = vmax.f32 %v2472_v9, 0.0 }
 0x1ef   : > { %v2480_v62 = vmax.f32 %v2464_v7, 0.0  ;;  %v2466_v15 = vadd.f32 %v4553_v8, %v2438_v31  ;;  %v2474_v16 = vadd.f32 %v4553_v8, %v2446_v55  ;;  %2504 = vst [vmem:[%s4571_s15 + $0x60] sm:$0xff] %v2487_v11 }
 0x1f0   : > { %2496 = vst [vmem:[%s4571_s15 + $0x20] sm:$0xff] %v2479_v10  ;;  %v2481_v17 = vmax.f32 %v2465_v12, 0.0  ;;  %v2489_v1 = vmax.f32 %v2473_v13, 0.0  ;;  %2505 = vst.msk [vmem:[%s4571_s15 + $0x68] sm:$0xff] %vm2492_vm0, %v2488_v14 }
 0x1f1   : > { %2497 = vst.msk [vmem:[%s4571_s15 + $0x28] sm:$0xff] %vm2492_vm0, %v2480_v62  ;;  %v2482_v18 = vmax.f32 %v2466_v15, 0.0  ;;  %v2490_v19 = vmax.f32 %v2474_v16, 0.0 }
 0x1f2   : > { %2498 = vst [vmem:[%s4571_s15 + $0x30] sm:$0xff] %v2481_v17  ;;  %2506 = vst [vmem:[%s4571_s15 + $0x70] sm:$0xff] %v2489_v1 }
 0x1f3   : > { %2499 = vst.msk [vmem:[%s4571_s15 + $0x38] sm:$0xff] %vm2492_vm0, %v2482_v18  ;;  %2507 = vst.msk [vmem:[%s4571_s15 + $0x78] sm:$0xff] %vm2492_vm0, %v2490_v19 }
 0x1f4   : > { %s4738_s25 = smov (!%p2517_p8, %s2516_s25), 8 }
 0x1f5   : > { %s3002_s30 = sshll.u32 %s4738_s25, 8 }
 0x1f6   : > { %p2990_p9 = scmp.eq.s32.totalorder %s3002_s30, 0 }
 0x1f7   : > { %s4634_s5 = sshrl.u32 (!%p2990_p9), %s4738_s25, 3 }
 0x1f8   : > { %2527 = sbr.rel (%p2990_p9) target bundleno = 549 (0x225), region = 44  ;;  %p2991_p10 = scmp.le.s32.totalorder (!%p2990_p9), %s4634_s5, 0 }
 0x1ff   : > { %2652 = sbr.rel (%p2991_p10) target bundleno = 528 (0x210), region = 92  ;;  %s4731_s18 = smov (!%p2991_p10), %s4628_s29 }
 0x200   : > { %s4732_s23 = smov (!%p2991_p10), %s4571_s15  ;;  %s4643_s24 = smov (!%p2991_p10), 0  }
 0x201   : > { %s4645_s6 = smov (!%p2991_p10), 0  }
 0x206 LB: >> { %v2540_v3 = vld [vmem:[%s3706_s23] sm:$0xff]  ;;  %v2542_v8 = vld [vmem:[%s3706_s23 + $0x10] sm:$0xff]  ;;  %s2572_s7 = sadd.s32 1, %s3710_s24  ;;  %v2556_v32 = vld [vmem:[%s3706_s23 + $0x8] sm:$0xff]  ;;  %s2534_s6 = sadd.s32 1, %s3714_s6   ;;  %s3714_s6 = sphi %s4645_s6, %s2534_s6   ;;  %s3710_s24 = sphi %s4643_s24, %s4733_s24   ;;  %s3706_s23 = sphi %s4732_s23, %s2577_s23   ;;  %s3702_s18 = sphi %s4731_s18, %s2578_s18  }
 0x207   : >> { %v2544_v20 = vld [vmem:[%s3706_s23 + $0x20] sm:$0xff]  ;;  %2541 = vst [vmem:[%s3702_s18] sm:$0xff] %v2540_v3  ;;  %2543 = vst [vmem:[%s3702_s18 + $0x10] sm:$0xff] %v2542_v8  ;;  %v2546_v21 = vld [vmem:[%s3706_s23 + $0x30] sm:$0xff]  ;;  %p2573_p11 = scmp.ge.s32.totalorder %s2572_s7, %s4634_s5  ;;  %p2533_p12 = scmp.ge.s32.totalorder %s2534_s6, %s4634_s5 }
 0x208   : >> { %2545 = vst [vmem:[%s3702_s18 + $0x20] sm:$0xff] %v2544_v20  ;;  %v2548_v22 = vld [vmem:[%s3706_s23 + $0x40] sm:$0xff]  ;;  %v2550_v23 = vld [vmem:[%s3706_s23 + $0x50] sm:$0xff]  ;;  %2547 = vst [vmem:[%s3702_s18 + $0x30] sm:$0xff] %v2546_v21 }
 0x209   : >> { %2549 = vst [vmem:[%s3702_s18 + $0x40] sm:$0xff] %v2548_v22  ;;  %2551 = vst [vmem:[%s3702_s18 + $0x50] sm:$0xff] %v2550_v23  ;;  %v2552_v24 = vld [vmem:[%s3706_s23 + $0x60] sm:$0xff]  ;;  %v2554_v25 = vld [vmem:[%s3706_s23 + $0x70] sm:$0xff]  ;;  %s4740_s7 = smov (%p2573_p11, %s2572_s7), 0  ;;  %2536 = sbr.rel (!%p2533_p12) target bundleno = 518 (0x206), region = 98 }
 0x20a   : >> { %2553 = vst [vmem:[%s3702_s18 + $0x60] sm:$0xff] %v2552_v24  ;;  %2555 = vst [vmem:[%s3702_s18 + $0x70] sm:$0xff] %v2554_v25  ;;  %v2558_v26 = vld [vmem:[%s3706_s23 + $0x18] sm:$0xff]  ;;  %v2560_v33 = vld [vmem:[%s3706_s23 + $0x28] sm:$0xff]  ;;  %s2992_s8 = sshll.u32 %s4740_s7, 7  ;;  %s4733_s24 = smov %s4740_s7 }
 0x20b   : >> { %2557 = vst [vmem:[%s3702_s18 + $0x8] sm:$0xff] %v2556_v32  ;;  %v2562_v34 = vld [vmem:[%s3706_s23 + $0x38] sm:$0xff]  ;;  %2559 = vst [vmem:[%s3702_s18 + $0x18] sm:$0xff] %v2558_v26  ;;  %v2564_v35 = vld [vmem:[%s3706_s23 + $0x48] sm:$0xff] }
 0x20c   : >> { %2561 = vst [vmem:[%s3702_s18 + $0x28] sm:$0xff] %v2560_v33  ;;  %2563 = vst [vmem:[%s3702_s18 + $0x38] sm:$0xff] %v2562_v34  ;;  %v2566_v36 = vld [vmem:[%s3706_s23 + $0x58] sm:$0xff]  ;;  %v2568_v27 = vld [vmem:[%s3706_s23 + $0x68] sm:$0xff] }
 0x20d   : >> { %2565 = vst [vmem:[%s3702_s18 + $0x48] sm:$0xff] %v2564_v35  ;;  %2567 = vst [vmem:[%s3702_s18 + $0x58] sm:$0xff] %v2566_v36  ;;  %v2570_v37 = vld [vmem:[%s3706_s23 + $0x78] sm:$0xff]  ;;  %s2577_s23 = scalar_lea.vmem %s4571_s15, %s2992_s8 [#allocation2]  }
 0x20e   : >> { %2569 = vst [vmem:[%s3702_s18 + $0x68] sm:$0xff] %v2568_v27  ;;  %2571 = vst [vmem:[%s3702_s18 + $0x78] sm:$0xff] %v2570_v37  ;;  %s2578_s18 = scalar_lea.vmem %s4628_s29, %s2992_s8  }
 0x210 PF: > { %s4703_s9 = sand.u32 7, %s4738_s25   ;;  %s3005_s10 = sshll.u32 %s4634_s5, 7 }
 0x211   : > { %s4707_s11 = scalar_lea.vmem %s4571_s15, %s3005_s10 [#allocation2]   ;;  %s2585_s14 = scalar_lea.vmem %s4628_s29, %s3005_s10  }
 0x212   : > { %p2997_p13 = scmp.le.s32.totalorder %s4703_s9, 0 }
 0x213   : > { %s3716_s12 = smov (!%p2997_p13), %s2585_s14   ;;  %s3720_s13 = smov (!%p2997_p13), %s4707_s11  }
 0x214   : > { %2666 = sbr.rel (%p2997_p13) target bundleno = 549 (0x225), region = 103  ;;  %s3724_s17 = smov (!%p2997_p13), 0  }
 0x215   : > { %s3728_s20 = smov (!%p2997_p13), 0  }
 0x21b LB: >> { %v2595_v38 = vld [vmem:[%s3722_s13] sm:$0xff]  ;;  %v2597_v39 = vld [vmem:[%s3722_s13 + $0x8] sm:$0xff]  ;;  %s2599_s21 = sadd.s32 1, %s3726_s17  ;;  %s2589_s20 = sadd.s32 1, %s3730_s20   ;;  %s3730_s20 = sphi %s3728_s20, %s2589_s20   ;;  %s3726_s17 = sphi %s3724_s17, %s3725_s17   ;;  %s3722_s13 = sphi %s3720_s13, %s2604_s13   ;;  %s3718_s12 = sphi %s3716_s12, %s2605_s12  }
 0x21c   : >> { %2596 = vst [vmem:[%s3718_s12] sm:$0xff] %v2595_v38  ;;  %2598 = vst [vmem:[%s3718_s12 + $0x8] sm:$0xff] %v2597_v39  ;;  %p2600_p0 = scmp.ge.s32.totalorder %s2599_s21, %s4703_s9  ;;  %p2588_p1 = scmp.ge.s32.totalorder %s2589_s20, %s4703_s9 }
 0x21e   : >> { %s4742_s21 = smov (%p2600_p0, %s2599_s21), 0  ;;  %2591 = sbr.rel (!%p2588_p1) target bundleno = 539 (0x21b), region = 109 }
 0x21f   : >> { %s2998_s15 = sshll.u32 %s4742_s21, 4  ;;  %s3725_s17 = smov %s4742_s21  }
 0x220   : >> { %s2604_s13 = scalar_lea.vmem %s4707_s11, %s2998_s15 [#allocation2]   ;;  %s2605_s12 = scalar_lea.vmem %s2585_s14, %s2998_s15  }
 0x225 PF: > { %p11_p2 = scmp.ge.s32.totalorder %s3772_s19, 4   ;;  %s4734_s15 = smov %s3694_s16 }
 0x226   : > { %s4735_s16 = smov %s3780_s22  ;;  %s4736_s17 = smov %s3772_s19 }
 0x227   :  { %13 = sbr.rel (!%p11_p2) target bundleno = 2 (0x2), region = 120 }

// kernel: inception_block_d.7
= control target key start
LH: loop header
LB: loop body
LE: loop exit
PB: predicated region body
PF: predicated region fallthrough
CT: control target
= control target key end

     0   :  { %s5665_s15 = smov 0   ;;  %s5667_s16 = smov 0   ;;  %s7241_s0 = inlined_call_operand.vmem [shape: bf16[98,1792], index: 0, kind: input, shape index: {}]   ;;  %s7242_s1 = inlined_call_operand.vmem [shape: bf16[1792,320], index: 1, kind: input, shape index: {}]   ;;  %s7243_s2 = inlined_call_operand.vmem [shape: f32[1,320], index: 2, kind: input, shape index: {}]   ;;  %s7244_s3 = inlined_call_operand.vmem [shape: f32[1,320], index: 3, kind: input, shape index: {}]   ;;  %s7245_s4 = inlined_call_operand.vmem [shape: f32[98,320], index: 4, kind: output, shape index: {}]  }
   0x1   :  { %s5669_s17 = smov 0  }
   0x2 LB: > { %s5678_s18 = sadd.s32 4294967295, %s5606_s17   ;;  %s5680_s19 = sadd.s32 1, %s5606_s17   ;;  %s5606_s17 = sphi %s5669_s17, %s7254_s17   ;;  %s5602_s16 = sphi %s5667_s16, %s7253_s16   ;;  %s5598_s15 = sphi %s5665_s15, %s7252_s15  }
   0x3   : > { %s107_s20 = ssub.s32 %s5606_s17, %s5680_s19  ;;  %s110_s21 = sadd.s32 1, %s5602_s16 }
   0x4   : > { %p108_p0 = scmp.eq.s32.totalorder %s107_s20, 0  ;;  %p120_p1 = scmp.ne.s32.totalorder %s5602_s16, %s5598_s15 }
   0x5   : > { %p121_p2 = scmp.eq.s32.totalorder %s5678_s18, 1  ;;  %p4111_p3 = scmp.ge.s32.totalorder %s5606_s17, 1 }
   0x6   : > { %s5688_s22 = scalar_select %p108_p0, %s5602_s16, %s110_s21  }
   0x7   : > { %p5690_p4 = por %p121_p2, %p120_p1  ;;  %p174_p5 = scmp.lt.s32.totalorder %s5606_s17, 3 }
   0x9   : > { %p175_p6 = pnand %p4111_p3, %p174_p5 }
   0xa   : > { %v5003_v0 = vld [vmem:[%s7242_s1 + $0x4] ss:$12 sps:$4 sm:$0xff] (!%p175_p6)   ;;  %v5007_v2 = vld [vmem:[%s7242_s1] ss:$12 sps:$4 sm:$0xff] (!%p175_p6)   ;;  %v5009_v4 = vld [vmem:[%s7242_s1 + $0x1c] ss:$12 sps:$4 sm:$0xff] (!%p175_p6)  }
   0xb   : > { %178 = sbr.rel (%p175_p6) target bundleno = 650 (0x28a), region = 36  ;;  %v5005_v1 = vld [vmem:[%s7242_s1 + $0x304] ss:$12 sps:$4 sm:$0xff] (!%p175_p6)   ;;  %2805 = vmatprep.subr.bf16.mxu1 (!%p175_p6), %v5003_v0  ;;  %v5008_v3 = vld [vmem:[%s7242_s1 + $0x300] ss:$12 sps:$4 sm:$0xff] (!%p175_p6)   ;;  %s5785_s24 = sshll.u32 (!%p175_p6), %s5678_s18, 3 }
   0xc   : > { %2951 = vmatprep.subr.bf16.mxu0 (!%p175_p6), %v5005_v1  ;;  %2806 = vmatpush1.bf16.msra.mxu1 (!%p175_p6), %v5007_v2  ;;  %v5011_v5 = vld [vmem:[%s7242_s1 + $0x31c] ss:$12 sps:$4 sm:$0xff] (!%p175_p6)   ;;  %v5013_v6 = vld [vmem:[%s7242_s1 + $0x18] ss:$12 sps:$4 sm:$0xff] (!%p175_p6)   ;;  %v5015_v8 = vld [vmem:[%s7242_s1 + $0x34] ss:$12 sps:$4 sm:$0xff] (!%p175_p6)  }
   0xd   : > { %2952 = vmatpush1.bf16.msra.mxu0 (!%p175_p6), %v5008_v3  ;;  %2807 = vmatprep.subr.bf16.mxu1 (!%p175_p6), %v5009_v4  ;;  %v5014_v7 = vld [vmem:[%s7242_s1 + $0x318] ss:$12 sps:$4 sm:$0xff] (!%p175_p6)   ;;  %v5017_v9 = vld [vmem:[%s7242_s1 + $0x334] ss:$12 sps:$4 sm:$0xff] (!%p175_p6)   ;;  %v5019_v10 = vld [vmem:[%s7242_s1 + $0x30] ss:$12 sps:$4 sm:$0xff] (!%p175_p6)  }
   0xe   : > { %2953 = vmatprep.subr.bf16.mxu0 (!%p175_p6), %v5011_v5  ;;  %v5020_v11 = vld [vmem:[%s7242_s1 + $0x330] ss:$12 sps:$4 sm:$0xff] (!%p175_p6)   ;;  %v5021_v12 = vld [vmem:[%s7242_s1 + $0x4c] ss:$12 sps:$4 sm:$0xff] (!%p175_p6)   ;;  %v5025_v14 = vld [vmem:[%s7242_s1 + $0x48] ss:$12 sps:$4 sm:$0xff] (!%p175_p6)  }
   0xf   : > { %v5023_v13 = vld [vmem:[%s7242_s1 + $0x34c] ss:$12 sps:$4 sm:$0xff] (!%p175_p6)   ;;  %v5026_v15 = vld [vmem:[%s7242_s1 + $0x348] ss:$12 sps:$4 sm:$0xff] (!%p175_p6)   ;;  %v5027_v16 = vld [vmem:[%s7242_s1 + $0x64] ss:$12 sps:$4 sm:$0xff] (!%p175_p6)  }
  0x10   : > { %2808 = vmatpush1.bf16.msra.mxu1 (!%p175_p6), %v5013_v6  ;;  %v5029_v17 = vld [vmem:[%s7242_s1 + $0x364] ss:$12 sps:$4 sm:$0xff] (!%p175_p6)   ;;  %v5031_v18 = vld [vmem:[%s7242_s1 + $0x60] ss:$12 sps:$4 sm:$0xff] (!%p175_p6)   ;;  %v5033_v20 = vld [vmem:[%s7242_s1 + $0x7c] ss:$12 sps:$4 sm:$0xff] (!%p175_p6)  }
  0x11   : > { %2954 = vmatpush1.bf16.msra.mxu0 (!%p175_p6), %v5014_v7  ;;  %2809 = vmatprep.subr.bf16.mxu1 (!%p175_p6), %v5015_v8  ;;  %v5032_v19 = vld [vmem:[%s7242_s1 + $0x360] ss:$12 sps:$4 sm:$0xff] (!%p175_p6)   ;;  %v5035_v21 = vld [vmem:[%s7242_s1 + $0x37c] ss:$12 sps:$4 sm:$0xff] (!%p175_p6)   ;;  %v5037_v22 = vld [vmem:[%s7242_s1 + $0x78] ss:$12 sps:$4 sm:$0xff] (!%p175_p6)  }
  0x12   : > { %2955 = vmatprep.subr.bf16.mxu0 %v5017_v9  ;;  %v5038_v23 = vld [vmem:[%s7242_s1 + $0x378] ss:$12 sps:$4 sm:$0xff]   ;;  %v5039_v24 = vld [vmem:[%s7242_s1 + $0x94] ss:$12 sps:$4 sm:$0xff]   ;;  %v5043_v26 = vld [vmem:[%s7242_s1 + $0x90] ss:$12 sps:$4 sm:$0xff]  }
  0x13   : > { %v5041_v25 = vld [vmem:[%s7242_s1 + $0x394] ss:$12 sps:$4 sm:$0xff]   ;;  %v5044_v27 = vld [vmem:[%s7242_s1 + $0x390] ss:$12 sps:$4 sm:$0xff]   ;;  %v5045_v28 = vld [vmem:[%s7242_s1 + $0xac] ss:$12 sps:$4 sm:$0xff]  }
  0x14   : > { %2810 = vmatpush1.bf16.msra.mxu1 %v5019_v10  ;;  %v5047_v29 = vld [vmem:[%s7242_s1 + $0x3ac] ss:$12 sps:$4 sm:$0xff]   ;;  %v5049_v30 = vld [vmem:[%s7242_s1 + $0xa8] ss:$12 sps:$4 sm:$0xff]   ;;  %v5051_v32 = vld [vmem:[%s7242_s1 + $0xc4] ss:$12 sps:$4 sm:$0xff]  }
  0x15   : > { %2956 = vmatpush1.bf16.msra.mxu0 %v5020_v11  ;;  %2811 = vmatprep.subr.bf16.mxu1 %v5021_v12  ;;  %v5050_v31 = vld [vmem:[%s7242_s1 + $0x3a8] ss:$12 sps:$4 sm:$0xff]   ;;  %p211_p7 = scmp.lt.s32.totalorder %s5785_s24, 12  ;;  %v5053_v33 = vld [vmem:[%s7242_s1 + $0x3c4] ss:$12 sps:$4 sm:$0xff]   ;;  %s202_s5 = sand.u32 1, %s5598_s15  }
  0x16   : > { %2957 = vmatprep.subr.bf16.mxu0 %v5023_v13  ;;  %v5055_v34 = vld [vmem:[%s7242_s1 + $0xc0] ss:$12 sps:$4 sm:$0xff]   ;;  %v5057_v36 = vld [vmem:[%s7242_s1 + $0xdc] ss:$12 sps:$4 sm:$0xff]   ;;  %v5061_v38 = vld [vmem:[%s7242_s1 + $0xd8] ss:$12 sps:$4 sm:$0xff]  }
  0x17   : > { %v5056_v35 = vld [vmem:[%s7242_s1 + $0x3c0] ss:$12 sps:$4 sm:$0xff]   ;;  %s212_s13 = scalar_select %p211_p7, %s5785_s24, 12  ;;  %v5059_v37 = vld [vmem:[%s7242_s1 + $0x3dc] ss:$12 sps:$4 sm:$0xff]   ;;  %vm3879_vm0 = vcmask 523264  }
  0x18   : > { %2812 = vmatpush1.bf16.msra.mxu1 %v5025_v14  ;;  %v5062_v39 = vld [vmem:[%s7242_s1 + $0x3d8] ss:$12 sps:$4 sm:$0xff]   ;;  %v5063_v40 = vld [vmem:[%s7242_s1 + $0xf4] ss:$12 sps:$4 sm:$0xff]   ;;  %v5067_v42 = vld [vmem:[%s7242_s1 + $0xf0] ss:$12 sps:$4 sm:$0xff]  }
  0x19   : > { %2958 = vmatpush1.bf16.msra.mxu0 %v5026_v15  ;;  %2813 = vmatprep.subr.bf16.mxu1 %v5027_v16  ;;  %s4913_s29 = smul.u32 56, %s212_s13  ;;  %v5065_v41 = vld [vmem:[%s7242_s1 + $0x3f4] ss:$12 sps:$4 sm:$0xff]   ;;  %v5068_v43 = vld [vmem:[%s7242_s1 + $0x3f0] ss:$12 sps:$4 sm:$0xff]   ;;  %s3910_s7 = ssub.s32 (%p5690_p4), 13, %s5785_s24 }
  0x1a   : > { %2959 = vmatprep.subr.bf16.mxu0 %v5029_v17  ;;  %v5069_v44 = vld [vmem:[%s7242_s1 + $0x10c] ss:$12 sps:$4 sm:$0xff]   ;;  %v5073_v46 = vld [vmem:[%s7242_s1 + $0x108] ss:$12 sps:$4 sm:$0xff]   ;;  %v5075_v49 = vld [vmem:[%s7242_s1 + $0x124] ss:$12 sps:$4 sm:$0xff]  }
  0x1b   : > { %s5837_s14 = scalar_lea.vmem %s7241_s0, %s4913_s29  ;;  %v5071_v45 = vld [vmem:[%s7242_s1 + $0x40c] ss:$12 sps:$4 sm:$0xff]   ;;  %v5074_v47 = vld [vmem:[%s7242_s1 + $0x408] ss:$12 sps:$4 sm:$0xff]   ;;  %v5077_v50 = vld [vmem:[%s7242_s1 + $0x424] ss:$12 sps:$4 sm:$0xff]  }
  0x1c   : > { %2814 = vmatpush1.bf16.msra.mxu1 %v5031_v18  ;;  %v5849_v48 = vld [vmem:[%s5837_s14 + $0x4] ss:$56 sps:$4 sm:$0xff]   ;;  %v5107_v51 = vld [vmem:[%s5837_s14 + $0x14] ss:$56 sps:$4 sm:$0xff]   ;;  %v5908_v4 = vld [vmem:[%s5837_s14] ss:$56 sps:$4 sm:$0xff]  }
  0x1d   : > { %2960 = vmatpush1.bf16.msra.mxu0 %v5032_v19  ;;  %2815 = vmatprep.subr.bf16.mxu1 %v5033_v20  ;;  %v5079_v52 = vld [vmem:[%s7242_s1 + $0x120] ss:$12 sps:$4 sm:$0xff]   ;;  %v5081_v54 = vld [vmem:[%s7242_s1 + $0x13c] ss:$12 sps:$4 sm:$0xff]   ;;  %v5085_v56 = vld [vmem:[%s7242_s1 + $0x138] ss:$12 sps:$4 sm:$0xff]  }
  0x1e   : > { %2961 = vmatprep.subr.bf16.mxu0 %v5035_v21  ;;  %2837 = vmatprep.mubr.bf16.mxu1 %v5849_v48  ;;  %v5080_v53 = vld [vmem:[%s7242_s1 + $0x420] ss:$12 sps:$4 sm:$0xff]   ;;  %v5083_v55 = vld [vmem:[%s7242_s1 + $0x43c] ss:$12 sps:$4 sm:$0xff]   ;;  %v5086_v57 = vld [vmem:[%s7242_s1 + $0x438] ss:$12 sps:$4 sm:$0xff]  }
  0x1f   : > { %2983 = vmatprep.mubr.bf16.mxu0 %v5107_v51  ;;  %v5087_v58 = vld [vmem:[%s7242_s1 + $0x154] ss:$12 sps:$4 sm:$0xff]   ;;  %v5091_v60 = vld [vmem:[%s7242_s1 + $0x150] ss:$12 sps:$4 sm:$0xff]   ;;  %v5093_v62 = vld [vmem:[%s7242_s1 + $0x16c] ss:$12 sps:$4 sm:$0xff]  }
  0x20   : > { %2816 = vmatpush1.bf16.msra.mxu1 %v5037_v22  ;;  %v5089_v59 = vld [vmem:[%s7242_s1 + $0x454] ss:$12 sps:$4 sm:$0xff]   ;;  %v5092_v61 = vld [vmem:[%s7242_s1 + $0x450] ss:$12 sps:$4 sm:$0xff]   ;;  %v5095_v63 = vld [vmem:[%s7242_s1 + $0x46c] ss:$12 sps:$4 sm:$0xff]  }
  0x21   : > { %2962 = vmatpush1.bf16.msra.mxu0 %v5038_v23  ;;  %2817 = vmatprep.subr.bf16.mxu1 %v5039_v24  ;;  %v5097_v0 = vld [vmem:[%s7242_s1 + $0x168] ss:$12 sps:$4 sm:$0xff]   ;;  %v5104_v2 = vld [vmem:[%s7242_s1 + $0x184] ss:$12 sps:$4 sm:$0xff]   ;;  %v5102_v5 = vld [vmem:[%s7242_s1 + $0x180] ss:$12 sps:$4 sm:$0xff]  }
  0x22   : > { %2963 = vmatprep.subr.bf16.mxu0 %v5041_v25  ;;  %v5098_v1 = vld [vmem:[%s7242_s1 + $0x468] ss:$12 sps:$4 sm:$0xff]   ;;  %v5110_v3 = vld [vmem:[%s7242_s1 + $0x484] ss:$12 sps:$4 sm:$0xff]   ;;  %v5108_v7 = vld [vmem:[%s7242_s1 + $0x480] ss:$12 sps:$4 sm:$0xff]  }
  0x23   : > { %v5105_v6 = vld [vmem:[%s5837_s14 + $0x10] ss:$56 sps:$4 sm:$0xff]   ;;  %v5111_v10 = vld [vmem:[%s7242_s1 + $0x198] ss:$12 sps:$4 sm:$0xff]   ;;  %v5119_v12 = vld [vmem:[%s7242_s1 + $0x1b4] ss:$12 sps:$4 sm:$0xff]  }
  0x24   : > { %2818 = vmatpush1.bf16.msra.mxu1 %v5043_v26  ;;  %v5113_v8 = vld [vmem:[%s7242_s1 + $0x19c] ss:$12 sps:$4 sm:$0xff]   ;;  %v5114_v11 = vld [vmem:[%s7242_s1 + $0x498] ss:$12 sps:$4 sm:$0xff]   ;;  %v5122_v13 = vld [vmem:[%s7242_s1 + $0x4b4] ss:$12 sps:$4 sm:$0xff]  }
  0x25   : > { %2964 = vmatpush1.bf16.msra.mxu0 %v5044_v27  ;;  %2819 = vmatprep.subr.bf16.mxu1 %v5045_v28  ;;  %v5116_v9 = vld [vmem:[%s7242_s1 + $0x49c] ss:$12 sps:$4 sm:$0xff]   ;;  %v5125_v16 = vld [vmem:[%s7242_s1 + $0x1cc] ss:$12 sps:$4 sm:$0xff]   ;;  %v5131_v23 = vld [vmem:[%s7242_s1 + $0x1e4] ss:$12 sps:$4 sm:$0xff]  }
  0x26   : > { %2965 = vmatprep.subr.bf16.mxu0 %v5047_v29  ;;  %v5117_v14 = vld [vmem:[%s7242_s1 + $0x1b0] ss:$12 sps:$4 sm:$0xff]   ;;  %v5128_v17 = vld [vmem:[%s7242_s1 + $0x4cc] ss:$12 sps:$4 sm:$0xff]   ;;  %v5123_v20 = vld [vmem:[%s7242_s1 + $0x1c8] ss:$12 sps:$4 sm:$0xff]  }
  0x27   : > { %v5120_v15 = vld [vmem:[%s7242_s1 + $0x4b0] ss:$12 sps:$4 sm:$0xff]   ;;  %v5949_v18 = vld [vmem:[%s5837_s14 + $0x74] ss:$56 sps:$4 sm:$0xff]   ;;  %v5176_v25 = vld [vmem:[%s5837_s14 + $0x80] ss:$56 sps:$4 sm:$0xff]  }
  0x28   : > { %2820 = vmatpush1.bf16.msra.mxu1 %v5049_v30  ;;  %v5952_v19 = vld [vmem:[%s5837_s14 + $0x70] ss:$56 sps:$4 sm:$0xff]   ;;  %v5171_v22 = vld [vmem:[%s5837_s14 + $0x84] ss:$56 sps:$4 sm:$0xff]   ;;  %v5129_v26 = vld [vmem:[%s7242_s1 + $0x1e0] ss:$12 sps:$4 sm:$0xff]  }
  0x29   : > { %2966 = vmatpush1.bf16.msra.mxu0 %v5050_v31  ;;  %2821 = vmatprep.subr.bf16.mxu1 %v5051_v32  ;;  %v5126_v21 = vld [vmem:[%s7242_s1 + $0x4c8] ss:$12 sps:$4 sm:$0xff]   ;;  %v5134_v24 = vld [vmem:[%s7242_s1 + $0x4e4] ss:$12 sps:$4 sm:$0xff]   ;;  %v5132_v27 = vld [vmem:[%s7242_s1 + $0x4e0] ss:$12 sps:$4 sm:$0xff]  }
  0x2a   : > { %2967 = vmatprep.subr.bf16.mxu0 %v5053_v33  ;;  %v5137_v28 = vld [vmem:[%s7242_s1 + $0x1fc] ss:$12 sps:$4 sm:$0xff]   ;;  %v5986_v31 = vld [vmem:[%s5837_s14 + $0xe0] ss:$56 sps:$4 sm:$0xff]   ;;  %s4912_s6 = smul.u32 192, %s202_s5  ;;  %p3911_p8 = scmp.lt.s32.totalorder (%p5690_p4), %s3910_s7, 8 }
  0x2b   : > { %v5140_v29 = vld [vmem:[%s7242_s1 + $0x4fc] ss:$12 sps:$4 sm:$0xff]   ;;  %v5135_v32 = vld [vmem:[%s7242_s1 + $0x1f8] ss:$12 sps:$4 sm:$0xff]   ;;  %v5153_v51 = vld [vmem:[%s7242_s1 + $0x240] ss:$12 sps:$4 sm:$0xff]  }
  0x2c   : > { %2822 = vmatpush1.bf16.msra.mxu1 %v5055_v34  ;;  %v5983_v30 = vld [vmem:[%s5837_s14 + $0xe4] ss:$56 sps:$4 sm:$0xff]   ;;  %v5189_v34 = vld [vmem:[%s5837_s14 + $0xf4] ss:$56 sps:$4 sm:$0xff]   ;;  %s7012_s15 = scalar_lea.vmem [#allocation2], %s4912_s6   ;;  %s4914_s8 = smul.u32 (%p5690_p4), 192, %s5678_s18 }
  0x2d   : > { %2968 = vmatpush1.bf16.msra.mxu0 %v5056_v35  ;;  %2823 = vmatprep.subr.bf16.mxu1 %v5057_v36  ;;  %v5138_v33 = vld [vmem:[%s7242_s1 + $0x4f8] ss:$12 sps:$4 sm:$0xff]   ;;  %v5143_v35 = vld [vmem:[%s7242_s1 + $0x214] ss:$12 sps:$4 sm:$0xff]  }
  0x2e   : > { %2969 = vmatprep.subr.bf16.mxu0 %v5059_v37  ;;  %v5146_v36 = vld [vmem:[%s7242_s1 + $0x514] ss:$12 sps:$4 sm:$0xff]   ;;  %v5194_v37 = vld [vmem:[%s5837_s14 + $0xf0] ss:$56 sps:$4 sm:$0xff]   ;;  %s7115_s11 = scalar_lea.vmem (%p5690_p4), %s7245_s4, %s4914_s8  }
  0x30   : > { %2824 = vmatpush1.bf16.msra.mxu1 %v5061_v38  ;;  %v5141_v38 = vld [vmem:[%s7242_s1 + $0x210] ss:$12 sps:$4 sm:$0xff]  }
  0x31   : > { %2970 = vmatpush1.bf16.msra.mxu0 %v5062_v39  ;;  %2825 = vmatprep.subr.bf16.mxu1 %v5063_v40  ;;  %v5144_v39 = vld [vmem:[%s7242_s1 + $0x510] ss:$12 sps:$4 sm:$0xff]   ;;  %v5149_v40 = vld [vmem:[%s7242_s1 + $0x22c] ss:$12 sps:$4 sm:$0xff]  }
  0x32   : > { %2971 = vmatprep.subr.bf16.mxu0 %v5065_v41  ;;  %v5152_v41 = vld [vmem:[%s7242_s1 + $0x52c] ss:$12 sps:$4 sm:$0xff]  }
  0x34   : > { %2826 = vmatpush1.bf16.msra.mxu1 %v5067_v42  ;;  %v6017_v42 = vld [vmem:[%s5837_s14 + $0x154] ss:$56 sps:$4 sm:$0xff]  }
  0x35   : > { %2972 = vmatpush1.bf16.msra.mxu0 %v5068_v43  ;;  %2827 = vmatprep.subr.bf16.mxu1 %v5069_v44  ;;  %v6020_v43 = vld [vmem:[%s5837_s14 + $0x150] ss:$56 sps:$4 sm:$0xff]  }
  0x36   : > { %2973 = vmatprep.subr.bf16.mxu0 %v5071_v45  ;;  %v5147_v44 = vld [vmem:[%s7242_s1 + $0x228] ss:$12 sps:$4 sm:$0xff]  }
  0x37   : > { %v5150_v45 = vld [vmem:[%s7242_s1 + $0x528] ss:$12 sps:$4 sm:$0xff]  }
  0x38   : > { %2828 = vmatpush1.bf16.msra.mxu1 %v5073_v46  ;;  %v5207_v46 = vld [vmem:[%s5837_s14 + $0x164] ss:$56 sps:$4 sm:$0xff]  }
  0x39   : > { %2974 = vmatpush1.bf16.msra.mxu0 %v5074_v47  ;;  %2829 = vmatprep.subr.bf16.mxu1 %v5075_v49  ;;  %v5155_v47 = vld [vmem:[%s7242_s1 + $0x244] ss:$12 sps:$4 sm:$0xff]  }
  0x3a   : > { %2975 = vmatprep.subr.bf16.mxu0 %v5077_v50  ;;  %v5158_v49 = vld [vmem:[%s7242_s1 + $0x544] ss:$12 sps:$4 sm:$0xff]   ;;  %v5212_v50 = vld [vmem:[%s5837_s14 + $0x160] ss:$56 sps:$4 sm:$0xff]  }
  0x3c   : > { %2830 = vmatpush1.bf16.msra.mxu1 %v5079_v52  ;;  %v5156_v52 = vld [vmem:[%s7242_s1 + $0x540] ss:$12 sps:$4 sm:$0xff]  }
  0x3d   : > { %2976 = vmatpush1.bf16.msra.mxu0 %v5080_v53  ;;  %2831 = vmatprep.subr.bf16.mxu1 %v5081_v54  ;;  %v5161_v53 = vld [vmem:[%s7242_s1 + $0x25c] ss:$12 sps:$4 sm:$0xff]  }
  0x3e   : > { %2977 = vmatprep.subr.bf16.mxu0 %v5083_v55  ;;  %v5164_v54 = vld [vmem:[%s7242_s1 + $0x55c] ss:$12 sps:$4 sm:$0xff]   ;;  %v6051_v55 = vld [vmem:[%s5837_s14 + $0xc] ss:$56 sps:$4 sm:$0xff]  }
  0x40   : > { %2832 = vmatpush1.bf16.msra.mxu1 %v5085_v56  ;;  %v5224_v56 = vld [vmem:[%s5837_s14 + $0x1c] ss:$56 sps:$4 sm:$0xff]  }
  0x41   : > { %2978 = vmatpush1.bf16.msra.mxu0 %v5086_v57  ;;  %2833 = vmatprep.subr.bf16.mxu1 %v5087_v58  ;;  %v5159_v57 = vld [vmem:[%s7242_s1 + $0x258] ss:$12 sps:$4 sm:$0xff]  }
  0x42   : > { %2979 = vmatprep.subr.bf16.mxu0 %v5089_v59  ;;  %v5162_v58 = vld [vmem:[%s7242_s1 + $0x558] ss:$12 sps:$4 sm:$0xff]   ;;  %v5170_v59 = vld [vmem:[%s7242_s1 + $0x274] ss:$12 sps:$4 sm:$0xff]  }
  0x44   : > { %2834 = vmatpush1.bf16.msra.mxu1 %v5091_v60  ;;  %v5175_v60 = vld [vmem:[%s7242_s1 + $0x574] ss:$12 sps:$4 sm:$0xff]  }
  0x45   : > { %2980 = vmatpush1.bf16.msra.mxu0 %v5092_v61  ;;  %2835 = vmatprep.subr.bf16.mxu1 %v5093_v62  ;;  %v5168_v61 = vld [vmem:[%s7242_s1 + $0x270] ss:$12 sps:$4 sm:$0xff]  }
  0x46   : > { %2981 = vmatprep.subr.bf16.mxu0 %v5095_v63  ;;  %v5173_v62 = vld [vmem:[%s7242_s1 + $0x570] ss:$12 sps:$4 sm:$0xff]   ;;  %v5179_v63 = vld [vmem:[%s7242_s1 + $0x28c] ss:$12 sps:$4 sm:$0xff]  }
  0x48   : > { %2836 = vmatpush1.bf16.msra.mxu1 %v5097_v0  ;;  %v5182_v0 = vld [vmem:[%s7242_s1 + $0x58c] ss:$12 sps:$4 sm:$0xff]  }
  0x49   : > { %2982 = vmatpush1.bf16.msra.mxu0 %v5098_v1  ;;  %2878 = vmatprep.subr.bf16.mxu1 %v5104_v2  ;;  %v5177_v1 = vld [vmem:[%s7242_s1 + $0x288] ss:$12 sps:$4 sm:$0xff]  }
  0x4a   : > { %3024 = vmatprep.subr.bf16.mxu0 %v5110_v3  ;;  %v5180_v2 = vld [vmem:[%s7242_s1 + $0x588] ss:$12 sps:$4 sm:$0xff]   ;;  %v5188_v3 = vld [vmem:[%s7242_s1 + $0x2a4] ss:$12 sps:$4 sm:$0xff]  }
  0x4b   : > { %2838 = vmatmul.mubr.bf16.vlgmr.msra.gmra.mrb[0].mxu1 %v5908_v4 }
  0x4c   : > { %2984 = vmatmul.mubr.bf16.vlgmr.msra.gmra.mrb[0].mxu0 %v5105_v6  ;;  %2879 = vmatpush1.bf16.msra.mxu1 %v5102_v5  ;;  %v5193_v5 = vld [vmem:[%s7242_s1 + $0x5a4] ss:$12 sps:$4 sm:$0xff]   ;;  %v5186_v6 = vld [vmem:[%s7242_s1 + $0x2a0] ss:$12 sps:$4 sm:$0xff]  }
  0x4d   : > { %3025 = vmatpush1.bf16.msra.mxu0 %v5108_v7  ;;  %2880 = vmatprep.subr.bf16.mxu1 %v5113_v8  ;;  %v5191_v7 = vld [vmem:[%s7242_s1 + $0x5a0] ss:$12 sps:$4 sm:$0xff]   ;;  %v5197_v8 = vld [vmem:[%s7242_s1 + $0x2bc] ss:$12 sps:$4 sm:$0xff]  }
  0x4e   : > { %3026 = vmatprep.subr.bf16.mxu0 %v5116_v9  ;;  %2847 = vmatprep.mubr.bf16.mxu1 %v5949_v18  ;;  %v5200_v9 = vld [vmem:[%s7242_s1 + $0x5bc] ss:$12 sps:$4 sm:$0xff]  }
  0x4f   : > { %2993 = vmatprep.mubr.bf16.mxu0 %v5171_v22  ;;  %v5227_v22 = vld [vmem:[%s7242_s1 + $0x604] ss:$12 sps:$4 sm:$0xff]  }
  0x50   : > { %2881 = vmatpush1.bf16.msra.mxu1 %v5111_v10  ;;  %v5195_v10 = vld [vmem:[%s7242_s1 + $0x2b8] ss:$12 sps:$4 sm:$0xff]  }
  0x51   : > { %3027 = vmatpush1.bf16.msra.mxu0 %v5114_v11  ;;  %2882 = vmatprep.subr.bf16.mxu1 %v5119_v12  ;;  %v5198_v11 = vld [vmem:[%s7242_s1 + $0x5b8] ss:$12 sps:$4 sm:$0xff]   ;;  %v5206_v12 = vld [vmem:[%s7242_s1 + $0x2d4] ss:$12 sps:$4 sm:$0xff]  }
  0x52   : > { %3028 = vmatprep.subr.bf16.mxu0 %v5122_v13  ;;  %v5211_v13 = vld [vmem:[%s7242_s1 + $0x5d4] ss:$12 sps:$4 sm:$0xff]  }
  0x53   : > { %2848 = vmatmul.mubr.bf16.gmra.mrb[4].mxu1 %v5952_v19 }
  0x54   : > { %2883 = vmatpush1.bf16.msra.mxu1 %v5117_v14  ;;  %2994 = vmatmul.mubr.bf16.gmra.mrb[4].mxu0 %v5176_v25  ;;  %v5204_v14 = vld [vmem:[%s7242_s1 + $0x2d0] ss:$12 sps:$4 sm:$0xff]   ;;  %v5228_v25 = vld [vmem:[%s7242_s1 + $0xc8] ss:$12 sps:$4 sm:$0xff]  }
  0x55   : > { %3029 = vmatpush1.bf16.msra.mxu0 %v5120_v15  ;;  %2884 = vmatprep.subr.bf16.mxu1 %v5125_v16  ;;  %v5209_v15 = vld [vmem:[%s7242_s1 + $0x5d0] ss:$12 sps:$4 sm:$0xff]   ;;  %v5215_v16 = vld [vmem:[%s7242_s1 + $0x2ec] ss:$12 sps:$4 sm:$0xff]  }
  0x56   : > { %3030 = vmatprep.subr.bf16.mxu0 %v5128_v17  ;;  %2857 = vmatprep.mubr.bf16.mxu1 %v5983_v30  ;;  %v5218_v17 = vld [vmem:[%s7242_s1 + $0x5ec] ss:$12 sps:$4 sm:$0xff]  }
  0x57   : > { %3003 = vmatprep.mubr.bf16.mxu0 %v5189_v34  ;;  %v5234_v34 = vld [vmem:[%s7242_s1 + $0x20] ss:$12 sps:$4 sm:$0xff]  }
  0x58   : > { %2885 = vmatpush1.bf16.msra.mxu1 %v5123_v20  ;;  %v5213_v20 = vld [vmem:[%s7242_s1 + $0x2e8] ss:$12 sps:$4 sm:$0xff]  }
  0x59   : > { %3031 = vmatpush1.bf16.msra.mxu0 %v5126_v21  ;;  %2886 = vmatprep.subr.bf16.mxu1 %v5131_v23  ;;  %v5216_v21 = vld [vmem:[%s7242_s1 + $0x5e8] ss:$12 sps:$4 sm:$0xff]  }
  0x5a   : > { %3032 = vmatprep.subr.bf16.mxu0 %v5134_v24  ;;  %v6137_v23 = vld [vmem:[%s5837_s14 + $0x8] ss:$56 sps:$4 sm:$0xff]   ;;  %v5222_v24 = vld [vmem:[%s5837_s14 + $0x18] ss:$56 sps:$4 sm:$0xff]  }
  0x5b   : > { %2858 = vmatmul.mubr.bf16.gmra.mrb[8].mxu1 %v5986_v31 }
  0x5c   : > { %2887 = vmatpush1.bf16.msra.mxu1 %v5129_v26  ;;  %3004 = vmatmul.mubr.bf16.gmra.mrb[8].mxu0 %v5194_v37  ;;  %v5225_v26 = vld [vmem:[%s7242_s1 + $0x600] ss:$12 sps:$4 sm:$0xff]   ;;  %v5241_v37 = vld [vmem:[%s7242_s1 + $0xf8] ss:$12 sps:$4 sm:$0xff]  }
  0x5d   : > { %3033 = vmatpush1.bf16.msra.mxu0 %v5132_v27  ;;  %2888 = vmatprep.subr.bf16.mxu1 %v5137_v28  ;;  %v5229_v27 = vld [vmem:[%s7242_s1 + $0x8] ss:$12 sps:$4 sm:$0xff]  }
  0x5e   : > { %3034 = vmatprep.subr.bf16.mxu0 %v5140_v29  ;;  %2867 = vmatprep.mubr.bf16.mxu1 %v6017_v42  ;;  %v5232_v28 = vld [vmem:[%s7242_s1 + $0x61c] ss:$12 sps:$4 sm:$0xff]   ;;  %v5233_v29 = vld [vmem:[%s7242_s1 + $0xe0] ss:$12 sps:$4 sm:$0xff]  }
  0x5f   : > { %3013 = vmatprep.mubr.bf16.mxu0 %v5207_v46  ;;  %v5243_v46 = vld [vmem:[%s7242_s1 + $0x648] ss:$12 sps:$4 sm:$0xff]  }
  0x60   : > { %2889 = vmatpush1.bf16.msra.mxu1 %v5135_v32  ;;  %v6156_v32 = vld [vmem:[%s5837_s14 + $0x7c] ss:$56 sps:$4 sm:$0xff]  }
  0x61   : > { %3035 = vmatpush1.bf16.msra.mxu0 %v5138_v33  ;;  %2890 = vmatprep.subr.bf16.mxu1 %v5143_v35  ;;  %v5230_v33 = vld [vmem:[%s7242_s1 + $0x618] ss:$12 sps:$4 sm:$0xff]  }
  0x62   : > { %3036 = vmatprep.subr.bf16.mxu0 %v5146_v36  ;;  %v6166_v35 = vld [vmem:[%s5837_s14 + $0x78] ss:$56 sps:$4 sm:$0xff]   ;;  %v5240_v36 = vld [vmem:[%s7242_s1 + $0x634] ss:$12 sps:$4 sm:$0xff]  }
  0x63   : > { %2868 = vmatmul.mubr.bf16.gmra.mrb[12].mxu1 %v6020_v43 }
  0x64   : > { %2891 = vmatpush1.bf16.msra.mxu1 %v5141_v38  ;;  %3014 = vmatmul.mubr.bf16.gmra.mrb[12].mxu0 %v5212_v50  ;;  %v5238_v38 = vld [vmem:[%s7242_s1 + $0x630] ss:$12 sps:$4 sm:$0xff]   ;;  %v6200_v50 = vld [vmem:[%s5837_s14 + $0xe8] ss:$56 sps:$4 sm:$0xff]  }
  0x65   : > { %3037 = vmatpush1.bf16.msra.mxu0 %v5144_v39  ;;  %2892 = vmatprep.subr.bf16.mxu1 %v5149_v40  ;;  %v5242_v39 = vld [vmem:[%s7242_s1 + $0x38] ss:$12 sps:$4 sm:$0xff]  }
  0x66   : > { %3038 = vmatprep.subr.bf16.mxu0 %v5152_v41  ;;  %2910 = vmatprep.mubr.bf16.mxu1 %v6051_v55  ;;  %v5245_v40 = vld [vmem:[%s7242_s1 + $0x64c] ss:$12 sps:$4 sm:$0xff]  }
  0x67   : > { %3056 = vmatprep.mubr.bf16.mxu0 %v5224_v56  ;;  %v5284_v41 = vld [vmem:[%s5837_s14 + $0x8c] ss:$56 sps:$4 sm:$0xff]   ;;  %v5258_v56 = vld [vmem:[%s7242_s1 + $0x67c] ss:$12 sps:$4 sm:$0xff]  }
  0x68   : > { %2893 = vmatpush1.bf16.msra.mxu1 %v5147_v44  ;;  %v5246_v44 = vld [vmem:[%s7242_s1 + $0x110] ss:$12 sps:$4 sm:$0xff]  }
  0x69   : > { %3039 = vmatpush1.bf16.msra.mxu0 %v5150_v45  ;;  %2894 = vmatprep.subr.bf16.mxu1 %v5155_v47  ;;  %v6189_v45 = vld [vmem:[%s5837_s14 + $0xec] ss:$56 sps:$4 sm:$0xff]   ;;  %v5290_v47 = vld [vmem:[%s5837_s14 + $0x88] ss:$56 sps:$4 sm:$0xff]  }
  0x6a   : > { %3040 = vmatprep.subr.bf16.mxu0 %v5158_v49  ;;  %v5247_v49 = vld [vmem:[%s7242_s1 + $0x50] ss:$12 sps:$4 sm:$0xff]  }
  0x6c   : > { %2895 = vmatpush1.bf16.msra.mxu1 %v5153_v51  ;;  %v5253_v51 = vld [vmem:[%s7242_s1 + $0x664] ss:$12 sps:$4 sm:$0xff]  }
  0x6d   : > { %3041 = vmatpush1.bf16.msra.mxu0 %v5156_v52  ;;  %2896 = vmatprep.subr.bf16.mxu1 %v5161_v53  ;;  %v5254_v52 = vld [vmem:[%s7242_s1 + $0x128] ss:$12 sps:$4 sm:$0xff]   ;;  %v5251_v53 = vld [vmem:[%s7242_s1 + $0x660] ss:$12 sps:$4 sm:$0xff]  }
  0x6e   : > { %3042 = vmatprep.subr.bf16.mxu0 %v5164_v54  ;;  %v5255_v54 = vld [vmem:[%s7242_s1 + $0x68] ss:$12 sps:$4 sm:$0xff]  }
  0x70   : > { %2897 = vmatpush1.bf16.msra.mxu1 %v5159_v57  ;;  %v5297_v57 = vld [vmem:[%s5837_s14 + $0xfc] ss:$56 sps:$4 sm:$0xff]  }
  0x71   : > { %3043 = vmatpush1.bf16.msra.mxu0 %v5162_v58  ;;  %2898 = vmatprep.subr.bf16.mxu1 %v5170_v59  ;;  %v5259_v58 = vld [vmem:[%s7242_s1 + $0x140] ss:$12 sps:$4 sm:$0xff]   ;;  %v6223_v59 = vld [vmem:[%s5837_s14 + $0x15c] ss:$56 sps:$4 sm:$0xff]  }
  0x72   : > { %3044 = vmatprep.subr.bf16.mxu0 %v5175_v60  ;;  %v5256_v60 = vld [vmem:[%s7242_s1 + $0x678] ss:$12 sps:$4 sm:$0xff]  }
  0x74   : > { %2899 = vmatpush1.bf16.msra.mxu1 %v5168_v61  ;;  %v5303_v61 = vld [vmem:[%s5837_s14 + $0xf8] ss:$56 sps:$4 sm:$0xff]  }
  0x75   : > { %3045 = vmatpush1.bf16.msra.mxu0 %v5173_v62  ;;  %2900 = vmatprep.subr.bf16.mxu1 %v5179_v63  ;;  %v5260_v62 = vld [vmem:[%s7242_s1 + $0x80] ss:$12 sps:$4 sm:$0xff]   ;;  %v6234_v63 = vld [vmem:[%s5837_s14 + $0x158] ss:$56 sps:$4 sm:$0xff]  }
  0x76   : > { %3046 = vmatprep.subr.bf16.mxu0 %v5182_v0  ;;  %v5266_v0 = vld [vmem:[%s7242_s1 + $0x694] ss:$12 sps:$4 sm:$0xff]  }
  0x78   : > { %2901 = vmatpush1.bf16.msra.mxu1 %v5177_v1  ;;  %v5267_v1 = vld [vmem:[%s7242_s1 + $0x158] ss:$12 sps:$4 sm:$0xff]  }
  0x79   : > { %3047 = vmatpush1.bf16.msra.mxu0 %v5180_v2  ;;  %2902 = vmatprep.subr.bf16.mxu1 %v5188_v3  ;;  %v5264_v2 = vld [vmem:[%s7242_s1 + $0x690] ss:$12 sps:$4 sm:$0xff]   ;;  %v5268_v3 = vld [vmem:[%s7242_s1 + $0x98] ss:$12 sps:$4 sm:$0xff]  }
  0x7a   : > { %3048 = vmatprep.subr.bf16.mxu0 %v5193_v5  ;;  %v5271_v5 = vld [vmem:[%s7242_s1 + $0x6ac] ss:$12 sps:$4 sm:$0xff]  }
  0x7c   : > { %2903 = vmatpush1.bf16.msra.mxu1 %v5186_v6  ;;  %v5310_v6 = vld [vmem:[%s5837_s14 + $0x16c] ss:$56 sps:$4 sm:$0xff]  }
  0x7d   : > { %3049 = vmatpush1.bf16.msra.mxu0 %v5191_v7  ;;  %2904 = vmatprep.subr.bf16.mxu1 %v5197_v8  ;;  %v5272_v7 = vld [vmem:[%s7242_s1 + $0x170] ss:$12 sps:$4 sm:$0xff]   ;;  %v5269_v8 = vld [vmem:[%s7242_s1 + $0x6a8] ss:$12 sps:$4 sm:$0xff]  }
  0x7e   : > { %3050 = vmatprep.subr.bf16.mxu0 %v5200_v9  ;;  %v5316_v9 = vld [vmem:[%s5837_s14 + $0x168] ss:$56 sps:$4 sm:$0xff]  }
  0x80   : > { %2905 = vmatpush1.bf16.msra.mxu1 %v5195_v10  ;;  %v5273_v10 = vld [vmem:[%s7242_s1 + $0xb0] ss:$12 sps:$4 sm:$0xff]  }
  0x81   : > { %3051 = vmatpush1.bf16.msra.mxu0 %v5198_v11  ;;  %2906 = vmatprep.subr.bf16.mxu1 %v5206_v12  ;;  %v5276_v11 = vld [vmem:[%s7242_s1 + $0x6c4] ss:$12 sps:$4 sm:$0xff]   ;;  %v5277_v12 = vld [vmem:[%s7242_s1 + $0x248] ss:$12 sps:$4 sm:$0xff]  }
  0x82   : > { %3052 = vmatprep.subr.bf16.mxu0 %v5211_v13  ;;  %v5274_v13 = vld [vmem:[%s7242_s1 + $0x6c0] ss:$12 sps:$4 sm:$0xff]  }
  0x84   : > { %2907 = vmatpush1.bf16.msra.mxu1 %v5204_v14  ;;  %v5278_v14 = vld [vmem:[%s7242_s1 + $0x188] ss:$12 sps:$4 sm:$0xff]  }
  0x85   : > { %3053 = vmatpush1.bf16.msra.mxu0 %v5209_v15  ;;  %2908 = vmatprep.subr.bf16.mxu1 %v5215_v16  ;;  %v5281_v15 = vld [vmem:[%s7242_s1 + $0x6dc] ss:$12 sps:$4 sm:$0xff]   ;;  %v5282_v16 = vld [vmem:[%s7242_s1 + $0x260] ss:$12 sps:$4 sm:$0xff]  }
  0x86   : > { %3054 = vmatprep.subr.bf16.mxu0 %v5218_v17  ;;  %v5279_v17 = vld [vmem:[%s7242_s1 + $0x6d8] ss:$12 sps:$4 sm:$0xff]  }
  0x88   : > { %2909 = vmatpush1.bf16.msra.mxu1 %v5213_v20  ;;  %v5283_v20 = vld [vmem:[%s7242_s1 + $0x1a0] ss:$12 sps:$4 sm:$0xff]  }
  0x89   : > { %3055 = vmatpush1.bf16.msra.mxu0 %v5216_v21  ;;  %4520 = vmatprep.subr.bf16.mxu1 %v5228_v25  ;;  %v5288_v21 = vld [vmem:[%s7242_s1 + $0x6f4] ss:$12 sps:$4 sm:$0xff]   ;;  %v5294_v25 = vld [vmem:[%s7242_s1 + $0x70c] ss:$12 sps:$4 sm:$0xff]  }
  0x8a   : > { %3097 = vmatprep.subr.bf16.mxu0 %v5227_v22  ;;  %v5286_v22 = vld [vmem:[%s7242_s1 + $0x6f0] ss:$12 sps:$4 sm:$0xff]  }
  0x8b   : > { %2911 = vmatmul.mubr.bf16.vlgmr.msra.gmra.mrb[0].mxu1 %v6137_v23 }
  0x8c   : > { %3057 = vmatmul.mubr.bf16.vlgmr.msra.gmra.mrb[0].mxu0 %v5222_v24  ;;  %4521 = vmatpush3.bf16.msra.mxu1 %v5229_v27  ;;  %v5291_v24 = vld [vmem:[%s7242_s1 + $0x1b8] ss:$12 sps:$4 sm:$0xff]   ;;  %v5296_v27 = vld [vmem:[%s7242_s1 + $0x1d0] ss:$12 sps:$4 sm:$0xff]  }
  0x8d   : > { %3098 = vmatpush1.bf16.msra.mxu0 %v5225_v26  ;;  %4522 = vmatprep.subr.bf16.mxu1 %v5233_v29  ;;  %v5292_v26 = vld [vmem:[%s7242_s1 + $0x708] ss:$12 sps:$4 sm:$0xff]   ;;  %v5299_v29 = vld [vmem:[%s7242_s1 + $0x720] ss:$12 sps:$4 sm:$0xff]  }
  0x8e   : > { %3099 = vmatprep.subr.bf16.mxu0 %v5232_v28  ;;  %2920 = vmatprep.mubr.bf16.mxu1 %v6156_v32  ;;  %v5301_v28 = vld [vmem:[%s7242_s1 + $0x724] ss:$12 sps:$4 sm:$0xff]  }
  0x8f   : > { %3066 = vmatprep.mubr.bf16.mxu0 %v5284_v41  ;;  %v5320_v41 = vld [vmem:[%s7242_s1 + $0x76c] ss:$12 sps:$4 sm:$0xff]  }
  0x90   : > { %4523 = vmatpush3.bf16.msra.mxu1 %v5234_v34  ;;  %v5307_v34 = vld [vmem:[%s7242_s1 + $0x73c] ss:$12 sps:$4 sm:$0xff]  }
  0x91   : > { %3100 = vmatpush1.bf16.msra.mxu0 %v5230_v33  ;;  %4524 = vmatprep.subr.bf16.mxu1 %v5241_v37  ;;  %v5304_v33 = vld [vmem:[%s7242_s1 + $0x1e8] ss:$12 sps:$4 sm:$0xff]   ;;  %v5309_v37 = vld [vmem:[%s7242_s1 + $0x200] ss:$12 sps:$4 sm:$0xff]  }
  0x92   : > { %3101 = vmatprep.subr.bf16.mxu0 %v5240_v36  ;;  %v5305_v36 = vld [vmem:[%s7242_s1 + $0x738] ss:$12 sps:$4 sm:$0xff]  }
  0x93   : > { %2921 = vmatmul.mubr.bf16.gmra.mrb[4].mxu1 %v6166_v35 }
  0x94   : > { %4525 = vmatpush3.bf16.msra.mxu1 %v5242_v39  ;;  %2930 = vmatprep.mubr.bf16.mxu1 %v6189_v45  ;;  %v5315_v39 = vld [vmem:[%s7242_s1 + $0x2d8] ss:$12 sps:$4 sm:$0xff]  }
  0x95   : > { %3102 = vmatpush1.bf16.msra.mxu0 %v5238_v38  ;;  %4526 = vmatprep.subr.bf16.mxu1 %v5246_v44  ;;  %v5314_v38 = vld [vmem:[%s7242_s1 + $0x754] ss:$12 sps:$4 sm:$0xff]  }
  0x96   : > { %3103 = vmatprep.subr.bf16.mxu0 %v5245_v40  ;;  %3067 = vmatmul.mubr.bf16.gmra.mrb[4].mxu0 %v5290_v47  ;;  %v5317_v40 = vld [vmem:[%s7242_s1 + $0x218] ss:$12 sps:$4 sm:$0xff]   ;;  %v5318_v44 = vld [vmem:[%s7242_s1 + $0x768] ss:$12 sps:$4 sm:$0xff]  }
  0x97   : > { %3076 = vmatprep.mubr.bf16.mxu0 %v5297_v57  ;;  %v5328_v47 = vld [vmem:[%s7242_s1 + $0x784] ss:$12 sps:$4 sm:$0xff]   ;;  %v5335_v57 = vld [vmem:[%s7242_s1 + $0x320] ss:$12 sps:$4 sm:$0xff]  }
  0x98   : > { %4527 = vmatpush3.bf16.msra.mxu1 %v5247_v49  ;;  %v5329_v49 = vld [vmem:[%s7242_s1 + $0x3c8] ss:$12 sps:$4 sm:$0xff]  }
  0x99   : > { %3104 = vmatpush1.bf16.msra.mxu0 %v5243_v46  ;;  %4528 = vmatprep.subr.bf16.mxu1 %v5254_v52  ;;  %v5322_v46 = vld [vmem:[%s7242_s1 + $0x230] ss:$12 sps:$4 sm:$0xff]   ;;  %v5330_v52 = vld [vmem:[%s7242_s1 + $0x308] ss:$12 sps:$4 sm:$0xff]  }
  0x9a   : > { %3105 = vmatprep.subr.bf16.mxu0 %v5253_v51  ;;  %v5326_v51 = vld [vmem:[%s7242_s1 + $0x780] ss:$12 sps:$4 sm:$0xff]  }
  0x9b   : > { %2931 = vmatmul.mubr.bf16.gmra.mrb[8].mxu1 %v6200_v50 }
  0x9c   : > { %4529 = vmatpush3.bf16.msra.mxu1 %v5255_v54  ;;  %2940 = vmatprep.mubr.bf16.mxu1 %v6223_v59  ;;  %v5331_v54 = vld [vmem:[%s7242_s1 + $0x798] ss:$12 sps:$4 sm:$0xff]  }
  0x9d   : > { %3106 = vmatpush1.bf16.msra.mxu0 %v5251_v53  ;;  %4530 = vmatprep.subr.bf16.mxu1 %v5259_v58  ;;  %v5333_v53 = vld [vmem:[%s7242_s1 + $0x79c] ss:$12 sps:$4 sm:$0xff]   ;;  %v5338_v58 = vld [vmem:[%s7242_s1 + $0x7b4] ss:$12 sps:$4 sm:$0xff]  }
  0x9e   : > { %3107 = vmatprep.subr.bf16.mxu0 %v5258_v56  ;;  %3077 = vmatmul.mubr.bf16.gmra.mrb[8].mxu0 %v5303_v61  ;;  %v6397_v56 = vld [vmem:[%s5837_s14 + $0x94] ss:$56 sps:$4 sm:$0xff]   ;;  %v6414_v61 = vld [vmem:[%s5837_s14 + $0x90] ss:$56 sps:$4 sm:$0xff]  }
  0x9f   : > { %3086 = vmatprep.mubr.bf16.mxu0 %v5310_v6  ;;  %v5346_v6 = vld [vmem:[%s7242_s1 + $0x7e0] ss:$12 sps:$4 sm:$0xff]  }
  0xa0   : > { %4531 = vmatpush3.bf16.msra.mxu1 %v5260_v62  ;;  %v5340_v62 = vld [vmem:[%s7242_s1 + $0x338] ss:$12 sps:$4 sm:$0xff]  }
  0xa1   : > { %3108 = vmatpush1.bf16.msra.mxu0 %v5256_v60  ;;  %4532 = vmatprep.subr.bf16.mxu1 %v5267_v1  ;;  %v5336_v60 = vld [vmem:[%s7242_s1 + $0x7b0] ss:$12 sps:$4 sm:$0xff]   ;;  %v5341_v1 = vld [vmem:[%s7242_s1 + $0x7c8] ss:$12 sps:$4 sm:$0xff]  }
  0xa2   : > { %3109 = vmatprep.subr.bf16.mxu0 %v5266_v0  ;;  %v5343_v0 = vld [vmem:[%s7242_s1 + $0x7cc] ss:$12 sps:$4 sm:$0xff]  }
  0xa3   : > { %2941 = vmatmul.mubr.bf16.gmra.mrb[12].mxu1 %v6234_v63 }
  0xa4   : > { %4533 = vmatpush3.bf16.msra.mxu1 %v5268_v3  ;;  %3348 = vmatprep.mubr.bf16.mxu1 %v5849_v48  ;;  %v5325_v48 = vld [vmem:[%s5837_s14 + $0x24] ss:$56 sps:$4 sm:$0xff]  }
  0xa5   : > { %3110 = vmatpush1.bf16.msra.mxu0 %v5264_v2  ;;  %4534 = vmatprep.subr.bf16.mxu1 %v5272_v7  ;;  %v6431_v2 = vld [vmem:[%s5837_s14 + $0x104] ss:$56 sps:$4 sm:$0xff]   ;;  %v6448_v7 = vld [vmem:[%s5837_s14 + $0x100] ss:$56 sps:$4 sm:$0xff]  }
  0xa6   : > { %3111 = vmatprep.subr.bf16.mxu0 %v5271_v5  ;;  %3087 = vmatmul.mubr.bf16.gmra.mrb[12].mxu0 %v5316_v9  ;;  %v5345_v3 = vld [vmem:[%s7242_s1 + $0x350] ss:$12 sps:$4 sm:$0xff]  }
  0xa7   : > { %3129 = vmatprep.mubr.bf16.mxu0 %v5325_v48  ;;  %v5348_v5 = vld [vmem:[%s7242_s1 + $0x7e4] ss:$12 sps:$4 sm:$0xff]   ;;  %v5353_v9 = vld [vmem:[%s7242_s1 + $0x7fc] ss:$12 sps:$4 sm:$0xff]   ;;  %v5363_v48 = vld [vmem:[%s7242_s1 + $0x82c] ss:$12 sps:$4 sm:$0xff]  }
  0xa8   : > { %4535 = vmatpush3.bf16.msra.mxu1 %v5273_v10  ;;  %v5351_v10 = vld [vmem:[%s7242_s1 + $0x7f8] ss:$12 sps:$4 sm:$0xff]  }
  0xa9   : > { %3112 = vmatpush1.bf16.msra.mxu0 %v5269_v8  ;;  %4560 = vmatprep.subr.bf16.mxu1 %v5277_v12  ;;  %v5350_v8 = vld [vmem:[%s7242_s1 + $0x368] ss:$12 sps:$4 sm:$0xff]   ;;  %v5355_v12 = vld [vmem:[%s7242_s1 + $0x380] ss:$12 sps:$4 sm:$0xff]  }
  0xaa   : > { %3113 = vmatprep.subr.bf16.mxu0 %v5276_v11  ;;  %v6465_v11 = vld [vmem:[%s5837_s14 + $0x174] ss:$56 sps:$4 sm:$0xff]  }
  0xab   : > { %3349 = vmatmul.mubr.bf16.vlgmr.msra.gmra.mrb[16].mxu1 %v5908_v4  ;;  %v5289_v4 = vld [vmem:[%s7242_s1 + $0x278] ss:$12 sps:$4 sm:$0xff]  }
  0xac   : > { %4561 = vmatpush3.bf16.msra.mxu1 %v5278_v14  ;;  %3356 = vmatprep.mubr.bf16.mxu1 %v5949_v18  ;;  %v5295_v18 = vld [vmem:[%s7242_s1 + $0x290] ss:$12 sps:$4 sm:$0xff]  }
  0xad   : > { %3114 = vmatpush1.bf16.msra.mxu0 %v5274_v13  ;;  %4562 = vmatprep.subr.bf16.mxu1 %v5282_v16  ;;  %v5358_v13 = vld [vmem:[%s7242_s1 + $0x814] ss:$12 sps:$4 sm:$0xff]   ;;  %v5356_v14 = vld [vmem:[%s7242_s1 + $0x810] ss:$12 sps:$4 sm:$0xff]   ;;  %v5360_v16 = vld [vmem:[%s7242_s1 + $0x398] ss:$12 sps:$4 sm:$0xff]  }
  0xae   : > { %3115 = vmatprep.subr.bf16.mxu0 %v5281_v15  ;;  %v6482_v15 = vld [vmem:[%s5837_s14 + $0x170] ss:$56 sps:$4 sm:$0xff]  }
  0xb0   : > { %4563 = vmatpush3.bf16.msra.mxu1 %v5283_v20  ;;  %v5365_v20 = vld [vmem:[%s7242_s1 + $0x3b0] ss:$12 sps:$4 sm:$0xff]  }
  0xb1   : > { %3116 = vmatpush1.bf16.msra.mxu0 %v5279_v17  ;;  %4564 = vmatprep.subr.bf16.mxu1 %v5289_v4  ;;  %v5361_v17 = vld [vmem:[%s7242_s1 + $0x828] ss:$12 sps:$4 sm:$0xff]   ;;  %v5368_v4 = vld [vmem:[%s7242_s1 + $0x844] ss:$12 sps:$4 sm:$0xff]  }
  0xb2   : > { %3117 = vmatprep.subr.bf16.mxu0 %v5288_v21  ;;  %v6502_v21 = vld [vmem:[%s5837_s14 + $0x2c] ss:$56 sps:$4 sm:$0xff]  }
  0xb3   : > { %3357 = vmatmul.mubr.bf16.gmra.mrb[20].mxu1 %v5952_v19  ;;  %v5302_v19 = vld [vmem:[%s7242_s1 + $0x2a8] ss:$12 sps:$4 sm:$0xff]  }
  0xb4   : > { %4565 = vmatpush3.bf16.msra.mxu1 %v5291_v24  ;;  %3364 = vmatprep.mubr.bf16.mxu1 %v5983_v30  ;;  %v5308_v30 = vld [vmem:[%s7242_s1 + $0x2c0] ss:$12 sps:$4 sm:$0xff]  }
  0xb5   : > { %3118 = vmatpush1.bf16.msra.mxu0 %v5286_v22  ;;  %4566 = vmatprep.subr.bf16.mxu1 %v5295_v18  ;;  %v5535_v22 = vld [vmem:[%s5837_s14 + $0x14] ss:$56 sps:$4 sm:$0xff]   ;;  %v5373_v18 = vld [vmem:[%s7242_s1 + $0x85c] ss:$12 sps:$4 sm:$0xff]  }
  0xb6   : > { %3119 = vmatprep.subr.bf16.mxu0 %v5294_v25  ;;  %v5366_v24 = vld [vmem:[%s7242_s1 + $0x840] ss:$12 sps:$4 sm:$0xff]   ;;  %v5370_v25 = vld [vmem:[%s7242_s1 + $0x488] ss:$12 sps:$4 sm:$0xff]  }
  0xb8   : > { %4567 = vmatpush3.bf16.msra.mxu1 %v5296_v27  ;;  %v5536_v27 = vld [vmem:[%s5837_s14 + $0x10] ss:$56 sps:$4 sm:$0xff]  }
  0xb9   : > { %3120 = vmatpush1.bf16.msra.mxu0 %v5292_v26  ;;  %4568 = vmatprep.subr.bf16.mxu1 %v5302_v19  ;;  %v5374_v26 = vld [vmem:[%s7242_s1 + $0x560] ss:$12 sps:$4 sm:$0xff]  }
  0xba   : > { %3121 = vmatprep.subr.bf16.mxu0 %v5301_v28  ;;  %v5371_v28 = vld [vmem:[%s7242_s1 + $0x858] ss:$12 sps:$4 sm:$0xff]   ;;  %v5375_v19 = vld [vmem:[%s7242_s1 + $0x4a0] ss:$12 sps:$4 sm:$0xff]  }
  0xbb   : > { %3365 = vmatmul.mubr.bf16.gmra.mrb[24].mxu1 %v5986_v31  ;;  %v5312_v31 = vld [vmem:[%s7242_s1 + $0x750] ss:$12 sps:$4 sm:$0xff]  }
  0xbc   : > { %4569 = vmatpush3.bf16.msra.mxu1 %v5304_v33  ;;  %3372 = vmatprep.mubr.bf16.mxu1 %v6017_v42  ;;  %v5321_v42 = vld [vmem:[%s7242_s1 + $0x2f0] ss:$12 sps:$4 sm:$0xff]   ;;  %v5381_v33 = vld [vmem:[%s7242_s1 + $0x578] ss:$12 sps:$4 sm:$0xff]  }
  0xbd   : > { %3122 = vmatpush1.bf16.msra.mxu0 %v5299_v29  ;;  %4570 = vmatprep.subr.bf16.mxu1 %v5308_v30  ;;  %v5380_v29 = vld [vmem:[%s7242_s1 + $0x874] ss:$12 sps:$4 sm:$0xff]   ;;  %v5378_v30 = vld [vmem:[%s7242_s1 + $0x870] ss:$12 sps:$4 sm:$0xff]  }
  0xbe   : > { %3123 = vmatprep.subr.bf16.mxu0 %v5307_v34  ;;  %v5537_v34 = vld [vmem:[%s5837_s14 + $0x84] ss:$56 sps:$4 sm:$0xff]  }
  0xc0   : > { %4571 = vmatpush3.bf16.msra.mxu1 %v5309_v37  ;;  %v5386_v37 = vld [vmem:[%s7242_s1 + $0x88c] ss:$12 sps:$4 sm:$0xff]  }
  0xc1   : > { %3124 = vmatpush1.bf16.msra.mxu0 %v5305_v36  ;;  %4572 = vmatprep.subr.bf16.mxu1 %v5315_v39  ;;  %v5383_v36 = vld [vmem:[%s7242_s1 + $0x4b8] ss:$12 sps:$4 sm:$0xff]  }
  0xc2   : > { %3125 = vmatprep.subr.bf16.mxu0 %v5314_v38  ;;  %v5387_v38 = vld [vmem:[%s7242_s1 + $0x590] ss:$12 sps:$4 sm:$0xff]   ;;  %v5538_v39 = vld [vmem:[%s5837_s14 + $0x80] ss:$56 sps:$4 sm:$0xff]  }
  0xc3   : > { %3373 = vmatmul.mubr.bf16.gmra.mrb[28].mxu1 %v6020_v43  ;;  %v6377_v43 = vld [vmem:[%s5837_s14 + $0x20] ss:$56 sps:$4 sm:$0xff]  }
  0xc4   : > { %4573 = vmatpush3.bf16.msra.mxu1 %v5317_v40  ;;  %3413 = vmatprep.mubr.bf16.mxu1 %v6051_v55  ;;  %v5334_v55 = vld [vmem:[%s7242_s1 + $0x3e0] ss:$12 sps:$4 sm:$0xff]   ;;  %v5388_v40 = vld [vmem:[%s7242_s1 + $0x4d0] ss:$12 sps:$4 sm:$0xff]  }
  0xc5   : > { %3126 = vmatpush1.bf16.msra.mxu0 %v5312_v31  ;;  %4574 = vmatprep.subr.bf16.mxu1 %v5321_v42  ;;  %v5384_v31 = vld [vmem:[%s7242_s1 + $0x888] ss:$12 sps:$4 sm:$0xff]  }
  0xc6   : > { %3127 = vmatprep.subr.bf16.mxu0 %v5320_v41  ;;  %v5393_v41 = vld [vmem:[%s7242_s1 + $0x8a4] ss:$12 sps:$4 sm:$0xff]   ;;  %v5394_v42 = vld [vmem:[%s7242_s1 + $0x5a8] ss:$12 sps:$4 sm:$0xff]  }
  0xc8   : > { %4575 = vmatpush3.bf16.msra.mxu1 %v5322_v46  ;;  %v5391_v46 = vld [vmem:[%s7242_s1 + $0x8a0] ss:$12 sps:$4 sm:$0xff]  }
  0xc9   : > { %3128 = vmatpush1.bf16.msra.mxu0 %v5318_v44  ;;  %4600 = vmatprep.subr.bf16.mxu1 %v5329_v49  ;;  %v5539_v44 = vld [vmem:[%s5837_s14 + $0xf4] ss:$56 sps:$4 sm:$0xff]   ;;  %v5399_v49 = vld [vmem:[%s7242_s1 + $0x8bc] ss:$12 sps:$4 sm:$0xff]  }
  0xca   : > { %3170 = vmatprep.subr.bf16.mxu0 %v5328_v47  ;;  %v5396_v47 = vld [vmem:[%s7242_s1 + $0x4e8] ss:$12 sps:$4 sm:$0xff]  }
  0xcb   : > { %3414 = vmatmul.mubr.bf16.vlgmr.msra.gmra.mrb[32].mxu1 %v6137_v23  ;;  %v5339_v23 = vld [vmem:[%s7242_s1 + $0x3f8] ss:$12 sps:$4 sm:$0xff]  }
  0xcc   : > { %3130 = vmatmul.mubr.bf16.vlgmr.msra.gmra.mrb[0].mxu0 %v6377_v43  ;;  %4601 = vmatpush3.bf16.msra.mxu1 %v5330_v52  ;;  %v5540_v52 = vld [vmem:[%s5837_s14 + $0xf0] ss:$56 sps:$4 sm:$0xff]  }
  0xcd   : > { %3171 = vmatpush1.bf16.msra.mxu0 %v5326_v51  ;;  %4602 = vmatprep.subr.bf16.mxu1 %v5334_v55  ;;  %v5400_v51 = vld [vmem:[%s7242_s1 + $0x5c0] ss:$12 sps:$4 sm:$0xff]  }
  0xce   : > { %3172 = vmatprep.subr.bf16.mxu0 %v5333_v53  ;;  %3421 = vmatprep.mubr.bf16.mxu1 %v6156_v32  ;;  %v5344_v32 = vld [vmem:[%s7242_s1 + $0x410] ss:$12 sps:$4 sm:$0xff]   ;;  %v5397_v53 = vld [vmem:[%s7242_s1 + $0x8b8] ss:$12 sps:$4 sm:$0xff]   ;;  %v5401_v55 = vld [vmem:[%s7242_s1 + $0x500] ss:$12 sps:$4 sm:$0xff]  }
  0xcf   : > { %3139 = vmatprep.mubr.bf16.mxu0 %v6397_v56 }
  0xd0   : > { %4603 = vmatpush3.bf16.msra.mxu1 %v5335_v57  ;;  %v5407_v57 = vld [vmem:[%s7242_s1 + $0x5d8] ss:$12 sps:$4 sm:$0xff]  }
  0xd1   : > { %3173 = vmatpush1.bf16.msra.mxu0 %v5331_v54  ;;  %4604 = vmatprep.subr.bf16.mxu1 %v5339_v23  ;;  %v5406_v54 = vld [vmem:[%s7242_s1 + $0x8d4] ss:$12 sps:$4 sm:$0xff]   ;;  %v5404_v23 = vld [vmem:[%s7242_s1 + $0x8d0] ss:$12 sps:$4 sm:$0xff]  }
  0xd2   : > { %3174 = vmatprep.subr.bf16.mxu0 %v5338_v58  ;;  %v5541_v58 = vld [vmem:[%s5837_s14 + $0x164] ss:$56 sps:$4 sm:$0xff]  }
  0xd3   : > { %3422 = vmatmul.mubr.bf16.gmra.mrb[36].mxu1 %v6166_v35  ;;  %v5349_v35 = vld [vmem:[%s7242_s1 + $0x428] ss:$12 sps:$4 sm:$0xff]  }
  0xd4   : > { %3140 = vmatmul.mubr.bf16.gmra.mrb[4].mxu0 %v6414_v61  ;;  %4605 = vmatpush3.bf16.msra.mxu1 %v5340_v62  ;;  %v5412_v62 = vld [vmem:[%s7242_s1 + $0x8ec] ss:$12 sps:$4 sm:$0xff]  }
  0xd5   : > { %3175 = vmatpush1.bf16.msra.mxu0 %v5336_v60  ;;  %4606 = vmatprep.subr.bf16.mxu1 %v5344_v32  ;;  %v5409_v60 = vld [vmem:[%s7242_s1 + $0x518] ss:$12 sps:$4 sm:$0xff]   ;;  %v5410_v32 = vld [vmem:[%s7242_s1 + $0x8e8] ss:$12 sps:$4 sm:$0xff]  }
  0xd6   : > { %3176 = vmatprep.subr.bf16.mxu0 %v5343_v0  ;;  %3429 = vmatprep.mubr.bf16.mxu1 %v6189_v45  ;;  %v5354_v45 = vld [vmem:[%s7242_s1 + $0x440] ss:$12 sps:$4 sm:$0xff]   ;;  %v5413_v0 = vld [vmem:[%s7242_s1 + $0x5f0] ss:$12 sps:$4 sm:$0xff]  }
  0xd7   : > { %3149 = vmatprep.mubr.bf16.mxu0 %v6431_v2 }
  0xd8   : > { %4607 = vmatpush3.bf16.msra.mxu1 %v5345_v3  ;;  %v5414_v3 = vld [vmem:[%s7242_s1 + $0x530] ss:$12 sps:$4 sm:$0xff]  }
  0xd9   : > { %3177 = vmatpush1.bf16.msra.mxu0 %v5341_v1  ;;  %4608 = vmatprep.subr.bf16.mxu1 %v5349_v35  ;;  %v5542_v1 = vld [vmem:[%s5837_s14 + $0x160] ss:$56 sps:$4 sm:$0xff]   ;;  %v5421_v35 = vld [vmem:[%s7242_s1 + $0x6c8] ss:$12 sps:$4 sm:$0xff]  }
  0xda   : > { %3178 = vmatprep.subr.bf16.mxu0 %v5348_v5  ;;  %v5420_v5 = vld [vmem:[%s7242_s1 + $0x904] ss:$12 sps:$4 sm:$0xff]  }
  0xdb   : > { %3430 = vmatmul.mubr.bf16.gmra.mrb[40].mxu1 %v6200_v50  ;;  %v5359_v50 = vld [vmem:[%s7242_s1 + $0x458] ss:$12 sps:$4 sm:$0xff]  }
  0xdc   : > { %3150 = vmatmul.mubr.bf16.gmra.mrb[8].mxu0 %v6448_v7  ;;  %4609 = vmatpush3.bf16.msra.mxu1 %v5350_v8  ;;  %v6617_v8 = vld [vmem:[%s5837_s14 + $0x28] ss:$56 sps:$4 sm:$0xff]  }
  0xdd   : > { %3179 = vmatpush1.bf16.msra.mxu0 %v5346_v6  ;;  %4610 = vmatprep.subr.bf16.mxu1 %v5354_v45  ;;  %v5543_v6 = vld [vmem:[%s5837_s14 + $0x1c] ss:$56 sps:$4 sm:$0xff]  }
  0xde   : > { %3180 = vmatprep.subr.bf16.mxu0 %v5353_v9  ;;  %3437 = vmatprep.mubr.bf16.mxu1 %v6223_v59  ;;  %v5364_v59 = vld [vmem:[%s7242_s1 + $0x470] ss:$12 sps:$4 sm:$0xff]   ;;  %v5418_v9 = vld [vmem:[%s7242_s1 + $0x900] ss:$12 sps:$4 sm:$0xff]   ;;  %v5422_v45 = vld [vmem:[%s7242_s1 + $0x608] ss:$12 sps:$4 sm:$0xff]  }
  0xdf   : > { %3159 = vmatprep.mubr.bf16.mxu0 %v6465_v11 }
  0xe0   : > { %4611 = vmatpush3.bf16.msra.mxu1 %v5355_v12  ;;  %v5426_v12 = vld [vmem:[%s7242_s1 + $0x6e0] ss:$12 sps:$4 sm:$0xff]  }
  0xe1   : > { %3181 = vmatpush1.bf16.msra.mxu0 %v5351_v10  ;;  %4612 = vmatprep.subr.bf16.mxu1 %v5359_v50  ;;  %v5425_v10 = vld [vmem:[%s7242_s1 + $0x91c] ss:$12 sps:$4 sm:$0xff]  }
  0xe2   : > { %3182 = vmatprep.subr.bf16.mxu0 %v5358_v13  ;;  %v5423_v13 = vld [vmem:[%s7242_s1 + $0x918] ss:$12 sps:$4 sm:$0xff]   ;;  %v6635_v50 = vld [vmem:[%s5837_s14 + $0x9c] ss:$56 sps:$4 sm:$0xff]  }
  0xe3   : > { %3438 = vmatmul.mubr.bf16.gmra.mrb[44].mxu1 %v6234_v63  ;;  %v5369_v63 = vld [vmem:[%s7242_s1 + $0x548] ss:$12 sps:$4 sm:$0xff]  }
  0xe4   : > { %3160 = vmatmul.mubr.bf16.gmra.mrb[12].mxu0 %v6482_v15  ;;  %4613 = vmatpush3.bf16.msra.mxu1 %v5360_v16  ;;  %v5427_v16 = vld [vmem:[%s7242_s1 + $0x620] ss:$12 sps:$4 sm:$0xff]  }
  0xe5   : > { %3183 = vmatpush1.bf16.msra.mxu0 %v5356_v14  ;;  %4614 = vmatprep.subr.bf16.mxu1 %v5364_v59  ;;  %v5544_v14 = vld [vmem:[%s5837_s14 + $0x18] ss:$56 sps:$4 sm:$0xff]  }
  0xe6   : > { %3184 = vmatprep.subr.bf16.mxu0 %v5363_v48  ;;  %3478 = vmatprep.mubr.bf16.mxu1 %v5535_v22  ;;  %v5430_v48 = vld [vmem:[%s7242_s1 + $0x934] ss:$12 sps:$4 sm:$0xff]   ;;  %v5431_v59 = vld [vmem:[%s7242_s1 + $0x6f8] ss:$12 sps:$4 sm:$0xff]  }
  0xe7   : > { %3202 = vmatprep.mubr.bf16.mxu0 %v6502_v21  ;;  %v5435_v22 = vld [vmem:[%s7242_s1 + $0x94c] ss:$12 sps:$4 sm:$0xff]  }
  0xe8   : > { %4615 = vmatpush3.bf16.msra.mxu1 %v5365_v20  ;;  %v5428_v20 = vld [vmem:[%s7242_s1 + $0x930] ss:$12 sps:$4 sm:$0xff]  }
  0xe9   : > { %3185 = vmatpush1.bf16.msra.mxu0 %v5361_v17  ;;  %4640 = vmatprep.subr.bf16.mxu1 %v5369_v63  ;;  %v5545_v17 = vld [vmem:[%s5837_s14 + $0x8c] ss:$56 sps:$4 sm:$0xff]   ;;  %v6657_v63 = vld [vmem:[%s5837_s14 + $0x98] ss:$56 sps:$4 sm:$0xff]  }
  0xea   : > { %3186 = vmatprep.subr.bf16.mxu0 %v5368_v4  ;;  %v5432_v4 = vld [vmem:[%s7242_s1 + $0x638] ss:$12 sps:$4 sm:$0xff]  }
  0xeb   : > { %3479 = vmatmul.mubr.bf16.vlgmr.msra.gmra.mrb[48].mxu1 %v5536_v27  ;;  %v5437_v27 = vld [vmem:[%s7242_s1 + $0x650] ss:$12 sps:$4 sm:$0xff]  }
  0xec   : > { %4641 = vmatpush3.bf16.msra.mxu1 %v5370_v25  ;;  %3486 = vmatprep.mubr.bf16.mxu1 %v5537_v34  ;;  %v5433_v25 = vld [vmem:[%s7242_s1 + $0x948] ss:$12 sps:$4 sm:$0xff]  }
  0xed   : > { %3187 = vmatpush1.bf16.msra.mxu0 %v5366_v24  ;;  %4642 = vmatprep.subr.bf16.mxu1 %v5374_v26  ;;  %v5436_v24 = vld [vmem:[%s7242_s1 + $0x710] ss:$12 sps:$4 sm:$0xff]   ;;  %v5546_v26 = vld [vmem:[%s5837_s14 + $0x88] ss:$56 sps:$4 sm:$0xff]  }
  0xee   : > { %3188 = vmatprep.subr.bf16.mxu0 %v5373_v18  ;;  %v6669_v18 = vld [vmem:[%s5837_s14 + $0x10c] ss:$56 sps:$4 sm:$0xff]   ;;  %v5442_v34 = vld [vmem:[%s7242_s1 + $0x668] ss:$12 sps:$4 sm:$0xff]  }
  0xf0   : > { %4643 = vmatpush3.bf16.msra.mxu1 %v5375_v19  ;;  %v5441_v19 = vld [vmem:[%s7242_s1 + $0x728] ss:$12 sps:$4 sm:$0xff]  }
  0xf1   : > { %3189 = vmatpush1.bf16.msra.mxu0 %v5371_v28  ;;  %4644 = vmatprep.subr.bf16.mxu1 %v5381_v33  ;;  %v5440_v28 = vld [vmem:[%s7242_s1 + $0x964] ss:$12 sps:$4 sm:$0xff]   ;;  %v5438_v33 = vld [vmem:[%s7242_s1 + $0x960] ss:$12 sps:$4 sm:$0xff]  }
  0xf2   : > { %3190 = vmatprep.subr.bf16.mxu0 %v5380_v29  ;;  %v5547_v29 = vld [vmem:[%s5837_s14 + $0xfc] ss:$56 sps:$4 sm:$0xff]  }
  0xf3   : > { %3487 = vmatmul.mubr.bf16.gmra.mrb[52].mxu1 %v5538_v39  ;;  %v6703_v39 = vld [vmem:[%s5837_s14 + $0x17c] ss:$56 sps:$4 sm:$0xff]  }
  0xf4   : > { %4645 = vmatpush3.bf16.msra.mxu1 %v5383_v36  ;;  %3494 = vmatprep.mubr.bf16.mxu1 %v5539_v44  ;;  %v5445_v36 = vld [vmem:[%s7242_s1 + $0x97c] ss:$12 sps:$4 sm:$0xff]   ;;  %v5549_v44 = vld [vmem:[%s5837_s14 + $0x16c] ss:$56 sps:$4 sm:$0xff]  }
  0xf5   : > { %3191 = vmatpush1.bf16.msra.mxu0 %v5378_v30  ;;  %4646 = vmatprep.subr.bf16.mxu1 %v5387_v38  ;;  %v6691_v30 = vld [vmem:[%s5837_s14 + $0x108] ss:$56 sps:$4 sm:$0xff]   ;;  %v5443_v38 = vld [vmem:[%s7242_s1 + $0x978] ss:$12 sps:$4 sm:$0xff]  }
  0xf6   : > { %3192 = vmatprep.subr.bf16.mxu0 %v5386_v37  ;;  %v5446_v37 = vld [vmem:[%s7242_s1 + $0x740] ss:$12 sps:$4 sm:$0xff]  }
  0xf8   : > { %4647 = vmatpush3.bf16.msra.mxu1 %v5388_v40  ;;  %v5447_v40 = vld [vmem:[%s7242_s1 + $0x680] ss:$12 sps:$4 sm:$0xff]  }
  0xf9   : > { %3193 = vmatpush1.bf16.msra.mxu0 %v5384_v31  ;;  %4648 = vmatprep.subr.bf16.mxu1 %v5394_v42  ;;  %v5548_v31 = vld [vmem:[%s5837_s14 + $0xf8] ss:$56 sps:$4 sm:$0xff]  }
  0xfa   : > { %3194 = vmatprep.subr.bf16.mxu0 %v5393_v41  ;;  %v5450_v41 = vld [vmem:[%s7242_s1 + $0x994] ss:$12 sps:$4 sm:$0xff]   ;;  %v5451_v42 = vld [vmem:[%s7242_s1 + $0x758] ss:$12 sps:$4 sm:$0xff]  }
  0xfb   : > { %3495 = vmatmul.mubr.bf16.gmra.mrb[56].mxu1 %v5540_v52  ;;  %v5456_v52 = vld [vmem:[%s7242_s1 + $0x770] ss:$12 sps:$4 sm:$0xff]  }
  0xfc   : > { %4649 = vmatpush3.bf16.msra.mxu1 %v5396_v47  ;;  %3502 = vmatprep.mubr.bf16.mxu1 %v5541_v58  ;;  %v5452_v47 = vld [vmem:[%s7242_s1 + $0x698] ss:$12 sps:$4 sm:$0xff]  }
  0xfd   : > { %3195 = vmatpush1.bf16.msra.mxu0 %v5391_v46  ;;  %4650 = vmatprep.subr.bf16.mxu1 %v5400_v51  ;;  %v5448_v46 = vld [vmem:[%s7242_s1 + $0x990] ss:$12 sps:$4 sm:$0xff]   ;;  %v5455_v51 = vld [vmem:[%s7242_s1 + $0x9ac] ss:$12 sps:$4 sm:$0xff]  }
  0xfe   : > { %3196 = vmatprep.subr.bf16.mxu0 %v5399_v49  ;;  %v6725_v49 = vld [vmem:[%s5837_s14 + $0x178] ss:$56 sps:$4 sm:$0xff]  }
  0xff   : > { %v5460_v58 = vld [vmem:[%s7242_s1 + $0x9c4] ss:$12 sps:$4 sm:$0xff]  }
 0x100   : > { %4651 = vmatpush3.bf16.msra.mxu1 %v5401_v55  ;;  %v5550_v55 = vld [vmem:[%s5837_s14 + $0x168] ss:$56 sps:$4 sm:$0xff]  }
 0x101   : > { %3197 = vmatpush1.bf16.msra.mxu0 %v5397_v53  ;;  %4652 = vmatprep.subr.bf16.mxu1 %v5407_v57  ;;  %v6734_v53 = vld [vmem:[%s5837_s14 + $0x34] ss:$56 sps:$4 sm:$0xff]   ;;  %v5457_v57 = vld [vmem:[%s7242_s1 + $0x6b0] ss:$12 sps:$4 sm:$0xff]  }
 0x102   : > { %3198 = vmatprep.subr.bf16.mxu0 %v5406_v54  ;;  %v5453_v54 = vld [vmem:[%s7242_s1 + $0x9a8] ss:$12 sps:$4 sm:$0xff]  }
 0x103   : > { %3503 = vmatmul.mubr.bf16.gmra.mrb[60].mxu1 %v5542_v1  ;;  %v5466_v1 = vld [vmem:[%s7242_s1 + $0x860] ss:$12 sps:$4 sm:$0xff]  }
 0x104   : > { %4653 = vmatpush3.bf16.msra.mxu1 %v5409_v60  ;;  %3543 = vmatprep.mubr.bf16.mxu1 %v5543_v6  ;;  %v5551_v60 = vld [vmem:[%s5837_s14 + $0x24] ss:$56 sps:$4 sm:$0xff]  }
 0x105   : > { %3199 = vmatpush1.bf16.msra.mxu0 %v5404_v23  ;;  %4654 = vmatprep.subr.bf16.mxu1 %v5413_v0  ;;  %v5461_v23 = vld [vmem:[%s7242_s1 + $0x848] ss:$12 sps:$4 sm:$0xff]   ;;  %v5474_v6 = vld [vmem:[%s7242_s1 + $0x878] ss:$12 sps:$4 sm:$0xff]  }
 0x106   : > { %3200 = vmatprep.subr.bf16.mxu0 %v5412_v62  ;;  %v5458_v62 = vld [vmem:[%s7242_s1 + $0x9c0] ss:$12 sps:$4 sm:$0xff]   ;;  %v5462_v0 = vld [vmem:[%s7242_s1 + $0x788] ss:$12 sps:$4 sm:$0xff]  }
 0x108   : > { %4655 = vmatpush3.bf16.msra.mxu1 %v5414_v3  ;;  %v5463_v3 = vld [vmem:[%s7242_s1 + $0x9d8] ss:$12 sps:$4 sm:$0xff]  }
 0x109   : > { %3201 = vmatpush1.bf16.msra.mxu0 %v5410_v32  ;;  %4680 = vmatprep.subr.bf16.mxu1 %v5421_v35  ;;  %v5465_v32 = vld [vmem:[%s7242_s1 + $0x9dc] ss:$12 sps:$4 sm:$0xff]   ;;  %v5473_v35 = vld [vmem:[%s7242_s1 + $0x9f4] ss:$12 sps:$4 sm:$0xff]  }
 0x10a   : > { %3243 = vmatprep.subr.bf16.mxu0 %v5420_v5  ;;  %v5467_v5 = vld [vmem:[%s7242_s1 + $0x7a0] ss:$12 sps:$4 sm:$0xff]  }
 0x10b   : > { %3544 = vmatmul.mubr.bf16.vlgmr.msra.gmra.mrb[64].mxu1 %v5544_v14  ;;  %v5484_v14 = vld [vmem:[%s7242_s1 + $0xa20] ss:$12 sps:$4 sm:$0xff]  }
 0x10c   : > { %3203 = vmatmul.mubr.bf16.vlgmr.msra.gmra.mrb[0].mxu0 %v6617_v8  ;;  %4681 = vmatpush3.bf16.msra.mxu1 %v5422_v45  ;;  %v5478_v45 = vld [vmem:[%s7242_s1 + $0xa0c] ss:$12 sps:$4 sm:$0xff]  }
 0x10d   : > { %3244 = vmatpush1.bf16.msra.mxu0 %v5418_v9  ;;  %4682 = vmatprep.subr.bf16.mxu1 %v5426_v12  ;;  %v5475_v9 = vld [vmem:[%s7242_s1 + $0x7b8] ss:$12 sps:$4 sm:$0xff]   ;;  %v5480_v12 = vld [vmem:[%s7242_s1 + $0x7d0] ss:$12 sps:$4 sm:$0xff]  }
 0x10e   : > { %3245 = vmatprep.subr.bf16.mxu0 %v5425_v10  ;;  %3551 = vmatprep.mubr.bf16.mxu1 %v5545_v17  ;;  %v5476_v10 = vld [vmem:[%s7242_s1 + $0xa08] ss:$12 sps:$4 sm:$0xff]   ;;  %v5493_v17 = vld [vmem:[%s7242_s1 + $0x800] ss:$12 sps:$4 sm:$0xff]  }
 0x10f   : > { %3212 = vmatprep.mubr.bf16.mxu0 %v6635_v50 }
 0x110   : > { %4683 = vmatpush3.bf16.msra.mxu1 %v5427_v16  ;;  %v5488_v16 = vld [vmem:[%s7242_s1 + $0x7e8] ss:$12 sps:$4 sm:$0xff]  }
 0x111   : > { %3246 = vmatpush1.bf16.msra.mxu0 %v5423_v13  ;;  %4684 = vmatprep.subr.bf16.mxu1 %v5431_v59  ;;  %v5486_v13 = vld [vmem:[%s7242_s1 + $0xa24] ss:$12 sps:$4 sm:$0xff]  }
 0x112   : > { %3247 = vmatprep.subr.bf16.mxu0 %v5430_v48  ;;  %v5491_v48 = vld [vmem:[%s7242_s1 + $0xa3c] ss:$12 sps:$4 sm:$0xff]   ;;  %v5489_v59 = vld [vmem:[%s7242_s1 + $0xa38] ss:$12 sps:$4 sm:$0xff]  }
 0x113   : > { %3552 = vmatmul.mubr.bf16.gmra.mrb[68].mxu1 %v5546_v26  ;;  %v5506_v26 = vld [vmem:[%s7242_s1 + $0x830] ss:$12 sps:$4 sm:$0xff]  }
 0x114   : > { %3213 = vmatmul.mubr.bf16.gmra.mrb[4].mxu0 %v6657_v63  ;;  %4685 = vmatpush3.bf16.msra.mxu1 %v5432_v4  ;;  %v5497_v4 = vld [vmem:[%s7242_s1 + $0xa50] ss:$12 sps:$4 sm:$0xff]  }
 0x115   : > { %3248 = vmatpush1.bf16.msra.mxu0 %v5428_v20  ;;  %4686 = vmatprep.subr.bf16.mxu1 %v5436_v24  ;;  %v5499_v20 = vld [vmem:[%s7242_s1 + $0xa54] ss:$12 sps:$4 sm:$0xff]   ;;  %v5504_v24 = vld [vmem:[%s7242_s1 + $0xa6c] ss:$12 sps:$4 sm:$0xff]  }
 0x116   : > { %3249 = vmatprep.subr.bf16.mxu0 %v5435_v22  ;;  %3559 = vmatprep.mubr.bf16.mxu1 %v5547_v29  ;;  %v5501_v22 = vld [vmem:[%s7242_s1 + $0x818] ss:$12 sps:$4 sm:$0xff]  }
 0x117   : > { %3222 = vmatprep.mubr.bf16.mxu0 %v6669_v18  ;;  %v6863_v29 = vld [vmem:[%s5837_s14 + $0xa4] ss:$56 sps:$4 sm:$0xff]  }
 0x118   : > { %4687 = vmatpush3.bf16.msra.mxu1 %v5437_v27  ;;  %v5510_v27 = vld [vmem:[%s7242_s1 + $0x9c8] ss:$12 sps:$4 sm:$0xff]  }
 0x119   : > { %3250 = vmatpush1.bf16.msra.mxu0 %v5433_v25  ;;  %4688 = vmatprep.subr.bf16.mxu1 %v5441_v19  ;;  %v5502_v25 = vld [vmem:[%s7242_s1 + $0xa68] ss:$12 sps:$4 sm:$0xff]   ;;  %v5512_v19 = vld [vmem:[%s7242_s1 + $0x9e0] ss:$12 sps:$4 sm:$0xff]  }
 0x11a   : > { %3251 = vmatprep.subr.bf16.mxu0 %v5440_v28  ;;  %v5511_v28 = vld [vmem:[%s7242_s1 + $0x908] ss:$12 sps:$4 sm:$0xff]  }
 0x11b   : > { %3560 = vmatmul.mubr.bf16.gmra.mrb[72].mxu1 %v5548_v31  ;;  %v5523_v31 = vld [vmem:[%s5837_s14 + $0x110] ss:$56 sps:$4 sm:$0xff]  }
 0x11c   : > { %3223 = vmatmul.mubr.bf16.gmra.mrb[8].mxu0 %v6691_v30  ;;  %4689 = vmatpush3.bf16.msra.mxu1 %v5442_v34  ;;  %v6876_v34 = vld [vmem:[%s5837_s14 + $0xa0] ss:$56 sps:$4 sm:$0xff]  }
 0x11d   : > { %3252 = vmatpush1.bf16.msra.mxu0 %v5438_v33  ;;  %4690 = vmatprep.subr.bf16.mxu1 %v5446_v37  ;;  %v5517_v33 = vld [vmem:[%s7242_s1 + $0x9f8] ss:$12 sps:$4 sm:$0xff]   ;;  %v5521_v37 = vld [vmem:[%s5837_s14 + $0x114] ss:$56 sps:$4 sm:$0xff]  }
 0x11e   : > { %3253 = vmatprep.subr.bf16.mxu0 %v5445_v36  ;;  %3567 = vmatprep.mubr.bf16.mxu1 %v5549_v44  ;;  %v5519_v36 = vld [vmem:[%s7242_s1 + $0xa10] ss:$12 sps:$4 sm:$0xff]  }
 0x11f   : > { %3232 = vmatprep.mubr.bf16.mxu0 %v6703_v39 }
 0x120   : > { %4691 = vmatpush3.bf16.msra.mxu1 %v5447_v40  ;;  %v5526_v40 = vld [vmem:[%s7242_s1 + $0xa40] ss:$12 sps:$4 sm:$0xff]  }
 0x121   : > { %3254 = vmatpush1.bf16.msra.mxu0 %v5443_v38  ;;  %4692 = vmatprep.subr.bf16.mxu1 %v5451_v42  ;;  %v5524_v38 = vld [vmem:[%s7242_s1 + $0xa28] ss:$12 sps:$4 sm:$0xff]   ;;  %v5531_v42 = vld [vmem:[%s7242_s1 + $0xa58] ss:$12 sps:$4 sm:$0xff]  }
 0x122   : > { %3255 = vmatprep.subr.bf16.mxu0 %v5450_v41  ;;  %v5528_v41 = vld [vmem:[%s5837_s14 + $0x184] ss:$56 sps:$4 sm:$0xff]  }
 0x123   : > { %3568 = vmatmul.mubr.bf16.gmra.mrb[76].mxu1 %v5550_v55  ;;  %v5533_v55 = vld [vmem:[%s7242_s1 + $0xa70] ss:$12 sps:$4 sm:$0xff]  }
 0x124   : > { %3233 = vmatmul.mubr.bf16.gmra.mrb[12].mxu0 %v6725_v49  ;;  %4693 = vmatpush3.bf16.msra.mxu1 %v5452_v47 }
 0x125   : > { %3256 = vmatpush1.bf16.msra.mxu0 %v5448_v46  ;;  %4694 = vmatprep.subr.bf16.mxu1 %v5456_v52 }
 0x126   : > { %3257 = vmatprep.subr.bf16.mxu0 %v5455_v51  ;;  %3608 = vmatprep.mubr.bf16.mxu1 %v5551_v60  ;;  %v5532_v51 = vld [vmem:[%s7242_s1 + $0x998] ss:$12 sps:$4 sm:$0xff]  }
 0x127   : > { %3275 = vmatprep.mubr.bf16.mxu0 %v6734_v53 }
 0x128   : > { %4695 = vmatpush3.bf16.msra.mxu1 %v5457_v57 }
 0x129   : > { %3258 = vmatpush1.bf16.msra.mxu0 %v5453_v54  ;;  %4720 = vmatprep.subr.bf16.mxu1 %v5461_v23 }
 0x12a   : > { %3259 = vmatprep.subr.bf16.mxu0 %v5460_v58 }
 0x12b   : > { %3609 = vmatmul.mubr.bf16.vlgmr.msra.gmra.mrb[80].mxu1 %v6377_v43  ;;  %v5471_v43 = vld [vmem:[%s7242_s1 + $0x9f0] ss:$12 sps:$4 sm:$0xff]  }
 0x12c   : > { %4721 = vmatpush3.bf16.msra.mxu1 %v5462_v0  ;;  %3616 = vmatprep.mubr.bf16.mxu1 %v6397_v56  ;;  %v5479_v56 = vld [vmem:[%s7242_s1 + $0x890] ss:$12 sps:$4 sm:$0xff]  }
 0x12d   : > { %3260 = vmatpush1.bf16.msra.mxu0 %v5458_v62  ;;  %4722 = vmatprep.subr.bf16.mxu1 %v5466_v1 }
 0x12e   : > { %3261 = vmatprep.subr.bf16.mxu0 %v5465_v32 }
 0x130   : > { %4723 = vmatpush3.bf16.msra.mxu1 %v5467_v5 }
 0x131   : > { %3262 = vmatpush1.bf16.msra.mxu0 %v5463_v3  ;;  %4724 = vmatprep.subr.bf16.mxu1 %v5474_v6 }
 0x132   : > { %3263 = vmatprep.subr.bf16.mxu0 %v5473_v35 }
 0x133   : > { %3617 = vmatmul.mubr.bf16.gmra.mrb[84].mxu1 %v6414_v61  ;;  %v5487_v61 = vld [vmem:[%s7242_s1 + $0x8a8] ss:$12 sps:$4 sm:$0xff]  }
 0x134   : > { %4725 = vmatpush3.bf16.msra.mxu1 %v5475_v9  ;;  %3624 = vmatprep.mubr.bf16.mxu1 %v6431_v2  ;;  %v5492_v2 = vld [vmem:[%s7242_s1 + $0x8c0] ss:$12 sps:$4 sm:$0xff]  }
 0x135   : > { %3264 = vmatpush1.bf16.msra.mxu0 %v5471_v43  ;;  %4726 = vmatprep.subr.bf16.mxu1 %v5479_v56 }
 0x136   : > { %3265 = vmatprep.subr.bf16.mxu0 %v5478_v45 }
 0x138   : > { %4727 = vmatpush3.bf16.msra.mxu1 %v5480_v12 }
 0x139   : > { %3266 = vmatpush1.bf16.msra.mxu0 %v5476_v10  ;;  %4728 = vmatprep.subr.bf16.mxu1 %v5487_v61 }
 0x13a   : > { %3267 = vmatprep.subr.bf16.mxu0 %v5486_v13 }
 0x13b   : > { %3625 = vmatmul.mubr.bf16.gmra.mrb[88].mxu1 %v6448_v7  ;;  %v5500_v7 = vld [vmem:[%s7242_s1 + $0x8d8] ss:$12 sps:$4 sm:$0xff]  }
 0x13c   : > { %4729 = vmatpush3.bf16.msra.mxu1 %v5488_v16  ;;  %3632 = vmatprep.mubr.bf16.mxu1 %v6465_v11  ;;  %v5505_v11 = vld [vmem:[%s7242_s1 + $0x8f0] ss:$12 sps:$4 sm:$0xff]  }
 0x13d   : > { %3268 = vmatpush1.bf16.msra.mxu0 %v5484_v14  ;;  %4730 = vmatprep.subr.bf16.mxu1 %v5492_v2 }
 0x13e   : > { %3269 = vmatprep.subr.bf16.mxu0 %v5491_v48 }
 0x140   : > { %4731 = vmatpush3.bf16.msra.mxu1 %v5493_v17 }
 0x141   : > { %3270 = vmatpush1.bf16.msra.mxu0 %v5489_v59  ;;  %4732 = vmatprep.subr.bf16.mxu1 %v5500_v7 }
 0x142   : > { %3271 = vmatprep.subr.bf16.mxu0 %v5499_v20 }
 0x143   : > { %3633 = vmatmul.mubr.bf16.gmra.mrb[92].mxu1 %v6482_v15  ;;  %v6854_v15 = vld [vmem:[%s5837_s14 + $0x30] ss:$56 sps:$4 sm:$0xff]  }
 0x144   : > { %4733 = vmatpush3.bf16.msra.mxu1 %v5501_v22  ;;  %3673 = vmatprep.mubr.bf16.mxu1 %v6502_v21  ;;  %v5513_v21 = vld [vmem:[%s7242_s1 + $0x920] ss:$12 sps:$4 sm:$0xff]  }
 0x145   : > { %3272 = vmatpush1.bf16.msra.mxu0 %v5497_v4  ;;  %4734 = vmatprep.subr.bf16.mxu1 %v5505_v11 }
 0x146   : > { %3273 = vmatprep.subr.bf16.mxu0 %v5504_v24 }
 0x148   : > { %4735 = vmatpush3.bf16.msra.mxu1 %v5506_v26 }
 0x149   : > { %3274 = vmatpush1.bf16.msra.mxu0 %v5502_v25  ;;  %4800 = vmatprep.subr.bf16.mxu1 %v5510_v27 }
 0x14a   : > { %4760 = vmatprep.subr.bf16.mxu0 %v5510_v27 }
 0x14b   : > { %3674 = vmatmul.mubr.bf16.vlgmr.msra.gmra.mrb[96].mxu1 %v6617_v8  ;;  %v5518_v8 = vld [vmem:[%s7242_s1 + $0x938] ss:$12 sps:$4 sm:$0xff]  }
 0x14c   : > { %3276 = vmatmul.mubr.bf16.vlgmr.msra.gmra.mrb[0].mxu0 %v6854_v15  ;;  %4808 = vmatpush3.bf16.msra.mxu1 %v5511_v28 }
 0x14d   : > { %4761 = vmatpush3.bf16.msra.mxu0 %v5511_v28  ;;  %4801 = vmatprep.subr.bf16.mxu1 %v5512_v19 }
 0x14e   : > { %4762 = vmatprep.subr.bf16.mxu0 %v5512_v19  ;;  %3285 = vmatprep.mubr.bf16.mxu0 %v6863_v29 }
 0x14f   : > { %3681 = vmatprep.mubr.bf16.mxu1 %v6635_v50  ;;  %v5520_v50 = vld [vmem:[%s7242_s1 + $0x950] ss:$12 sps:$4 sm:$0xff]  }
 0x150   : > { %4809 = vmatpush3.bf16.msra.mxu1 %v5513_v21 }
 0x151   : > { %4763 = vmatpush3.bf16.msra.mxu0 %v5513_v21  ;;  %4802 = vmatprep.subr.bf16.mxu1 %v5517_v33 }
 0x152   : > { %4764 = vmatprep.subr.bf16.mxu0 %v5517_v33 }
 0x153   : > { %3682 = vmatmul.mubr.bf16.gmra.mrb[100].mxu1 %v6657_v63  ;;  %v5525_v63 = vld [vmem:[%s7242_s1 + $0x968] ss:$12 sps:$4 sm:$0xff]  }
 0x154   : > { %3286 = vmatmul.mubr.bf16.gmra.mrb[4].mxu0 %v6876_v34  ;;  %4810 = vmatpush3.bf16.msra.mxu1 %v5518_v8 }
 0x155   : > { %4765 = vmatpush3.bf16.msra.mxu0 %v5518_v8  ;;  %4803 = vmatprep.subr.bf16.mxu1 %v5519_v36 }
 0x156   : > { %4766 = vmatprep.subr.bf16.mxu0 %v5519_v36  ;;  %3295 = vmatprep.mubr.bf16.mxu0 %v5521_v37 }
 0x157   : > { %3689 = vmatprep.mubr.bf16.mxu1 %v6669_v18  ;;  %v5527_v18 = vld [vmem:[%s7242_s1 + $0x980] ss:$12 sps:$4 sm:$0xff]  }
 0x158   : > { %4811 = vmatpush3.bf16.msra.mxu1 %v5520_v50 }
 0x159   : > { %4767 = vmatpush3.bf16.msra.mxu0 %v5520_v50  ;;  %4804 = vmatprep.subr.bf16.mxu1 %v5524_v38 }
 0x15a   : > { %4768 = vmatprep.subr.bf16.mxu0 %v5524_v38 }
 0x15b   : > { %3690 = vmatmul.mubr.bf16.gmra.mrb[104].mxu1 %v6691_v30  ;;  %v5530_v30 = vld [vmem:[%s5837_s14 + $0x180] ss:$56 sps:$4 sm:$0xff]  }
 0x15c   : > { %3296 = vmatmul.mubr.bf16.gmra.mrb[8].mxu0 %v5523_v31  ;;  %4812 = vmatpush3.bf16.msra.mxu1 %v5525_v63 }
 0x15d   : > { %4769 = vmatpush3.bf16.msra.mxu0 %v5525_v63  ;;  %4805 = vmatprep.subr.bf16.mxu1 %v5526_v40 }
 0x15e   : > { %4770 = vmatprep.subr.bf16.mxu0 %v5526_v40  ;;  %v6909_v44 = vpop.f32.mrb[0].mxu1  ;;  %3305 = vmatprep.mubr.bf16.mxu0 %v5528_v41 }
 0x15f   : > { %3697 = vmatprep.mubr.bf16.mxu1 %v6703_v39  ;;  %v6912_v46 = vpop.f32.mrb[1].mxu1  ;;  %v5534_v39 = vld [vmem:[%s7242_s1 + $0x9b0] ss:$12 sps:$4 sm:$0xff]  }
 0x160   : > { %v6915_v47 = vpop.f32.mrb[2].mxu1  ;;  %4813 = vmatpush3.bf16.msra.mxu1 %v5527_v18 }
 0x161   : > { %4771 = vmatpush3.bf16.msra.mxu0 %v5527_v18  ;;  %v6920_v52 = vpop.f32.mrb[3].mxu1  ;;  %4806 = vmatprep.subr.bf16.mxu1 %v5531_v42 }
 0x162   : > { %4772 = vmatprep.subr.bf16.mxu0 %v5531_v42 }
 0x163   : > { %3698 = vmatmul.mubr.bf16.gmra.mrb[108].mxu1 %v6725_v49 }
 0x164   : > { %3306 = vmatmul.mubr.bf16.gmra.mrb[12].mxu0 %v5530_v30  ;;  %4814 = vmatpush3.bf16.msra.mxu1 %v5532_v51 }
 0x165   : > { %4773 = vmatpush3.bf16.msra.mxu0 %v5532_v51  ;;  %4807 = vmatprep.subr.bf16.mxu1 %v5533_v55 }
 0x166   : > { %4774 = vmatprep.subr.bf16.mxu0 %v5533_v55  ;;  %v6929_v54 = vpop.f32.mrb[4].mxu1  ;;  %3738 = vmatprep.mubr.bf16.mxu0 %v6734_v53 }
 0x167   : > { %3754 = vmatprep.mubr.bf16.mxu1 %v5521_v37  ;;  %v6932_v57 = vpop.f32.mrb[5].mxu1 }
 0x168   : > { %v6934_v58 = vpop.f32.mrb[6].mxu1  ;;  %4815 = vmatpush3.bf16.msra.mxu1 %v5534_v39 }
 0x169   : > { %4775 = vmatpush3.bf16.msra.mxu0 %v5534_v39  ;;  %v6936_v49 = vpop.f32.mrb[7].mxu1 }
 0x16b   : > { %3755 = vmatmul.mubr.bf16.vlgmr.msra.gmra.mrb[112].mxu1 %v5523_v31 }
 0x16c   : > { %3739 = vmatmul.mubr.bf16.vlgmr.msra.gmra.mrb[16].mxu0 %v6854_v15  ;;  %3762 = vmatprep.mubr.bf16.mxu1 %v5528_v41 }
 0x16d   : > { %3746 = vmatprep.mubr.bf16.mxu0 %v6863_v29 }
 0x16e   : > { %v6940_v23 = vpop.f32.mrb[8].mxu1 }
 0x16f   : > { %v6942_v60 = vpop.f32.mrb[9].mxu1 }
 0x170   : > { %v6944_v53 = vpop.f32.mrb[10].mxu1 }
 0x171   : > { %v6946_v62 = vpop.f32.mrb[11].mxu1 }
 0x173   : > { %3763 = vmatmul.mubr.bf16.gmra.mrb[116].mxu1 %v5530_v30 }
 0x174   : > { %3747 = vmatmul.mubr.bf16.gmra.mrb[20].mxu0 %v6876_v34 }
 0x176   : > { %v6949_v0 = vpop.f32.mrb[12].mxu1 }
 0x177   : > { %v6951_v32 = vpop.f32.mrb[13].mxu1 }
 0x178   : > { %v6953_v1 = vpop.f32.mrb[14].mxu1 }
 0x179   : > { %v6955_v3 = vpop.f32.mrb[15].mxu1 }
 0x17e   : > { %v4536_v5 = vpop.f32.mrb[16].mxu1 }
 0x17f   : > { %v4537_v35 = vpop.f32.mrb[17].mxu1 }
 0x180   : > { %v4538_v6 = vadd.f32 %v4537_v35, %v4536_v5  ;;  %v4539_v43 = vpop.f32.mrb[18].mxu1 }
 0x181   : > { %v4540_v9 = vpop.f32.mrb[19].mxu1 }
 0x182   : > { %v4541_v45 = vadd.f32 %v4540_v9, %v4539_v43 }
 0x186   : > { %v4542_v56 = vpop.f32.mrb[20].mxu1 }
 0x187   : > { %v4543_v10 = vpop.f32.mrb[21].mxu1 }
 0x188   : > { %v4544_v12 = vadd.f32 %v4543_v10, %v4542_v56  ;;  %v4545_v13 = vpop.f32.mrb[22].mxu1 }
 0x189   : > { %v4546_v61 = vpop.f32.mrb[23].mxu1 }
 0x18a   : > { %v4547_v14 = vadd.f32 %v4546_v61, %v4545_v13 }
 0x18e   : > { %v4548_v16 = vpop.f32.mrb[24].mxu1 }
 0x18f   : > { %v4549_v48 = vpop.f32.mrb[25].mxu1 }
 0x190   : > { %v4550_v2 = vadd.f32 %v4549_v48, %v4548_v16  ;;  %v4551_v59 = vpop.f32.mrb[26].mxu1 }
 0x191   : > { %v4552_v17 = vpop.f32.mrb[27].mxu1 }
 0x192   : > { %v4553_v20 = vadd.f32 %v4552_v17, %v4551_v59 }
 0x196   : > { %v4554_v7 = vpop.f32.mrb[28].mxu1 }
 0x197   : > { %v4555_v4 = vpop.f32.mrb[29].mxu1 }
 0x198   : > { %v4556_v22 = vadd.f32 %v4555_v4, %v4554_v7  ;;  %v4557_v24 = vpop.f32.mrb[30].mxu1 }
 0x199   : > { %v4558_v11 = vpop.f32.mrb[31].mxu1 }
 0x19a   : > { %v4559_v25 = vadd.f32 %v4558_v11, %v4557_v24 }
 0x19e   : > { %v4576_v26 = vpop.f32.mrb[32].mxu1 }
 0x19f   : > { %v4577_v27 = vpop.f32.mrb[33].mxu1 }
 0x1a0   : > { %v4578_v15 = vadd.f32 %v4577_v27, %v4576_v26  ;;  %v4579_v28 = vpop.f32.mrb[34].mxu1 }
 0x1a1   : > { %v4580_v19 = vpop.f32.mrb[35].mxu1 }
 0x1a2   : > { %v3416_v29 = vadd.f32 %v4578_v15, %v4538_v6  ;;  %v4581_v21 = vadd.f32 %v4580_v19, %v4579_v28 }
 0x1a4   : > { %v3419_v33 = vadd.f32 %v4581_v21, %v4541_v45 }
 0x1a6   : > { %v4582_v34 = vpop.f32.mrb[36].mxu1 }
 0x1a7   : > { %v4583_v8 = vpop.f32.mrb[37].mxu1 }
 0x1a8   : > { %v4584_v36 = vadd.f32 %v4583_v8, %v4582_v34  ;;  %v4585_v37 = vpop.f32.mrb[38].mxu1 }
 0x1a9   : > { %v4586_v50 = vpop.f32.mrb[39].mxu1 }
 0x1aa   : > { %v3424_v38 = vadd.f32 %v4584_v36, %v4544_v12  ;;  %v4587_v31 = vadd.f32 %v4586_v50, %v4585_v37 }
 0x1ac   : > { %v3427_v63 = vadd.f32 %v4587_v31, %v4547_v14 }
 0x1ae   : > { %v4588_v40 = vpop.f32.mrb[40].mxu1 }
 0x1af   : > { %v4589_v41 = vpop.f32.mrb[41].mxu1 }
 0x1b0   : > { %v4590_v18 = vadd.f32 %v4589_v41, %v4588_v40  ;;  %v4591_v42 = vpop.f32.mrb[42].mxu1 }
 0x1b1   : > { %v4592_v30 = vpop.f32.mrb[43].mxu1 }
 0x1b2   : > { %v3432_v51 = vadd.f32 %v4590_v18, %v4550_v2  ;;  %v4593_v55 = vadd.f32 %v4592_v30, %v4591_v42 }
 0x1b4   : > { %v3435_v39 = vadd.f32 %v4593_v55, %v4553_v20 }
 0x1b6   : > { %v4594_v5 = vpop.f32.mrb[44].mxu1 }
 0x1b7   : > { %v4595_v35 = vpop.f32.mrb[45].mxu1 }
 0x1b8   : > { %v4596_v6 = vadd.f32 %v4595_v35, %v4594_v5  ;;  %v4597_v43 = vpop.f32.mrb[46].mxu1 }
 0x1b9   : > { %v4598_v9 = vpop.f32.mrb[47].mxu1 }
 0x1ba   : > { %v3440_v45 = vadd.f32 %v4596_v6, %v4556_v22  ;;  %v4599_v56 = vadd.f32 %v4598_v9, %v4597_v43 }
 0x1bc   : > { %v3443_v10 = vadd.f32 %v4599_v56, %v4559_v25 }
 0x1be   : > { %v4616_v13 = vpop.f32.mrb[48].mxu1 }
 0x1bf   : > { %v4617_v12 = vpop.f32.mrb[49].mxu1 }
 0x1c0   : > { %v4618_v61 = vadd.f32 %v4617_v12, %v4616_v13  ;;  %v4619_v14 = vpop.f32.mrb[50].mxu1 }
 0x1c1   : > { %v4620_v16 = vpop.f32.mrb[51].mxu1 }
 0x1c2   : > { %v3481_v48 = vadd.f32 %v4618_v61, %v3416_v29  ;;  %v4621_v59 = vadd.f32 %v4620_v16, %v4619_v14 }
 0x1c4   : > { %v3484_v17 = vadd.f32 %v4621_v59, %v3419_v33 }
 0x1c6   : > { %v4622_v7 = vpop.f32.mrb[52].mxu1 }
 0x1c7   : > { %v4623_v2 = vpop.f32.mrb[53].mxu1 }
 0x1c8   : > { %v4624_v4 = vadd.f32 %v4623_v2, %v4622_v7  ;;  %v4625_v20 = vpop.f32.mrb[54].mxu1 }
 0x1c9   : > { %v4626_v24 = vpop.f32.mrb[55].mxu1 }
 0x1ca   : > { %v3489_v11 = vadd.f32 %v4624_v4, %v3424_v38  ;;  %v4627_v26 = vadd.f32 %v4626_v24, %v4625_v20 }
 0x1cc   : > { %v3492_v27 = vadd.f32 %v4627_v26, %v3427_v63 }
 0x1ce   : > { %v4628_v15 = vpop.f32.mrb[56].mxu1 }
 0x1cf   : > { %v4629_v22 = vpop.f32.mrb[57].mxu1 }
 0x1d0   : > { %v4630_v28 = vadd.f32 %v4629_v22, %v4628_v15  ;;  %v4631_v25 = vpop.f32.mrb[58].mxu1 }
 0x1d1   : > { %v4632_v19 = vpop.f32.mrb[59].mxu1 }
 0x1d2   : > { %v3497_v21 = vadd.f32 %v4630_v28, %v3432_v51  ;;  %v4633_v34 = vadd.f32 %v4632_v19, %v4631_v25 }
 0x1d4   : > { %v3500_v8 = vadd.f32 %v4633_v34, %v3435_v39 }
 0x1d6   : > { %v4634_v36 = vpop.f32.mrb[60].mxu1 }
 0x1d7   : > { %v4635_v29 = vpop.f32.mrb[61].mxu1 }
 0x1d8   : > { %v4636_v37 = vadd.f32 %v4635_v29, %v4634_v36  ;;  %v4637_v33 = vpop.f32.mrb[62].mxu1 }
 0x1d9   : > { %v4638_v50 = vpop.f32.mrb[63].mxu1 }
 0x1da   : > { %v3505_v31 = vadd.f32 %v4636_v37, %v3440_v45  ;;  %v4639_v40 = vadd.f32 %v4638_v50, %v4637_v33 }
 0x1dc   : > { %v3508_v41 = vadd.f32 %v4639_v40, %v3443_v10 }
 0x1de   : > { %v4656_v18 = vpop.f32.mrb[64].mxu1 }
 0x1df   : > { %v4657_v38 = vpop.f32.mrb[65].mxu1 }
 0x1e0   : > { %v4658_v42 = vadd.f32 %v4657_v38, %v4656_v18  ;;  %v4659_v63 = vpop.f32.mrb[66].mxu1 }
 0x1e1   : > { %v4660_v30 = vpop.f32.mrb[67].mxu1 }
 0x1e2   : > { %v3546_v55 = vadd.f32 %v4658_v42, %v3481_v48  ;;  %v4661_v5 = vadd.f32 %v4660_v30, %v4659_v63 }
 0x1e4   : > { %v3549_v35 = vadd.f32 %v4661_v5, %v3484_v17  ;;  %v3773_v5 = vlaneseq }
 0x1e6   : > { %v4662_v6 = vpop.f32.mrb[68].mxu1 }
 0x1e7   : > { %v4663_v51 = vpop.f32.mrb[69].mxu1 }
 0x1e8   : > { %v4664_v43 = vadd.f32 %v4663_v51, %v4662_v6  ;;  %v4665_v39 = vpop.f32.mrb[70].mxu1  ;;  %v6965_v51 = vshrl.u32 %v3773_v5, 7 }
 0x1e9   : > { %v4666_v9 = vpop.f32.mrb[71].mxu1 }
 0x1ea   : > { %v3554_v56 = vadd.f32 %v4664_v43, %v3489_v11  ;;  %v4667_v13 = vadd.f32 %v4666_v9, %v4665_v39 }
 0x1ec   : > { %v3557_v12 = vadd.f32 %v4667_v13, %v3492_v27 }
 0x1ee   : > { %v4668_v61 = vpop.f32.mrb[72].mxu1 }
 0x1ef   : > { %v4669_v45 = vpop.f32.mrb[73].mxu1 }
 0x1f0   : > { %v4670_v14 = vadd.f32 %v4669_v45, %v4668_v61  ;;  %v4671_v10 = vpop.f32.mrb[74].mxu1 }
 0x1f1   : > { %v4672_v16 = vpop.f32.mrb[75].mxu1 }
 0x1f2   : > { %v3562_v59 = vadd.f32 %v4670_v14, %v3497_v21  ;;  %v4673_v7 = vadd.f32 %v4672_v16, %v4671_v10  ;;  %v6973_v14 = vld [vmem:[%s7243_s2] sm:$0x7]  ;;  %v3779_v10 = vsub.s32 1, %v6965_v51 }
 0x1f4   : > { %v3565_v2 = vadd.f32 %v4673_v7, %v3500_v8 }
 0x1f6   : > { %v4674_v4 = vpop.f32.mrb[76].mxu1 }
 0x1f7   : > { %v4675_v48 = vpop.f32.mrb[77].mxu1 }
 0x1f8   : > { %v4676_v20 = vadd.f32 %v4675_v48, %v4674_v4  ;;  %v4677_v17 = vpop.f32.mrb[78].mxu1  ;;  %v6988_v48 = vrot.slane %v6973_v14, %v3779_v10 }
 0x1f9   : > { %v4678_v24 = vpop.f32.mrb[79].mxu1 }
 0x1fa   : > { %v3570_v26 = vadd.f32 %v4676_v20, %v3505_v31  ;;  %v4679_v15 = vadd.f32 %v4678_v24, %v4677_v17 }
 0x1fc   : > { %v3573_v22 = vadd.f32 %v4679_v15, %v3508_v41 }
 0x1fe   : > { %v4696_v28 = vpop.f32.mrb[80].mxu1 }
 0x1ff   : > { %v4697_v11 = vpop.f32.mrb[81].mxu1 }
 0x200   : > { %v4698_v25 = vadd.f32 %v4697_v11, %v4696_v28  ;;  %v4699_v27 = vpop.f32.mrb[82].mxu1 }
 0x201   : > { %v4700_v19 = vpop.f32.mrb[83].mxu1 }
 0x202   : > { %v3611_v34 = vadd.f32 %v4698_v25, %v3546_v55  ;;  %v4701_v36 = vadd.f32 %v4700_v19, %v4699_v27 }
 0x204   : > { %v3614_v29 = vadd.f32 %v4701_v36, %v3549_v35 }
 0x206   : > { %v4702_v37 = vpop.f32.mrb[84].mxu1 }
 0x207   : > { %v4703_v21 = vpop.f32.mrb[85].mxu1 }
 0x208   : > { %v4704_v33 = vadd.f32 %v4703_v21, %v4702_v37  ;;  %v4705_v8 = vpop.f32.mrb[86].mxu1 }
 0x209   : > { %v4706_v50 = vpop.f32.mrb[87].mxu1 }
 0x20a   : > { %v6957_v40 = vadd.f32 %v4704_v33, %v3554_v56  ;;  %v4707_v18 = vadd.f32 %v4706_v50, %v4705_v8 }
 0x20c   : > { %v6959_v38 = vadd.f32 %v4707_v18, %v3557_v12  ;;  %v3775_v12 = vsub.s32 0, %v6965_v51 }
 0x20e   : > { %v4708_v31 = vpop.f32.mrb[88].mxu1  ;;  %v6985_v7 = vrot.slane %v6973_v14, %v3775_v12 }
 0x20f   : > { %v4709_v41 = vpop.f32.mrb[89].mxu1 }
 0x210   : > { %v4710_v42 = vadd.f32 %v4709_v41, %v4708_v31  ;;  %v4711_v63 = vpop.f32.mrb[90].mxu1 }
 0x211   : > { %v4712_v30 = vpop.f32.mrb[91].mxu1 }
 0x212   : > { %v6961_v6 = vadd.f32 %v4710_v42, %v3562_v59  ;;  %v4713_v55 = vadd.f32 %v4712_v30, %v4711_v63  ;;  %v6981_v59 = vld [vmem:[%s7244_s3] sm:$0x7] }
 0x213   : > { %v6992_v17 = vrot.slane %v6981_v59, %v3775_v12 }
 0x214   : > { %v6963_v35 = vadd.f32 %v4713_v55, %v3565_v2 }
 0x216   : > { %v4714_v43 = vpop.f32.mrb[92].mxu1 }
 0x217   : > { %v4715_v39 = vpop.f32.mrb[93].mxu1 }
 0x218   : > { %v4716_v9 = vadd.f32 %v4715_v39, %v4714_v43  ;;  %v4717_v56 = vpop.f32.mrb[94].mxu1 }
 0x219   : > { %v4718_v13 = vpop.f32.mrb[95].mxu1 }
 0x21a   : > { %v6968_v61 = vadd.f32 %v4716_v9, %v3570_v26  ;;  %v4719_v45 = vadd.f32 %v4718_v13, %v4717_v56 }
 0x21c   : > { %v6976_v16 = vadd.f32 %v4719_v45, %v3573_v22  ;;  %v6996_v22 = vrot.slane %v6981_v59, %v3779_v10 }
 0x21e   : > { %v4736_v4 = vpop.f32.mrb[96].mxu1 }
 0x21f   : > { %v3277_v2 = vpop.f32.mrb[0].mxu0  ;;  %v4737_v26 = vpop.f32.mrb[97].mxu1 }
 0x220   : > { %v4816_v20 = vadd.f32 %v3277_v2, %v6909_v44  ;;  %v3279_v24 = vpop.f32.mrb[1].mxu0  ;;  %v4738_v28 = vadd.f32 %v4737_v26, %v4736_v4  ;;  %v4739_v25 = vpop.f32.mrb[98].mxu1 }
 0x221   : > { %v4817_v15 = vadd.f32 %v3279_v24, %v6912_v46  ;;  %v3281_v11 = vpop.f32.mrb[2].mxu0  ;;  %v4740_v44 = vpop.f32.mrb[99].mxu1 }
 0x222   : > { %v3788_v27 = vmul.f32 %v4816_v20, %v6985_v7  ;;  %v4818_v19 = vadd.f32 %v3281_v11, %v6915_v47  ;;  %v3283_v36 = vpop.f32.mrb[3].mxu0  ;;  %v7001_v21 = vadd.f32 %v4738_v28, %v3611_v34  ;;  %v4741_v8 = vadd.f32 %v4740_v44, %v4739_v25 }
 0x223   : > { %v3789_v37 = vmul.f32 %v4817_v15, %v6988_v48  ;;  %v4819_v33 = vadd.f32 %v3283_v36, %v6920_v52 }
 0x224   : > { %v3829_v46 = vadd.f32 %v6992_v17, %v3788_v27  ;;  %v3791_v50 = vmul.f32 %v4818_v19, %v6985_v7  ;;  %v7008_v41 = vadd.f32 %v4741_v8, %v3614_v29 }
 0x225   : > { %v3830_v18 = vadd.f32 %v6996_v22, %v3789_v37  ;;  %v3792_v31 = vmul.f32 %v4819_v33, %v6988_v48 }
 0x226   : > { %v3853_v47 = vmax.f32 %v3829_v46, 0.0  ;;  %v3832_v42 = vadd.f32 %v6992_v17, %v3791_v50  ;;  %v4742_v5 = vpop.f32.mrb[100].mxu1 }
 0x227   : > { %v3854_v63 = vmax.f32 %v3830_v18, 0.0  ;;  %v3833_v34 = vadd.f32 %v6996_v22, %v3792_v31  ;;  %v3287_v30 = vpop.f32.mrb[4].mxu0  ;;  %v4743_v43 = vpop.f32.mrb[101].mxu1 }
 0x228   : > { %3877 = vst [vmem:[%s7012_s15] sm:$0xff] %v3853_v47  ;;  %v3856_v52 = vmax.f32 %v3832_v42, 0.0  ;;  %v4820_v55 = vadd.f32 %v3287_v30, %v6929_v54  ;;  %v3289_v29 = vpop.f32.mrb[5].mxu0  ;;  %v4744_v56 = vadd.f32 %v4743_v43, %v4742_v5  ;;  %v4745_v12 = vpop.f32.mrb[102].mxu1 }
 0x229   : > { %3878 = vst [vmem:[%s7012_s15 + $0x8] sm:$0xff] %v3854_v63  ;;  %v3857_v39 = vmax.f32 %v3833_v34, 0.0  ;;  %v4821_v9 = vadd.f32 %v3289_v29, %v6932_v57  ;;  %v3291_v13 = vpop.f32.mrb[6].mxu0  ;;  %v4746_v4 = vpop.f32.mrb[103].mxu1 }
 0x22a   : > { %3881 = vst [vmem:[%s7012_s15 + $0x18] sm:$0xff] %v3856_v52  ;;  %v3794_v45 = vmul.f32 %v4820_v55, %v6985_v7  ;;  %v4822_v10 = vadd.f32 %v3291_v13, %v6934_v58  ;;  %v3293_v2 = vpop.f32.mrb[7].mxu0  ;;  %v7024_v20 = vadd.f32 %v4744_v56, %v6957_v40  ;;  %v4747_v57 = vadd.f32 %v4746_v4, %v4745_v12 }
 0x22b   : > { %3882 = vst [vmem:[%s7012_s15 + $0x20] sm:$0xff] %v3857_v39  ;;  %v3795_v54 = vmul.f32 %v4821_v9, %v6988_v48  ;;  %v4823_v24 = vadd.f32 %v3293_v2, %v6936_v49 }
 0x22c   : > { %v3835_v26 = vadd.f32 %v6992_v17, %v3794_v45  ;;  %v3797_v15 = vmul.f32 %v4822_v10, %v6985_v7  ;;  %v7032_v11 = vadd.f32 %v4747_v57, %v6959_v38 }
 0x22d   : > { %v3836_v28 = vadd.f32 %v6996_v22, %v3795_v54  ;;  %v3798_v58 = vmul.f32 %v4823_v24, %v6988_v48 }
 0x22e   : > { %v3859_v25 = vmax.f32 %v3835_v26, 0.0  ;;  %v3838_v27 = vadd.f32 %v6992_v17, %v3797_v15  ;;  %v4748_v36 = vpop.f32.mrb[104].mxu1 }
 0x22f   : > { %v3860_v40 = vmax.f32 %v3836_v28, 0.0  ;;  %v3839_v49 = vadd.f32 %v6996_v22, %v3798_v58  ;;  %v3297_v19 = vpop.f32.mrb[8].mxu0  ;;  %v4749_v8 = vpop.f32.mrb[105].mxu1 }
 0x230   : > { %3884 = vst [vmem:[%s7012_s15 + $0x30] sm:$0xff] %v3859_v25  ;;  %v3862_v44 = vmax.f32 %v3838_v27, 0.0  ;;  %v4824_v37 = vadd.f32 %v3297_v19, %v6940_v23  ;;  %v3299_v33 = vpop.f32.mrb[9].mxu0  ;;  %v4750_v50 = vadd.f32 %v4749_v8, %v4748_v36  ;;  %v4751_v31 = vpop.f32.mrb[106].mxu1 }
 0x231   : > { %3885 = vst [vmem:[%s7012_s15 + $0x38] sm:$0xff] %v3860_v40  ;;  %v3863_v46 = vmax.f32 %v3839_v49, 0.0  ;;  %v4825_v38 = vadd.f32 %v3299_v33, %v6942_v60  ;;  %v3301_v18 = vpop.f32.mrb[10].mxu0  ;;  %v4752_v34 = vpop.f32.mrb[107].mxu1 }
 0x232   : > { %3887 = vst [vmem:[%s7012_s15 + $0x48] sm:$0xff] %v3862_v44  ;;  %v3800_v47 = vmul.f32 %v4824_v37, %v6985_v7  ;;  %v4826_v42 = vadd.f32 %v3301_v18, %v6944_v53  ;;  %v3303_v63 = vpop.f32.mrb[11].mxu0  ;;  %v7046_v30 = vadd.f32 %v4750_v50, %v6961_v6  ;;  %v4753_v60 = vadd.f32 %v4752_v34, %v4751_v31 }
 0x233   : > { %3888 = vst [vmem:[%s7012_s15 + $0x50] sm:$0xff] %v3863_v46  ;;  %v3801_v23 = vmul.f32 %v4825_v38, %v6988_v48  ;;  %v4827_v5 = vadd.f32 %v3303_v63, %v6946_v62  ;;  %v3783_v44 = vsub.s32 2, %v6965_v51 }
 0x234   : > { %v3841_v52 = vadd.f32 %v6992_v17, %v3800_v47  ;;  %v3803_v55 = vmul.f32 %v4826_v42, %v6985_v7  ;;  %v7054_v43 = vadd.f32 %v4753_v60, %v6963_v35 }
 0x235   : > { %v3842_v29 = vadd.f32 %v6996_v22, %v3801_v23  ;;  %v3804_v53 = vmul.f32 %v4827_v5, %v6988_v48 }
 0x236   : > { %v3865_v39 = vmax.f32 %v3841_v52, 0.0  ;;  %v3844_v9 = vadd.f32 %v6992_v17, %v3803_v55  ;;  %v4754_v13 = vpop.f32.mrb[108].mxu1 }
 0x237   : > { %v3866_v6 = vmax.f32 %v3842_v29, 0.0  ;;  %v3845_v62 = vadd.f32 %v6996_v22, %v3804_v53  ;;  %v3307_v56 = vpop.f32.mrb[12].mxu0  ;;  %v4755_v2 = vpop.f32.mrb[109].mxu1 }
 0x238   : > { %3890 = vst [vmem:[%s7012_s15 + $0x60] sm:$0xff] %v3865_v39  ;;  %v3868_v12 = vmax.f32 %v3844_v9, 0.0  ;;  %v4828_v45 = vadd.f32 %v3307_v56, %v6949_v0  ;;  %v3309_v10 = vpop.f32.mrb[13].mxu0  ;;  %v4756_v54 = vadd.f32 %v4755_v2, %v4754_v13  ;;  %v4757_v57 = vpop.f32.mrb[110].mxu1 }
 0x239   : > { %3891 = vst [vmem:[%s7012_s15 + $0x68] sm:$0xff] %v3866_v6  ;;  %v3869_v4 = vmax.f32 %v3845_v62, 0.0  ;;  %v4829_v35 = vadd.f32 %v3309_v10, %v6951_v32  ;;  %v3311_v24 = vpop.f32.mrb[14].mxu0  ;;  %v4758_v58 = vpop.f32.mrb[111].mxu1 }
 0x23a   : > { %3893 = vst [vmem:[%s7012_s15 + $0x78] sm:$0xff] %v3868_v12  ;;  %v3806_v26 = vmul.f32 %v4828_v45, %v6985_v7  ;;  %v4830_v15 = vadd.f32 %v3311_v24, %v6953_v1  ;;  %v3313_v28 = vpop.f32.mrb[15].mxu0  ;;  %v7068_v0 = vadd.f32 %v4756_v54, %v6968_v61  ;;  %v4759_v32 = vadd.f32 %v4758_v58, %v4757_v57 }
 0x23b   : > { %3894 = vst [vmem:[%s7012_s15 + $0x80] sm:$0xff] %v3869_v4  ;;  %v3807_v25 = vmul.f32 %v4829_v35, %v6988_v48  ;;  %v4831_v27 = vadd.f32 %v3313_v28, %v6955_v3 }
 0x23c   : > { %v3847_v40 = vadd.f32 %v6992_v17, %v3806_v26  ;;  %v3809_v49 = vmul.f32 %v4830_v15, %v6985_v7  ;;  %v3703_v36 = vadd.f32 %v4759_v32, %v6976_v16  ;;  %v3784_v16 = vrot.slane %v6973_v14, %v3783_v44 }
 0x23d   : > { %v3848_v19 = vadd.f32 %v6996_v22, %v3807_v25  ;;  %v3810_v1 = vmul.f32 %v4831_v27, %v6988_v48 }
 0x23e   : > { %v3871_v37 = vmax.f32 %v3847_v40, 0.0  ;;  %v3850_v61 = vadd.f32 %v6992_v17, %v3809_v49  ;;  %v4788_v46 = vpop.f32.mrb[112].mxu1  ;;  %v3825_v17 = vrot.slane %v6981_v59, %v3783_v44 }
 0x23f   : > { %v3872_v33 = vmax.f32 %v3848_v19, 0.0  ;;  %v3851_v3 = vadd.f32 %v6996_v22, %v3810_v1  ;;  %v4776_v8 = vpop.f32.mrb[16].mxu0  ;;  %v4789_v50 = vpop.f32.mrb[113].mxu1 }
 0x240   : > { %3896 = vst [vmem:[%s7012_s15 + $0x90] sm:$0xff] %v3871_v37  ;;  %v3874_v7 = vmax.f32 %v3850_v61, 0.0  ;;  %v4777_v38 = vpop.f32.mrb[17].mxu0  ;;  %v4790_v51 = vadd.f32 %v4789_v50, %v4788_v46  ;;  %v4791_v47 = vpop.f32.mrb[114].mxu1 }
 0x241   : > { %3897 = vst [vmem:[%s7012_s15 + $0x98] sm:$0xff] %v3872_v33  ;;  %v3875_v48 = vmax.f32 %v3851_v3, 0.0  ;;  %v4778_v18 = vadd.f32 %v4777_v38, %v4776_v8  ;;  %v4779_v31 = vpop.f32.mrb[18].mxu0  ;;  %v4792_v22 = vpop.f32.mrb[115].mxu1 }
 0x242   : > { %3899 = vst [vmem:[%s7012_s15 + $0xa8] sm:$0xff] %v3874_v7  ;;  %v4780_v42 = vpop.f32.mrb[19].mxu0  ;;  %v3757_v34 = vadd.f32 %v4790_v51, %v7046_v30  ;;  %v4793_v5 = vadd.f32 %v4792_v22, %v4791_v47 }
 0x243   : > { %3900 = vst [vmem:[%s7012_s15 + $0xb0] sm:$0xff] %v3875_v48  ;;  %v3741_v63 = vadd.f32 %v4778_v18, %v7001_v21  ;;  %v4781_v23 = vadd.f32 %v4780_v42, %v4779_v31 }
 0x244   : > { %v3802_v52 = vmul.f32 %v3784_v16, %v3757_v34  ;;  %v3760_v14 = vadd.f32 %v4793_v5, %v7054_v43 }
 0x245   : > { %v3790_v60 = vmul.f32 %v3784_v16, %v3741_v63  ;;  %v3744_v55 = vadd.f32 %v4781_v23, %v7008_v41 }
 0x246   : > { %v3843_v53 = vadd.f32 %v3825_v17, %v3802_v52  ;;  %v3805_v9 = vmul.f32 %v3784_v16, %v3760_v14  ;;  %v4794_v6 = vpop.f32.mrb[116].mxu1 }
 0x247   : > { %v3831_v29 = vadd.f32 %v3825_v17, %v3790_v60  ;;  %v3793_v39 = vmul.f32 %v3784_v16, %v3744_v55  ;;  %v4782_v59 = vpop.f32.mrb[20].mxu0  ;;  %v4795_v62 = vpop.f32.mrb[117].mxu1 }
 0x248   : > { %v4783_v21 = vpop.f32.mrb[21].mxu0  ;;  %v3867_v56 = vmax.f32 %v3843_v53, 0.0  ;;  %v3846_v12 = vadd.f32 %v3825_v17, %v3805_v9  ;;  %v4797_v45 = vpop.f32.mrb[118].mxu1  ;;  %v4796_v10 = vadd.f32 %v4795_v62, %v4794_v6 }
 0x249   : > { %v3855_v30 = vmax.f32 %v3831_v29, 0.0  ;;  %v3834_v13 = vadd.f32 %v3825_v17, %v3793_v39  ;;  %v4785_v41 = vpop.f32.mrb[22].mxu0  ;;  %v4784_v43 = vadd.f32 %v4783_v21, %v4782_v59  ;;  %v4798_v4 = vpop.f32.mrb[119].mxu1 }
 0x24a   : > { %v4786_v2 = vpop.f32.mrb[23].mxu0  ;;  %3892 = vst.msk [vmem:[%s7012_s15 + $0x70] sm:$0xff] %vm3879_vm0, %v3867_v56  ;;  %v3870_v54 = vmax.f32 %v3846_v12, 0.0  ;;  %v4799_v57 = vadd.f32 %v4798_v4, %v4797_v45  ;;  %v3765_v15 = vadd.f32 %v4796_v10, %v7068_v0 }
 0x24b   : > { %3880 = vst.msk [vmem:[%s7012_s15 + $0x10] sm:$0xff] %vm3879_vm0, %v3855_v30  ;;  %v3858_v35 = vmax.f32 %v3834_v13, 0.0  ;;  %v4787_v24 = vadd.f32 %v4786_v2, %v4785_v41  ;;  %v3749_v26 = vadd.f32 %v4784_v43, %v7024_v20 }
 0x24c   : > { %3895 = vst.msk [vmem:[%s7012_s15 + $0x88] sm:$0xff] %vm3879_vm0, %v3870_v54  ;;  %v3768_v58 = vadd.f32 %v4799_v57, %v3703_v36  ;;  %v3808_v27 = vmul.f32 %v3784_v16, %v3765_v15 }
 0x24d   : > { %3883 = vst.msk [vmem:[%s7012_s15 + $0x28] sm:$0xff] %vm3879_vm0, %v3858_v35  ;;  %v3752_v28 = vadd.f32 %v4787_v24, %v7032_v11  ;;  %v3796_v25 = vmul.f32 %v3784_v16, %v3749_v26 }
 0x24e   : > { %v3811_v40 = vmul.f32 %v3784_v16, %v3768_v58  ;;  %v3849_v19 = vadd.f32 %v3825_v17, %v3808_v27 }
 0x24f   : > { %v3799_v32 = vmul.f32 %v3784_v16, %v3752_v28  ;;  %v3837_v49 = vadd.f32 %v3825_v17, %v3796_v25  ;;  %3908 = sbr.rel (!%p5690_p4) target bundleno = 650 (0x28a), region = 40 }
 0x250   : > { %v3852_v1 = vadd.f32 %v3825_v17, %v3811_v40  ;;  %v3873_v44 = vmax.f32 %v3849_v19, 0.0 }
 0x251   : > { %v3840_v20 = vadd.f32 %v3825_v17, %v3799_v32  ;;  %v3861_v0 = vmax.f32 %v3837_v49, 0.0 }
 0x252   : > { %v3876_v61 = vmax.f32 %v3852_v1, 0.0  ;;  %3898 = vst.msk [vmem:[%s7012_s15 + $0xa0] sm:$0xff] %vm3879_vm0, %v3873_v44 }
 0x253   : > { %v3864_v37 = vmax.f32 %v3840_v20, 0.0  ;;  %3886 = vst.msk [vmem:[%s7012_s15 + $0x40] sm:$0xff] %vm3879_vm0, %v3861_v0 }
 0x254   : > { %3901 = vst.msk [vmem:[%s7012_s15 + $0xb8] sm:$0xff] %vm3879_vm0, %v3876_v61 }
 0x255   : > { %3889 = vst.msk [vmem:[%s7012_s15 + $0x58] sm:$0xff] %vm3879_vm0, %v3864_v37 }
 0x256   : > { %s7256_s7 = smov (!%p3911_p8, %s3910_s7), 8 }
 0x257   : > { %s4508_s12 = smul.u32 384, %s7256_s7 }
 0x259   : > { %p4512_p9 = scmp.eq.s32.totalorder %s4508_s12, 0 }
 0x25a   : > { %s7121_s13 = sshrl.u32 (!%p4512_p9), %s7256_s7, 3 }
 0x25b   : > { %3921 = sbr.rel (%p4512_p9) target bundleno = 650 (0x28a), region = 44  ;;  %p4513_p10 = scmp.le.s32.totalorder (!%p4512_p9), %s7121_s13, 0 }
 0x262   : > { %4064 = sbr.rel (%p4513_p10) target bundleno = 630 (0x276), region = 92  ;;  %s7247_s18 = smov (!%p4513_p10), %s7115_s11 }
 0x263   : > { %s7248_s23 = smov (!%p4513_p10), %s7012_s15  ;;  %s7130_s24 = smov (!%p4513_p10), 0  }
 0x264   : > { %s7132_s17 = smov (!%p4513_p10), 0  }
 0x269 LB: >> { %v3934_v11 = vld [vmem:[%s5614_s23] sm:$0xff]  ;;  %v3936_v36 = vld [vmem:[%s5614_s23 + $0x18] sm:$0xff]  ;;  %v3938_v33 = vld [vmem:[%s5614_s23 + $0x30] sm:$0xff]  ;;  %s3982_s20 = sadd.s32 1, %s5618_s24  ;;  %s3928_s17 = sadd.s32 1, %s5622_s17   ;;  %s5622_s17 = sphi %s7132_s17, %s3928_s17   ;;  %s5618_s24 = sphi %s7130_s24, %s7250_s24   ;;  %s5614_s23 = sphi %s7248_s23, %s3987_s23   ;;  %s5610_s18 = sphi %s7247_s18, %s7249_s18  }
 0x26a   : >> { %3935 = vst [vmem:[%s5610_s18] sm:$0xff] %v3934_v11  ;;  %3937 = vst [vmem:[%s5610_s18 + $0x18] sm:$0xff] %v3936_v36  ;;  %v3940_v3 = vld [vmem:[%s5614_s23 + $0x48] sm:$0xff]  ;;  %v3942_v8 = vld [vmem:[%s5614_s23 + $0x60] sm:$0xff]  ;;  %p3983_p11 = scmp.ge.s32.totalorder %s3982_s20, %s7121_s13  ;;  %p3927_p12 = scmp.ge.s32.totalorder %s3928_s17, %s7121_s13 }
 0x26b   : >> { %3939 = vst [vmem:[%s5610_s18 + $0x30] sm:$0xff] %v3938_v33  ;;  %v3944_v46 = vld [vmem:[%s5614_s23 + $0x78] sm:$0xff]  ;;  %3941 = vst [vmem:[%s5610_s18 + $0x48] sm:$0xff] %v3940_v3  ;;  %v3946_v7 = vld [vmem:[%s5614_s23 + $0x90] sm:$0xff] }
 0x26c   : >> { %3943 = vst [vmem:[%s5610_s18 + $0x60] sm:$0xff] %v3942_v8  ;;  %3945 = vst [vmem:[%s5610_s18 + $0x78] sm:$0xff] %v3944_v46  ;;  %v3948_v38 = vld [vmem:[%s5614_s23 + $0xa8] sm:$0xff]  ;;  %v3952_v48 = vld [vmem:[%s5614_s23 + $0x20] sm:$0xff]  ;;  %s7258_s20 = smov (%p3983_p11, %s3982_s20), 0 }
 0x26d   : >> { %v3950_v50 = vld [vmem:[%s5614_s23 + $0x8] sm:$0xff]  ;;  %3947 = vst [vmem:[%s5610_s18 + $0x90] sm:$0xff] %v3946_v7  ;;  %3949 = vst [vmem:[%s5610_s18 + $0xa8] sm:$0xff] %v3948_v38  ;;  %v3954_v18 = vld [vmem:[%s5614_s23 + $0x38] sm:$0xff]  ;;  %s3985_s21 = smul.u32 192, %s7258_s20  ;;  %s7250_s24 = smov %s7258_s20 }
 0x26e   : >> { %3951 = vst [vmem:[%s5610_s18 + $0x8] sm:$0xff] %v3950_v50  ;;  %v3956_v16 = vld [vmem:[%s5614_s23 + $0x50] sm:$0xff]  ;;  %3953 = vst [vmem:[%s5610_s18 + $0x20] sm:$0xff] %v3952_v48  ;;  %v3958_v51 = vld [vmem:[%s5614_s23 + $0x68] sm:$0xff] }
 0x26f   : >> { %3955 = vst [vmem:[%s5610_s18 + $0x38] sm:$0xff] %v3954_v18  ;;  %3957 = vst [vmem:[%s5610_s18 + $0x50] sm:$0xff] %v3956_v16  ;;  %v3960_v31 = vld [vmem:[%s5614_s23 + $0x80] sm:$0xff]  ;;  %v3962_v47 = vld [vmem:[%s5614_s23 + $0x98] sm:$0xff]  ;;  %s3988_s25 = scalar_lea.vmem %s7115_s11, %s3985_s21   ;;  %3930 = sbr.rel (!%p3927_p12) target bundleno = 617 (0x269), region = 98 }
 0x270   : >> { %3959 = vst [vmem:[%s5610_s18 + $0x68] sm:$0xff] %v3958_v51  ;;  %3961 = vst [vmem:[%s5610_s18 + $0x80] sm:$0xff] %v3960_v31  ;;  %v3964_v17 = vld [vmem:[%s5614_s23 + $0xb0] sm:$0xff]  ;;  %v3968_v22 = vld [vmem:[%s5614_s23 + $0x28] sm:$0xff] }
 0x271   : >> { %3963 = vst [vmem:[%s5610_s18 + $0x98] sm:$0xff] %v3962_v47  ;;  %v3966_v42 = vld [vmem:[%s5614_s23 + $0x10] sm:$0xff]  ;;  %3965 = vst [vmem:[%s5610_s18 + $0xb0] sm:$0xff] %v3964_v17  ;;  %v3970_v63 = vld [vmem:[%s5614_s23 + $0x40] sm:$0xff] }
 0x272   : >> { %3967 = vst [vmem:[%s5610_s18 + $0x10] sm:$0xff] %v3966_v42  ;;  %3969 = vst [vmem:[%s5610_s18 + $0x28] sm:$0xff] %v3968_v22  ;;  %v3972_v34 = vld [vmem:[%s5614_s23 + $0x58] sm:$0xff]  ;;  %v3974_v23 = vld [vmem:[%s5614_s23 + $0x70] sm:$0xff] }
 0x273   : >> { %3971 = vst [vmem:[%s5610_s18 + $0x40] sm:$0xff] %v3970_v63  ;;  %3973 = vst [vmem:[%s5610_s18 + $0x58] sm:$0xff] %v3972_v34  ;;  %v3976_v5 = vld [vmem:[%s5614_s23 + $0x88] sm:$0xff]  ;;  %v3978_v60 = vld [vmem:[%s5614_s23 + $0xa0] sm:$0xff] }
 0x274   : >> { %3975 = vst [vmem:[%s5610_s18 + $0x70] sm:$0xff] %v3974_v23  ;;  %v3980_v52 = vld [vmem:[%s5614_s23 + $0xb8] sm:$0xff]  ;;  %s3987_s23 = scalar_lea.vmem %s7012_s15, %s3985_s21 [#allocation2]   ;;  %3977 = vst [vmem:[%s5610_s18 + $0x88] sm:$0xff] %v3976_v5 }
 0x275   : >> { %3979 = vst [vmem:[%s5610_s18 + $0xa0] sm:$0xff] %v3978_v60  ;;  %3981 = vst [vmem:[%s5610_s18 + $0xb8] sm:$0xff] %v3980_v52  ;;  %s7249_s18 = smov %s3988_s25 }
 0x276 PF: > { %s7210_s14 = sand.u32 7, %s7256_s7   ;;  %s4515_s26 = smul.u32 192, %s7121_s13 }
 0x277   : > { %p4517_p13 = scmp.le.s32.totalorder %s7210_s14, 0 }
 0x278   : > { %s7214_s27 = scalar_lea.vmem %s7012_s15, %s4515_s26 [#allocation2]   ;;  %s7217_s28 = scalar_lea.vmem %s7115_s11, %s4515_s26  }
 0x279   : > { %4078 = sbr.rel (%p4517_p13) target bundleno = 650 (0x28a), region = 103  ;;  %s7251_s29 = smov (!%p4517_p13), %s7217_s28 }
 0x27a   : > { %s5628_s30 = smov (!%p4517_p13), %s7214_s27   ;;  %s5632_s5 = smov (!%p4517_p13), 0  }
 0x27b   : > { %s5636_s6 = smov (!%p4517_p13), 0  }
 0x280 LB: >> { %v4005_v55 = vld [vmem:[%s5630_s30] sm:$0xff]  ;;  %v4007_v14 = vld [vmem:[%s5630_s30 + $0x8] sm:$0xff]  ;;  %v4009_v29 = vld [vmem:[%s5630_s30 + $0x10] sm:$0xff]  ;;  %s4011_s15 = sadd.s32 1, %s5634_s5  ;;  %s3999_s6 = sadd.s32 1, %s5638_s6   ;;  %s5638_s6 = sphi %s5636_s6, %s3999_s6   ;;  %s5634_s5 = sphi %s5632_s5, %s5633_s5   ;;  %s5630_s30 = sphi %s5628_s30, %s4016_s30   ;;  %s5626_s29 = sphi %s7251_s29, %s4017_s29  }
 0x281   : >> { %4006 = vst [vmem:[%s5626_s29] sm:$0xff] %v4005_v55  ;;  %4008 = vst [vmem:[%s5626_s29 + $0x8] sm:$0xff] %v4007_v14  ;;  %p4012_p0 = scmp.ge.s32.totalorder %s4011_s15, %s7210_s14  ;;  %p3998_p1 = scmp.ge.s32.totalorder %s3999_s6, %s7210_s14 }
 0x282   : >> { %4010 = vst [vmem:[%s5626_s29 + $0x10] sm:$0xff] %v4009_v29 }
 0x283   : >> { %s7260_s15 = smov (%p4012_p0, %s4011_s15), 0  ;;  %4001 = sbr.rel (!%p3998_p1) target bundleno = 640 (0x280), region = 109 }
 0x284   : >> { %s4014_s7 = smul.u32 24, %s7260_s15  ;;  %s5633_s5 = smov %s7260_s15  }
 0x286   : >> { %s4016_s30 = scalar_lea.vmem %s7214_s27, %s4014_s7 [#allocation2]   ;;  %s4017_s29 = scalar_lea.vmem %s7217_s28, %s4014_s7  }
 0x28a PF: > { %p11_p2 = scmp.ge.s32.totalorder %s5680_s19, 4   ;;  %s7252_s15 = smov %s5602_s16 }
 0x28b   : > { %s7253_s16 = smov %s5688_s22  ;;  %s7254_s17 = smov %s5680_s19 }
 0x28c   :  { %13 = sbr.rel (!%p11_p2) target bundleno = 2 (0x2), region = 120 }

</bundles_post_ra>
